<compile_context>
chip_gen: v5e
topology: v5e:2x2
jax: 0.10.0
libtpu: 0.0.40
codegen_flags: <defaults>
</compile_context>

<pallas_src>
import functools

import jax
import jax.numpy as jnp
from jax.experimental import pallas as pl
from jax.experimental.pallas import tpu as pltpu

CHANNEL = 256  # as in the PyTorch module


# ----------------------------------------------------------------------------
# Fused GEMM + per-channel affine (+ ReLU) Pallas kernel
# ----------------------------------------------------------------------------
def _gemm_affine_kernel(x_ref, w_ref, scale_ref, shift_ref, o_ref, acc_ref,
                        *, apply_relu):
    # grid = (N-tiles [parallel], K-tiles [arbitrary/reduction])
    k = pl.program_id(1)

    @pl.when(k == 0)
    def _():
        acc_ref[...] = jnp.zeros_like(acc_ref)

    acc_ref[...] += jnp.dot(x_ref[...], w_ref[...],
                            preferred_element_type=jnp.float32)

    @pl.when(k == pl.num_programs(1) - 1)
    def _():
        y = acc_ref[...] * scale_ref[...] + shift_ref[...]   # f32 epilogue
        if apply_relu:
            y = jnp.maximum(y, 0.0)
        o_ref[...] = y.astype(o_ref.dtype)


def _pick_tn(n):
    """Fat, lane-dense N tiles; keep >=2 parallel steps for dual-TC chips."""
    if n % 256 == 0:
        return n // 2          # 128/256/512 for N = 256/512/1024 -> 2 steps
    if n % 128 == 0:
        return 128
    return n


def _pick_tk(m, k, tn, in_itemsize, out_itemsize, budget=24 * 1024 * 1024):
    """Only tile K when the untiled blocks would stress scoped VMEM."""
    def vmem_bytes(tk):
        return (2 * (m * tk + tk * tn) * in_itemsize       # double-buffered ins
                + m * tn * 4                                # f32 accumulator
                + 2 * m * tn * out_itemsize                 # double-buffered out
                + 4 * tn * 4)                               # scale/shift
    if k % 128 != 0 or vmem_bytes(k) <= budget:
        return k
    for tk in range(k - 128, 127, -128):
        if k % tk == 0 and vmem_bytes(tk) <= budget:
            return tk
    return 128


def gemm_affine(x, w_t, scale, shift, *, apply_relu, out_dtype=jnp.float32):
    """(x @ w_t) * scale + shift [+ ReLU], tiled over N (parallel) and K (red.)."""
    M, K = x.shape
    K2, N = w_t.shape
    assert K == K2
    tn = _pick_tn(N)
    tk = _pick_tk(M, K, tn, x.dtype.itemsize, jnp.dtype(out_dtype).itemsize)
    grid = (N // tn, K // tk)

    cost = pl.CostEstimate(
        flops=2 * M * K * N,
        transcendentals=0,
        bytes_accessed=(M * K * x.dtype.itemsize
                        + K * N * w_t.dtype.itemsize
                        + M * N * jnp.dtype(out_dtype).itemsize
                        + 2 * N * 4),
    )

    kernel = functools.partial(_gemm_affine_kernel, apply_relu=apply_relu)
    return pl.pallas_call(
        kernel,
        out_shape=jax.ShapeDtypeStruct((M, N), out_dtype),
        grid=grid,
        in_specs=[
            pl.BlockSpec((M, tk), lambda j, k: (0, k)),
            pl.BlockSpec((tk, tn), lambda j, k: (k, j)),
            pl.BlockSpec((1, tn), lambda j, k: (0, j)),
            pl.BlockSpec((1, tn), lambda j, k: (0, j)),
        ],
        out_specs=pl.BlockSpec((M, tn), lambda j, k: (0, j)),
        scratch_shapes=[pltpu.VMEM((M, tn), jnp.float32)],
        compiler_params=pltpu.CompilerParams(
            dimension_semantics=("parallel", "arbitrary")),
        cost_estimate=cost,
    )(x, w_t,
      scale.reshape(1, N).astype(jnp.float32),
      shift.reshape(1, N).astype(jnp.float32))


# ----------------------------------------------------------------------------
# Plain-JAX glue: channels-last im2col, BN folding, param init
# ----------------------------------------------------------------------------
def im2col_nhwc(x, kh, kw, stride):
    """x: (B, H, W, C) -> patches (B*OH*OW, KH*KW*C), feature order (kh, kw, C)."""
    B, H, W, C = x.shape
    oh = (H - kh) // stride + 1
    ow = (W - kw) // stride + 1
    cols = []
    for i in range(kh):
        for j in range(kw):
            cols.append(x[:, i:i + stride * oh:stride,
                          j:j + stride * ow:stride, :])
    p = jnp.concatenate(cols, axis=-1)            # lane-axis concat, no transpose
    return p.reshape(B * oh * ow, kh * kw * C), oh, ow


def fold_bn(gamma, beta, mean, var, conv_bias, eps=1e-5):
    # eval-mode BatchNorm folded into a per-channel affine (conv bias included)
    scale = gamma / jnp.sqrt(var + eps)
    shift = beta - mean * scale + conv_bias * scale
    return scale, shift


def init_params(key):
    c1, c2, c3 = CHANNEL, CHANNEL * 2, CHANNEL * 4
    ks = jax.random.split(key, 8)
    p = {}
    # conv1: (256, 3, 7, 7)  conv2: (512, 256, 3, 3)  conv3: (1024, 512, 2, 2)
    p["w1"] = 0.05 * jax.random.normal(ks[0], (c1, 3, 7, 7), jnp.float32)
    p["b1"] = 0.01 * jax.random.normal(ks[1], (c1,), jnp.float32)
    p["w2"] = 0.05 * jax.random.normal(ks[2], (c2, c1, 3, 3), jnp.float32)
    p["b2"] = 0.01 * jax.random.normal(ks[3], (c2,), jnp.float32)
    p["w3"] = 0.05 * jax.random.normal(ks[4], (c3, c2, 2, 2), jnp.float32)
    p["b3"] = 0.01 * jax.random.normal(ks[5], (c3,), jnp.float32)
    # BatchNorm params at PyTorch defaults: gamma=1, beta=0, mean=0, var=1
    for name, c in (("bn1", c1), ("bn2", c2), ("bn3", c3)):
        p[name] = dict(gamma=jnp.ones((c,), jnp.float32),
                       beta=jnp.zeros((c,), jnp.float32),
                       mean=jnp.zeros((c,), jnp.float32),
                       var=jnp.ones((c,), jnp.float32))
    # classifier: Linear(1024, 10)
    p["wfc"] = 0.05 * jax.random.normal(ks[6], (10, c3), jnp.float32)
    p["bfc"] = 0.01 * jax.random.normal(ks[7], (10,), jnp.float32)
    return p


# ----------------------------------------------------------------------------
# Forward pass
# ----------------------------------------------------------------------------
def forward(params, x):
    """x: (B, 3, H, W) NCHW (PyTorch layout) -> logits (B, 10)."""
    B = x.shape[0]
    # One-time NCHW -> NHWC relayout; keep bf16 activations in HBM after that.
    x = x.transpose(0, 2, 3, 1).astype(jnp.bfloat16)

    conv_cfg = [
        ("w1", "b1", "bn1", 7, 5),   # Conv2d(3,   256, 7, 5) + BN + ReLU
        ("w2", "b2", "bn2", 3, 3),   # Conv2d(256, 512, 3, 3) + BN + ReLU
        ("w3", "b3", "bn3", 2, 1),   # Conv2d(512, 1024, 2, 1) + BN + ReLU
    ]
    for wname, bname, bnname, k, s in conv_cfg:
        w = params[wname]
        cout = w.shape[0]
        patches, oh, ow = im2col_nhwc(x, k, k, s)
        # (C_out, C_in, KH, KW) -> (KH*KW*C_in, C_out), matching patch order
        w_t = w.transpose(2, 3, 1, 0).reshape(-1, cout).astype(jnp.bfloat16)
        bn = params[bnname]
        scale, shift = fold_bn(bn["gamma"], bn["beta"], bn["mean"], bn["var"],
                               params[bname])
        y = gemm_affine(patches, w_t, scale, shift,
                        apply_relu=True, out_dtype=jnp.bfloat16)
        x = y.reshape(B, oh, ow, cout)            # stays channels-last

    # AdaptiveAvgPool2d((1,1)) + flatten: trivial spatial mean, plain JAX.
    pooled = jnp.mean(x.astype(jnp.float32), axis=(1, 2)).astype(jnp.bfloat16)

    # classifier Linear(1024, 10): pad N 10 -> 128 for lane-dense stores,
    # reuse the fused GEMM (scale=1, shift=bias, no ReLU), slice back to 10.
    n_cls = params["wfc"].shape[0]                # 10
    n_pad = 128
    wfc_pad = jnp.pad(params["wfc"].T, ((0, 0), (0, n_pad - n_cls))
                      ).astype(jnp.bfloat16)      # (1024, 128)
    bfc_pad = jnp.pad(params["bfc"], (0, n_pad - n_cls))
    logits = gemm_affine(pooled, wfc_pad,
                         jnp.ones((n_pad,), jnp.float32), bfc_pad,
                         apply_relu=False, out_dtype=jnp.float32)
    return logits[:, :n_cls]


if __name__ == "__main__":
    key = jax.random.PRNGKey(0)
    pkey, xkey = jax.random.split(key)
    params = init_params(pkey)
    # Smallest spatial size that survives the conv stack: 32x32
    # 32 -(k7,s5)-> 6 -(k3,s3)-> 2 -(k2,s1)-> 1
    x = jax.random.normal(xkey, (2, 3, 32, 32), jnp.float32)

    out = jax.jit(forward)(params, x)
    out = jax.block_until_ready(out)
    assert out.shape == (2, 10) and out.dtype == jnp.float32
    print("KERNEL_OK")
</pallas_src>

<mosaic_0001>
module attributes {stable_mosaic.version = 11 : i64} {
  func.func @_gemm_affine_kernel(%arg0: i32, %arg1: i32, %arg2: memref<72x147xbf16, #tpu.memory_space<vmem>>, %arg3: memref<147x128xbf16, #tpu.memory_space<vmem>>, %arg4: memref<1x128xf32, #tpu.memory_space<vmem>>, %arg5: memref<1x128xf32, #tpu.memory_space<vmem>>, %arg6: memref<72x128xbf16, #tpu.memory_space<vmem>>, %arg7: memref<72x128xf32, #tpu.memory_space<vmem>>) attributes {dimension_semantics = [#tpu.dimension_semantics<parallel>, #tpu.dimension_semantics<arbitrary>], iteration_bounds = array<i64: 2, 1>, scalar_prefetch = 0 : i64, scratch_operands = 1 : i64, tpu.core_type = #tpu.core_type<tc>, window_params = [{transform_indices = @transform_0, window_bounds = array<i64: 72, 147>}, {transform_indices = @transform_1, window_bounds = array<i64: 147, 128>}, {transform_indices = @transform_2, window_bounds = array<i64: 1, 128>}, {transform_indices = @transform_3, window_bounds = array<i64: 1, 128>}, {transform_indices = @transform_4, window_bounds = array<i64: 72, 128>}]} {
    %c0_i32 = arith.constant 0 : i32
    %0 = arith.cmpi eq, %arg1, %c0_i32 : i32
    %1 = arith.extui %0 : i1 to i32
    %c0_i32_0 = arith.constant 0 : i32
    %2 = arith.cmpi ne, %1, %c0_i32_0 : i32
    scf.if %2 {
      %cst_10 = arith.constant 0.000000e+00 : f32
      %12 = vector.broadcast %cst_10 : f32 to vector<72x128xf32>
      %c0_11 = arith.constant 0 : index
      %c0_12 = arith.constant 0 : index
      %13 = vector.load %arg7[%c0_11, %c0_12] : memref<72x128xf32, #tpu.memory_space<vmem>>, vector<72x128xf32>
      tpu.vector_store %arg7[%c0_11, %c0_12], %12 {strides = array<i32>} : memref<72x128xf32, #tpu.memory_space<vmem>>, vector<72x128xf32>,
    } else {
    }
    %c0 = arith.constant 0 : index
    %c0_1 = arith.constant 0 : index
    %3 = vector.load %arg7[%c0, %c0_1] : memref<72x128xf32, #tpu.memory_space<vmem>>, vector<72x128xf32>
    %c0_2 = arith.constant 0 : index
    %c0_3 = arith.constant 0 : index
    %4 = vector.load %arg2[%c0_2, %c0_3] : memref<72x147xbf16, #tpu.memory_space<vmem>>, vector<72x147xbf16>
    %c0_4 = arith.constant 0 : index
    %c0_5 = arith.constant 0 : index
    %5 = vector.load %arg3[%c0_4, %c0_5] : memref<147x128xbf16, #tpu.memory_space<vmem>>, vector<147x128xbf16>
    %cst = arith.constant dense<0.000000e+00> : vector<72x128xf32>
    %6 = tpu.matmul %4, %5, %cst {dimension_numbers = #tpu.dot_dimension_numbers<[1], [0], [0], [1], [0, 0, 1, 1], [], []>} : vector<72x147xbf16>, vector<147x128xbf16>, vector<72x128xf32> -> vector<72x128xf32>
    %7 = arith.addf %3, %6 : vector<72x128xf32>
    %c0_6 = arith.constant 0 : index
    %c0_7 = arith.constant 0 : index
    %8 = vector.load %arg7[%c0_6, %c0_7] : memref<72x128xf32, #tpu.memory_space<vmem>>, vector<72x128xf32>
    tpu.vector_store %arg7[%c0_6, %c0_7], %7 {strides = array<i32>} : memref<72x128xf32, #tpu.memory_space<vmem>>, vector<72x128xf32>,
    %c0_i32_8 = arith.constant 0 : i32
    %9 = arith.cmpi eq, %arg1, %c0_i32_8 : i32
    %10 = arith.extui %9 : i1 to i32
    %c0_i32_9 = arith.constant 0 : i32
    %11 = arith.cmpi ne, %10, %c0_i32_9 : i32
    scf.if %11 {
      %c0_10 = arith.constant 0 : index
      %c0_11 = arith.constant 0 : index
      %12 = vector.load %arg7[%c0_10, %c0_11] : memref<72x128xf32, #tpu.memory_space<vmem>>, vector<72x128xf32>
      %c0_12 = arith.constant 0 : index
      %c0_13 = arith.constant 0 : index
      %13 = vector.load %arg4[%c0_12, %c0_13] : memref<1x128xf32, #tpu.memory_space<vmem>>, vector<1x128xf32>
      %14 = vector.broadcast %13 : vector<1x128xf32> to vector<72x128xf32>
      %15 = arith.mulf %12, %14 : vector<72x128xf32>
      %c0_14 = arith.constant 0 : index
      %c0_15 = arith.constant 0 : index
      %16 = vector.load %arg5[%c0_14, %c0_15] : memref<1x128xf32, #tpu.memory_space<vmem>>, vector<1x128xf32>
      %17 = vector.broadcast %16 : vector<1x128xf32> to vector<72x128xf32>
      %18 = arith.addf %15, %17 : vector<72x128xf32>
      %cst_16 = arith.constant 0.000000e+00 : f32
      %19 = vector.broadcast %cst_16 : f32 to vector<72x128xf32>
      %20 = arith.maximumf %18, %19 : vector<72x128xf32>
      %21 = arith.truncf %20 : vector<72x128xf32> to vector<72x128xbf16>
      %c0_17 = arith.constant 0 : index
      %c0_18 = arith.constant 0 : index
      %22 = vector.load %arg6[%c0_17, %c0_18] : memref<72x128xbf16, #tpu.memory_space<vmem>>, vector<72x128xbf16>
      tpu.vector_store %arg6[%c0_17, %c0_18], %21 {strides = array<i32>} : memref<72x128xbf16, #tpu.memory_space<vmem>>, vector<72x128xbf16>,
    } else {
    }
    return
  }
  func.func @transform_0(%arg0: i32, %arg1: i32) -> (i32, i32) {
    %c0_i32 = arith.constant 0 : i32
    %c0_i32_0 = arith.constant 0 : i32
    return %c0_i32, %arg1 : i32, i32
  }
  func.func @transform_1(%arg0: i32, %arg1: i32) -> (i32, i32) {
    %c0_i32 = arith.constant 0 : i32
    return %arg1, %arg0 : i32, i32
  }
  func.func @transform_2(%arg0: i32, %arg1: i32) -> (i32, i32) {
    %c0_i32 = arith.constant 0 : i32
    %c0_i32_0 = arith.constant 0 : i32
    return %c0_i32, %arg0 : i32, i32
  }
  func.func @transform_3(%arg0: i32, %arg1: i32) -> (i32, i32) {
    %c0_i32 = arith.constant 0 : i32
    %c0_i32_0 = arith.constant 0 : i32
    return %c0_i32, %arg0 : i32, i32
  }
  func.func @transform_4(%arg0: i32, %arg1: i32) -> (i32, i32) {
    %c0_i32 = arith.constant 0 : i32
    %c0_i32_0 = arith.constant 0 : i32
    return %c0_i32, %arg0 : i32, i32
  }
}

module attributes {stable_mosaic.version = 11 : i64} {
  func.func @_gemm_affine_kernel(%arg0: i32, %arg1: i32, %arg2: memref<8x2304xbf16, #tpu.memory_space<vmem>>, %arg3: memref<2304x256xbf16, #tpu.memory_space<vmem>>, %arg4: memref<1x256xf32, #tpu.memory_space<vmem>>, %arg5: memref<1x256xf32, #tpu.memory_space<vmem>>, %arg6: memref<8x256xbf16, #tpu.memory_space<vmem>>, %arg7: memref<8x256xf32, #tpu.memory_space<vmem>>) attributes {dimension_semantics = [#tpu.dimension_semantics<parallel>, #tpu.dimension_semantics<arbitrary>], iteration_bounds = array<i64: 2, 1>, scalar_prefetch = 0 : i64, scratch_operands = 1 : i64, tpu.core_type = #tpu.core_type<tc>, window_params = [{transform_indices = @transform_0, window_bounds = array<i64: 8, 2304>}, {transform_indices = @transform_1, window_bounds = array<i64: 2304, 256>}, {transform_indices = @transform_2, window_bounds = array<i64: 1, 256>}, {transform_indices = @transform_3, window_bounds = array<i64: 1, 256>}, {transform_indices = @transform_4, window_bounds = array<i64: 8, 256>}]} {
    %c0_i32 = arith.constant 0 : i32
    %0 = arith.cmpi eq, %arg1, %c0_i32 : i32
    %1 = arith.extui %0 : i1 to i32
    %c0_i32_0 = arith.constant 0 : i32
    %2 = arith.cmpi ne, %1, %c0_i32_0 : i32
    scf.if %2 {
      %cst_10 = arith.constant 0.000000e+00 : f32
      %12 = vector.broadcast %cst_10 : f32 to vector<8x256xf32>
      %c0_11 = arith.constant 0 : index
      %c0_12 = arith.constant 0 : index
      %13 = vector.load %arg7[%c0_11, %c0_12] : memref<8x256xf32, #tpu.memory_space<vmem>>, vector<8x256xf32>
      tpu.vector_store %arg7[%c0_11, %c0_12], %12 {strides = array<i32>} : memref<8x256xf32, #tpu.memory_space<vmem>>, vector<8x256xf32>,
    } else {
    }
    %c0 = arith.constant 0 : index
    %c0_1 = arith.constant 0 : index
    %3 = vector.load %arg7[%c0, %c0_1] : memref<8x256xf32, #tpu.memory_space<vmem>>, vector<8x256xf32>
    %c0_2 = arith.constant 0 : index
    %c0_3 = arith.constant 0 : index
    %4 = vector.load %arg2[%c0_2, %c0_3] : memref<8x2304xbf16, #tpu.memory_space<vmem>>, vector<8x2304xbf16>
    %c0_4 = arith.constant 0 : index
    %c0_5 = arith.constant 0 : index
    %5 = vector.load %arg3[%c0_4, %c0_5] : memref<2304x256xbf16, #tpu.memory_space<vmem>>, vector<2304x256xbf16>
    %cst = arith.constant dense<0.000000e+00> : vector<8x256xf32>
    %6 = tpu.matmul %4, %5, %cst {dimension_numbers = #tpu.dot_dimension_numbers<[1], [0], [0], [1], [0, 0, 1, 1], [], []>} : vector<8x2304xbf16>, vector<2304x256xbf16>, vector<8x256xf32> -> vector<8x256xf32>
    %7 = arith.addf %3, %6 : vector<8x256xf32>
    %c0_6 = arith.constant 0 : index
    %c0_7 = arith.constant 0 : index
    %8 = vector.load %arg7[%c0_6, %c0_7] : memref<8x256xf32, #tpu.memory_space<vmem>>, vector<8x256xf32>
    tpu.vector_store %arg7[%c0_6, %c0_7], %7 {strides = array<i32>} : memref<8x256xf32, #tpu.memory_space<vmem>>, vector<8x256xf32>,
    %c0_i32_8 = arith.constant 0 : i32
    %9 = arith.cmpi eq, %arg1, %c0_i32_8 : i32
    %10 = arith.extui %9 : i1 to i32
    %c0_i32_9 = arith.constant 0 : i32
    %11 = arith.cmpi ne, %10, %c0_i32_9 : i32
    scf.if %11 {
      %c0_10 = arith.constant 0 : index
      %c0_11 = arith.constant 0 : index
      %12 = vector.load %arg7[%c0_10, %c0_11] : memref<8x256xf32, #tpu.memory_space<vmem>>, vector<8x256xf32>
      %c0_12 = arith.constant 0 : index
      %c0_13 = arith.constant 0 : index
      %13 = vector.load %arg4[%c0_12, %c0_13] : memref<1x256xf32, #tpu.memory_space<vmem>>, vector<1x256xf32>
      %14 = vector.broadcast %13 : vector<1x256xf32> to vector<8x256xf32>
      %15 = arith.mulf %12, %14 : vector<8x256xf32>
      %c0_14 = arith.constant 0 : index
      %c0_15 = arith.constant 0 : index
      %16 = vector.load %arg5[%c0_14, %c0_15] : memref<1x256xf32, #tpu.memory_space<vmem>>, vector<1x256xf32>
      %17 = vector.broadcast %16 : vector<1x256xf32> to vector<8x256xf32>
      %18 = arith.addf %15, %17 : vector<8x256xf32>
      %cst_16 = arith.constant 0.000000e+00 : f32
      %19 = vector.broadcast %cst_16 : f32 to vector<8x256xf32>
      %20 = arith.maximumf %18, %19 : vector<8x256xf32>
      %21 = arith.truncf %20 : vector<8x256xf32> to vector<8x256xbf16>
      %c0_17 = arith.constant 0 : index
      %c0_18 = arith.constant 0 : index
      %22 = vector.load %arg6[%c0_17, %c0_18] : memref<8x256xbf16, #tpu.memory_space<vmem>>, vector<8x256xbf16>
      tpu.vector_store %arg6[%c0_17, %c0_18], %21 {strides = array<i32>} : memref<8x256xbf16, #tpu.memory_space<vmem>>, vector<8x256xbf16>,
    } else {
    }
    return
  }
  func.func @transform_0(%arg0: i32, %arg1: i32) -> (i32, i32) {
    %c0_i32 = arith.constant 0 : i32
    %c0_i32_0 = arith.constant 0 : i32
    return %c0_i32, %arg1 : i32, i32
  }
  func.func @transform_1(%arg0: i32, %arg1: i32) -> (i32, i32) {
    %c0_i32 = arith.constant 0 : i32
    return %arg1, %arg0 : i32, i32
  }
  func.func @transform_2(%arg0: i32, %arg1: i32) -> (i32, i32) {
    %c0_i32 = arith.constant 0 : i32
    %c0_i32_0 = arith.constant 0 : i32
    return %c0_i32, %arg0 : i32, i32
  }
  func.func @transform_3(%arg0: i32, %arg1: i32) -> (i32, i32) {
    %c0_i32 = arith.constant 0 : i32
    %c0_i32_0 = arith.constant 0 : i32
    return %c0_i32, %arg0 : i32, i32
  }
  func.func @transform_4(%arg0: i32, %arg1: i32) -> (i32, i32) {
    %c0_i32 = arith.constant 0 : i32
    %c0_i32_0 = arith.constant 0 : i32
    return %c0_i32, %arg0 : i32, i32
  }
}

module attributes {stable_mosaic.version = 11 : i64} {
  func.func @_gemm_affine_kernel(%arg0: i32, %arg1: i32, %arg2: memref<2x2048xbf16, #tpu.memory_space<vmem>>, %arg3: memref<2048x512xbf16, #tpu.memory_space<vmem>>, %arg4: memref<1x512xf32, #tpu.memory_space<vmem>>, %arg5: memref<1x512xf32, #tpu.memory_space<vmem>>, %arg6: memref<2x512xbf16, #tpu.memory_space<vmem>>, %arg7: memref<2x512xf32, #tpu.memory_space<vmem>>) attributes {dimension_semantics = [#tpu.dimension_semantics<parallel>, #tpu.dimension_semantics<arbitrary>], iteration_bounds = array<i64: 2, 1>, scalar_prefetch = 0 : i64, scratch_operands = 1 : i64, tpu.core_type = #tpu.core_type<tc>, window_params = [{transform_indices = @transform_0, window_bounds = array<i64: 2, 2048>}, {transform_indices = @transform_1, window_bounds = array<i64: 2048, 512>}, {transform_indices = @transform_2, window_bounds = array<i64: 1, 512>}, {transform_indices = @transform_3, window_bounds = array<i64: 1, 512>}, {transform_indices = @transform_4, window_bounds = array<i64: 2, 512>}]} {
    %c0_i32 = arith.constant 0 : i32
    %0 = arith.cmpi eq, %arg1, %c0_i32 : i32
    %1 = arith.extui %0 : i1 to i32
    %c0_i32_0 = arith.constant 0 : i32
    %2 = arith.cmpi ne, %1, %c0_i32_0 : i32
    scf.if %2 {
      %cst_10 = arith.constant 0.000000e+00 : f32
      %12 = vector.broadcast %cst_10 : f32 to vector<2x512xf32>
      %c0_11 = arith.constant 0 : index
      %c0_12 = arith.constant 0 : index
      %13 = vector.load %arg7[%c0_11, %c0_12] : memref<2x512xf32, #tpu.memory_space<vmem>>, vector<2x512xf32>
      tpu.vector_store %arg7[%c0_11, %c0_12], %12 {strides = array<i32>} : memref<2x512xf32, #tpu.memory_space<vmem>>, vector<2x512xf32>,
    } else {
    }
    %c0 = arith.constant 0 : index
    %c0_1 = arith.constant 0 : index
    %3 = vector.load %arg7[%c0, %c0_1] : memref<2x512xf32, #tpu.memory_space<vmem>>, vector<2x512xf32>
    %c0_2 = arith.constant 0 : index
    %c0_3 = arith.constant 0 : index
    %4 = vector.load %arg2[%c0_2, %c0_3] : memref<2x2048xbf16, #tpu.memory_space<vmem>>, vector<2x2048xbf16>
    %c0_4 = arith.constant 0 : index
    %c0_5 = arith.constant 0 : index
    %5 = vector.load %arg3[%c0_4, %c0_5] : memref<2048x512xbf16, #tpu.memory_space<vmem>>, vector<2048x512xbf16>
    %cst = arith.constant dense<0.000000e+00> : vector<2x512xf32>
    %6 = tpu.matmul %4, %5, %cst {dimension_numbers = #tpu.dot_dimension_numbers<[1], [0], [0], [1], [0, 0, 1, 1], [], []>} : vector<2x2048xbf16>, vector<2048x512xbf16>, vector<2x512xf32> -> vector<2x512xf32>
    %7 = arith.addf %3, %6 : vector<2x512xf32>
    %c0_6 = arith.constant 0 : index
    %c0_7 = arith.constant 0 : index
    %8 = vector.load %arg7[%c0_6, %c0_7] : memref<2x512xf32, #tpu.memory_space<vmem>>, vector<2x512xf32>
    tpu.vector_store %arg7[%c0_6, %c0_7], %7 {strides = array<i32>} : memref<2x512xf32, #tpu.memory_space<vmem>>, vector<2x512xf32>,
    %c0_i32_8 = arith.constant 0 : i32
    %9 = arith.cmpi eq, %arg1, %c0_i32_8 : i32
    %10 = arith.extui %9 : i1 to i32
    %c0_i32_9 = arith.constant 0 : i32
    %11 = arith.cmpi ne, %10, %c0_i32_9 : i32
    scf.if %11 {
      %c0_10 = arith.constant 0 : index
      %c0_11 = arith.constant 0 : index
      %12 = vector.load %arg7[%c0_10, %c0_11] : memref<2x512xf32, #tpu.memory_space<vmem>>, vector<2x512xf32>
      %c0_12 = arith.constant 0 : index
      %c0_13 = arith.constant 0 : index
      %13 = vector.load %arg4[%c0_12, %c0_13] : memref<1x512xf32, #tpu.memory_space<vmem>>, vector<1x512xf32>
      %14 = vector.broadcast %13 : vector<1x512xf32> to vector<2x512xf32>
      %15 = arith.mulf %12, %14 : vector<2x512xf32>
      %c0_14 = arith.constant 0 : index
      %c0_15 = arith.constant 0 : index
      %16 = vector.load %arg5[%c0_14, %c0_15] : memref<1x512xf32, #tpu.memory_space<vmem>>, vector<1x512xf32>
      %17 = vector.broadcast %16 : vector<1x512xf32> to vector<2x512xf32>
      %18 = arith.addf %15, %17 : vector<2x512xf32>
      %cst_16 = arith.constant 0.000000e+00 : f32
      %19 = vector.broadcast %cst_16 : f32 to vector<2x512xf32>
      %20 = arith.maximumf %18, %19 : vector<2x512xf32>
      %21 = arith.truncf %20 : vector<2x512xf32> to vector<2x512xbf16>
      %c0_17 = arith.constant 0 : index
      %c0_18 = arith.constant 0 : index
      %22 = vector.load %arg6[%c0_17, %c0_18] : memref<2x512xbf16, #tpu.memory_space<vmem>>, vector<2x512xbf16>
      tpu.vector_store %arg6[%c0_17, %c0_18], %21 {strides = array<i32>} : memref<2x512xbf16, #tpu.memory_space<vmem>>, vector<2x512xbf16>,
    } else {
    }
    return
  }
  func.func @transform_0(%arg0: i32, %arg1: i32) -> (i32, i32) {
    %c0_i32 = arith.constant 0 : i32
    %c0_i32_0 = arith.constant 0 : i32
    return %c0_i32, %arg1 : i32, i32
  }
  func.func @transform_1(%arg0: i32, %arg1: i32) -> (i32, i32) {
    %c0_i32 = arith.constant 0 : i32
    return %arg1, %arg0 : i32, i32
  }
  func.func @transform_2(%arg0: i32, %arg1: i32) -> (i32, i32) {
    %c0_i32 = arith.constant 0 : i32
    %c0_i32_0 = arith.constant 0 : i32
    return %c0_i32, %arg0 : i32, i32
  }
  func.func @transform_3(%arg0: i32, %arg1: i32) -> (i32, i32) {
    %c0_i32 = arith.constant 0 : i32
    %c0_i32_0 = arith.constant 0 : i32
    return %c0_i32, %arg0 : i32, i32
  }
  func.func @transform_4(%arg0: i32, %arg1: i32) -> (i32, i32) {
    %c0_i32 = arith.constant 0 : i32
    %c0_i32_0 = arith.constant 0 : i32
    return %c0_i32, %arg0 : i32, i32
  }
}

module attributes {stable_mosaic.version = 11 : i64} {
  func.func @_gemm_affine_kernel(%arg0: i32, %arg1: i32, %arg2: memref<2x1024xbf16, #tpu.memory_space<vmem>>, %arg3: memref<1024x128xbf16, #tpu.memory_space<vmem>>, %arg4: memref<1x128xf32, #tpu.memory_space<vmem>>, %arg5: memref<1x128xf32, #tpu.memory_space<vmem>>, %arg6: memref<2x128xf32, #tpu.memory_space<vmem>>, %arg7: memref<2x128xf32, #tpu.memory_space<vmem>>) attributes {dimension_semantics = [#tpu.dimension_semantics<parallel>, #tpu.dimension_semantics<arbitrary>], iteration_bounds = array<i64: 1, 1>, scalar_prefetch = 0 : i64, scratch_operands = 1 : i64, tpu.core_type = #tpu.core_type<tc>, window_params = [{transform_indices = @transform_0, window_bounds = array<i64: 2, 1024>}, {transform_indices = @transform_1, window_bounds = array<i64: 1024, 128>}, {transform_indices = @transform_2, window_bounds = array<i64: 1, 128>}, {transform_indices = @transform_3, window_bounds = array<i64: 1, 128>}, {transform_indices = @transform_4, window_bounds = array<i64: 2, 128>}]} {
    %c0_i32 = arith.constant 0 : i32
    %0 = arith.cmpi eq, %arg1, %c0_i32 : i32
    %1 = arith.extui %0 : i1 to i32
    %c0_i32_0 = arith.constant 0 : i32
    %2 = arith.cmpi ne, %1, %c0_i32_0 : i32
    scf.if %2 {
      %cst_10 = arith.constant 0.000000e+00 : f32
      %12 = vector.broadcast %cst_10 : f32 to vector<2x128xf32>
      %c0_11 = arith.constant 0 : index
      %c0_12 = arith.constant 0 : index
      %13 = vector.load %arg7[%c0_11, %c0_12] : memref<2x128xf32, #tpu.memory_space<vmem>>, vector<2x128xf32>
      tpu.vector_store %arg7[%c0_11, %c0_12], %12 {strides = array<i32>} : memref<2x128xf32, #tpu.memory_space<vmem>>, vector<2x128xf32>,
    } else {
    }
    %c0 = arith.constant 0 : index
    %c0_1 = arith.constant 0 : index
    %3 = vector.load %arg7[%c0, %c0_1] : memref<2x128xf32, #tpu.memory_space<vmem>>, vector<2x128xf32>
    %c0_2 = arith.constant 0 : index
    %c0_3 = arith.constant 0 : index
    %4 = vector.load %arg2[%c0_2, %c0_3] : memref<2x1024xbf16, #tpu.memory_space<vmem>>, vector<2x1024xbf16>
    %c0_4 = arith.constant 0 : index
    %c0_5 = arith.constant 0 : index
    %5 = vector.load %arg3[%c0_4, %c0_5] : memref<1024x128xbf16, #tpu.memory_space<vmem>>, vector<1024x128xbf16>
    %cst = arith.constant dense<0.000000e+00> : vector<2x128xf32>
    %6 = tpu.matmul %4, %5, %cst {dimension_numbers = #tpu.dot_dimension_numbers<[1], [0], [0], [1], [0, 0, 1, 1], [], []>} : vector<2x1024xbf16>, vector<1024x128xbf16>, vector<2x128xf32> -> vector<2x128xf32>
    %7 = arith.addf %3, %6 : vector<2x128xf32>
    %c0_6 = arith.constant 0 : index
    %c0_7 = arith.constant 0 : index
    %8 = vector.load %arg7[%c0_6, %c0_7] : memref<2x128xf32, #tpu.memory_space<vmem>>, vector<2x128xf32>
    tpu.vector_store %arg7[%c0_6, %c0_7], %7 {strides = array<i32>} : memref<2x128xf32, #tpu.memory_space<vmem>>, vector<2x128xf32>,
    %c0_i32_8 = arith.constant 0 : i32
    %9 = arith.cmpi eq, %arg1, %c0_i32_8 : i32
    %10 = arith.extui %9 : i1 to i32
    %c0_i32_9 = arith.constant 0 : i32
    %11 = arith.cmpi ne, %10, %c0_i32_9 : i32
    scf.if %11 {
      %c0_10 = arith.constant 0 : index
      %c0_11 = arith.constant 0 : index
      %12 = vector.load %arg7[%c0_10, %c0_11] : memref<2x128xf32, #tpu.memory_space<vmem>>, vector<2x128xf32>
      %c0_12 = arith.constant 0 : index
      %c0_13 = arith.constant 0 : index
      %13 = vector.load %arg4[%c0_12, %c0_13] : memref<1x128xf32, #tpu.memory_space<vmem>>, vector<1x128xf32>
      %14 = vector.broadcast %13 : vector<1x128xf32> to vector<2x128xf32>
      %15 = arith.mulf %12, %14 : vector<2x128xf32>
      %c0_14 = arith.constant 0 : index
      %c0_15 = arith.constant 0 : index
      %16 = vector.load %arg5[%c0_14, %c0_15] : memref<1x128xf32, #tpu.memory_space<vmem>>, vector<1x128xf32>
      %17 = vector.broadcast %16 : vector<1x128xf32> to vector<2x128xf32>
      %18 = arith.addf %15, %17 : vector<2x128xf32>
      %c0_16 = arith.constant 0 : index
      %c0_17 = arith.constant 0 : index
      %19 = vector.load %arg6[%c0_16, %c0_17] : memref<2x128xf32, #tpu.memory_space<vmem>>, vector<2x128xf32>
      tpu.vector_store %arg6[%c0_16, %c0_17], %18 {strides = array<i32>} : memref<2x128xf32, #tpu.memory_space<vmem>>, vector<2x128xf32>,
    } else {
    }
    return
  }
  func.func @transform_0(%arg0: i32, %arg1: i32) -> (i32, i32) {
    %c0_i32 = arith.constant 0 : i32
    %c0_i32_0 = arith.constant 0 : i32
    return %c0_i32, %arg1 : i32, i32
  }
  func.func @transform_1(%arg0: i32, %arg1: i32) -> (i32, i32) {
    %c0_i32 = arith.constant 0 : i32
    return %arg1, %arg0 : i32, i32
  }
  func.func @transform_2(%arg0: i32, %arg1: i32) -> (i32, i32) {
    %c0_i32 = arith.constant 0 : i32
    %c0_i32_0 = arith.constant 0 : i32
    return %c0_i32, %arg0 : i32, i32
  }
  func.func @transform_3(%arg0: i32, %arg1: i32) -> (i32, i32) {
    %c0_i32 = arith.constant 0 : i32
    %c0_i32_0 = arith.constant 0 : i32
    return %c0_i32, %arg0 : i32, i32
  }
  func.func @transform_4(%arg0: i32, %arg1: i32) -> (i32, i32) {
    %c0_i32 = arith.constant 0 : i32
    %c0_i32_0 = arith.constant 0 : i32
    return %c0_i32, %arg0 : i32, i32
  }
}

</mosaic_0001>

<bundles_post_ra>
// kernel: forward.4
= control target key start
LH: loop header
LB: loop body
LE: loop exit
PB: predicated region body
PF: predicated region fallthrough
CT: control target
= control target key end

     0   :  { %s1124_s15 = smov 0   ;;  %s1126_s16 = smov 0   ;;  %s1338_s0 = inlined_call_operand.vmem [shape: bf16[72,147], index: 0, kind: input, shape index: {}]   ;;  %s1339_s1 = inlined_call_operand.vmem [shape: bf16[147,256], index: 1, kind: input, shape index: {}]   ;;  %s1340_s2 = inlined_call_operand.vmem [shape: f32[1,256], index: 2, kind: input, shape index: {}]   ;;  %s1341_s3 = inlined_call_operand.vmem [shape: f32[1,256], index: 3, kind: input, shape index: {}]   ;;  %s1342_s4 = inlined_call_operand.vmem [shape: bf16[72,256], index: 4, kind: output, shape index: {}]  }
   0x1   :  { %s1128_s17 = smov 0   ;;  %s1130_s18 = smov 0  }
   0x2   :  { %s1132_s19 = smov 0  }
   0x3 LB: > { %s26_s20 = sadd.s32 1, %s1092_s18  ;;  %s879_s21 = sadd.s32 4294967295, %s1096_s19   ;;  %s1096_s19 = sphi %s1132_s19, %s14_s19   ;;  %s1092_s18 = sphi %s1130_s18, %s1347_s18   ;;  %s1088_s17 = sphi %s1128_s17, %s1346_s17   ;;  %s1084_s16 = sphi %s1126_s16, %s1345_s16   ;;  %s1080_s15 = sphi %s1124_s15, %s1344_s15  }
   0x4   : > { %p28_p0 = scmp.ge.s32.totalorder %s26_s20, 2  ;;  %p68_p1 = scmp.ne.s32.totalorder %s1084_s16, %s1080_s15 }
   0x5   : > { %p69_p2 = scmp.eq.s32.totalorder %s1096_s19, 0  ;;  %p150_p4 = scmp.eq.s32.totalorder %s879_s21, 1 }
   0x6   : > { %s1349_s20 = smov (%p28_p0, %s26_s20), 0  ;;  %s61_s23 = sadd.s32 1, %s1084_s16 }
   0x7   : > { %p70_p3 = por %p69_p2, %p68_p1  ;;  %s57_s22 = ssub.s32 %s1092_s18, %s1349_s20 }
   0x8   : > { %p59_p5 = scmp.eq.s32.totalorder %s57_s22, 0  ;;  %p1159_p6 = por %p150_p4, %p68_p1 }
   0x9   : > { %p883_p7 = scmp.ge.s32.totalorder %s1096_s19, 2 }
   0xa   : > { %s1164_s25 = scalar_select %p59_p5, %s1084_s16, %s61_s23  }
   0xb   : > { %181 = sbr.rel (%p883_p7) target bundleno = 40 (0x28), region = 20 }
  0x10   : > { %184 = sbr.rel (!%p70_p3) target bundleno = 40 (0x28), region = 24  ;;  %s186_s26 = sand.u32 (%p70_p3), 1, %s1084_s16  }
  0x11   : > { %s884_s27 = sshll.u32 (%p70_p3), %s1092_s18, 2  ;;  %s1012_s28 = smul.u32 (%p70_p3), 76, %s186_s26 }
  0x12   : > { %s1172_s5 = scalar_lea.vmem (%p70_p3), %s1339_s1, %s884_s27 }
  0x13   : > { %v210_v0 = vld [vmem:[%s1172_s5] sm:$0xf] (%p70_p3)  ;;  %v212_v1 = vld [vmem:[%s1172_s5 + $0x8] sm:$0xf] (%p70_p3)  ;;  %v214_v2 = vld [vmem:[%s1172_s5 + $0x10] sm:$0xf] (%p70_p3) }
  0x14   : > { %s1177_s6 = scalar_lea.vmem (%p70_p3), [#allocation3], %s1012_s28  ;;  %v216_v3 = vld [vmem:[%s1172_s5 + $0x18] sm:$0xf] (%p70_p3)  ;;  %v218_v4 = vld [vmem:[%s1172_s5 + $0x20] sm:$0xf] (%p70_p3) }
  0x15   : > { %211 = vst [vmem:[%s1177_s6] sm:$0xf] %v210_v0  ;;  %v220_v5 = vld [vmem:[%s1172_s5 + $0x28] sm:$0xf]  ;;  %v222_v6 = vld [vmem:[%s1172_s5 + $0x30] sm:$0xf] }
  0x16   : > { %213 = vst [vmem:[%s1177_s6 + $0x4] sm:$0xf] %v212_v1  ;;  %v224_v7 = vld [vmem:[%s1172_s5 + $0x38] sm:$0xf]  ;;  %v226_v8 = vld [vmem:[%s1172_s5 + $0x40] sm:$0xf] }
  0x17   : > { %215 = vst [vmem:[%s1177_s6 + $0x8] sm:$0xf] %v214_v2  ;;  %v228_v9 = vld [vmem:[%s1172_s5 + $0x48] sm:$0xf]  ;;  %v230_v10 = vld [vmem:[%s1172_s5 + $0x50] sm:$0xf] }
  0x18   : > { %217 = vst [vmem:[%s1177_s6 + $0xc] sm:$0xf] %v216_v3  ;;  %v232_v11 = vld [vmem:[%s1172_s5 + $0x58] sm:$0xf]  ;;  %v234_v12 = vld [vmem:[%s1172_s5 + $0x60] sm:$0xf] }
  0x19   : > { %219 = vst [vmem:[%s1177_s6 + $0x10] sm:$0xf] %v218_v4  ;;  %v236_v13 = vld [vmem:[%s1172_s5 + $0x68] sm:$0xf]  ;;  %v238_v14 = vld [vmem:[%s1172_s5 + $0x70] sm:$0xf] }
  0x1a   : > { %221 = vst [vmem:[%s1177_s6 + $0x14] sm:$0xf] %v220_v5  ;;  %v240_v15 = vld [vmem:[%s1172_s5 + $0x78] sm:$0xf]  ;;  %v242_v16 = vld [vmem:[%s1172_s5 + $0x80] sm:$0xf] }
  0x1b   : > { %223 = vst [vmem:[%s1177_s6 + $0x18] sm:$0xf] %v222_v6  ;;  %v244_v17 = vld [vmem:[%s1172_s5 + $0x88] sm:$0xf]  ;;  %v246_v18 = vld [vmem:[%s1172_s5 + $0x90] sm:$0xf] }
  0x1c   : > { %225 = vst [vmem:[%s1177_s6 + $0x1c] sm:$0xf] %v224_v7 }
  0x1d   : > { %227 = vst [vmem:[%s1177_s6 + $0x20] sm:$0xf] %v226_v8 }
  0x1e   : > { %229 = vst [vmem:[%s1177_s6 + $0x24] sm:$0xf] %v228_v9 }
  0x1f   : > { %231 = vst [vmem:[%s1177_s6 + $0x28] sm:$0xf] %v230_v10 }
  0x20   : > { %233 = vst [vmem:[%s1177_s6 + $0x2c] sm:$0xf] %v232_v11 }
  0x21   : > { %235 = vst [vmem:[%s1177_s6 + $0x30] sm:$0xf] %v234_v12 }
  0x22   : > { %237 = vst [vmem:[%s1177_s6 + $0x34] sm:$0xf] %v236_v13 }
  0x23   : > { %239 = vst [vmem:[%s1177_s6 + $0x38] sm:$0xf] %v238_v14 }
  0x24   : > { %241 = vst [vmem:[%s1177_s6 + $0x3c] sm:$0xf] %v240_v15 }
  0x25   : > { %243 = vst [vmem:[%s1177_s6 + $0x40] sm:$0xf] %v242_v16 }
  0x26   : > { %245 = vst [vmem:[%s1177_s6 + $0x44] sm:$0xf] %v244_v17 }
  0x27   : > { %247 = vst [vmem:[%s1177_s6 + $0x48] sm:$0xf] %v246_v18 }
  0x28 PF: > { %p885_p8 = scmp.ge.s32.totalorder %s1096_s19, 1  ;;  %p320_p9 = scmp.lt.s32.totalorder %s1096_s19, 3 }
  0x2a   : > { %p321_p10 = pnand %p885_p8, %p320_p9 }
  0x2b   : > { %s327_s7 = sand.u32 (!%p321_p10), 1, %s1080_s15   ;;  %p369_p11 = scmp.lt.s32.totalorder (!%p321_p10), %s1088_s17, 1 }
  0x2c   : > { %324 = sbr.rel (%p321_p10) target bundleno = 264 (0x108), region = 73 }
  0x2d   : > { %s1013_s8 = smul.u32 (!%p321_p10), 76, %s327_s7 }
  0x2e   : > { %s1014_s26 = smul.u32 (!%p321_p10), 36, %s327_s7 }
  0x2f   : > { %s1219_s9 = scalar_lea.vmem (!%p321_p10), [#allocation3], %s1013_s8 }
  0x31   : > { %vm541_vm0 = vcmask 1040384   ;;  %vm542_vm1 = vcmask 1041408   ;;  %v1098_v19 = vmov 65535   ;;  %v977_v21 = vld [vmem:[%s1219_s9 + $0x38] sm:$0xff]  ;;  %v425_v22 = vld [vmem:[%s1219_s9 + $0x48] sm:$0x3] }
  0x32   : > { %v543_v20 = vsel %vm541_vm0, 4294967295, %v1098_v19  ;;  %v505_v23 = vunpack.c.l.b16 %v425_v22  ;;  %548 = vmatpush.bf16.msra.mxu0 %v977_v21  ;;  %1002 = vmatpush.bf16.msra.mxu2 %v977_v21  ;;  %v976_v24 = vld [vmem:[%s1219_s9 + $0x30] sm:$0xff]  ;;  %v975_v28 = vld [vmem:[%s1219_s9 + $0x28] sm:$0xff]  ;;  %v978_v29 = vld [vmem:[%s1219_s9 + $0x40] sm:$0xff]  ;;  %vm525_vm2 = vcmask 154624   ;;  %s959_s15 = sshll.u32 (%p1159_p6), %s1088_s17, 2 }
  0x33   : > { %v544_v25 = vsel %vm542_vm1, %v543_v20, 0  ;;  %v964_v30 = vld [vmem:[%s1338_s0 + $0x14] sm:$0xf]  ;;  %v898_v31 = vld [vmem:[%s1338_s0 + $0x18] sm:$0xf0]  ;;  %v974_v35 = vld [vmem:[%s1219_s9 + $0x20] sm:$0xff]  ;;  %s705_s28 = scalar_lea.vmem (%p1159_p6), %s1342_s4, %s959_s15 }
  0x34   : > { %v515_v26 = vpack.c.b16 %v505_v23, %v505_v23  ;;  %v962_v32 = vld [vmem:[%s1338_s0 + $0x4] sm:$0xf]  ;;  %v890_v33 = vld [vmem:[%s1338_s0 + $0x8] sm:$0xf0]  ;;  %v901_v34 = vor.u32 %v964_v30, %v898_v31  ;;  %v972_v38 = vld [vmem:[%s1219_s9 + $0x10] sm:$0xff] }
  0x35   : > { %v893_v36 = vor.u32 %v962_v32, %v890_v33  ;;  %v973_v37 = vld [vmem:[%s1219_s9 + $0x18] sm:$0xff]  ;;  %v971_v39 = vld [vmem:[%s1219_s9 + $0x8] sm:$0xff]  ;;  %v970_v43 = vld [vmem:[%s1219_s9] sm:$0xff]  ;;  %s1266_s9 = scalar_select %p369_p11, %s1088_s17, 1 }
  0x36   : > { %v546_v27 = vand.u32 %v544_v25, %v515_v26  ;;  %549 = vmatpush.bf16.msra.mxu0 %v976_v24  ;;  %1003 = vmatpush.bf16.msra.mxu2 %v976_v24  ;;  %v966_v40 = vld [vmem:[%s1338_s0 + $0x24] sm:$0xf]  ;;  %v906_v41 = vld [vmem:[%s1338_s0 + $0x28] sm:$0xf0]  ;;  %v888_v44 = vld [vmem:[%s1338_s0] sm:$0xf] }
  0x37   : > { %v909_v42 = vor.u32 %v966_v40, %v906_v41  ;;  %v963_v45 = vld [vmem:[%s1338_s0 + $0x4] sm:$0xf0]  ;;  %v904_v46 = vld [vmem:[%s1338_s0 + $0x20] sm:$0xf]  ;;  %s371_s22 = scalar_lea.vmem %s1340_s2, %s1266_s9  ;;  %s374_s27 = scalar_lea.vmem %s1341_s3, %s1266_s9  ;;  %v968_v50 = vld [vmem:[%s1338_s0 + $0x34] sm:$0xf] }
  0x38   : > { %1010 = vmatpush.bf16.msra.mxu3 %v546_v27  ;;  %587 = vmatpush.bf16.msra.mxu1 %v546_v27  ;;  %v967_v47 = vld [vmem:[%s1338_s0 + $0x24] sm:$0xf0]  ;;  %v889_v48 = vor.u32 %v963_v45, %v888_v44  ;;  %v914_v51 = vld [vmem:[%s1338_s0 + $0x38] sm:$0xf0]  ;;  %v896_v53 = vld [vmem:[%s1338_s0 + $0x10] sm:$0xf] }
  0x39   : > { %v905_v49 = vor.u32 %v967_v47, %v904_v46  ;;  %v917_v52 = vor.u32 %v968_v50, %v914_v51  ;;  %v965_v54 = vld [vmem:[%s1338_s0 + $0x14] sm:$0xf0]  ;;  %v912_v55 = vld [vmem:[%s1338_s0 + $0x30] sm:$0xf]  ;;  %v406_v59 = vld [vmem:[%s1338_s0 + $0x40] sm:$0xff] }
  0x3a   : > { %550 = vmatpush.bf16.msra.mxu0 %v975_v28  ;;  %1004 = vmatpush.bf16.msra.mxu2 %v975_v28  ;;  %v969_v56 = vld [vmem:[%s1338_s0 + $0x34] sm:$0xf0]  ;;  %v897_v57 = vor.u32 %v965_v54, %v896_v53  ;;  %v452_v60 = vunpack.c.h.b16 %v406_v59  ;;  %v451_v62 = vunpack.c.l.b16 %v406_v59  ;;  %v1056_v6 = vld [vmem:[%s371_s22] ss:$0 sm:$0xff]  ;;  %s1301_s22 = scalar_lea.vmem [#allocation4], %s1014_s26 }
  0x3b   : > { %v913_v58 = vor.u32 %v969_v56, %v912_v55  ;;  %v1057_v10 = vld [vmem:[%s374_s27] ss:$0 sm:$0xff] }
  0x3c   : > { %1011 = vmatpush.bf16.msra.mxu3 %v978_v29  ;;  %588 = vmatpush.bf16.msra.mxu1 %v978_v29  ;;  %v462_v61 = vpack.c.b16 %v452_v60, %v452_v60  ;;  %v461_v63 = vpack.c.b16 %v451_v62, %v451_v62 }
  0x3e   : > { %551 = vmatpush.bf16.msra.mxu0 %v974_v35  ;;  %1005 = vmatpush.bf16.msra.mxu2 %v974_v35 }
  0x3f   : > { %955 = vmatmul.msk.bf16.vlgmr.msra.gmra.mxu3 %vm525_vm2, %v901_v34  ;;  %954 = vmatmul.msk.bf16.vlgmr.msra.gmra.mxu1 %vm525_vm2, %v893_v36 }
  0x42   : > { %552 = vmatpush.bf16.msra.mxu0 %v973_v37  ;;  %1006 = vmatpush.bf16.msra.mxu2 %v973_v37 }
  0x46   : > { %553 = vmatpush.bf16.msra.mxu0 %v972_v38  ;;  %1007 = vmatpush.bf16.msra.mxu2 %v972_v38 }
  0x4a   : > { %554 = vmatpush.bf16.msra.mxu0 %v971_v39  ;;  %1008 = vmatpush.bf16.msra.mxu2 %v971_v39 }
  0x4e   : > { %555 = vmatpush.bf16.msra.mxu0 %v970_v43  ;;  %1009 = vmatpush.bf16.msra.mxu2 %v970_v43 }
  0x4f   : > { %956 = vmatmul.msk.bf16.gmra.mxu3 %vm525_vm2, %v909_v42 }
  0x51   : > { %556 = vmatmul.bf16.vlgmr.msra.gmra.mxu0 %v889_v48  ;;  %566 = vmatmul.bf16.vlgmr.msra.gmra.mxu2 %v905_v49 }
  0x5f   : > { %957 = vmatmul.msk.bf16.gmra.mxu3 %vm525_vm2, %v917_v52 }
  0x61   : > { %561 = vmatmul.bf16.gmra.mxu0 %v897_v57  ;;  %571 = vmatmul.bf16.gmra.mxu2 %v913_v58 }
  0x6f   : > { %958 = vmatmul.msk.bf16.gmra.mxu3 %vm525_vm2, %v462_v61 }
  0x71   : > { %576 = vmatmul.bf16.gmra.mxu2 %v461_v63 }
  0xbc   : > { %v590_v2 = vpop.f32.mrf.mxu1 }
  0xc2   : > { %v595_v0 = vpop.f32.mrf.mxu3 }
  0xc4   : > { %v592_v8 = vpop.f32.mrf.mxu1 }
  0xca   : > { %v597_v1 = vpop.f32.mrf.mxu3 }
  0xce   : > { %v557_v3 = vpop.f32.mrf.mxu0 }
  0xcf   : > { %v591_v4 = vadd.f32 %v590_v2, %v557_v3 }
  0xd1   : > { %v648_v7 = vmul.f32 %v1056_v6, %v591_v4 }
  0xd2   : > { %v600_v5 = vpop.f32.mrf.mxu3 }
  0xd3   : > { %v661_v12 = vadd.f32 %v1057_v10, %v648_v7 }
  0xd4   : > { %v567_v9 = vpop.f32.mrf.mxu2 }
  0xd5   : > { %v601_v14 = vadd.f32 %v600_v5, %v567_v9  ;;  %v670_v17 = vmax.f32 %v661_v12, 0.0 }
  0xd6   : > { %v559_v11 = vpop.f32.mrf.mxu0 }
  0xd7   : > { %v593_v13 = vadd.f32 %v592_v8, %v559_v11  ;;  %v652_v19 = vmul.f32 %v1056_v6, %v601_v14 }
  0xd9   : > { %v649_v16 = vmul.f32 %v1056_v6, %v593_v13  ;;  %v665_v25 = vadd.f32 %v1057_v10, %v652_v19 }
  0xda   : > { %v602_v15 = vpop.f32.mrf.mxu3 }
  0xdb   : > { %v662_v18 = vadd.f32 %v1057_v10, %v649_v16  ;;  %v674_v30 = vmax.f32 %v665_v25, 0.0 }
  0xdc   : > { %v569_v20 = vpop.f32.mrf.mxu2 }
  0xdd   : > { %v671_v21 = vmax.f32 %v662_v18, 0.0  ;;  %v603_v22 = vadd.f32 %v602_v15, %v569_v20 }
  0xde   : > { %v562_v23 = vpop.f32.mrf.mxu0 }
  0xdf   : > { %v982_v24 = vpack.c.bf16 %v671_v21, %v670_v17  ;;  %v653_v26 = vmul.f32 %v1056_v6, %v603_v22  ;;  %v596_v27 = vadd.f32 %v595_v0, %v562_v23 }
  0xe1   : > { %983 = vst [vmem:[%s1301_s22] sm:$0xff] %v982_v24   ;;  %v666_v29 = vadd.f32 %v1057_v10, %v653_v26  ;;  %v650_v32 = vmul.f32 %v1056_v6, %v596_v27 }
  0xe2   : > { %v605_v28 = vpop.f32.mrf.mxu3 }
  0xe3   : > { %v675_v31 = vmax.f32 %v666_v29, 0.0  ;;  %v663_v38 = vadd.f32 %v1057_v10, %v650_v32 }
  0xe4   : > { %v572_v33 = vpop.f32.mrf.mxu2 }
  0xe5   : > { %v992_v34 = vpack.c.bf16 %v675_v31, %v674_v30  ;;  %v606_v37 = vadd.f32 %v605_v28, %v572_v33  ;;  %v672_v43 = vmax.f32 %v663_v38, 0.0 }
  0xe6   : > { %v564_v35 = vpop.f32.mrf.mxu0 }
  0xe7   : > { %v598_v36 = vadd.f32 %v597_v1, %v564_v35  ;;  %1000 = vst [vmem:[%s1301_s22 + $0x10] sm:$0xff] %v992_v34   ;;  %v654_v42 = vmul.f32 %v1056_v6, %v606_v37 }
  0xe8   : > { %v722_v63 = vld [vmem:[%s1301_s22] sm:$0xf] (%p1159_p6)  ;;  %v724_v0 = vld [vmem:[%s1301_s22 + $0x4] sm:$0xf] (%p1159_p6) }
  0xe9   : > { %v651_v39 = vmul.f32 %v1056_v6, %v598_v36  ;;  %v667_v48 = vadd.f32 %v1057_v10, %v654_v42  ;;  %723 = vst [vmem:[%s705_s28] sm:$0xf] (%p1159_p6), %v722_v63 }
  0xea   : > { %v607_v40 = vpop.f32.mrf.mxu3  ;;  %725 = vst [vmem:[%s705_s28 + $0x8] sm:$0xf] (%p1159_p6), %v724_v0 }
  0xeb   : > { %v664_v41 = vadd.f32 %v1057_v10, %v651_v39  ;;  %v676_v52 = vmax.f32 %v667_v48, 0.0 }
  0xec   : > { %v574_v45 = vpop.f32.mrf.mxu2 }
  0xed   : > { %v673_v44 = vmax.f32 %v664_v41, 0.0  ;;  %v608_v46 = vadd.f32 %v607_v40, %v574_v45 }
  0xee   : > { %v730_v3 = vld [vmem:[%s1301_s22 + $0x10] sm:$0xf] (%p1159_p6)  ;;  %v732_v4 = vld [vmem:[%s1301_s22 + $0x14] sm:$0xf] (%p1159_p6) }
  0xef   : > { %v987_v47 = vpack.c.bf16 %v673_v44, %v672_v43  ;;  %v655_v49 = vmul.f32 %v1056_v6, %v608_v46  ;;  %731 = vst [vmem:[%s705_s28 + $0x20] sm:$0xf] (%p1159_p6), %v730_v3 }
  0xf0   : > { %733 = vst [vmem:[%s705_s28 + $0x28] sm:$0xf] (%p1159_p6), %v732_v4 }
  0xf1   : > { %999 = vst [vmem:[%s1301_s22 + $0x8] sm:$0xff] %v987_v47   ;;  %v668_v51 = vadd.f32 %v1057_v10, %v655_v49 }
  0xf2   : > { %v610_v50 = vpop.f32.mrf.mxu3 }
  0xf3   : > { %v677_v53 = vmax.f32 %v668_v51, 0.0 }
  0xf4   : > { %v577_v54 = vpop.f32.mrf.mxu2 }
  0xf5   : > { %v997_v55 = vpack.c.bf16 %v677_v53, %v676_v52  ;;  %v611_v56 = vadd.f32 %v610_v50, %v577_v54 }
  0xf7   : > { %1001 = vst [vmem:[%s1301_s22 + $0x18] sm:$0xff] %v997_v55   ;;  %v656_v57 = vmul.f32 %v1056_v6, %v611_v56 }
  0xf8   : > { %v726_v1 = vld [vmem:[%s1301_s22 + $0x8] sm:$0xf] (%p1159_p6)  ;;  %v728_v2 = vld [vmem:[%s1301_s22 + $0xc] sm:$0xf] (%p1159_p6) }
  0xf9   : > { %v669_v59 = vadd.f32 %v1057_v10, %v656_v57  ;;  %727 = vst [vmem:[%s705_s28 + $0x10] sm:$0xf] (%p1159_p6), %v726_v1 }
  0xfa   : > { %v612_v58 = vpop.f32.mrf.mxu3  ;;  %729 = vst [vmem:[%s705_s28 + $0x18] sm:$0xf] (%p1159_p6), %v728_v2 }
  0xfb   : > { %v678_v60 = vmax.f32 %v669_v59, 0.0  ;;  %703 = sbr.rel (!%p1159_p6) target bundleno = 264 (0x108), region = 89 }
  0xfc   : > { %v579_v61 = vpop.f32.mrf.mxu2 }
  0xfd   : > { %v687_v62 = vpack.c.bf16 %v678_v60, %v678_v60 }
  0xfe   : > { %v734_v5 = vld [vmem:[%s1301_s22 + $0x18] sm:$0xf] (%p1159_p6)  ;;  %v736_v6 = vld [vmem:[%s1301_s22 + $0x1c] sm:$0xf] (%p1159_p6) }
  0xff   : > { %696 = vst [vmem:[%s1301_s22 + $0x20] sm:$0xf] %v687_v62 }
 0x100   : > { %735 = vst [vmem:[%s705_s28 + $0x30] sm:$0xf] %v734_v5 }
 0x101   : > { %737 = vst [vmem:[%s705_s28 + $0x38] sm:$0xf] %v736_v6 }
 0x106   : > { %v738_v7 = vld [vmem:[%s1301_s22 + $0x20] sm:$0xf] }
 0x107   : > { %739 = vst [vmem:[%s705_s28 + $0x40] sm:$0xf] %v738_v7 }
 0x108 PF: > { %s14_s19 = sadd.s32 1, %s1096_s19   ;;  %s1344_s15 = smov %s1084_s16 }
 0x109   : > { %p11_p12 = scmp.ge.s32.totalorder %s14_s19, 4   ;;  %s1345_s16 = smov %s1164_s25 }
 0x10a   : > { %s1346_s17 = smov %s1092_s18  ;;  %s1347_s18 = smov %s1349_s20 }
 0x10b   :  { %13 = sbr.rel (!%p11_p12) target bundleno = 3 (0x3), region = 170 }

// kernel: forward.5
= control target key start
LH: loop header
LB: loop body
LE: loop exit
PB: predicated region body
PF: predicated region fallthrough
CT: control target
= control target key end

     0   :  { %s6633_s15 = smov 0   ;;  %s6635_s16 = smov 0   ;;  %s7975_s0 = inlined_call_operand.vmem [shape: bf16[8,2304], index: 0, kind: input, shape index: {}]   ;;  %s7976_s1 = inlined_call_operand.vmem [shape: bf16[2304,512], index: 1, kind: input, shape index: {}]   ;;  %s7977_s2 = inlined_call_operand.vmem [shape: f32[1,512], index: 2, kind: input, shape index: {}]   ;;  %s7978_s3 = inlined_call_operand.vmem [shape: f32[1,512], index: 3, kind: input, shape index: {}]   ;;  %s7979_s4 = inlined_call_operand.vmem [shape: bf16[8,512], index: 4, kind: output, shape index: {}]  }
   0x1   :  { %s6637_s17 = smov 0   ;;  %s6639_s18 = smov 0  }
   0x2   :  { %s6641_s19 = smov 0  }
   0x3 LB: > { %s26_s20 = sadd.s32 1, %s6602_s18  ;;  %p68_p1 = scmp.ne.s32.totalorder %s6594_s16, %s6590_s15  ;;  %s6606_s19 = sphi %s6641_s19, %s14_s19   ;;  %s6602_s18 = sphi %s6639_s18, %s7983_s18   ;;  %s6598_s17 = sphi %s6637_s17, %s7982_s17   ;;  %s6594_s16 = sphi %s6635_s16, %s7981_s16   ;;  %s6590_s15 = sphi %s6633_s15, %s7980_s15  }
   0x4   : > { %p28_p0 = scmp.ge.s32.totalorder %s26_s20, 2  ;;  %p69_p2 = scmp.eq.s32.totalorder %s6606_s19, 0 }
   0x5   : > { %s61_s22 = sadd.s32 1, %s6594_s16  ;;  %p5075_p5 = scmp.ge.s32.totalorder %s6606_s19, 2 }
   0x6   : > { %s7985_s20 = smov (%p28_p0, %s26_s20), 0  ;;  %p70_p3 = por %p69_p2, %p68_p1 }
   0x7   : > { %s57_s21 = ssub.s32 %s6602_s18, %s7985_s20  ;;  %181 = sbr.rel (%p5075_p5) target bundleno = 304 (0x130), region = 20 }
   0x8   : > { %p59_p4 = scmp.eq.s32.totalorder %s57_s21, 0 }
   0xa   : > { %s6668_s23 = scalar_select %p59_p4, %s6594_s16, %s61_s22  }
   0xc   : > { %184 = sbr.rel (!%p70_p3) target bundleno = 304 (0x130), region = 24  ;;  %s186_s24 = sand.u32 (%p70_p3), 1, %s6594_s16  }
   0xd   : > { %s6237_s25 = sshll.u32 (%p70_p3), %s6602_s18, 3  ;;  %s6526_s26 = smul.u32 (%p70_p3), 2304, %s186_s24 }
   0xe   : > { %s6676_s29 = scalar_lea.vmem (%p70_p3), %s7976_s1, %s6237_s25 }
   0xf   : > { %v798_v0 = vld [vmem:[%s6676_s29] sm:$0xff] (%p70_p3)  ;;  %v800_v1 = vld [vmem:[%s6676_s29 + $0x10] sm:$0xff] (%p70_p3)  ;;  %s6681_s30 = scalar_lea.vmem (%p70_p3), [#allocation3], %s6526_s26 }
  0x10   : > { %v802_v2 = vld [vmem:[%s6676_s29 + $0x20] sm:$0xff] (%p70_p3)  ;;  %799 = vst [vmem:[%s6681_s30] sm:$0xff] (%p70_p3), %v798_v0  ;;  %v804_v3 = vld [vmem:[%s6676_s29 + $0x30] sm:$0xff] (%p70_p3) }
  0x11   : > { %801 = vst [vmem:[%s6681_s30 + $0x8] sm:$0xff] %v800_v1  ;;  %v806_v4 = vld [vmem:[%s6676_s29 + $0x40] sm:$0xff]  ;;  %v808_v5 = vld [vmem:[%s6676_s29 + $0x50] sm:$0xff] }
  0x12   : > { %803 = vst [vmem:[%s6681_s30 + $0x10] sm:$0xff] %v802_v2  ;;  %v810_v6 = vld [vmem:[%s6676_s29 + $0x60] sm:$0xff]  ;;  %v812_v7 = vld [vmem:[%s6676_s29 + $0x70] sm:$0xff] }
  0x13   : > { %805 = vst [vmem:[%s6681_s30 + $0x18] sm:$0xff] %v804_v3  ;;  %v814_v8 = vld [vmem:[%s6676_s29 + $0x80] sm:$0xff]  ;;  %v816_v9 = vld [vmem:[%s6676_s29 + $0x90] sm:$0xff] }
  0x14   : > { %807 = vst [vmem:[%s6681_s30 + $0x20] sm:$0xff] %v806_v4  ;;  %v818_v10 = vld [vmem:[%s6676_s29 + $0xa0] sm:$0xff]  ;;  %v820_v11 = vld [vmem:[%s6676_s29 + $0xb0] sm:$0xff] }
  0x15   : > { %809 = vst [vmem:[%s6681_s30 + $0x28] sm:$0xff] %v808_v5  ;;  %v822_v12 = vld [vmem:[%s6676_s29 + $0xc0] sm:$0xff]  ;;  %v824_v13 = vld [vmem:[%s6676_s29 + $0xd0] sm:$0xff] }
  0x16   : > { %811 = vst [vmem:[%s6681_s30 + $0x30] sm:$0xff] %v810_v6  ;;  %v826_v14 = vld [vmem:[%s6676_s29 + $0xe0] sm:$0xff]  ;;  %v828_v15 = vld [vmem:[%s6676_s29 + $0xf0] sm:$0xff] }
  0x17   : > { %813 = vst [vmem:[%s6681_s30 + $0x38] sm:$0xff] %v812_v7  ;;  %v830_v16 = vld [vmem:[%s6676_s29 + $0x100] sm:$0xff]  ;;  %v832_v17 = vld [vmem:[%s6676_s29 + $0x110] sm:$0xff] }
  0x18   : > { %815 = vst [vmem:[%s6681_s30 + $0x40] sm:$0xff] %v814_v8  ;;  %v834_v18 = vld [vmem:[%s6676_s29 + $0x120] sm:$0xff]  ;;  %v836_v19 = vld [vmem:[%s6676_s29 + $0x130] sm:$0xff] }
  0x19   : > { %817 = vst [vmem:[%s6681_s30 + $0x48] sm:$0xff] %v816_v9  ;;  %v838_v20 = vld [vmem:[%s6676_s29 + $0x140] sm:$0xff]  ;;  %v840_v21 = vld [vmem:[%s6676_s29 + $0x150] sm:$0xff] }
  0x1a   : > { %819 = vst [vmem:[%s6681_s30 + $0x50] sm:$0xff] %v818_v10  ;;  %v842_v22 = vld [vmem:[%s6676_s29 + $0x160] sm:$0xff]  ;;  %v844_v23 = vld [vmem:[%s6676_s29 + $0x170] sm:$0xff] }
  0x1b   : > { %821 = vst [vmem:[%s6681_s30 + $0x58] sm:$0xff] %v820_v11  ;;  %v846_v24 = vld [vmem:[%s6676_s29 + $0x180] sm:$0xff]  ;;  %v848_v25 = vld [vmem:[%s6676_s29 + $0x190] sm:$0xff] }
  0x1c   : > { %823 = vst [vmem:[%s6681_s30 + $0x60] sm:$0xff] %v822_v12  ;;  %v850_v26 = vld [vmem:[%s6676_s29 + $0x1a0] sm:$0xff]  ;;  %v852_v27 = vld [vmem:[%s6676_s29 + $0x1b0] sm:$0xff] }
  0x1d   : > { %825 = vst [vmem:[%s6681_s30 + $0x68] sm:$0xff] %v824_v13  ;;  %v854_v28 = vld [vmem:[%s6676_s29 + $0x1c0] sm:$0xff]  ;;  %v856_v29 = vld [vmem:[%s6676_s29 + $0x1d0] sm:$0xff] }
  0x1e   : > { %827 = vst [vmem:[%s6681_s30 + $0x70] sm:$0xff] %v826_v14  ;;  %v858_v30 = vld [vmem:[%s6676_s29 + $0x1e0] sm:$0xff]  ;;  %v860_v31 = vld [vmem:[%s6676_s29 + $0x1f0] sm:$0xff] }
  0x1f   : > { %829 = vst [vmem:[%s6681_s30 + $0x78] sm:$0xff] %v828_v15  ;;  %v862_v32 = vld [vmem:[%s6676_s29 + $0x200] sm:$0xff]  ;;  %v864_v33 = vld [vmem:[%s6676_s29 + $0x210] sm:$0xff] }
  0x20   : > { %831 = vst [vmem:[%s6681_s30 + $0x80] sm:$0xff] %v830_v16  ;;  %v866_v34 = vld [vmem:[%s6676_s29 + $0x220] sm:$0xff]  ;;  %v868_v35 = vld [vmem:[%s6676_s29 + $0x230] sm:$0xff] }
  0x21   : > { %833 = vst [vmem:[%s6681_s30 + $0x88] sm:$0xff] %v832_v17  ;;  %v870_v36 = vld [vmem:[%s6676_s29 + $0x240] sm:$0xff]  ;;  %v872_v37 = vld [vmem:[%s6676_s29 + $0x250] sm:$0xff] }
  0x22   : > { %835 = vst [vmem:[%s6681_s30 + $0x90] sm:$0xff] %v834_v18  ;;  %v874_v38 = vld [vmem:[%s6676_s29 + $0x260] sm:$0xff]  ;;  %v876_v39 = vld [vmem:[%s6676_s29 + $0x270] sm:$0xff] }
  0x23   : > { %837 = vst [vmem:[%s6681_s30 + $0x98] sm:$0xff] %v836_v19  ;;  %v878_v40 = vld [vmem:[%s6676_s29 + $0x280] sm:$0xff]  ;;  %v880_v41 = vld [vmem:[%s6676_s29 + $0x290] sm:$0xff] }
  0x24   : > { %839 = vst [vmem:[%s6681_s30 + $0xa0] sm:$0xff] %v838_v20  ;;  %v882_v42 = vld [vmem:[%s6676_s29 + $0x2a0] sm:$0xff]  ;;  %v884_v43 = vld [vmem:[%s6676_s29 + $0x2b0] sm:$0xff] }
  0x25   : > { %841 = vst [vmem:[%s6681_s30 + $0xa8] sm:$0xff] %v840_v21  ;;  %v886_v44 = vld [vmem:[%s6676_s29 + $0x2c0] sm:$0xff]  ;;  %v888_v45 = vld [vmem:[%s6676_s29 + $0x2d0] sm:$0xff] }
  0x26   : > { %843 = vst [vmem:[%s6681_s30 + $0xb0] sm:$0xff] %v842_v22  ;;  %v890_v46 = vld [vmem:[%s6676_s29 + $0x2e0] sm:$0xff]  ;;  %v892_v47 = vld [vmem:[%s6676_s29 + $0x2f0] sm:$0xff] }
  0x27   : > { %845 = vst [vmem:[%s6681_s30 + $0xb8] sm:$0xff] %v844_v23  ;;  %v894_v48 = vld [vmem:[%s6676_s29 + $0x300] sm:$0xff]  ;;  %v896_v49 = vld [vmem:[%s6676_s29 + $0x310] sm:$0xff] }
  0x28   : > { %847 = vst [vmem:[%s6681_s30 + $0xc0] sm:$0xff] %v846_v24  ;;  %v898_v50 = vld [vmem:[%s6676_s29 + $0x320] sm:$0xff]  ;;  %v900_v51 = vld [vmem:[%s6676_s29 + $0x330] sm:$0xff] }
  0x29   : > { %849 = vst [vmem:[%s6681_s30 + $0xc8] sm:$0xff] %v848_v25  ;;  %v902_v52 = vld [vmem:[%s6676_s29 + $0x340] sm:$0xff]  ;;  %v904_v53 = vld [vmem:[%s6676_s29 + $0x350] sm:$0xff] }
  0x2a   : > { %851 = vst [vmem:[%s6681_s30 + $0xd0] sm:$0xff] %v850_v26  ;;  %v906_v54 = vld [vmem:[%s6676_s29 + $0x360] sm:$0xff]  ;;  %v908_v55 = vld [vmem:[%s6676_s29 + $0x370] sm:$0xff] }
  0x2b   : > { %853 = vst [vmem:[%s6681_s30 + $0xd8] sm:$0xff] %v852_v27  ;;  %v910_v56 = vld [vmem:[%s6676_s29 + $0x380] sm:$0xff]  ;;  %v912_v57 = vld [vmem:[%s6676_s29 + $0x390] sm:$0xff] }
  0x2c   : > { %855 = vst [vmem:[%s6681_s30 + $0xe0] sm:$0xff] %v854_v28  ;;  %v914_v58 = vld [vmem:[%s6676_s29 + $0x3a0] sm:$0xff]  ;;  %v916_v59 = vld [vmem:[%s6676_s29 + $0x3b0] sm:$0xff] }
  0x2d   : > { %857 = vst [vmem:[%s6681_s30 + $0xe8] sm:$0xff] %v856_v29  ;;  %v918_v60 = vld [vmem:[%s6676_s29 + $0x3c0] sm:$0xff]  ;;  %v920_v61 = vld [vmem:[%s6676_s29 + $0x3d0] sm:$0xff] }
  0x2e   : > { %859 = vst [vmem:[%s6681_s30 + $0xf0] sm:$0xff] %v858_v30  ;;  %v922_v62 = vld [vmem:[%s6676_s29 + $0x3e0] sm:$0xff]  ;;  %v924_v63 = vld [vmem:[%s6676_s29 + $0x3f0] sm:$0xff] }
  0x2f   : > { %861 = vst [vmem:[%s6681_s30 + $0xf8] sm:$0xff] %v860_v31  ;;  %v926_v0 = vld [vmem:[%s6676_s29 + $0x400] sm:$0xff]  ;;  %v928_v1 = vld [vmem:[%s6676_s29 + $0x410] sm:$0xff] }
  0x30   : > { %863 = vst [vmem:[%s6681_s30 + $0x100] sm:$0xff] %v862_v32  ;;  %v930_v2 = vld [vmem:[%s6676_s29 + $0x420] sm:$0xff]  ;;  %v932_v3 = vld [vmem:[%s6676_s29 + $0x430] sm:$0xff] }
  0x31   : > { %865 = vst [vmem:[%s6681_s30 + $0x108] sm:$0xff] %v864_v33  ;;  %v934_v4 = vld [vmem:[%s6676_s29 + $0x440] sm:$0xff]  ;;  %v936_v5 = vld [vmem:[%s6676_s29 + $0x450] sm:$0xff] }
  0x32   : > { %867 = vst [vmem:[%s6681_s30 + $0x110] sm:$0xff] %v866_v34  ;;  %v938_v6 = vld [vmem:[%s6676_s29 + $0x460] sm:$0xff]  ;;  %v940_v7 = vld [vmem:[%s6676_s29 + $0x470] sm:$0xff] }
  0x33   : > { %869 = vst [vmem:[%s6681_s30 + $0x118] sm:$0xff] %v868_v35  ;;  %v942_v8 = vld [vmem:[%s6676_s29 + $0x480] sm:$0xff]  ;;  %v944_v9 = vld [vmem:[%s6676_s29 + $0x490] sm:$0xff] }
  0x34   : > { %871 = vst [vmem:[%s6681_s30 + $0x120] sm:$0xff] %v870_v36  ;;  %v946_v10 = vld [vmem:[%s6676_s29 + $0x4a0] sm:$0xff]  ;;  %v948_v11 = vld [vmem:[%s6676_s29 + $0x4b0] sm:$0xff] }
  0x35   : > { %873 = vst [vmem:[%s6681_s30 + $0x128] sm:$0xff] %v872_v37  ;;  %v950_v12 = vld [vmem:[%s6676_s29 + $0x4c0] sm:$0xff]  ;;  %v952_v13 = vld [vmem:[%s6676_s29 + $0x4d0] sm:$0xff] }
  0x36   : > { %875 = vst [vmem:[%s6681_s30 + $0x130] sm:$0xff] %v874_v38  ;;  %v954_v14 = vld [vmem:[%s6676_s29 + $0x4e0] sm:$0xff]  ;;  %v956_v15 = vld [vmem:[%s6676_s29 + $0x4f0] sm:$0xff] }
  0x37   : > { %877 = vst [vmem:[%s6681_s30 + $0x138] sm:$0xff] %v876_v39  ;;  %v958_v16 = vld [vmem:[%s6676_s29 + $0x500] sm:$0xff]  ;;  %v960_v17 = vld [vmem:[%s6676_s29 + $0x510] sm:$0xff] }
  0x38   : > { %879 = vst [vmem:[%s6681_s30 + $0x140] sm:$0xff] %v878_v40  ;;  %v962_v18 = vld [vmem:[%s6676_s29 + $0x520] sm:$0xff]  ;;  %v964_v19 = vld [vmem:[%s6676_s29 + $0x530] sm:$0xff] }
  0x39   : > { %881 = vst [vmem:[%s6681_s30 + $0x148] sm:$0xff] %v880_v41  ;;  %v966_v20 = vld [vmem:[%s6676_s29 + $0x540] sm:$0xff]  ;;  %v968_v21 = vld [vmem:[%s6676_s29 + $0x550] sm:$0xff] }
  0x3a   : > { %883 = vst [vmem:[%s6681_s30 + $0x150] sm:$0xff] %v882_v42  ;;  %v970_v22 = vld [vmem:[%s6676_s29 + $0x560] sm:$0xff]  ;;  %v972_v23 = vld [vmem:[%s6676_s29 + $0x570] sm:$0xff] }
  0x3b   : > { %885 = vst [vmem:[%s6681_s30 + $0x158] sm:$0xff] %v884_v43  ;;  %v974_v24 = vld [vmem:[%s6676_s29 + $0x580] sm:$0xff]  ;;  %v976_v25 = vld [vmem:[%s6676_s29 + $0x590] sm:$0xff] }
  0x3c   : > { %887 = vst [vmem:[%s6681_s30 + $0x160] sm:$0xff] %v886_v44  ;;  %v978_v26 = vld [vmem:[%s6676_s29 + $0x5a0] sm:$0xff]  ;;  %v980_v27 = vld [vmem:[%s6676_s29 + $0x5b0] sm:$0xff] }
  0x3d   : > { %889 = vst [vmem:[%s6681_s30 + $0x168] sm:$0xff] %v888_v45  ;;  %v982_v28 = vld [vmem:[%s6676_s29 + $0x5c0] sm:$0xff]  ;;  %v984_v29 = vld [vmem:[%s6676_s29 + $0x5d0] sm:$0xff] }
  0x3e   : > { %891 = vst [vmem:[%s6681_s30 + $0x170] sm:$0xff] %v890_v46  ;;  %v986_v30 = vld [vmem:[%s6676_s29 + $0x5e0] sm:$0xff]  ;;  %v988_v31 = vld [vmem:[%s6676_s29 + $0x5f0] sm:$0xff] }
  0x3f   : > { %893 = vst [vmem:[%s6681_s30 + $0x178] sm:$0xff] %v892_v47  ;;  %v990_v32 = vld [vmem:[%s6676_s29 + $0x600] sm:$0xff]  ;;  %v992_v33 = vld [vmem:[%s6676_s29 + $0x610] sm:$0xff] }
  0x40   : > { %895 = vst [vmem:[%s6681_s30 + $0x180] sm:$0xff] %v894_v48  ;;  %v994_v34 = vld [vmem:[%s6676_s29 + $0x620] sm:$0xff]  ;;  %v996_v35 = vld [vmem:[%s6676_s29 + $0x630] sm:$0xff] }
  0x41   : > { %897 = vst [vmem:[%s6681_s30 + $0x188] sm:$0xff] %v896_v49  ;;  %v998_v36 = vld [vmem:[%s6676_s29 + $0x640] sm:$0xff]  ;;  %v1000_v37 = vld [vmem:[%s6676_s29 + $0x650] sm:$0xff] }
  0x42   : > { %899 = vst [vmem:[%s6681_s30 + $0x190] sm:$0xff] %v898_v50  ;;  %v1002_v38 = vld [vmem:[%s6676_s29 + $0x660] sm:$0xff]  ;;  %v1004_v39 = vld [vmem:[%s6676_s29 + $0x670] sm:$0xff] }
  0x43   : > { %901 = vst [vmem:[%s6681_s30 + $0x198] sm:$0xff] %v900_v51  ;;  %v1006_v40 = vld [vmem:[%s6676_s29 + $0x680] sm:$0xff]  ;;  %v1008_v41 = vld [vmem:[%s6676_s29 + $0x690] sm:$0xff] }
  0x44   : > { %903 = vst [vmem:[%s6681_s30 + $0x1a0] sm:$0xff] %v902_v52  ;;  %v1010_v42 = vld [vmem:[%s6676_s29 + $0x6a0] sm:$0xff]  ;;  %v1012_v43 = vld [vmem:[%s6676_s29 + $0x6b0] sm:$0xff] }
  0x45   : > { %905 = vst [vmem:[%s6681_s30 + $0x1a8] sm:$0xff] %v904_v53  ;;  %v1014_v44 = vld [vmem:[%s6676_s29 + $0x6c0] sm:$0xff]  ;;  %v1016_v45 = vld [vmem:[%s6676_s29 + $0x6d0] sm:$0xff] }
  0x46   : > { %907 = vst [vmem:[%s6681_s30 + $0x1b0] sm:$0xff] %v906_v54  ;;  %v1018_v46 = vld [vmem:[%s6676_s29 + $0x6e0] sm:$0xff]  ;;  %v1020_v47 = vld [vmem:[%s6676_s29 + $0x6f0] sm:$0xff] }
  0x47   : > { %909 = vst [vmem:[%s6681_s30 + $0x1b8] sm:$0xff] %v908_v55  ;;  %v1022_v48 = vld [vmem:[%s6676_s29 + $0x700] sm:$0xff]  ;;  %v1024_v49 = vld [vmem:[%s6676_s29 + $0x710] sm:$0xff] }
  0x48   : > { %911 = vst [vmem:[%s6681_s30 + $0x1c0] sm:$0xff] %v910_v56  ;;  %v1026_v50 = vld [vmem:[%s6676_s29 + $0x720] sm:$0xff]  ;;  %v1028_v51 = vld [vmem:[%s6676_s29 + $0x730] sm:$0xff] }
  0x49   : > { %913 = vst [vmem:[%s6681_s30 + $0x1c8] sm:$0xff] %v912_v57  ;;  %v1030_v52 = vld [vmem:[%s6676_s29 + $0x740] sm:$0xff]  ;;  %v1032_v53 = vld [vmem:[%s6676_s29 + $0x750] sm:$0xff] }
  0x4a   : > { %915 = vst [vmem:[%s6681_s30 + $0x1d0] sm:$0xff] %v914_v58  ;;  %v1034_v54 = vld [vmem:[%s6676_s29 + $0x760] sm:$0xff]  ;;  %v1036_v55 = vld [vmem:[%s6676_s29 + $0x770] sm:$0xff] }
  0x4b   : > { %917 = vst [vmem:[%s6681_s30 + $0x1d8] sm:$0xff] %v916_v59  ;;  %v1038_v56 = vld [vmem:[%s6676_s29 + $0x780] sm:$0xff]  ;;  %v1040_v57 = vld [vmem:[%s6676_s29 + $0x790] sm:$0xff] }
  0x4c   : > { %919 = vst [vmem:[%s6681_s30 + $0x1e0] sm:$0xff] %v918_v60  ;;  %v1042_v58 = vld [vmem:[%s6676_s29 + $0x7a0] sm:$0xff]  ;;  %v1044_v59 = vld [vmem:[%s6676_s29 + $0x7b0] sm:$0xff] }
  0x4d   : > { %921 = vst [vmem:[%s6681_s30 + $0x1e8] sm:$0xff] %v920_v61  ;;  %v1046_v60 = vld [vmem:[%s6676_s29 + $0x7c0] sm:$0xff]  ;;  %v1048_v61 = vld [vmem:[%s6676_s29 + $0x7d0] sm:$0xff] }
  0x4e   : > { %923 = vst [vmem:[%s6681_s30 + $0x1f0] sm:$0xff] %v922_v62  ;;  %v1050_v62 = vld [vmem:[%s6676_s29 + $0x7e0] sm:$0xff] }
  0x4f   : > { %925 = vst [vmem:[%s6681_s30 + $0x1f8] sm:$0xff] %v924_v63  ;;  %v1052_v63 = vld [vmem:[%s6676_s29 + $0x7f0] sm:$0xff] }
  0x50   : > { %927 = vst [vmem:[%s6681_s30 + $0x200] sm:$0xff] %v926_v0  ;;  %v1054_v0 = vld [vmem:[%s6676_s29 + $0x800] sm:$0xff] }
  0x51   : > { %929 = vst [vmem:[%s6681_s30 + $0x208] sm:$0xff] %v928_v1  ;;  %v1056_v1 = vld [vmem:[%s6676_s29 + $0x810] sm:$0xff] }
  0x52   : > { %931 = vst [vmem:[%s6681_s30 + $0x210] sm:$0xff] %v930_v2  ;;  %v1058_v2 = vld [vmem:[%s6676_s29 + $0x820] sm:$0xff] }
  0x53   : > { %933 = vst [vmem:[%s6681_s30 + $0x218] sm:$0xff] %v932_v3  ;;  %v1060_v3 = vld [vmem:[%s6676_s29 + $0x830] sm:$0xff] }
  0x54   : > { %935 = vst [vmem:[%s6681_s30 + $0x220] sm:$0xff] %v934_v4  ;;  %v1062_v4 = vld [vmem:[%s6676_s29 + $0x840] sm:$0xff] }
  0x55   : > { %937 = vst [vmem:[%s6681_s30 + $0x228] sm:$0xff] %v936_v5  ;;  %v1064_v5 = vld [vmem:[%s6676_s29 + $0x850] sm:$0xff] }
  0x56   : > { %939 = vst [vmem:[%s6681_s30 + $0x230] sm:$0xff] %v938_v6  ;;  %v1066_v6 = vld [vmem:[%s6676_s29 + $0x860] sm:$0xff] }
  0x57   : > { %941 = vst [vmem:[%s6681_s30 + $0x238] sm:$0xff] %v940_v7  ;;  %v1068_v7 = vld [vmem:[%s6676_s29 + $0x870] sm:$0xff] }
  0x58   : > { %943 = vst [vmem:[%s6681_s30 + $0x240] sm:$0xff] %v942_v8  ;;  %v1070_v8 = vld [vmem:[%s6676_s29 + $0x880] sm:$0xff] }
  0x59   : > { %945 = vst [vmem:[%s6681_s30 + $0x248] sm:$0xff] %v944_v9  ;;  %v1072_v9 = vld [vmem:[%s6676_s29 + $0x890] sm:$0xff] }
  0x5a   : > { %947 = vst [vmem:[%s6681_s30 + $0x250] sm:$0xff] %v946_v10  ;;  %v1074_v10 = vld [vmem:[%s6676_s29 + $0x8a0] sm:$0xff] }
  0x5b   : > { %949 = vst [vmem:[%s6681_s30 + $0x258] sm:$0xff] %v948_v11  ;;  %v1076_v11 = vld [vmem:[%s6676_s29 + $0x8b0] sm:$0xff] }
  0x5c   : > { %951 = vst [vmem:[%s6681_s30 + $0x260] sm:$0xff] %v950_v12  ;;  %v1078_v12 = vld [vmem:[%s6676_s29 + $0x8c0] sm:$0xff] }
  0x5d   : > { %953 = vst [vmem:[%s6681_s30 + $0x268] sm:$0xff] %v952_v13  ;;  %v1080_v13 = vld [vmem:[%s6676_s29 + $0x8d0] sm:$0xff] }
  0x5e   : > { %955 = vst [vmem:[%s6681_s30 + $0x270] sm:$0xff] %v954_v14  ;;  %v1082_v14 = vld [vmem:[%s6676_s29 + $0x8e0] sm:$0xff] }
  0x5f   : > { %957 = vst [vmem:[%s6681_s30 + $0x278] sm:$0xff] %v956_v15  ;;  %v1084_v15 = vld [vmem:[%s6676_s29 + $0x8f0] sm:$0xff] }
  0x60   : > { %959 = vst [vmem:[%s6681_s30 + $0x280] sm:$0xff] %v958_v16  ;;  %v1086_v16 = vld [vmem:[%s6676_s29 + $0x900] sm:$0xff] }
  0x61   : > { %961 = vst [vmem:[%s6681_s30 + $0x288] sm:$0xff] %v960_v17  ;;  %v1088_v17 = vld [vmem:[%s6676_s29 + $0x910] sm:$0xff] }
  0x62   : > { %963 = vst [vmem:[%s6681_s30 + $0x290] sm:$0xff] %v962_v18  ;;  %v1090_v18 = vld [vmem:[%s6676_s29 + $0x920] sm:$0xff] }
  0x63   : > { %965 = vst [vmem:[%s6681_s30 + $0x298] sm:$0xff] %v964_v19  ;;  %v1092_v19 = vld [vmem:[%s6676_s29 + $0x930] sm:$0xff] }
  0x64   : > { %967 = vst [vmem:[%s6681_s30 + $0x2a0] sm:$0xff] %v966_v20  ;;  %v1094_v20 = vld [vmem:[%s6676_s29 + $0x940] sm:$0xff] }
  0x65   : > { %969 = vst [vmem:[%s6681_s30 + $0x2a8] sm:$0xff] %v968_v21  ;;  %v1096_v21 = vld [vmem:[%s6676_s29 + $0x950] sm:$0xff] }
  0x66   : > { %971 = vst [vmem:[%s6681_s30 + $0x2b0] sm:$0xff] %v970_v22  ;;  %v1098_v22 = vld [vmem:[%s6676_s29 + $0x960] sm:$0xff] }
  0x67   : > { %973 = vst [vmem:[%s6681_s30 + $0x2b8] sm:$0xff] %v972_v23  ;;  %v1100_v23 = vld [vmem:[%s6676_s29 + $0x970] sm:$0xff] }
  0x68   : > { %975 = vst [vmem:[%s6681_s30 + $0x2c0] sm:$0xff] %v974_v24  ;;  %v1102_v24 = vld [vmem:[%s6676_s29 + $0x980] sm:$0xff] }
  0x69   : > { %977 = vst [vmem:[%s6681_s30 + $0x2c8] sm:$0xff] %v976_v25  ;;  %v1104_v25 = vld [vmem:[%s6676_s29 + $0x990] sm:$0xff] }
  0x6a   : > { %979 = vst [vmem:[%s6681_s30 + $0x2d0] sm:$0xff] %v978_v26  ;;  %v1106_v26 = vld [vmem:[%s6676_s29 + $0x9a0] sm:$0xff] }
  0x6b   : > { %981 = vst [vmem:[%s6681_s30 + $0x2d8] sm:$0xff] %v980_v27  ;;  %v1108_v27 = vld [vmem:[%s6676_s29 + $0x9b0] sm:$0xff] }
  0x6c   : > { %983 = vst [vmem:[%s6681_s30 + $0x2e0] sm:$0xff] %v982_v28  ;;  %v1110_v28 = vld [vmem:[%s6676_s29 + $0x9c0] sm:$0xff] }
  0x6d   : > { %985 = vst [vmem:[%s6681_s30 + $0x2e8] sm:$0xff] %v984_v29  ;;  %v1112_v29 = vld [vmem:[%s6676_s29 + $0x9d0] sm:$0xff] }
  0x6e   : > { %987 = vst [vmem:[%s6681_s30 + $0x2f0] sm:$0xff] %v986_v30  ;;  %v1114_v30 = vld [vmem:[%s6676_s29 + $0x9e0] sm:$0xff] }
  0x6f   : > { %989 = vst [vmem:[%s6681_s30 + $0x2f8] sm:$0xff] %v988_v31  ;;  %v1116_v31 = vld [vmem:[%s6676_s29 + $0x9f0] sm:$0xff] }
  0x70   : > { %991 = vst [vmem:[%s6681_s30 + $0x300] sm:$0xff] %v990_v32  ;;  %v1118_v32 = vld [vmem:[%s6676_s29 + $0xa00] sm:$0xff] }
  0x71   : > { %993 = vst [vmem:[%s6681_s30 + $0x308] sm:$0xff] %v992_v33  ;;  %v1120_v33 = vld [vmem:[%s6676_s29 + $0xa10] sm:$0xff] }
  0x72   : > { %995 = vst [vmem:[%s6681_s30 + $0x310] sm:$0xff] %v994_v34  ;;  %v1122_v34 = vld [vmem:[%s6676_s29 + $0xa20] sm:$0xff] }
  0x73   : > { %997 = vst [vmem:[%s6681_s30 + $0x318] sm:$0xff] %v996_v35  ;;  %v1124_v35 = vld [vmem:[%s6676_s29 + $0xa30] sm:$0xff] }
  0x74   : > { %999 = vst [vmem:[%s6681_s30 + $0x320] sm:$0xff] %v998_v36  ;;  %v1126_v36 = vld [vmem:[%s6676_s29 + $0xa40] sm:$0xff] }
  0x75   : > { %1001 = vst [vmem:[%s6681_s30 + $0x328] sm:$0xff] %v1000_v37  ;;  %v1128_v37 = vld [vmem:[%s6676_s29 + $0xa50] sm:$0xff] }
  0x76   : > { %1003 = vst [vmem:[%s6681_s30 + $0x330] sm:$0xff] %v1002_v38  ;;  %v1130_v38 = vld [vmem:[%s6676_s29 + $0xa60] sm:$0xff] }
  0x77   : > { %1005 = vst [vmem:[%s6681_s30 + $0x338] sm:$0xff] %v1004_v39  ;;  %v1132_v39 = vld [vmem:[%s6676_s29 + $0xa70] sm:$0xff] }
  0x78   : > { %1007 = vst [vmem:[%s6681_s30 + $0x340] sm:$0xff] %v1006_v40  ;;  %v1134_v40 = vld [vmem:[%s6676_s29 + $0xa80] sm:$0xff] }
  0x79   : > { %1009 = vst [vmem:[%s6681_s30 + $0x348] sm:$0xff] %v1008_v41  ;;  %v1136_v41 = vld [vmem:[%s6676_s29 + $0xa90] sm:$0xff] }
  0x7a   : > { %1011 = vst [vmem:[%s6681_s30 + $0x350] sm:$0xff] %v1010_v42  ;;  %v1138_v42 = vld [vmem:[%s6676_s29 + $0xaa0] sm:$0xff] }
  0x7b   : > { %1013 = vst [vmem:[%s6681_s30 + $0x358] sm:$0xff] %v1012_v43  ;;  %v1140_v43 = vld [vmem:[%s6676_s29 + $0xab0] sm:$0xff] }
  0x7c   : > { %1015 = vst [vmem:[%s6681_s30 + $0x360] sm:$0xff] %v1014_v44  ;;  %v1142_v44 = vld [vmem:[%s6676_s29 + $0xac0] sm:$0xff] }
  0x7d   : > { %1017 = vst [vmem:[%s6681_s30 + $0x368] sm:$0xff] %v1016_v45  ;;  %v1144_v45 = vld [vmem:[%s6676_s29 + $0xad0] sm:$0xff] }
  0x7e   : > { %1019 = vst [vmem:[%s6681_s30 + $0x370] sm:$0xff] %v1018_v46  ;;  %v1146_v46 = vld [vmem:[%s6676_s29 + $0xae0] sm:$0xff] }
  0x7f   : > { %1021 = vst [vmem:[%s6681_s30 + $0x378] sm:$0xff] %v1020_v47  ;;  %v1148_v47 = vld [vmem:[%s6676_s29 + $0xaf0] sm:$0xff] }
  0x80   : > { %1023 = vst [vmem:[%s6681_s30 + $0x380] sm:$0xff] %v1022_v48  ;;  %v1150_v48 = vld [vmem:[%s6676_s29 + $0xb00] sm:$0xff] }
  0x81   : > { %1025 = vst [vmem:[%s6681_s30 + $0x388] sm:$0xff] %v1024_v49  ;;  %v1152_v49 = vld [vmem:[%s6676_s29 + $0xb10] sm:$0xff] }
  0x82   : > { %1027 = vst [vmem:[%s6681_s30 + $0x390] sm:$0xff] %v1026_v50  ;;  %v1154_v50 = vld [vmem:[%s6676_s29 + $0xb20] sm:$0xff] }
  0x83   : > { %1029 = vst [vmem:[%s6681_s30 + $0x398] sm:$0xff] %v1028_v51  ;;  %v1156_v51 = vld [vmem:[%s6676_s29 + $0xb30] sm:$0xff] }
  0x84   : > { %1031 = vst [vmem:[%s6681_s30 + $0x3a0] sm:$0xff] %v1030_v52  ;;  %v1158_v52 = vld [vmem:[%s6676_s29 + $0xb40] sm:$0xff] }
  0x85   : > { %1033 = vst [vmem:[%s6681_s30 + $0x3a8] sm:$0xff] %v1032_v53  ;;  %v1160_v53 = vld [vmem:[%s6676_s29 + $0xb50] sm:$0xff] }
  0x86   : > { %1035 = vst [vmem:[%s6681_s30 + $0x3b0] sm:$0xff] %v1034_v54  ;;  %v1162_v54 = vld [vmem:[%s6676_s29 + $0xb60] sm:$0xff] }
  0x87   : > { %1037 = vst [vmem:[%s6681_s30 + $0x3b8] sm:$0xff] %v1036_v55  ;;  %v1164_v55 = vld [vmem:[%s6676_s29 + $0xb70] sm:$0xff] }
  0x88   : > { %1039 = vst [vmem:[%s6681_s30 + $0x3c0] sm:$0xff] %v1038_v56  ;;  %v1166_v56 = vld [vmem:[%s6676_s29 + $0xb80] sm:$0xff] }
  0x89   : > { %1041 = vst [vmem:[%s6681_s30 + $0x3c8] sm:$0xff] %v1040_v57  ;;  %v1168_v57 = vld [vmem:[%s6676_s29 + $0xb90] sm:$0xff] }
  0x8a   : > { %1043 = vst [vmem:[%s6681_s30 + $0x3d0] sm:$0xff] %v1042_v58  ;;  %v1170_v58 = vld [vmem:[%s6676_s29 + $0xba0] sm:$0xff] }
  0x8b   : > { %1045 = vst [vmem:[%s6681_s30 + $0x3d8] sm:$0xff] %v1044_v59  ;;  %v1172_v59 = vld [vmem:[%s6676_s29 + $0xbb0] sm:$0xff] }
  0x8c   : > { %1047 = vst [vmem:[%s6681_s30 + $0x3e0] sm:$0xff] %v1046_v60  ;;  %v1174_v60 = vld [vmem:[%s6676_s29 + $0xbc0] sm:$0xff] }
  0x8d   : > { %1049 = vst [vmem:[%s6681_s30 + $0x3e8] sm:$0xff] %v1048_v61  ;;  %v1176_v61 = vld [vmem:[%s6676_s29 + $0xbd0] sm:$0xff] }
  0x8e   : > { %1051 = vst [vmem:[%s6681_s30 + $0x3f0] sm:$0xff] %v1050_v62  ;;  %v1178_v62 = vld [vmem:[%s6676_s29 + $0xbe0] sm:$0xff] }
  0x8f   : > { %1053 = vst [vmem:[%s6681_s30 + $0x3f8] sm:$0xff] %v1052_v63  ;;  %v1180_v63 = vld [vmem:[%s6676_s29 + $0xbf0] sm:$0xff] }
  0x90   : > { %1055 = vst [vmem:[%s6681_s30 + $0x400] sm:$0xff] %v1054_v0  ;;  %v1182_v0 = vld [vmem:[%s6676_s29 + $0xc00] sm:$0xff] }
  0x91   : > { %1057 = vst [vmem:[%s6681_s30 + $0x408] sm:$0xff] %v1056_v1  ;;  %v1184_v1 = vld [vmem:[%s6676_s29 + $0xc10] sm:$0xff] }
  0x92   : > { %1059 = vst [vmem:[%s6681_s30 + $0x410] sm:$0xff] %v1058_v2  ;;  %v1186_v2 = vld [vmem:[%s6676_s29 + $0xc20] sm:$0xff] }
  0x93   : > { %1061 = vst [vmem:[%s6681_s30 + $0x418] sm:$0xff] %v1060_v3  ;;  %v1188_v3 = vld [vmem:[%s6676_s29 + $0xc30] sm:$0xff] }
  0x94   : > { %1063 = vst [vmem:[%s6681_s30 + $0x420] sm:$0xff] %v1062_v4  ;;  %v1190_v4 = vld [vmem:[%s6676_s29 + $0xc40] sm:$0xff] }
  0x95   : > { %1065 = vst [vmem:[%s6681_s30 + $0x428] sm:$0xff] %v1064_v5  ;;  %v1192_v5 = vld [vmem:[%s6676_s29 + $0xc50] sm:$0xff] }
  0x96   : > { %1067 = vst [vmem:[%s6681_s30 + $0x430] sm:$0xff] %v1066_v6  ;;  %v1194_v6 = vld [vmem:[%s6676_s29 + $0xc60] sm:$0xff] }
  0x97   : > { %1069 = vst [vmem:[%s6681_s30 + $0x438] sm:$0xff] %v1068_v7  ;;  %v1196_v7 = vld [vmem:[%s6676_s29 + $0xc70] sm:$0xff] }
  0x98   : > { %1071 = vst [vmem:[%s6681_s30 + $0x440] sm:$0xff] %v1070_v8  ;;  %v1198_v8 = vld [vmem:[%s6676_s29 + $0xc80] sm:$0xff] }
  0x99   : > { %1073 = vst [vmem:[%s6681_s30 + $0x448] sm:$0xff] %v1072_v9  ;;  %v1200_v9 = vld [vmem:[%s6676_s29 + $0xc90] sm:$0xff] }
  0x9a   : > { %1075 = vst [vmem:[%s6681_s30 + $0x450] sm:$0xff] %v1074_v10  ;;  %v1202_v10 = vld [vmem:[%s6676_s29 + $0xca0] sm:$0xff] }
  0x9b   : > { %1077 = vst [vmem:[%s6681_s30 + $0x458] sm:$0xff] %v1076_v11  ;;  %v1204_v11 = vld [vmem:[%s6676_s29 + $0xcb0] sm:$0xff] }
  0x9c   : > { %1079 = vst [vmem:[%s6681_s30 + $0x460] sm:$0xff] %v1078_v12  ;;  %v1206_v12 = vld [vmem:[%s6676_s29 + $0xcc0] sm:$0xff] }
  0x9d   : > { %1081 = vst [vmem:[%s6681_s30 + $0x468] sm:$0xff] %v1080_v13  ;;  %v1208_v13 = vld [vmem:[%s6676_s29 + $0xcd0] sm:$0xff] }
  0x9e   : > { %1083 = vst [vmem:[%s6681_s30 + $0x470] sm:$0xff] %v1082_v14  ;;  %v1210_v14 = vld [vmem:[%s6676_s29 + $0xce0] sm:$0xff] }
  0x9f   : > { %1085 = vst [vmem:[%s6681_s30 + $0x478] sm:$0xff] %v1084_v15  ;;  %v1212_v15 = vld [vmem:[%s6676_s29 + $0xcf0] sm:$0xff] }
  0xa0   : > { %1087 = vst [vmem:[%s6681_s30 + $0x480] sm:$0xff] %v1086_v16  ;;  %v1214_v16 = vld [vmem:[%s6676_s29 + $0xd00] sm:$0xff] }
  0xa1   : > { %1089 = vst [vmem:[%s6681_s30 + $0x488] sm:$0xff] %v1088_v17  ;;  %v1216_v17 = vld [vmem:[%s6676_s29 + $0xd10] sm:$0xff] }
  0xa2   : > { %1091 = vst [vmem:[%s6681_s30 + $0x490] sm:$0xff] %v1090_v18  ;;  %v1218_v18 = vld [vmem:[%s6676_s29 + $0xd20] sm:$0xff] }
  0xa3   : > { %1093 = vst [vmem:[%s6681_s30 + $0x498] sm:$0xff] %v1092_v19  ;;  %v1220_v19 = vld [vmem:[%s6676_s29 + $0xd30] sm:$0xff] }
  0xa4   : > { %1095 = vst [vmem:[%s6681_s30 + $0x4a0] sm:$0xff] %v1094_v20  ;;  %v1222_v20 = vld [vmem:[%s6676_s29 + $0xd40] sm:$0xff] }
  0xa5   : > { %1097 = vst [vmem:[%s6681_s30 + $0x4a8] sm:$0xff] %v1096_v21  ;;  %v1224_v21 = vld [vmem:[%s6676_s29 + $0xd50] sm:$0xff] }
  0xa6   : > { %1099 = vst [vmem:[%s6681_s30 + $0x4b0] sm:$0xff] %v1098_v22  ;;  %v1226_v22 = vld [vmem:[%s6676_s29 + $0xd60] sm:$0xff] }
  0xa7   : > { %1101 = vst [vmem:[%s6681_s30 + $0x4b8] sm:$0xff] %v1100_v23  ;;  %v1228_v23 = vld [vmem:[%s6676_s29 + $0xd70] sm:$0xff] }
  0xa8   : > { %1103 = vst [vmem:[%s6681_s30 + $0x4c0] sm:$0xff] %v1102_v24  ;;  %v1230_v24 = vld [vmem:[%s6676_s29 + $0xd80] sm:$0xff] }
  0xa9   : > { %1105 = vst [vmem:[%s6681_s30 + $0x4c8] sm:$0xff] %v1104_v25  ;;  %v1232_v25 = vld [vmem:[%s6676_s29 + $0xd90] sm:$0xff] }
  0xaa   : > { %1107 = vst [vmem:[%s6681_s30 + $0x4d0] sm:$0xff] %v1106_v26  ;;  %v1234_v26 = vld [vmem:[%s6676_s29 + $0xda0] sm:$0xff] }
  0xab   : > { %1109 = vst [vmem:[%s6681_s30 + $0x4d8] sm:$0xff] %v1108_v27  ;;  %v1236_v27 = vld [vmem:[%s6676_s29 + $0xdb0] sm:$0xff] }
  0xac   : > { %1111 = vst [vmem:[%s6681_s30 + $0x4e0] sm:$0xff] %v1110_v28  ;;  %v1238_v28 = vld [vmem:[%s6676_s29 + $0xdc0] sm:$0xff] }
  0xad   : > { %1113 = vst [vmem:[%s6681_s30 + $0x4e8] sm:$0xff] %v1112_v29  ;;  %v1240_v29 = vld [vmem:[%s6676_s29 + $0xdd0] sm:$0xff] }
  0xae   : > { %1115 = vst [vmem:[%s6681_s30 + $0x4f0] sm:$0xff] %v1114_v30  ;;  %v1242_v30 = vld [vmem:[%s6676_s29 + $0xde0] sm:$0xff] }
  0xaf   : > { %1117 = vst [vmem:[%s6681_s30 + $0x4f8] sm:$0xff] %v1116_v31  ;;  %v1244_v31 = vld [vmem:[%s6676_s29 + $0xdf0] sm:$0xff] }
  0xb0   : > { %1119 = vst [vmem:[%s6681_s30 + $0x500] sm:$0xff] %v1118_v32  ;;  %v1246_v32 = vld [vmem:[%s6676_s29 + $0xe00] sm:$0xff] }
  0xb1   : > { %1121 = vst [vmem:[%s6681_s30 + $0x508] sm:$0xff] %v1120_v33  ;;  %v1248_v33 = vld [vmem:[%s6676_s29 + $0xe10] sm:$0xff] }
  0xb2   : > { %1123 = vst [vmem:[%s6681_s30 + $0x510] sm:$0xff] %v1122_v34  ;;  %v1250_v34 = vld [vmem:[%s6676_s29 + $0xe20] sm:$0xff] }
  0xb3   : > { %1125 = vst [vmem:[%s6681_s30 + $0x518] sm:$0xff] %v1124_v35  ;;  %v1252_v35 = vld [vmem:[%s6676_s29 + $0xe30] sm:$0xff] }
  0xb4   : > { %1127 = vst [vmem:[%s6681_s30 + $0x520] sm:$0xff] %v1126_v36  ;;  %v1254_v36 = vld [vmem:[%s6676_s29 + $0xe40] sm:$0xff] }
  0xb5   : > { %1129 = vst [vmem:[%s6681_s30 + $0x528] sm:$0xff] %v1128_v37  ;;  %v1256_v37 = vld [vmem:[%s6676_s29 + $0xe50] sm:$0xff] }
  0xb6   : > { %1131 = vst [vmem:[%s6681_s30 + $0x530] sm:$0xff] %v1130_v38  ;;  %v1258_v38 = vld [vmem:[%s6676_s29 + $0xe60] sm:$0xff] }
  0xb7   : > { %1133 = vst [vmem:[%s6681_s30 + $0x538] sm:$0xff] %v1132_v39  ;;  %v1260_v39 = vld [vmem:[%s6676_s29 + $0xe70] sm:$0xff] }
  0xb8   : > { %1135 = vst [vmem:[%s6681_s30 + $0x540] sm:$0xff] %v1134_v40  ;;  %v1262_v40 = vld [vmem:[%s6676_s29 + $0xe80] sm:$0xff] }
  0xb9   : > { %1137 = vst [vmem:[%s6681_s30 + $0x548] sm:$0xff] %v1136_v41  ;;  %v1264_v41 = vld [vmem:[%s6676_s29 + $0xe90] sm:$0xff] }
  0xba   : > { %1139 = vst [vmem:[%s6681_s30 + $0x550] sm:$0xff] %v1138_v42  ;;  %v1266_v42 = vld [vmem:[%s6676_s29 + $0xea0] sm:$0xff] }
  0xbb   : > { %1141 = vst [vmem:[%s6681_s30 + $0x558] sm:$0xff] %v1140_v43  ;;  %v1268_v43 = vld [vmem:[%s6676_s29 + $0xeb0] sm:$0xff] }
  0xbc   : > { %1143 = vst [vmem:[%s6681_s30 + $0x560] sm:$0xff] %v1142_v44  ;;  %v1270_v44 = vld [vmem:[%s6676_s29 + $0xec0] sm:$0xff] }
  0xbd   : > { %1145 = vst [vmem:[%s6681_s30 + $0x568] sm:$0xff] %v1144_v45  ;;  %v1272_v45 = vld [vmem:[%s6676_s29 + $0xed0] sm:$0xff] }
  0xbe   : > { %1147 = vst [vmem:[%s6681_s30 + $0x570] sm:$0xff] %v1146_v46  ;;  %v1274_v46 = vld [vmem:[%s6676_s29 + $0xee0] sm:$0xff] }
  0xbf   : > { %1149 = vst [vmem:[%s6681_s30 + $0x578] sm:$0xff] %v1148_v47  ;;  %v1276_v47 = vld [vmem:[%s6676_s29 + $0xef0] sm:$0xff] }
  0xc0   : > { %1151 = vst [vmem:[%s6681_s30 + $0x580] sm:$0xff] %v1150_v48  ;;  %v1278_v48 = vld [vmem:[%s6676_s29 + $0xf00] sm:$0xff] }
  0xc1   : > { %1153 = vst [vmem:[%s6681_s30 + $0x588] sm:$0xff] %v1152_v49  ;;  %v1280_v49 = vld [vmem:[%s6676_s29 + $0xf10] sm:$0xff] }
  0xc2   : > { %1155 = vst [vmem:[%s6681_s30 + $0x590] sm:$0xff] %v1154_v50  ;;  %v1282_v50 = vld [vmem:[%s6676_s29 + $0xf20] sm:$0xff] }
  0xc3   : > { %1157 = vst [vmem:[%s6681_s30 + $0x598] sm:$0xff] %v1156_v51  ;;  %v1284_v51 = vld [vmem:[%s6676_s29 + $0xf30] sm:$0xff] }
  0xc4   : > { %1159 = vst [vmem:[%s6681_s30 + $0x5a0] sm:$0xff] %v1158_v52  ;;  %v1286_v52 = vld [vmem:[%s6676_s29 + $0xf40] sm:$0xff] }
  0xc5   : > { %1161 = vst [vmem:[%s6681_s30 + $0x5a8] sm:$0xff] %v1160_v53  ;;  %v1288_v53 = vld [vmem:[%s6676_s29 + $0xf50] sm:$0xff] }
  0xc6   : > { %1163 = vst [vmem:[%s6681_s30 + $0x5b0] sm:$0xff] %v1162_v54  ;;  %v1290_v54 = vld [vmem:[%s6676_s29 + $0xf60] sm:$0xff] }
  0xc7   : > { %1165 = vst [vmem:[%s6681_s30 + $0x5b8] sm:$0xff] %v1164_v55  ;;  %v1292_v55 = vld [vmem:[%s6676_s29 + $0xf70] sm:$0xff] }
  0xc8   : > { %1167 = vst [vmem:[%s6681_s30 + $0x5c0] sm:$0xff] %v1166_v56  ;;  %v1294_v56 = vld [vmem:[%s6676_s29 + $0xf80] sm:$0xff] }
  0xc9   : > { %1169 = vst [vmem:[%s6681_s30 + $0x5c8] sm:$0xff] %v1168_v57  ;;  %v1296_v57 = vld [vmem:[%s6676_s29 + $0xf90] sm:$0xff] }
  0xca   : > { %1171 = vst [vmem:[%s6681_s30 + $0x5d0] sm:$0xff] %v1170_v58  ;;  %v1298_v58 = vld [vmem:[%s6676_s29 + $0xfa0] sm:$0xff] }
  0xcb   : > { %1173 = vst [vmem:[%s6681_s30 + $0x5d8] sm:$0xff] %v1172_v59  ;;  %v1300_v59 = vld [vmem:[%s6676_s29 + $0xfb0] sm:$0xff] }
  0xcc   : > { %1175 = vst [vmem:[%s6681_s30 + $0x5e0] sm:$0xff] %v1174_v60  ;;  %v1302_v60 = vld [vmem:[%s6676_s29 + $0xfc0] sm:$0xff] }
  0xcd   : > { %1177 = vst [vmem:[%s6681_s30 + $0x5e8] sm:$0xff] %v1176_v61  ;;  %v1304_v61 = vld [vmem:[%s6676_s29 + $0xfd0] sm:$0xff] }
  0xce   : > { %1179 = vst [vmem:[%s6681_s30 + $0x5f0] sm:$0xff] %v1178_v62  ;;  %v1306_v62 = vld [vmem:[%s6676_s29 + $0xfe0] sm:$0xff] }
  0xcf   : > { %1181 = vst [vmem:[%s6681_s30 + $0x5f8] sm:$0xff] %v1180_v63  ;;  %v1308_v63 = vld [vmem:[%s6676_s29 + $0xff0] sm:$0xff] }
  0xd0   : > { %1183 = vst [vmem:[%s6681_s30 + $0x600] sm:$0xff] %v1182_v0  ;;  %v1310_v0 = vld [vmem:[%s6676_s29 + $0x1000] sm:$0xff] }
  0xd1   : > { %1185 = vst [vmem:[%s6681_s30 + $0x608] sm:$0xff] %v1184_v1  ;;  %v1312_v1 = vld [vmem:[%s6676_s29 + $0x1010] sm:$0xff] }
  0xd2   : > { %1187 = vst [vmem:[%s6681_s30 + $0x610] sm:$0xff] %v1186_v2  ;;  %v1314_v2 = vld [vmem:[%s6676_s29 + $0x1020] sm:$0xff] }
  0xd3   : > { %1189 = vst [vmem:[%s6681_s30 + $0x618] sm:$0xff] %v1188_v3  ;;  %v1316_v3 = vld [vmem:[%s6676_s29 + $0x1030] sm:$0xff] }
  0xd4   : > { %1191 = vst [vmem:[%s6681_s30 + $0x620] sm:$0xff] %v1190_v4  ;;  %v1318_v4 = vld [vmem:[%s6676_s29 + $0x1040] sm:$0xff] }
  0xd5   : > { %1193 = vst [vmem:[%s6681_s30 + $0x628] sm:$0xff] %v1192_v5  ;;  %v1320_v5 = vld [vmem:[%s6676_s29 + $0x1050] sm:$0xff] }
  0xd6   : > { %1195 = vst [vmem:[%s6681_s30 + $0x630] sm:$0xff] %v1194_v6  ;;  %v1322_v6 = vld [vmem:[%s6676_s29 + $0x1060] sm:$0xff] }
  0xd7   : > { %1197 = vst [vmem:[%s6681_s30 + $0x638] sm:$0xff] %v1196_v7  ;;  %v1324_v7 = vld [vmem:[%s6676_s29 + $0x1070] sm:$0xff] }
  0xd8   : > { %1199 = vst [vmem:[%s6681_s30 + $0x640] sm:$0xff] %v1198_v8  ;;  %v1326_v8 = vld [vmem:[%s6676_s29 + $0x1080] sm:$0xff] }
  0xd9   : > { %1201 = vst [vmem:[%s6681_s30 + $0x648] sm:$0xff] %v1200_v9  ;;  %v1328_v9 = vld [vmem:[%s6676_s29 + $0x1090] sm:$0xff] }
  0xda   : > { %1203 = vst [vmem:[%s6681_s30 + $0x650] sm:$0xff] %v1202_v10  ;;  %v1330_v10 = vld [vmem:[%s6676_s29 + $0x10a0] sm:$0xff] }
  0xdb   : > { %1205 = vst [vmem:[%s6681_s30 + $0x658] sm:$0xff] %v1204_v11  ;;  %v1332_v11 = vld [vmem:[%s6676_s29 + $0x10b0] sm:$0xff] }
  0xdc   : > { %1207 = vst [vmem:[%s6681_s30 + $0x660] sm:$0xff] %v1206_v12  ;;  %v1334_v12 = vld [vmem:[%s6676_s29 + $0x10c0] sm:$0xff] }
  0xdd   : > { %1209 = vst [vmem:[%s6681_s30 + $0x668] sm:$0xff] %v1208_v13  ;;  %v1336_v13 = vld [vmem:[%s6676_s29 + $0x10d0] sm:$0xff] }
  0xde   : > { %1211 = vst [vmem:[%s6681_s30 + $0x670] sm:$0xff] %v1210_v14  ;;  %v1338_v14 = vld [vmem:[%s6676_s29 + $0x10e0] sm:$0xff] }
  0xdf   : > { %1213 = vst [vmem:[%s6681_s30 + $0x678] sm:$0xff] %v1212_v15  ;;  %v1340_v15 = vld [vmem:[%s6676_s29 + $0x10f0] sm:$0xff] }
  0xe0   : > { %1215 = vst [vmem:[%s6681_s30 + $0x680] sm:$0xff] %v1214_v16  ;;  %v1342_v16 = vld [vmem:[%s6676_s29 + $0x1100] sm:$0xff] }
  0xe1   : > { %1217 = vst [vmem:[%s6681_s30 + $0x688] sm:$0xff] %v1216_v17  ;;  %v1344_v17 = vld [vmem:[%s6676_s29 + $0x1110] sm:$0xff] }
  0xe2   : > { %1219 = vst [vmem:[%s6681_s30 + $0x690] sm:$0xff] %v1218_v18  ;;  %v1346_v18 = vld [vmem:[%s6676_s29 + $0x1120] sm:$0xff] }
  0xe3   : > { %1221 = vst [vmem:[%s6681_s30 + $0x698] sm:$0xff] %v1220_v19  ;;  %v1348_v19 = vld [vmem:[%s6676_s29 + $0x1130] sm:$0xff] }
  0xe4   : > { %1223 = vst [vmem:[%s6681_s30 + $0x6a0] sm:$0xff] %v1222_v20  ;;  %v1350_v20 = vld [vmem:[%s6676_s29 + $0x1140] sm:$0xff] }
  0xe5   : > { %1225 = vst [vmem:[%s6681_s30 + $0x6a8] sm:$0xff] %v1224_v21  ;;  %v1352_v21 = vld [vmem:[%s6676_s29 + $0x1150] sm:$0xff] }
  0xe6   : > { %1227 = vst [vmem:[%s6681_s30 + $0x6b0] sm:$0xff] %v1226_v22  ;;  %v1354_v22 = vld [vmem:[%s6676_s29 + $0x1160] sm:$0xff] }
  0xe7   : > { %1229 = vst [vmem:[%s6681_s30 + $0x6b8] sm:$0xff] %v1228_v23  ;;  %v1356_v23 = vld [vmem:[%s6676_s29 + $0x1170] sm:$0xff] }
  0xe8   : > { %1231 = vst [vmem:[%s6681_s30 + $0x6c0] sm:$0xff] %v1230_v24  ;;  %v1358_v24 = vld [vmem:[%s6676_s29 + $0x1180] sm:$0xff] }
  0xe9   : > { %1233 = vst [vmem:[%s6681_s30 + $0x6c8] sm:$0xff] %v1232_v25  ;;  %v1360_v25 = vld [vmem:[%s6676_s29 + $0x1190] sm:$0xff] }
  0xea   : > { %1235 = vst [vmem:[%s6681_s30 + $0x6d0] sm:$0xff] %v1234_v26  ;;  %v1362_v26 = vld [vmem:[%s6676_s29 + $0x11a0] sm:$0xff] }
  0xeb   : > { %1237 = vst [vmem:[%s6681_s30 + $0x6d8] sm:$0xff] %v1236_v27  ;;  %v1364_v27 = vld [vmem:[%s6676_s29 + $0x11b0] sm:$0xff] }
  0xec   : > { %1239 = vst [vmem:[%s6681_s30 + $0x6e0] sm:$0xff] %v1238_v28  ;;  %v1366_v28 = vld [vmem:[%s6676_s29 + $0x11c0] sm:$0xff] }
  0xed   : > { %1241 = vst [vmem:[%s6681_s30 + $0x6e8] sm:$0xff] %v1240_v29  ;;  %v1368_v29 = vld [vmem:[%s6676_s29 + $0x11d0] sm:$0xff] }
  0xee   : > { %1243 = vst [vmem:[%s6681_s30 + $0x6f0] sm:$0xff] %v1242_v30  ;;  %v1370_v30 = vld [vmem:[%s6676_s29 + $0x11e0] sm:$0xff] }
  0xef   : > { %1245 = vst [vmem:[%s6681_s30 + $0x6f8] sm:$0xff] %v1244_v31  ;;  %v1372_v31 = vld [vmem:[%s6676_s29 + $0x11f0] sm:$0xff] }
  0xf0   : > { %1247 = vst [vmem:[%s6681_s30 + $0x700] sm:$0xff] %v1246_v32 }
  0xf1   : > { %1249 = vst [vmem:[%s6681_s30 + $0x708] sm:$0xff] %v1248_v33 }
  0xf2   : > { %1251 = vst [vmem:[%s6681_s30 + $0x710] sm:$0xff] %v1250_v34 }
  0xf3   : > { %1253 = vst [vmem:[%s6681_s30 + $0x718] sm:$0xff] %v1252_v35 }
  0xf4   : > { %1255 = vst [vmem:[%s6681_s30 + $0x720] sm:$0xff] %v1254_v36 }
  0xf5   : > { %1257 = vst [vmem:[%s6681_s30 + $0x728] sm:$0xff] %v1256_v37 }
  0xf6   : > { %1259 = vst [vmem:[%s6681_s30 + $0x730] sm:$0xff] %v1258_v38 }
  0xf7   : > { %1261 = vst [vmem:[%s6681_s30 + $0x738] sm:$0xff] %v1260_v39 }
  0xf8   : > { %1263 = vst [vmem:[%s6681_s30 + $0x740] sm:$0xff] %v1262_v40 }
  0xf9   : > { %1265 = vst [vmem:[%s6681_s30 + $0x748] sm:$0xff] %v1264_v41 }
  0xfa   : > { %1267 = vst [vmem:[%s6681_s30 + $0x750] sm:$0xff] %v1266_v42 }
  0xfb   : > { %1269 = vst [vmem:[%s6681_s30 + $0x758] sm:$0xff] %v1268_v43 }
  0xfc   : > { %1271 = vst [vmem:[%s6681_s30 + $0x760] sm:$0xff] %v1270_v44 }
  0xfd   : > { %1273 = vst [vmem:[%s6681_s30 + $0x768] sm:$0xff] %v1272_v45 }
  0xfe   : > { %1275 = vst [vmem:[%s6681_s30 + $0x770] sm:$0xff] %v1274_v46 }
  0xff   : > { %1277 = vst [vmem:[%s6681_s30 + $0x778] sm:$0xff] %v1276_v47 }
 0x100   : > { %1279 = vst [vmem:[%s6681_s30 + $0x780] sm:$0xff] %v1278_v48 }
 0x101   : > { %1281 = vst [vmem:[%s6681_s30 + $0x788] sm:$0xff] %v1280_v49 }
 0x102   : > { %1283 = vst [vmem:[%s6681_s30 + $0x790] sm:$0xff] %v1282_v50 }
 0x103   : > { %1285 = vst [vmem:[%s6681_s30 + $0x798] sm:$0xff] %v1284_v51 }
 0x104   : > { %1287 = vst [vmem:[%s6681_s30 + $0x7a0] sm:$0xff] %v1286_v52 }
 0x105   : > { %1289 = vst [vmem:[%s6681_s30 + $0x7a8] sm:$0xff] %v1288_v53 }
 0x106   : > { %1291 = vst [vmem:[%s6681_s30 + $0x7b0] sm:$0xff] %v1290_v54 }
 0x107   : > { %1293 = vst [vmem:[%s6681_s30 + $0x7b8] sm:$0xff] %v1292_v55 }
 0x108   : > { %1295 = vst [vmem:[%s6681_s30 + $0x7c0] sm:$0xff] %v1294_v56 }
 0x109   : > { %1297 = vst [vmem:[%s6681_s30 + $0x7c8] sm:$0xff] %v1296_v57 }
 0x10a   : > { %1299 = vst [vmem:[%s6681_s30 + $0x7d0] sm:$0xff] %v1298_v58 }
 0x10b   : > { %1301 = vst [vmem:[%s6681_s30 + $0x7d8] sm:$0xff] %v1300_v59 }
 0x10c   : > { %1303 = vst [vmem:[%s6681_s30 + $0x7e0] sm:$0xff] %v1302_v60 }
 0x10d   : > { %1305 = vst [vmem:[%s6681_s30 + $0x7e8] sm:$0xff] %v1304_v61 }
 0x10e   : > { %1307 = vst [vmem:[%s6681_s30 + $0x7f0] sm:$0xff] %v1306_v62 }
 0x10f   : > { %1309 = vst [vmem:[%s6681_s30 + $0x7f8] sm:$0xff] %v1308_v63 }
 0x110   : > { %1311 = vst [vmem:[%s6681_s30 + $0x800] sm:$0xff] %v1310_v0 }
 0x111   : > { %1313 = vst [vmem:[%s6681_s30 + $0x808] sm:$0xff] %v1312_v1 }
 0x112   : > { %1315 = vst [vmem:[%s6681_s30 + $0x810] sm:$0xff] %v1314_v2 }
 0x113   : > { %1317 = vst [vmem:[%s6681_s30 + $0x818] sm:$0xff] %v1316_v3 }
 0x114   : > { %1319 = vst [vmem:[%s6681_s30 + $0x820] sm:$0xff] %v1318_v4 }
 0x115   : > { %1321 = vst [vmem:[%s6681_s30 + $0x828] sm:$0xff] %v1320_v5 }
 0x116   : > { %1323 = vst [vmem:[%s6681_s30 + $0x830] sm:$0xff] %v1322_v6 }
 0x117   : > { %1325 = vst [vmem:[%s6681_s30 + $0x838] sm:$0xff] %v1324_v7 }
 0x118   : > { %1327 = vst [vmem:[%s6681_s30 + $0x840] sm:$0xff] %v1326_v8 }
 0x119   : > { %1329 = vst [vmem:[%s6681_s30 + $0x848] sm:$0xff] %v1328_v9 }
 0x11a   : > { %1331 = vst [vmem:[%s6681_s30 + $0x850] sm:$0xff] %v1330_v10 }
 0x11b   : > { %1333 = vst [vmem:[%s6681_s30 + $0x858] sm:$0xff] %v1332_v11 }
 0x11c   : > { %1335 = vst [vmem:[%s6681_s30 + $0x860] sm:$0xff] %v1334_v12 }
 0x11d   : > { %1337 = vst [vmem:[%s6681_s30 + $0x868] sm:$0xff] %v1336_v13 }
 0x11e   : > { %1339 = vst [vmem:[%s6681_s30 + $0x870] sm:$0xff] %v1338_v14 }
 0x11f   : > { %1341 = vst [vmem:[%s6681_s30 + $0x878] sm:$0xff] %v1340_v15 }
 0x120   : > { %1343 = vst [vmem:[%s6681_s30 + $0x880] sm:$0xff] %v1342_v16 }
 0x121   : > { %1345 = vst [vmem:[%s6681_s30 + $0x888] sm:$0xff] %v1344_v17 }
 0x122   : > { %1347 = vst [vmem:[%s6681_s30 + $0x890] sm:$0xff] %v1346_v18 }
 0x123   : > { %1349 = vst [vmem:[%s6681_s30 + $0x898] sm:$0xff] %v1348_v19 }
 0x124   : > { %1351 = vst [vmem:[%s6681_s30 + $0x8a0] sm:$0xff] %v1350_v20 }
 0x125   : > { %1353 = vst [vmem:[%s6681_s30 + $0x8a8] sm:$0xff] %v1352_v21 }
 0x126   : > { %1355 = vst [vmem:[%s6681_s30 + $0x8b0] sm:$0xff] %v1354_v22 }
 0x127   : > { %1357 = vst [vmem:[%s6681_s30 + $0x8b8] sm:$0xff] %v1356_v23 }
 0x128   : > { %1359 = vst [vmem:[%s6681_s30 + $0x8c0] sm:$0xff] %v1358_v24 }
 0x129   : > { %1361 = vst [vmem:[%s6681_s30 + $0x8c8] sm:$0xff] %v1360_v25 }
 0x12a   : > { %1363 = vst [vmem:[%s6681_s30 + $0x8d0] sm:$0xff] %v1362_v26 }
 0x12b   : > { %1365 = vst [vmem:[%s6681_s30 + $0x8d8] sm:$0xff] %v1364_v27 }
 0x12c   : > { %1367 = vst [vmem:[%s6681_s30 + $0x8e0] sm:$0xff] %v1366_v28 }
 0x12d   : > { %1369 = vst [vmem:[%s6681_s30 + $0x8e8] sm:$0xff] %v1368_v29 }
 0x12e   : > { %1371 = vst [vmem:[%s6681_s30 + $0x8f0] sm:$0xff] %v1370_v30 }
 0x12f   : > { %1373 = vst [vmem:[%s6681_s30 + $0x8f8] sm:$0xff] %v1372_v31 }
 0x130 PF: > { %p5078_p6 = scmp.ge.s32.totalorder %s6606_s19, 1  ;;  %p2581_p7 = scmp.lt.s32.totalorder %s6606_s19, 3 }
 0x132   : > { %p2582_p8 = pnand %p5078_p6, %p2581_p7 }
 0x133   : > { %s2588_s5 = sand.u32 (!%p2582_p8), 1, %s6590_s15  }
 0x134   : > { %2585 = sbr.rel (%p2582_p8) target bundleno = 750 (0x2ee), region = 84 }
 0x135   : > { %s6527_s6 = smul.u32 (!%p2582_p8), 2304, %s2588_s5 }
 0x137   : > { %s7259_s7 = scalar_lea.vmem (!%p2582_p8), [#allocation3], %s6527_s6  ;;  %s5079_s6 = sshll.u32 (!%p2582_p8), %s6598_s17, 1 }
 0x138   : > { %p2635_p9 = scmp.lt.s32.totalorder (!%p2582_p8), %s5079_s6, 3 }
 0x139   : > { %v5141_v32 = vld [vmem:[%s7259_s7 + $0x70] sm:$0xf]  ;;  %v6253_v33 = vld [vmem:[%s7259_s7 + $0x74] sm:$0xf0]  ;;  %v5133_v43 = vld [vmem:[%s7259_s7 + $0x60] sm:$0xf] }
 0x13a   : > { %v5205_v34 = vld [vmem:[%s7259_s7 + $0xf0] sm:$0xf]  ;;  %v5142_v35 = vor.u32 %v6253_v33, %v5141_v32  ;;  %v6269_v36 = vld [vmem:[%s7259_s7 + $0xf4] sm:$0xf0]  ;;  %v6251_v45 = vld [vmem:[%s7259_s7 + $0x64] sm:$0xf0] }
 0x13b   : > { %v5269_v37 = vld [vmem:[%s7259_s7 + $0x170] sm:$0xf]  ;;  %v6285_v38 = vld [vmem:[%s7259_s7 + $0x174] sm:$0xf0]  ;;  %v5206_v39 = vor.u32 %v6269_v36, %v5205_v34  ;;  %v5197_v46 = vld [vmem:[%s7259_s7 + $0xe0] sm:$0xf]  ;;  %v5134_v48 = vor.u32 %v6251_v45, %v5133_v43 }
 0x13c   : > { %v5270_v40 = vor.u32 %v6285_v38, %v5269_v37  ;;  %v5333_v41 = vld [vmem:[%s7259_s7 + $0x1f0] sm:$0xf]  ;;  %v6301_v42 = vld [vmem:[%s7259_s7 + $0x1f4] sm:$0xf0]  ;;  %4458 = vmatpush.bf16.msra.mxu0 %v5142_v35  ;;  %v6267_v47 = vld [vmem:[%s7259_s7 + $0xe4] sm:$0xf0] }
 0x13d   : > { %v5334_v44 = vor.u32 %v6301_v42, %v5333_v41  ;;  %4471 = vmatpush.bf16.msra.mxu1 %v5206_v39  ;;  %v5198_v49 = vor.u32 %v6267_v47, %v5197_v46  ;;  %v5261_v50 = vld [vmem:[%s7259_s7 + $0x160] sm:$0xf]  ;;  %v6283_v51 = vld [vmem:[%s7259_s7 + $0x164] sm:$0xf0]  ;;  %v5125_v55 = vld [vmem:[%s7259_s7 + $0x50] sm:$0xf] }
 0x13e   : > { %4484 = vmatpush.bf16.msra.mxu2 %v5270_v40  ;;  %v5325_v52 = vld [vmem:[%s7259_s7 + $0x1e0] sm:$0xf]  ;;  %v5262_v53 = vor.u32 %v6283_v51, %v5261_v50  ;;  %v6299_v54 = vld [vmem:[%s7259_s7 + $0x1e4] sm:$0xf0]  ;;  %v6249_v56 = vld [vmem:[%s7259_s7 + $0x54] sm:$0xf0] }
 0x13f   : > { %4497 = vmatpush.bf16.msra.mxu3 %v5334_v44  ;;  %v5326_v57 = vor.u32 %v6299_v54, %v5325_v52  ;;  %v5189_v58 = vld [vmem:[%s7259_s7 + $0xd0] sm:$0xf]  ;;  %v6265_v59 = vld [vmem:[%s7259_s7 + $0xd4] sm:$0xf0]  ;;  %v5126_v61 = vor.u32 %v6249_v56, %v5125_v55  ;;  %v5117_v3 = vld [vmem:[%s7259_s7 + $0x40] sm:$0xf] }
 0x140   : > { %v5253_v60 = vld [vmem:[%s7259_s7 + $0x150] sm:$0xf]  ;;  %4459 = vmatpush.bf16.msra.mxu0 %v5134_v48  ;;  %v6281_v62 = vld [vmem:[%s7259_s7 + $0x154] sm:$0xf0]  ;;  %v5190_v1 = vor.u32 %v6265_v59, %v5189_v58  ;;  %v6247_v4 = vld [vmem:[%s7259_s7 + $0x44] sm:$0xf0] }
 0x141   : > { %v5317_v63 = vld [vmem:[%s7259_s7 + $0x1d0] sm:$0xf]  ;;  %v6297_v0 = vld [vmem:[%s7259_s7 + $0x1d4] sm:$0xf0]  ;;  %4472 = vmatpush.bf16.msra.mxu1 %v5198_v49  ;;  %v5254_v2 = vor.u32 %v6281_v62, %v5253_v60  ;;  %v5181_v5 = vld [vmem:[%s7259_s7 + $0xc0] sm:$0xf]  ;;  %v5118_v12 = vor.u32 %v6247_v4, %v5117_v3 }
 0x142   : > { %4485 = vmatpush.bf16.msra.mxu2 %v5262_v53  ;;  %v5318_v6 = vor.u32 %v6297_v0, %v5317_v63  ;;  %v6263_v7 = vld [vmem:[%s7259_s7 + $0xc4] sm:$0xf0]  ;;  %v5245_v8 = vld [vmem:[%s7259_s7 + $0x140] sm:$0xf]  ;;  %v5109_v15 = vld [vmem:[%s7259_s7 + $0x30] sm:$0xf] }
 0x143   : > { %4498 = vmatpush.bf16.msra.mxu3 %v5326_v57  ;;  %v6279_v9 = vld [vmem:[%s7259_s7 + $0x144] sm:$0xf0]  ;;  %v5309_v10 = vld [vmem:[%s7259_s7 + $0x1c0] sm:$0xf]  ;;  %v5182_v13 = vor.u32 %v6263_v7, %v5181_v5  ;;  %v6245_v16 = vld [vmem:[%s7259_s7 + $0x34] sm:$0xf0] }
 0x144   : > { %v6295_v11 = vld [vmem:[%s7259_s7 + $0x1c4] sm:$0xf0]  ;;  %4460 = vmatpush.bf16.msra.mxu0 %v5126_v61  ;;  %v5246_v14 = vor.u32 %v6279_v9, %v5245_v8  ;;  %v5173_v17 = vld [vmem:[%s7259_s7 + $0xb0] sm:$0xf]  ;;  %v6261_v19 = vld [vmem:[%s7259_s7 + $0xb4] sm:$0xf0]  ;;  %v5110_v24 = vor.u32 %v6245_v16, %v5109_v15 }
 0x145   : > { %4473 = vmatpush.bf16.msra.mxu1 %v5190_v1  ;;  %v5310_v18 = vor.u32 %v6295_v11, %v5309_v10  ;;  %v5237_v20 = vld [vmem:[%s7259_s7 + $0x130] sm:$0xf]  ;;  %v6277_v21 = vld [vmem:[%s7259_s7 + $0x134] sm:$0xf0]  ;;  %v5174_v25 = vor.u32 %v6261_v19, %v5173_v17  ;;  %v5101_v27 = vld [vmem:[%s7259_s7 + $0x20] sm:$0xf] }
 0x146   : > { %4486 = vmatpush.bf16.msra.mxu2 %v5254_v2  ;;  %v5301_v22 = vld [vmem:[%s7259_s7 + $0x1b0] sm:$0xf]  ;;  %v6293_v23 = vld [vmem:[%s7259_s7 + $0x1b4] sm:$0xf0]  ;;  %v5238_v26 = vor.u32 %v6277_v21, %v5237_v20  ;;  %v6243_v28 = vld [vmem:[%s7259_s7 + $0x24] sm:$0xf0] }
 0x147   : > { %4499 = vmatpush.bf16.msra.mxu3 %v5318_v6  ;;  %v5165_v29 = vld [vmem:[%s7259_s7 + $0xa0] sm:$0xf]  ;;  %v5302_v30 = vor.u32 %v6293_v23, %v5301_v22  ;;  %v6259_v31 = vld [vmem:[%s7259_s7 + $0xa4] sm:$0xf0]  ;;  %v5102_v36 = vor.u32 %v6243_v28, %v5101_v27  ;;  %v5093_v39 = vld [vmem:[%s7259_s7 + $0x10] sm:$0xf] }
 0x148   : > { %4461 = vmatpush.bf16.msra.mxu0 %v5118_v12  ;;  %v5229_v32 = vld [vmem:[%s7259_s7 + $0x120] sm:$0xf]  ;;  %v6275_v33 = vld [vmem:[%s7259_s7 + $0x124] sm:$0xf0]  ;;  %v5166_v37 = vor.u32 %v6259_v31, %v5165_v29  ;;  %v6241_v40 = vld [vmem:[%s7259_s7 + $0x14] sm:$0xf0] }
 0x149   : > { %4474 = vmatpush.bf16.msra.mxu1 %v5182_v13  ;;  %v5293_v34 = vld [vmem:[%s7259_s7 + $0x1a0] sm:$0xf]  ;;  %v6291_v35 = vld [vmem:[%s7259_s7 + $0x1a4] sm:$0xf0]  ;;  %v5230_v38 = vor.u32 %v6275_v33, %v5229_v32  ;;  %v5157_v41 = vld [vmem:[%s7259_s7 + $0x90] sm:$0xf]  ;;  %v5094_v48 = vor.u32 %v6241_v40, %v5093_v39 }
 0x14a   : > { %4487 = vmatpush.bf16.msra.mxu2 %v5246_v14  ;;  %v5294_v42 = vor.u32 %v6291_v35, %v5293_v34  ;;  %v6257_v43 = vld [vmem:[%s7259_s7 + $0x94] sm:$0xf0]  ;;  %v5221_v44 = vld [vmem:[%s7259_s7 + $0x110] sm:$0xf]  ;;  %v5085_v49 = vld [vmem:[%s7259_s7] sm:$0xf] }
 0x14b   : > { %4500 = vmatpush.bf16.msra.mxu3 %v5310_v18  ;;  %v6273_v45 = vld [vmem:[%s7259_s7 + $0x114] sm:$0xf0]  ;;  %v5285_v46 = vld [vmem:[%s7259_s7 + $0x190] sm:$0xf]  ;;  %v6239_v50 = vld [vmem:[%s7259_s7 + $0x4] sm:$0xf0]  ;;  %v5158_v51 = vor.u32 %v6257_v43, %v5157_v41 }
 0x14c   : > { %4462 = vmatpush.bf16.msra.mxu0 %v5110_v24  ;;  %v6289_v47 = vld [vmem:[%s7259_s7 + $0x194] sm:$0xf0]  ;;  %v5222_v52 = vor.u32 %v6273_v45, %v5221_v44  ;;  %v5149_v53 = vld [vmem:[%s7259_s7 + $0x80] sm:$0xf]  ;;  %v6255_v54 = vld [vmem:[%s7259_s7 + $0x84] sm:$0xf0]  ;;  %v5086_v63 = vor.u32 %v6239_v50, %v5085_v49 }
 0x14d   : > { %4475 = vmatpush.bf16.msra.mxu1 %v5174_v25  ;;  %v5213_v55 = vld [vmem:[%s7259_s7 + $0x100] sm:$0xf]  ;;  %v5286_v56 = vor.u32 %v6289_v47, %v5285_v46  ;;  %v6271_v57 = vld [vmem:[%s7259_s7 + $0x104] sm:$0xf0]  ;;  %v5397_v60 = vld [vmem:[%s7259_s7 + $0x270] sm:$0xf]  ;;  %v5150_v3 = vor.u32 %v6255_v54, %v5149_v53 }
 0x14e   : > { %4488 = vmatpush.bf16.msra.mxu2 %v5238_v26  ;;  %v5277_v58 = vld [vmem:[%s7259_s7 + $0x180] sm:$0xf]  ;;  %v6287_v59 = vld [vmem:[%s7259_s7 + $0x184] sm:$0xf0]  ;;  %v6317_v61 = vld [vmem:[%s7259_s7 + $0x274] sm:$0xf0]  ;;  %v5214_v4 = vor.u32 %v6271_v57, %v5213_v55 }
 0x14f   : > { %4501 = vmatpush.bf16.msra.mxu3 %v5302_v30  ;;  %v5461_v62 = vld [vmem:[%s7259_s7 + $0x2f0] sm:$0xf]  ;;  %v6333_v0 = vld [vmem:[%s7259_s7 + $0x2f4] sm:$0xf0]  ;;  %v5278_v7 = vor.u32 %v6287_v59, %v5277_v58  ;;  %v5398_v8 = vor.u32 %v6317_v61, %v5397_v60  ;;  %v5389_v11 = vld [vmem:[%s7259_s7 + $0x260] sm:$0xf] }
 0x150   : > { %4463 = vmatpush.bf16.msra.mxu0 %v5102_v36  ;;  %v5525_v1 = vld [vmem:[%s7259_s7 + $0x370] sm:$0xf]  ;;  %v6349_v2 = vld [vmem:[%s7259_s7 + $0x374] sm:$0xf0]  ;;  %v5462_v9 = vor.u32 %v6333_v0, %v5461_v62  ;;  %v6315_v12 = vld [vmem:[%s7259_s7 + $0x264] sm:$0xf0] }
 0x151   : > { %4476 = vmatpush.bf16.msra.mxu1 %v5166_v37  ;;  %v5589_v5 = vld [vmem:[%s7259_s7 + $0x3f0] sm:$0xf]  ;;  %v6365_v6 = vld [vmem:[%s7259_s7 + $0x3f4] sm:$0xf0]  ;;  %v5526_v10 = vor.u32 %v6349_v2, %v5525_v1  ;;  %v5453_v13 = vld [vmem:[%s7259_s7 + $0x2e0] sm:$0xf]  ;;  %v5390_v20 = vor.u32 %v6315_v12, %v5389_v11 }
 0x152   : > { %4489 = vmatpush.bf16.msra.mxu2 %v5230_v38  ;;  %v5590_v14 = vor.u32 %v6365_v6, %v5589_v5  ;;  %v6331_v15 = vld [vmem:[%s7259_s7 + $0x2e4] sm:$0xf0]  ;;  %v5517_v16 = vld [vmem:[%s7259_s7 + $0x360] sm:$0xf]  ;;  %v5381_v21 = vld [vmem:[%s7259_s7 + $0x250] sm:$0xf] }
 0x153   : > { %4502 = vmatpush.bf16.msra.mxu3 %v5294_v42  ;;  %v6347_v17 = vld [vmem:[%s7259_s7 + $0x364] sm:$0xf0]  ;;  %v5581_v18 = vld [vmem:[%s7259_s7 + $0x3e0] sm:$0xf]  ;;  %v5454_v22 = vor.u32 %v6331_v15, %v5453_v13  ;;  %v6313_v24 = vld [vmem:[%s7259_s7 + $0x254] sm:$0xf0] }
 0x154   : > { %4464 = vmatpush.bf16.msra.mxu0 %v5094_v48  ;;  %v6363_v19 = vld [vmem:[%s7259_s7 + $0x3e4] sm:$0xf0]  ;;  %v5518_v23 = vor.u32 %v6347_v17, %v5517_v16  ;;  %v5445_v25 = vld [vmem:[%s7259_s7 + $0x2d0] sm:$0xf]  ;;  %v6329_v28 = vld [vmem:[%s7259_s7 + $0x2d4] sm:$0xf0]  ;;  %v5382_v35 = vor.u32 %v6313_v24, %v5381_v21 }
 0x155   : > { %4477 = vmatpush.bf16.msra.mxu1 %v5158_v51  ;;  %v2659_v26 = vld [vmem:[%s7975_s0 + $0x8] sm:$0xff]  ;;  %v5582_v27 = vor.u32 %v6363_v19, %v5581_v18  ;;  %v5509_v29 = vld [vmem:[%s7259_s7 + $0x350] sm:$0xf]  ;;  %v6345_v30 = vld [vmem:[%s7259_s7 + $0x354] sm:$0xf0]  ;;  %v5446_v39 = vor.u32 %v6329_v28, %v5445_v25  ;;  %s7987_s6 = smov (!%p2635_p9, %s5079_s6), 3 }
 0x156   : > { %4490 = vmatpush.bf16.msra.mxu2 %v5222_v52  ;;  %v2966_v31 = vunpack.c.l.b16 %v2659_v26  ;;  %v2967_v32 = vunpack.c.h.b16 %v2659_v26  ;;  %v5573_v33 = vld [vmem:[%s7259_s7 + $0x3d0] sm:$0xf]  ;;  %v6361_v34 = vld [vmem:[%s7259_s7 + $0x3d4] sm:$0xf0]  ;;  %v2658_v37 = vld [vmem:[%s7975_s0] sm:$0xff]  ;;  %v5510_v40 = vor.u32 %v6345_v30, %v5509_v29  ;;  %s2637_s9 = scalar_lea.vmem %s7977_s2, %s7987_s6  ;;  %s2642_s11 = scalar_lea.vmem %s7978_s3, %s7987_s6 }
 0x157   : > { %4503 = vmatpush.bf16.msra.mxu3 %v5286_v56  ;;  %v5373_v41 = vld [vmem:[%s7259_s7 + $0x240] sm:$0xf]  ;;  %v6311_v42 = vld [vmem:[%s7259_s7 + $0x244] sm:$0xf0]  ;;  %v2964_v44 = vunpack.c.l.b16 %v2658_v37  ;;  %v2965_v45 = vunpack.c.h.b16 %v2658_v37  ;;  %v5574_v46 = vor.u32 %v6361_v34, %v5573_v33  ;;  %v5365_v57 = vld [vmem:[%s7259_s7 + $0x230] sm:$0xf] }
 0x158   : > { %4465 = vmatpush.bf16.msra.mxu0 %v5086_v63  ;;  %v7352_v36 = vpack.c.b16 %v2966_v31, %v2966_v31  ;;  %v7357_v38 = vpack.c.b16 %v2967_v32, %v2967_v32  ;;  %v5437_v43 = vld [vmem:[%s7259_s7 + $0x2c0] sm:$0xf]  ;;  %v6327_v47 = vld [vmem:[%s7259_s7 + $0x2c4] sm:$0xf0]  ;;  %v5374_v54 = vor.u32 %v6311_v42, %v5373_v41  ;;  %v6309_v58 = vld [vmem:[%s7259_s7 + $0x234] sm:$0xf0] }
 0x159   : > { %4478 = vmatpush.bf16.msra.mxu1 %v5150_v3  ;;  %v5501_v48 = vld [vmem:[%s7259_s7 + $0x340] sm:$0xf]  ;;  %v6343_v49 = vld [vmem:[%s7259_s7 + $0x344] sm:$0xf0]  ;;  %v7368_v52 = vpack.c.b16 %v2964_v44, %v2964_v44  ;;  %v7371_v53 = vpack.c.b16 %v2965_v45, %v2965_v45  ;;  %v5438_v55 = vor.u32 %v6327_v47, %v5437_v43  ;;  %v5429_v59 = vld [vmem:[%s7259_s7 + $0x2b0] sm:$0xf]  ;;  %v5366_v2 = vor.u32 %v6309_v58, %v5365_v57 }
 0x15a   : > { %4491 = vmatpush.bf16.msra.mxu2 %v5214_v4  ;;  %v5565_v50 = vld [vmem:[%s7259_s7 + $0x3c0] sm:$0xf]  ;;  %v6359_v51 = vld [vmem:[%s7259_s7 + $0x3c4] sm:$0xf0]  ;;  %v5502_v56 = vor.u32 %v6343_v49, %v5501_v48  ;;  %v6325_v61 = vld [vmem:[%s7259_s7 + $0x2b4] sm:$0xf0] }
 0x15b   : > { %4504 = vmatpush.bf16.msra.mxu3 %v5278_v7  ;;  %v5566_v60 = vor.u32 %v6359_v51, %v5565_v50  ;;  %v5493_v62 = vld [vmem:[%s7259_s7 + $0x330] sm:$0xf]  ;;  %v6341_v63 = vld [vmem:[%s7259_s7 + $0x334] sm:$0xf0]  ;;  %4466 = vmatmul.bf16.vlgmr.msra.gmra.mxu0 %v7368_v52  ;;  %v5430_v3 = vor.u32 %v6325_v61, %v5429_v59  ;;  %v5357_v5 = vld [vmem:[%s7259_s7 + $0x220] sm:$0xf] }
 0x15c   : > { %4510 = vmatpush.bf16.msrb.mxu0 %v5398_v8  ;;  %v5557_v0 = vld [vmem:[%s7259_s7 + $0x3b0] sm:$0xf]  ;;  %v6357_v1 = vld [vmem:[%s7259_s7 + $0x3b4] sm:$0xf0]  ;;  %4479 = vmatmul.bf16.vlgmr.msra.gmra.mxu1 %v7371_v53  ;;  %v5494_v4 = vor.u32 %v6341_v63, %v5493_v62  ;;  %v6307_v6 = vld [vmem:[%s7259_s7 + $0x224] sm:$0xf0] }
 0x15d   : > { %4523 = vmatpush.bf16.msrb.mxu1 %v5462_v9  ;;  %4492 = vmatmul.bf16.vlgmr.msra.gmra.mxu2 %v7352_v36  ;;  %v5421_v7 = vld [vmem:[%s7259_s7 + $0x2a0] sm:$0xf]  ;;  %v5558_v8 = vor.u32 %v6357_v1, %v5557_v0  ;;  %v6323_v9 = vld [vmem:[%s7259_s7 + $0x2a4] sm:$0xf0]  ;;  %v5349_v17 = vld [vmem:[%s7259_s7 + $0x210] sm:$0xf] }
 0x15e   : > { %4536 = vmatpush.bf16.msrb.mxu2 %v5526_v10  ;;  %4505 = vmatmul.bf16.vlgmr.msra.gmra.mxu3 %v7357_v38  ;;  %v5485_v10 = vld [vmem:[%s7259_s7 + $0x320] sm:$0xf]  ;;  %v6339_v11 = vld [vmem:[%s7259_s7 + $0x324] sm:$0xf0]  ;;  %v5422_v15 = vor.u32 %v6323_v9, %v5421_v7  ;;  %v6305_v18 = vld [vmem:[%s7259_s7 + $0x214] sm:$0xf0] }
 0x15f   : > { %4549 = vmatpush.bf16.msrb.mxu3 %v5590_v14  ;;  %v5549_v12 = vld [vmem:[%s7259_s7 + $0x3a0] sm:$0xf]  ;;  %v6355_v13 = vld [vmem:[%s7259_s7 + $0x3a4] sm:$0xf0]  ;;  %v5358_v14 = vor.u32 %v6307_v6, %v5357_v5  ;;  %v5486_v16 = vor.u32 %v6339_v11, %v5485_v10  ;;  %v5413_v19 = vld [vmem:[%s7259_s7 + $0x290] sm:$0xf] }
 0x160   : > { %4511 = vmatpush.bf16.msrb.mxu0 %v5390_v20  ;;  %v5550_v20 = vor.u32 %v6355_v13, %v5549_v12  ;;  %v6321_v21 = vld [vmem:[%s7259_s7 + $0x294] sm:$0xf0]  ;;  %v5541_v24 = vld [vmem:[%s7259_s7 + $0x390] sm:$0xf]  ;;  %v5341_v26 = vld [vmem:[%s7259_s7 + $0x200] sm:$0xf] }
 0x161   : > { %4524 = vmatpush.bf16.msrb.mxu1 %v5454_v22  ;;  %v5477_v22 = vld [vmem:[%s7259_s7 + $0x310] sm:$0xf]  ;;  %v6353_v25 = vld [vmem:[%s7259_s7 + $0x394] sm:$0xf0]  ;;  %v6303_v28 = vld [vmem:[%s7259_s7 + $0x204] sm:$0xf0]  ;;  %v5414_v31 = vor.u32 %v6321_v21, %v5413_v19 }
 0x162   : > { %4537 = vmatpush.bf16.msrb.mxu2 %v5518_v23  ;;  %v6337_v23 = vld [vmem:[%s7259_s7 + $0x314] sm:$0xf0]  ;;  %v5405_v29 = vld [vmem:[%s7259_s7 + $0x280] sm:$0xf]  ;;  %v6319_v30 = vld [vmem:[%s7259_s7 + $0x284] sm:$0xf0]  ;;  %v5542_v37 = vor.u32 %v6353_v25, %v5541_v24  ;;  %v5342_v45 = vor.u32 %v6303_v28, %v5341_v26 }
 0x163   : > { %4550 = vmatpush.bf16.msrb.mxu3 %v5582_v27  ;;  %v5350_v27 = vor.u32 %v6305_v18, %v5349_v17  ;;  %v5478_v32 = vor.u32 %v6337_v23, %v5477_v22  ;;  %v5469_v33 = vld [vmem:[%s7259_s7 + $0x300] sm:$0xf]  ;;  %v6335_v34 = vld [vmem:[%s7259_s7 + $0x304] sm:$0xf0]  ;;  %v2660_v41 = vld [vmem:[%s7975_s0 + $0x10] sm:$0xff]  ;;  %v5406_v50 = vor.u32 %v6319_v30, %v5405_v29  ;;  %s5082_s12 = sshll.u32 %s7987_s6, 2 }
 0x164   : > { %4512 = vmatpush.bf16.msrb.mxu0 %v5382_v35  ;;  %v2661_v35 = vld [vmem:[%s7975_s0 + $0x18] sm:$0xff]  ;;  %v5653_v42 = vld [vmem:[%s7259_s7 + $0x470] sm:$0xf]  ;;  %v5470_v51 = vor.u32 %v6335_v34, %v5469_v33  ;;  %v5645_v63 = vld [vmem:[%s7259_s7 + $0x460] sm:$0xf]  ;;  %s2648_s15 = scalar_lea.vmem %s7979_s4, %s5082_s12 }
 0x165   : > { %4525 = vmatpush.bf16.msrb.mxu1 %v5446_v39  ;;  %v5533_v39 = vld [vmem:[%s7259_s7 + $0x380] sm:$0xf]  ;;  %v6381_v43 = vld [vmem:[%s7259_s7 + $0x474] sm:$0xf0]  ;;  %v5717_v44 = vld [vmem:[%s7259_s7 + $0x4f0] sm:$0xf]  ;;  %v2970_v49 = vunpack.c.l.b16 %v2661_v35  ;;  %v2971_v57 = vunpack.c.h.b16 %v2661_v35 }
 0x166   : > { %4538 = vmatpush.bf16.msrb.mxu2 %v5510_v40  ;;  %v6351_v40 = vld [vmem:[%s7259_s7 + $0x384] sm:$0xf0]  ;;  %v5781_v47 = vld [vmem:[%s7259_s7 + $0x570] sm:$0xf]  ;;  %v6413_v48 = vld [vmem:[%s7259_s7 + $0x574] sm:$0xf0]  ;;  %v5654_v59 = vor.u32 %v6381_v43, %v5653_v42 }
 0x167   : > { %4551 = vmatpush.bf16.msrb.mxu3 %v5574_v46  ;;  %v6397_v46 = vld [vmem:[%s7259_s7 + $0x4f4] sm:$0xf0]  ;;  %v5534_v58 = vor.u32 %v6351_v40, %v5533_v39  ;;  %v5782_v62 = vor.u32 %v6413_v48, %v5781_v47  ;;  %v6379_v0 = vld [vmem:[%s7259_s7 + $0x464] sm:$0xf0]  ;;  %v5709_v1 = vld [vmem:[%s7259_s7 + $0x4e0] sm:$0xf]  ;;  %v7427_v6 = vpack.c.b16 %v2970_v49, %v2970_v49  ;;  %v7433_v10 = vpack.c.b16 %v2971_v57, %v2971_v57 }
 0x168   : > { %4513 = vmatpush.bf16.msrb.mxu0 %v5374_v54  ;;  %v5845_v54 = vld [vmem:[%s7259_s7 + $0x5f0] sm:$0xf]  ;;  %v5718_v61 = vor.u32 %v6397_v46, %v5717_v44  ;;  %v6411_v5 = vld [vmem:[%s7259_s7 + $0x564] sm:$0xf0]  ;;  %v5837_v7 = vld [vmem:[%s7259_s7 + $0x5e0] sm:$0xf]  ;;  %v5646_v11 = vor.u32 %v6379_v0, %v5645_v63 }
 0x169   : > { %4526 = vmatpush.bf16.msrb.mxu1 %v5438_v55  ;;  %v6429_v55 = vld [vmem:[%s7259_s7 + $0x5f4] sm:$0xf0]  ;;  %v5701_v17 = vld [vmem:[%s7259_s7 + $0x4d0] sm:$0xf]  ;;  %v6375_v28 = vld [vmem:[%s7259_s7 + $0x444] sm:$0xf0] }
 0x16a   : > { %4539 = vmatpush.bf16.msrb.mxu2 %v5502_v56  ;;  %v2968_v56 = vunpack.c.l.b16 %v2660_v41  ;;  %v6393_v19 = vld [vmem:[%s7259_s7 + $0x4d4] sm:$0xf0]  ;;  %v5829_v22 = vld [vmem:[%s7259_s7 + $0x5d0] sm:$0xf]  ;;  %v5693_v29 = vld [vmem:[%s7259_s7 + $0x4c0] sm:$0xf] }
 0x16b   : > { %4552 = vmatpush.bf16.msrb.mxu3 %v5566_v60  ;;  %v2969_v60 = vunpack.c.h.b16 %v2660_v41  ;;  %v6409_v21 = vld [vmem:[%s7259_s7 + $0x554] sm:$0xf0]  ;;  %v5702_v25 = vor.u32 %v6393_v19, %v5701_v17  ;;  %v6407_v33 = vld [vmem:[%s7259_s7 + $0x544] sm:$0xf0]  ;;  %v5821_v34 = vld [vmem:[%s7259_s7 + $0x5c0] sm:$0xf] }
 0x16c   : > { %4514 = vmatpush.bf16.msrb.mxu0 %v5366_v2  ;;  %v5846_v2 = vor.u32 %v6429_v55, %v5845_v54  ;;  %v7431_v9 = vpack.c.b16 %v2968_v56, %v2968_v56  ;;  %v6425_v23 = vld [vmem:[%s7259_s7 + $0x5d4] sm:$0xf0]  ;;  %v6423_v35 = vld [vmem:[%s7259_s7 + $0x5c4] sm:$0xf0]  ;;  %v5621_v41 = vld [vmem:[%s7259_s7 + $0x430] sm:$0xf] }
 0x16d   : > { %4527 = vmatpush.bf16.msrb.mxu1 %v5430_v3  ;;  %v6395_v3 = vld [vmem:[%s7259_s7 + $0x4e4] sm:$0xf0]  ;;  %v7435_v12 = vpack.c.b16 %v2969_v60, %v2969_v60  ;;  %v5830_v30 = vor.u32 %v6425_v23, %v5829_v22  ;;  %v6373_v42 = vld [vmem:[%s7259_s7 + $0x434] sm:$0xf0]  ;;  %v5685_v43 = vld [vmem:[%s7259_s7 + $0x4b0] sm:$0xf]  ;;  %v5822_v44 = vor.u32 %v6423_v35, %v5821_v34 }
 0x16e   : > { %4540 = vmatpush.bf16.msrb.mxu2 %v5494_v4  ;;  %v5773_v4 = vld [vmem:[%s7259_s7 + $0x560] sm:$0xf]  ;;  %v5710_v13 = vor.u32 %v6395_v3, %v5709_v1  ;;  %v5749_v46 = vld [vmem:[%s7259_s7 + $0x530] sm:$0xf]  ;;  %v6405_v47 = vld [vmem:[%s7259_s7 + $0x534] sm:$0xf0] }
 0x16f   : > { %4553 = vmatpush.bf16.msrb.mxu3 %v5558_v8  ;;  %v6427_v8 = vld [vmem:[%s7259_s7 + $0x5e4] sm:$0xf0]  ;;  %v5813_v48 = vld [vmem:[%s7259_s7 + $0x5b0] sm:$0xf]  ;;  %v6421_v49 = vld [vmem:[%s7259_s7 + $0x5b4] sm:$0xf0]  ;;  %v5750_v54 = vor.u32 %v6405_v47, %v5749_v46 }
 0x170   : > { %4515 = vmatpush.bf16.msrb.mxu0 %v5358_v14  ;;  %v5774_v14 = vor.u32 %v6411_v5, %v5773_v4  ;;  %v5838_v18 = vor.u32 %v6427_v8, %v5837_v7  ;;  %v5613_v55 = vld [vmem:[%s7259_s7 + $0x420] sm:$0xf]  ;;  %v6371_v56 = vld [vmem:[%s7259_s7 + $0x424] sm:$0xf0]  ;;  %v5605_v3 = vld [vmem:[%s7259_s7 + $0x410] sm:$0xf] }
 0x171   : > { %4528 = vmatpush.bf16.msrb.mxu1 %v5422_v15  ;;  %v5637_v15 = vld [vmem:[%s7259_s7 + $0x450] sm:$0xf]  ;;  %v5677_v57 = vld [vmem:[%s7259_s7 + $0x4a0] sm:$0xf]  ;;  %v6419_v63 = vld [vmem:[%s7259_s7 + $0x5a4] sm:$0xf0]  ;;  %v5614_v0 = vor.u32 %v6371_v56, %v5613_v55 }
 0x172   : > { %4541 = vmatpush.bf16.msrb.mxu2 %v5486_v16  ;;  %v6377_v16 = vld [vmem:[%s7259_s7 + $0x454] sm:$0xf0]  ;;  %v5741_v60 = vld [vmem:[%s7259_s7 + $0x520] sm:$0xf]  ;;  %v5669_v5 = vld [vmem:[%s7259_s7 + $0x490] sm:$0xf] }
 0x173   : > { %4554 = vmatpush.bf16.msrb.mxu3 %v5550_v20  ;;  %v5765_v20 = vld [vmem:[%s7259_s7 + $0x550] sm:$0xf]  ;;  %v5638_v24 = vor.u32 %v6377_v16, %v5637_v15  ;;  %v6369_v4 = vld [vmem:[%s7259_s7 + $0x414] sm:$0xf0]  ;;  %v5597_v16 = vld [vmem:[%s7259_s7 + $0x400] sm:$0xf] }
 0x174   : > { %4516 = vmatpush.bf16.msrb.mxu0 %v5350_v27  ;;  %v5766_v26 = vor.u32 %v6409_v21, %v5765_v20  ;;  %v5629_v27 = vld [vmem:[%s7259_s7 + $0x440] sm:$0xf]  ;;  %v6385_v8 = vld [vmem:[%s7259_s7 + $0x494] sm:$0xf0]  ;;  %v5606_v17 = vor.u32 %v6369_v4, %v5605_v3  ;;  %v6383_v20 = vld [vmem:[%s7259_s7 + $0x484] sm:$0xf0] }
 0x175   : > { %4529 = vmatpush.bf16.msrb.mxu1 %v5414_v31  ;;  %v6391_v31 = vld [vmem:[%s7259_s7 + $0x4c4] sm:$0xf0]  ;;  %v6417_v15 = vld [vmem:[%s7259_s7 + $0x594] sm:$0xf0]  ;;  %v5661_v19 = vld [vmem:[%s7259_s7 + $0x480] sm:$0xf]  ;;  %v5670_v21 = vor.u32 %v6385_v8, %v5669_v5 }
 0x176   : > { %4542 = vmatpush.bf16.msrb.mxu2 %v5478_v32  ;;  %v5757_v32 = vld [vmem:[%s7259_s7 + $0x540] sm:$0xf]  ;;  %v5694_v39 = vor.u32 %v6391_v31, %v5693_v29  ;;  %v2663_v29 = vld [vmem:[%s7975_s0 + $0x28] sm:$0xff]  ;;  %v6445_v31 = vld [vmem:[%s7259_s7 + $0x674] sm:$0xf0] }
 0x177   : > { %4555 = vmatpush.bf16.msrb.mxu3 %v5542_v37  ;;  %v5630_v37 = vor.u32 %v6375_v28, %v5629_v27  ;;  %v5758_v40 = vor.u32 %v6407_v33, %v5757_v32  ;;  %v5725_v23 = vld [vmem:[%s7259_s7 + $0x500] sm:$0xf]  ;;  %v6415_v28 = vld [vmem:[%s7259_s7 + $0x584] sm:$0xf0]  ;;  %v5973_v32 = vld [vmem:[%s7259_s7 + $0x6f0] sm:$0xf] }
 0x178   : > { %4517 = vmatpush.bf16.msrb.mxu0 %v5342_v45  ;;  %v6389_v45 = vld [vmem:[%s7259_s7 + $0x4b4] sm:$0xf0]  ;;  %v5789_v27 = vld [vmem:[%s7259_s7 + $0x580] sm:$0xf]  ;;  %v6037_v35 = vld [vmem:[%s7259_s7 + $0x770] sm:$0xf] }
 0x179   : > { %4530 = vmatpush.bf16.msrb.mxu1 %v5406_v50  ;;  %v5622_v50 = vor.u32 %v6373_v42, %v5621_v41  ;;  %v6461_v34 = vld [vmem:[%s7259_s7 + $0x6f4] sm:$0xf0]  ;;  %v6101_v42 = vld [vmem:[%s7259_s7 + $0x7f0] sm:$0xf]  ;;  %v5790_v46 = vor.u32 %v6415_v28, %v5789_v27  ;;  %v5965_v55 = vld [vmem:[%s7259_s7 + $0x6e0] sm:$0xf] }
 0x17a   : > { %4543 = vmatpush.bf16.msrb.mxu2 %v5470_v51  ;;  %v5686_v51 = vor.u32 %v6389_v45, %v5685_v43  ;;  %v6493_v43 = vld [vmem:[%s7259_s7 + $0x7f4] sm:$0xf0]  ;;  %v5893_v5 = vld [vmem:[%s7259_s7 + $0x650] sm:$0xf]  ;;  %v6471_v27 = vld [vmem:[%s7259_s7 + $0x744] sm:$0xf0] }
 0x17b   : > { %4556 = vmatpush.bf16.msrb.mxu3 %v5534_v58  ;;  %4518 = vmatmul.bf16.vlgmr.msrb.gmra.mxu0 %v7431_v9  ;;  %v5814_v58 = vor.u32 %v6421_v49, %v5813_v48  ;;  %v2975_v48 = vunpack.c.h.b16 %v2663_v29  ;;  %v5974_v49 = vor.u32 %v6461_v34, %v5973_v32  ;;  %v6102_v56 = vor.u32 %v6493_v43, %v6101_v42  ;;  %v5957_v8 = vld [vmem:[%s7259_s7 + $0x6d0] sm:$0xf]  ;;  %v6077_v28 = vld [vmem:[%s7259_s7 + $0x7c0] sm:$0xf]  ;;  %v6437_v34 = vld [vmem:[%s7259_s7 + $0x634] sm:$0xf0] }
 0x17c   : > { %4562 = vmatpush.bf16.msra.mxu0 %v5654_v59  ;;  %4531 = vmatmul.bf16.vlgmr.msrb.gmra.mxu1 %v7435_v12  ;;  %v6387_v59 = vld [vmem:[%s7259_s7 + $0x4a4] sm:$0xf0]  ;;  %v6069_v42 = vld [vmem:[%s7259_s7 + $0x7b0] sm:$0xf]  ;;  %v6485_v43 = vld [vmem:[%s7259_s7 + $0x7b4] sm:$0xf0] }
 0x17d   : > { %4575 = vmatpush.bf16.msra.mxu1 %v5718_v61  ;;  %4544 = vmatmul.bf16.vlgmr.msrb.gmra.mxu2 %v7427_v6  ;;  %v6403_v61 = vld [vmem:[%s7259_s7 + $0x524] sm:$0xf0]  ;;  %v5678_v1 = vor.u32 %v6387_v59, %v5677_v57  ;;  %v6029_v59 = vld [vmem:[%s7259_s7 + $0x760] sm:$0xf] }
 0x17e   : > { %4588 = vmatpush.bf16.msra.mxu2 %v5782_v62  ;;  %4557 = vmatmul.bf16.vlgmr.msrb.gmra.mxu3 %v7433_v10  ;;  %v5805_v62 = vld [vmem:[%s7259_s7 + $0x5a0] sm:$0xf] }
 0x17f   : > { %4601 = vmatpush.bf16.msra.mxu3 %v5846_v2  ;;  %v5742_v2 = vor.u32 %v6403_v61, %v5741_v60  ;;  %v5806_v7 = vor.u32 %v6419_v63, %v5805_v62  ;;  %v6475_v60 = vld [vmem:[%s7259_s7 + $0x764] sm:$0xf0]  ;;  %v6093_v63 = vld [vmem:[%s7259_s7 + $0x7e0] sm:$0xf] }
 0x180   : > { %4563 = vmatpush.bf16.msra.mxu0 %v5646_v11  ;;  %v5733_v11 = vld [vmem:[%s7259_s7 + $0x510] sm:$0xf]  ;;  %v6030_v4 = vor.u32 %v6475_v60, %v6029_v59 }
 0x181   : > { %4576 = vmatpush.bf16.msra.mxu1 %v5710_v13  ;;  %v6401_v13 = vld [vmem:[%s7259_s7 + $0x514] sm:$0xf0] }
 0x182   : > { %4589 = vmatpush.bf16.msra.mxu2 %v5774_v14  ;;  %v5797_v14 = vld [vmem:[%s7259_s7 + $0x590] sm:$0xf]  ;;  %v5734_v22 = vor.u32 %v6401_v13, %v5733_v11  ;;  %v6457_v13 = vld [vmem:[%s7259_s7 + $0x6d4] sm:$0xf0] }
 0x183   : > { %4602 = vmatpush.bf16.msra.mxu3 %v5838_v18  ;;  %v6367_v18 = vld [vmem:[%s7259_s7 + $0x404] sm:$0xf0] }
 0x184   : > { %4564 = vmatpush.bf16.msra.mxu0 %v5638_v24  ;;  %v6399_v24 = vld [vmem:[%s7259_s7 + $0x504] sm:$0xf0]  ;;  %v5598_v33 = vor.u32 %v6367_v18, %v5597_v16  ;;  %v6085_v16 = vld [vmem:[%s7259_s7 + $0x7d0] sm:$0xf] }
 0x185   : > { %4577 = vmatpush.bf16.msra.mxu1 %v5702_v25  ;;  %v2662_v25 = vld [vmem:[%s7975_s0 + $0x20] sm:$0xff]  ;;  %v5726_v41 = vor.u32 %v6399_v24, %v5725_v23 }
 0x186   : > { %4590 = vmatpush.bf16.msra.mxu2 %v5766_v26  ;;  %v5798_v26 = vor.u32 %v6417_v15, %v5797_v14  ;;  %v2973_v45 = vunpack.c.h.b16 %v2662_v25  ;;  %v6021_v14 = vld [vmem:[%s7259_s7 + $0x750] sm:$0xf]  ;;  %v6473_v15 = vld [vmem:[%s7259_s7 + $0x754] sm:$0xf0]  ;;  %v5949_v23 = vld [vmem:[%s7259_s7 + $0x6c0] sm:$0xf] }
 0x187   : > { %4603 = vmatpush.bf16.msra.mxu3 %v5830_v30  ;;  %v5909_v30 = vld [vmem:[%s7259_s7 + $0x670] sm:$0xf] }
 0x188   : > { %4565 = vmatpush.bf16.msra.mxu0 %v5630_v37  ;;  %v6477_v37 = vld [vmem:[%s7259_s7 + $0x774] sm:$0xf0]  ;;  %v5910_v47 = vor.u32 %v6445_v31, %v5909_v30  ;;  %v7513_v62 = vpack.c.b16 %v2973_v45, %v2973_v45 }
 0x189   : > { %4578 = vmatpush.bf16.msra.mxu1 %v5694_v39  ;;  %v2972_v39 = vunpack.c.l.b16 %v2662_v25  ;;  %v6455_v25 = vld [vmem:[%s7259_s7 + $0x6c4] sm:$0xf0] }
 0x18a   : > { %4591 = vmatpush.bf16.msra.mxu2 %v5758_v40  ;;  %v5662_v40 = vor.u32 %v6383_v20, %v5661_v19  ;;  %v5958_v19 = vor.u32 %v6457_v13, %v5957_v8  ;;  %v6022_v20 = vor.u32 %v6473_v15, %v6021_v14  ;;  %v5950_v31 = vor.u32 %v6455_v25, %v5949_v23  ;;  %v6465_v8 = vld [vmem:[%s7259_s7 + $0x714] sm:$0xf0]  ;;  %v5853_v14 = vld [vmem:[%s7259_s7 + $0x600] sm:$0xf]  ;;  %v2664_v23 = vld [vmem:[%s7975_s0 + $0x30] sm:$0xff] }
 0x18b   : > { %4604 = vmatpush.bf16.msra.mxu3 %v5822_v44  ;;  %v2974_v44 = vunpack.c.l.b16 %v2663_v29  ;;  %v7506_v57 = vpack.c.b16 %v2972_v39, %v2972_v39  ;;  %v6487_v29 = vld [vmem:[%s7259_s7 + $0x7c4] sm:$0xf0]  ;;  %v6453_v39 = vld [vmem:[%s7259_s7 + $0x6b4] sm:$0xf0]  ;;  %v6045_v25 = vld [vmem:[%s7259_s7 + $0x780] sm:$0xf] }
 0x18c   : > { %4566 = vmatpush.bf16.msra.mxu0 %v5622_v50  ;;  %v6038_v50 = vor.u32 %v6477_v37, %v6037_v35  ;;  %v5941_v35 = vld [vmem:[%s7259_s7 + $0x6b0] sm:$0xf]  ;;  %v6078_v37 = vor.u32 %v6487_v29, %v6077_v28  ;;  %v6481_v13 = vld [vmem:[%s7259_s7 + $0x794] sm:$0xf0] }
 0x18d   : > { %4579 = vmatpush.bf16.msra.mxu1 %v5686_v51  ;;  %v5901_v51 = vld [vmem:[%s7259_s7 + $0x660] sm:$0xf]  ;;  %v7511_v61 = vpack.c.b16 %v2974_v44, %v2974_v44  ;;  %v5942_v45 = vor.u32 %v6453_v39, %v5941_v35  ;;  %v6165_v28 = vld [vmem:[%s7259_s7 + $0x870] sm:$0xf]  ;;  %v6509_v29 = vld [vmem:[%s7259_s7 + $0x874] sm:$0xf0]  ;;  %v2976_v35 = vunpack.c.l.b16 %v2664_v23 }
 0x18e   : > { %4592 = vmatpush.bf16.msra.mxu2 %v5750_v54  ;;  %v6443_v54 = vld [vmem:[%s7259_s7 + $0x664] sm:$0xf0] }
 0x18f   : > { %4605 = vmatpush.bf16.msra.mxu3 %v5814_v58  ;;  %v6459_v58 = vld [vmem:[%s7259_s7 + $0x6e4] sm:$0xf0] }
 0x190   : > { %4567 = vmatpush.bf16.msra.mxu0 %v5614_v0  ;;  %v6491_v0 = vld [vmem:[%s7259_s7 + $0x7e4] sm:$0xf0]  ;;  %v5966_v3 = vor.u32 %v6459_v58, %v5965_v55 }
 0x191   : > { %4580 = vmatpush.bf16.msra.mxu1 %v5678_v1  ;;  %v7517_v1 = vpack.c.b16 %v2975_v48, %v2975_v48  ;;  %v6094_v11 = vor.u32 %v6491_v0, %v6093_v63  ;;  %v6435_v48 = vld [vmem:[%s7259_s7 + $0x624] sm:$0xf0]  ;;  %v5861_v0 = vld [vmem:[%s7259_s7 + $0x610] sm:$0xf] }
 0x192   : > { %4593 = vmatpush.bf16.msra.mxu2 %v5742_v2  ;;  %v5902_v2 = vor.u32 %v6443_v54, %v5901_v51  ;;  %v6451_v51 = vld [vmem:[%s7259_s7 + $0x6a4] sm:$0xf0]  ;;  %v5997_v54 = vld [vmem:[%s7259_s7 + $0x720] sm:$0xf] }
 0x193   : > { %4606 = vmatpush.bf16.msra.mxu3 %v5806_v7  ;;  %v6441_v7 = vld [vmem:[%s7259_s7 + $0x654] sm:$0xf0]  ;;  %v6467_v55 = vld [vmem:[%s7259_s7 + $0x724] sm:$0xf0] }
 0x194   : > { %4568 = vmatpush.bf16.msra.mxu0 %v5606_v17  ;;  %v6489_v17 = vld [vmem:[%s7259_s7 + $0x7d4] sm:$0xf0]  ;;  %v5894_v18 = vor.u32 %v6441_v7, %v5893_v5  ;;  %v6483_v58 = vld [vmem:[%s7259_s7 + $0x7a4] sm:$0xf0]  ;;  %v5998_v63 = vor.u32 %v6467_v55, %v5997_v54  ;;  %v5989_v7 = vld [vmem:[%s7259_s7 + $0x710] sm:$0xf]  ;;  %v7588_v55 = vpack.c.b16 %v2976_v35, %v2976_v35 }
 0x195   : > { %4581 = vmatpush.bf16.msra.mxu1 %v5670_v21  ;;  %v5885_v21 = vld [vmem:[%s7259_s7 + $0x640] sm:$0xf]  ;;  %v6086_v24 = vor.u32 %v6489_v17, %v6085_v16  ;;  %v6449_v5 = vld [vmem:[%s7259_s7 + $0x694] sm:$0xf0]  ;;  %v6431_v16 = vld [vmem:[%s7259_s7 + $0x604] sm:$0xf0] }
 0x196   : > { %4594 = vmatpush.bf16.msra.mxu2 %v5734_v22  ;;  %v6439_v22 = vld [vmem:[%s7259_s7 + $0x644] sm:$0xf0]  ;;  %v5917_v17 = vld [vmem:[%s7259_s7 + $0x680] sm:$0xf]  ;;  %v6133_v35 = vld [vmem:[%s7259_s7 + $0x830] sm:$0xf] }
 0x197   : > { %4607 = vmatpush.bf16.msra.mxu3 %v5798_v26  ;;  %v6013_v26 = vld [vmem:[%s7259_s7 + $0x740] sm:$0xf]  ;;  %v5886_v30 = vor.u32 %v6439_v22, %v5885_v21  ;;  %v6463_v22 = vld [vmem:[%s7259_s7 + $0x704] sm:$0xf0] }
 0x198   : > { %4569 = vmatpush.bf16.msra.mxu0 %v5598_v33  ;;  %v6014_v32 = vor.u32 %v6471_v27, %v6013_v26  ;;  %v5877_v33 = vld [vmem:[%s7259_s7 + $0x630] sm:$0xf]  ;;  %v5981_v21 = vld [vmem:[%s7259_s7 + $0x700] sm:$0xf]  ;;  %v6479_v26 = vld [vmem:[%s7259_s7 + $0x784] sm:$0xf0] }
 0x199   : > { %4582 = vmatpush.bf16.msra.mxu1 %v5662_v40  ;;  %v6005_v40 = vld [vmem:[%s7259_s7 + $0x730] sm:$0xf]  ;;  %v5878_v44 = vor.u32 %v6437_v34, %v5877_v33  ;;  %v2665_v27 = vld [vmem:[%s7975_s0 + $0x38] sm:$0xff]  ;;  %v6252_v33 = vld [vmem:[%s7259_s7 + $0x74] sm:$0xf]  ;;  %v5982_v39 = vor.u32 %v6463_v22, %v5981_v21 }
 0x19a   : > { %4595 = vmatpush.bf16.msra.mxu2 %v5726_v41  ;;  %v6469_v41 = vld [vmem:[%s7259_s7 + $0x734] sm:$0xf0]  ;;  %v5143_v34 = vld [vmem:[%s7259_s7 + $0x78] sm:$0xf0] }
 0x19b   : > { %4608 = vmatpush.bf16.msra.mxu3 %v5790_v46  ;;  %4570 = vmatmul.bf16.vlgmr.msra.gmra.mxu0 %v7506_v57  ;;  %v6006_v46 = vor.u32 %v6469_v41, %v6005_v40  ;;  %v6268_v40 = vld [vmem:[%s7259_s7 + $0xf4] sm:$0xf]  ;;  %v5207_v41 = vld [vmem:[%s7259_s7 + $0xf8] sm:$0xf0] }
 0x19c   : > { %4614 = vmatpush.bf16.msrb.mxu0 %v5910_v47  ;;  %4583 = vmatmul.bf16.vlgmr.msra.gmra.mxu1 %v7513_v62  ;;  %v5869_v47 = vld [vmem:[%s7259_s7 + $0x620] sm:$0xf]  ;;  %v5210_v54 = vor.u32 %v6268_v40, %v5207_v41  ;;  %v6517_v41 = vld [vmem:[%s7259_s7 + $0x8b4] sm:$0xf0] }
 0x19d   : > { %4627 = vmatpush.bf16.msrb.mxu1 %v5974_v49  ;;  %4596 = vmatmul.bf16.vlgmr.msra.gmra.mxu2 %v7511_v61  ;;  %v5933_v49 = vld [vmem:[%s7259_s7 + $0x6a0] sm:$0xf]  ;;  %v5870_v59 = vor.u32 %v6435_v48, %v5869_v47  ;;  %v5146_v48 = vor.u32 %v6252_v33, %v5143_v34 }
 0x19e   : > { %4640 = vmatpush.bf16.msrb.mxu2 %v6038_v50  ;;  %4609 = vmatmul.bf16.vlgmr.msra.gmra.mxu3 %v7517_v1  ;;  %v6070_v50 = vor.u32 %v6485_v43, %v6069_v42  ;;  %v5934_v60 = vor.u32 %v6451_v51, %v5933_v49  ;;  %v2978_v42 = vunpack.c.l.b16 %v2665_v27  ;;  %v2977_v43 = vunpack.c.h.b16 %v2664_v23  ;;  %v6157_v49 = vld [vmem:[%s7259_s7 + $0x860] sm:$0xf] }
 0x19f   : > { %4653 = vmatpush.bf16.msrb.mxu3 %v6102_v56  ;;  %v6061_v56 = vld [vmem:[%s7259_s7 + $0x7a0] sm:$0xf] }
 0x1a0   : > { %4615 = vmatpush.bf16.msrb.mxu0 %v5902_v2  ;;  %v6433_v2 = vld [vmem:[%s7259_s7 + $0x614] sm:$0xf0]  ;;  %v6221_v51 = vld [vmem:[%s7259_s7 + $0x8e0] sm:$0xf] }
 0x1a1   : > { %4628 = vmatpush.bf16.msrb.mxu1 %v5966_v3  ;;  %v5925_v3 = vld [vmem:[%s7259_s7 + $0x690] sm:$0xf]  ;;  %v5862_v15 = vor.u32 %v6433_v2, %v5861_v0  ;;  %v6266_v0 = vld [vmem:[%s7259_s7 + $0xe4] sm:$0xf]  ;;  %v5199_v2 = vld [vmem:[%s7259_s7 + $0xe8] sm:$0xf0] }
 0x1a2   : > { %4641 = vmatpush.bf16.msrb.mxu2 %v6030_v4  ;;  %v6062_v4 = vor.u32 %v6483_v58, %v6061_v56  ;;  %v6523_v56 = vld [vmem:[%s7259_s7 + $0x8e4] sm:$0xf0]  ;;  %v6250_v58 = vld [vmem:[%s7259_s7 + $0x64] sm:$0xf]  ;;  %v6141_v23 = vld [vmem:[%s7259_s7 + $0x840] sm:$0xf] }
 0x1a3   : > { %4654 = vmatpush.bf16.msrb.mxu3 %v6094_v11  ;;  %v6053_v11 = vld [vmem:[%s7259_s7 + $0x790] sm:$0xf] }
 0x1a4   : > { %4616 = vmatpush.bf16.msrb.mxu0 %v5894_v18  ;;  %v6447_v18 = vld [vmem:[%s7259_s7 + $0x684] sm:$0xf0] }
 0x1a5   : > { %4629 = vmatpush.bf16.msrb.mxu1 %v5958_v19  ;;  %v5926_v19 = vor.u32 %v6449_v5, %v5925_v3  ;;  %v6222_v5 = vor.u32 %v6523_v56, %v6221_v51  ;;  %v6189_v51 = vld [vmem:[%s7259_s7 + $0x8a0] sm:$0xf]  ;;  %v6515_v56 = vld [vmem:[%s7259_s7 + $0x8a4] sm:$0xf0] }
 0x1a6   : > { %4642 = vmatpush.bf16.msrb.mxu2 %v6022_v20  ;;  %v5990_v20 = vor.u32 %v6465_v8, %v5989_v7  ;;  %v6149_v8 = vld [vmem:[%s7259_s7 + $0x850] sm:$0xf] }
 0x1a7   : > { %4655 = vmatpush.bf16.msrb.mxu3 %v6086_v24  ;;  %v6054_v24 = vor.u32 %v6481_v13, %v6053_v11  ;;  %v6505_v11 = vld [vmem:[%s7259_s7 + $0x854] sm:$0xf0]  ;;  %v6213_v13 = vld [vmem:[%s7259_s7 + $0x8d0] sm:$0xf] }
 0x1a8   : > { %4617 = vmatpush.bf16.msrb.mxu0 %v5886_v30  ;;  %v6229_v30 = vld [vmem:[%s7259_s7 + $0x8f0] sm:$0xf] }
 0x1a9   : > { %4630 = vmatpush.bf16.msrb.mxu1 %v5950_v31  ;;  %v5854_v31 = vor.u32 %v6431_v16, %v5853_v14  ;;  %v5202_v14 = vor.u32 %v6266_v0, %v5199_v2  ;;  %v6248_v16 = vld [vmem:[%s7259_s7 + $0x54] sm:$0xf]  ;;  %v6258_v0 = vld [vmem:[%s7259_s7 + $0xa4] sm:$0xf]  ;;  %v5167_v2 = vld [vmem:[%s7259_s7 + $0xa8] sm:$0xf0] }
 0x1aa   : > { %4643 = vmatpush.bf16.msrb.mxu2 %v6014_v32  ;;  %v6525_v32 = vld [vmem:[%s7259_s7 + $0x8f4] sm:$0xf0] }
 0x1ab   : > { %4656 = vmatpush.bf16.msrb.mxu3 %v6078_v37  ;;  %v5918_v37 = vor.u32 %v6447_v18, %v5917_v17  ;;  %v6230_v47 = vor.u32 %v6525_v32, %v6229_v30  ;;  %v5127_v17 = vld [vmem:[%s7259_s7 + $0x58] sm:$0xf0]  ;;  %v6264_v18 = vld [vmem:[%s7259_s7 + $0xd4] sm:$0xf]  ;;  %v6262_v30 = vld [vmem:[%s7259_s7 + $0xc4] sm:$0xf] }
 0x1ac   : > { %4618 = vmatpush.bf16.msrb.mxu0 %v5878_v44  ;;  %v6046_v44 = vor.u32 %v6479_v26, %v6045_v25  ;;  %v5130_v22 = vor.u32 %v6248_v16, %v5127_v17  ;;  %v6205_v25 = vld [vmem:[%s7259_s7 + $0x8c0] sm:$0xf]  ;;  %v6240_v16 = vld [vmem:[%s7259_s7 + $0x14] sm:$0xf]  ;;  %v5095_v17 = vld [vmem:[%s7259_s7 + $0x18] sm:$0xf0] }
 0x1ad   : > { %4631 = vmatpush.bf16.msrb.mxu1 %v5942_v45  ;;  %v6166_v45 = vor.u32 %v6509_v29, %v6165_v28  ;;  %v6246_v28 = vld [vmem:[%s7259_s7 + $0x44] sm:$0xf]  ;;  %v5119_v29 = vld [vmem:[%s7259_s7 + $0x48] sm:$0xf0] }
 0x1ae   : > { %4644 = vmatpush.bf16.msrb.mxu2 %v6006_v46  ;;  %v2979_v46 = vunpack.c.h.b16 %v2665_v27  ;;  %v6519_v27 = vld [vmem:[%s7259_s7 + $0x8c4] sm:$0xf0]  ;;  %v5122_v34 = vor.u32 %v6246_v28, %v5119_v29  ;;  %v2666_v28 = vld [vmem:[%s7975_s0 + $0x40] sm:$0xff] }
 0x1af   : > { %4657 = vmatpush.bf16.msrb.mxu3 %v6070_v50  ;;  %v6507_v50 = vld [vmem:[%s7259_s7 + $0x864] sm:$0xf0]  ;;  %v6206_v33 = vor.u32 %v6519_v27, %v6205_v25  ;;  %v5098_v25 = vor.u32 %v6240_v16, %v5095_v17  ;;  %v6238_v27 = vld [vmem:[%s7259_s7 + $0x4] sm:$0xf]  ;;  %v6280_v16 = vld [vmem:[%s7259_s7 + $0x154] sm:$0xf] }
 0x1b0   : > { %4619 = vmatpush.bf16.msrb.mxu0 %v5870_v59  ;;  %v5135_v59 = vld [vmem:[%s7259_s7 + $0x68] sm:$0xf0]  ;;  %v7599_v3 = vpack.c.b16 %v2979_v46, %v2979_v46  ;;  %v5255_v17 = vld [vmem:[%s7259_s7 + $0x158] sm:$0xf0] }
 0x1b1   : > { %4632 = vmatpush.bf16.msrb.mxu1 %v5934_v60  ;;  %v7593_v60 = vpack.c.b16 %v2978_v42, %v2978_v42  ;;  %v5138_v7 = vor.u32 %v6250_v58, %v5135_v59  ;;  %v6244_v42 = vld [vmem:[%s7259_s7 + $0x34] sm:$0xf]  ;;  %v6242_v58 = vld [vmem:[%s7259_s7 + $0x24] sm:$0xf]  ;;  %v5103_v59 = vld [vmem:[%s7259_s7 + $0x28] sm:$0xf0] }
 0x1b2   : > { %4645 = vmatpush.bf16.msrb.mxu2 %v5998_v63  ;;  %v7595_v63 = vpack.c.b16 %v2977_v43, %v2977_v43  ;;  %v5111_v43 = vld [vmem:[%s7259_s7 + $0x38] sm:$0xf0] }
 0x1b3   : > { %4658 = vmatpush.bf16.msrb.mxu3 %v6062_v4  ;;  %v6158_v4 = vor.u32 %v6507_v50, %v6157_v49  ;;  %v6125_v49 = vld [vmem:[%s7259_s7 + $0x820] sm:$0xf]  ;;  %v6499_v50 = vld [vmem:[%s7259_s7 + $0x824] sm:$0xf0] }
 0x1b4   : > { %4620 = vmatpush.bf16.msrb.mxu0 %v5862_v15  ;;  %v6521_v15 = vld [vmem:[%s7259_s7 + $0x8d4] sm:$0xf0] }
 0x1b5   : > { %4633 = vmatpush.bf16.msrb.mxu1 %v5926_v19  ;;  %v5191_v19 = vld [vmem:[%s7259_s7 + $0xd8] sm:$0xf0]  ;;  %v6214_v21 = vor.u32 %v6521_v15, %v6213_v13  ;;  %v6181_v13 = vld [vmem:[%s7259_s7 + $0x890] sm:$0xf]  ;;  %v6513_v15 = vld [vmem:[%s7259_s7 + $0x894] sm:$0xf0] }
 0x1b6   : > { %4646 = vmatpush.bf16.msrb.mxu2 %v5990_v20  ;;  %v6150_v20 = vor.u32 %v6505_v11, %v6149_v8  ;;  %v5194_v26 = vor.u32 %v6264_v18, %v5191_v19  ;;  %v6117_v8 = vld [vmem:[%s7259_s7 + $0x810] sm:$0xf]  ;;  %v6497_v11 = vld [vmem:[%s7259_s7 + $0x814] sm:$0xf0]  ;;  %v6256_v18 = vld [vmem:[%s7259_s7 + $0x94] sm:$0xf] }
 0x1b7   : > { %4659 = vmatpush.bf16.msrb.mxu3 %v6054_v24  ;;  %v6503_v24 = vld [vmem:[%s7259_s7 + $0x844] sm:$0xf0]  ;;  %v5159_v19 = vld [vmem:[%s7259_s7 + $0x98] sm:$0xf0] }
 0x1b8   : > { %4621 = vmatpush.bf16.msrb.mxu0 %v5854_v31  ;;  %v5183_v31 = vld [vmem:[%s7259_s7 + $0xc8] sm:$0xf0]  ;;  %v6142_v32 = vor.u32 %v6503_v24, %v6141_v23  ;;  %v6173_v23 = vld [vmem:[%s7259_s7 + $0x880] sm:$0xf]  ;;  %v6182_v24 = vor.u32 %v6513_v15, %v6181_v13  ;;  %v5162_v29 = vor.u32 %v6256_v18, %v5159_v19  ;;  %v6296_v18 = vld [vmem:[%s7259_s7 + $0x1d4] sm:$0xf] }
 0x1b9   : > { %4634 = vmatpush.bf16.msrb.mxu1 %v5918_v37  ;;  %v6501_v37 = vld [vmem:[%s7259_s7 + $0x834] sm:$0xf0]  ;;  %v5186_v40 = vor.u32 %v6262_v30, %v5183_v31  ;;  %v5087_v30 = vld [vmem:[%s7259_s7 + $0x8] sm:$0xf0]  ;;  %v6254_v31 = vld [vmem:[%s7259_s7 + $0x84] sm:$0xf] }
 0x1ba   : > { %4647 = vmatpush.bf16.msrb.mxu2 %v5982_v39  ;;  %v6197_v39 = vld [vmem:[%s7259_s7 + $0x8b0] sm:$0xf]  ;;  %v6134_v46 = vor.u32 %v6501_v37, %v6133_v35  ;;  %v6300_v35 = vld [vmem:[%s7259_s7 + $0x1f4] sm:$0xf] }
 0x1bb   : > { %4660 = vmatpush.bf16.msrb.mxu3 %v6046_v44  ;;  %4622 = vmatmul.bf16.vlgmr.msrb.gmra.mxu0 %v7588_v55  ;;  %v6260_v44 = vld [vmem:[%s7259_s7 + $0xb4] sm:$0xf] }
 0x1bc   : > { %4666 = vmatpush.bf16.msra.mxu0 %v6166_v45  ;;  %4635 = vmatmul.bf16.vlgmr.msrb.gmra.mxu1 %v7595_v63  ;;  %v5175_v45 = vld [vmem:[%s7259_s7 + $0xb8] sm:$0xf0] }
 0x1bd   : > { %4679 = vmatpush.bf16.msra.mxu1 %v6230_v47  ;;  %4648 = vmatmul.bf16.vlgmr.msrb.gmra.mxu2 %v7593_v60  ;;  %v6198_v47 = vor.u32 %v6517_v41, %v6197_v39  ;;  %v5335_v39 = vld [vmem:[%s7259_s7 + $0x1f8] sm:$0xf0] }
 0x1be   : > { %4692 = vmatpush.bf16.msra.mxu2 %v5146_v48  ;;  %4661 = vmatmul.bf16.vlgmr.msrb.gmra.mxu3 %v7599_v3  ;;  %v5114_v48 = vor.u32 %v6244_v42, %v5111_v43  ;;  %v5399_v41 = vld [vmem:[%s7259_s7 + $0x278] sm:$0xf0]  ;;  %v2980_v42 = vunpack.c.l.b16 %v2666_v28 }
 0x1bf   : > { %4705 = vmatpush.bf16.msra.mxu3 %v5210_v54  ;;  %v5178_v54 = vor.u32 %v6260_v44, %v5175_v45  ;;  %v5090_v44 = vor.u32 %v6238_v27, %v5087_v30  ;;  %v6332_v45 = vld [vmem:[%s7259_s7 + $0x2f4] sm:$0xf]  ;;  %v6294_v30 = vld [vmem:[%s7259_s7 + $0x1c4] sm:$0xf] }
 0x1c0   : > { %4667 = vmatpush.bf16.msra.mxu0 %v6158_v4  ;;  %v6126_v4 = vor.u32 %v6499_v50, %v6125_v49  ;;  %v5338_v50 = vor.u32 %v6300_v35, %v5335_v39 }
 0x1c1   : > { %4680 = vmatpush.bf16.msra.mxu1 %v6222_v5  ;;  %v6190_v5 = vor.u32 %v6515_v56, %v6189_v51  ;;  %v5263_v56 = vld [vmem:[%s7259_s7 + $0x168] sm:$0xf0] }
 0x1c2   : > { %4693 = vmatpush.bf16.msra.mxu2 %v5138_v7  ;;  %v5106_v7 = vor.u32 %v6242_v58, %v5103_v59  ;;  %v6298_v58 = vld [vmem:[%s7259_s7 + $0x1e4] sm:$0xf] }
 0x1c3   : > { %4706 = vmatpush.bf16.msra.mxu3 %v5202_v14  ;;  %v5170_v14 = vor.u32 %v6258_v0, %v5167_v2  ;;  %v7667_v0 = vpack.c.b16 %v2980_v42, %v2980_v42  ;;  %v5327_v2 = vld [vmem:[%s7259_s7 + $0x1e8] sm:$0xf0]  ;;  %v6292_v42 = vld [vmem:[%s7259_s7 + $0x1b4] sm:$0xf] }
 0x1c4   : > { %4668 = vmatpush.bf16.msra.mxu0 %v6150_v20  ;;  %v6118_v20 = vor.u32 %v6497_v11, %v6117_v8  ;;  %v6330_v8 = vld [vmem:[%s7259_s7 + $0x2e4] sm:$0xf]  ;;  %v5455_v11 = vld [vmem:[%s7259_s7 + $0x2e8] sm:$0xf0] }
 0x1c5   : > { %4681 = vmatpush.bf16.msra.mxu1 %v6214_v21  ;;  %v6109_v21 = vld [vmem:[%s7259_s7 + $0x800] sm:$0xf]  ;;  %v5458_v19 = vor.u32 %v6330_v8, %v5455_v11  ;;  %v6322_v8 = vld [vmem:[%s7259_s7 + $0x2a4] sm:$0xf]  ;;  %v5423_v11 = vld [vmem:[%s7259_s7 + $0x2a8] sm:$0xf0] }
 0x1c6   : > { %4694 = vmatpush.bf16.msra.mxu2 %v5130_v22  ;;  %v6495_v22 = vld [vmem:[%s7259_s7 + $0x804] sm:$0xf0] }
 0x1c7   : > { %4707 = vmatpush.bf16.msra.mxu3 %v5194_v26  ;;  %v6511_v26 = vld [vmem:[%s7259_s7 + $0x884] sm:$0xf0]  ;;  %v6110_v37 = vor.u32 %v6495_v22, %v6109_v21  ;;  %v6312_v21 = vld [vmem:[%s7259_s7 + $0x254] sm:$0xf]  ;;  %v5383_v22 = vld [vmem:[%s7259_s7 + $0x258] sm:$0xf0] }
 0x1c8   : > { %4669 = vmatpush.bf16.msra.mxu0 %v6142_v32  ;;  %v5151_v32 = vld [vmem:[%s7259_s7 + $0x88] sm:$0xf0]  ;;  %v6174_v43 = vor.u32 %v6511_v26, %v6173_v23  ;;  %v6328_v23 = vld [vmem:[%s7259_s7 + $0x2d4] sm:$0xf]  ;;  %v5386_v27 = vor.u32 %v6312_v21, %v5383_v22 }
 0x1c9   : > { %4682 = vmatpush.bf16.msra.mxu1 %v6206_v33  ;;  %v6284_v33 = vld [vmem:[%s7259_s7 + $0x174] sm:$0xf] }
 0x1ca   : > { %4695 = vmatpush.bf16.msra.mxu2 %v5122_v34  ;;  %v5271_v34 = vld [vmem:[%s7259_s7 + $0x178] sm:$0xf0] }
 0x1cb   : > { %4708 = vmatpush.bf16.msra.mxu3 %v5186_v40  ;;  %v6316_v40 = vld [vmem:[%s7259_s7 + $0x274] sm:$0xf]  ;;  %v5274_v49 = vor.u32 %v6284_v33, %v5271_v34  ;;  %v5375_v33 = vld [vmem:[%s7259_s7 + $0x248] sm:$0xf0]  ;;  %v6326_v34 = vld [vmem:[%s7259_s7 + $0x2c4] sm:$0xf] }
 0x1cc   : > { %4670 = vmatpush.bf16.msra.mxu0 %v6134_v46  ;;  %v5463_v46 = vld [vmem:[%s7259_s7 + $0x2f8] sm:$0xf0]  ;;  %v5402_v51 = vor.u32 %v6316_v40, %v5399_v41  ;;  %v6276_v40 = vld [vmem:[%s7259_s7 + $0x134] sm:$0xf] }
 0x1cd   : > { %4683 = vmatpush.bf16.msra.mxu1 %v6198_v47  ;;  %v2981_v47 = vunpack.c.h.b16 %v2666_v28  ;;  %v5466_v59 = vor.u32 %v6332_v45, %v5463_v46  ;;  %v6278_v28 = vld [vmem:[%s7259_s7 + $0x144] sm:$0xf]  ;;  %v5239_v41 = vld [vmem:[%s7259_s7 + $0x138] sm:$0xf0]  ;;  %v6308_v45 = vld [vmem:[%s7259_s7 + $0x234] sm:$0xf] }
 0x1ce   : > { %4696 = vmatpush.bf16.msra.mxu2 %v5114_v48  ;;  %v5154_v48 = vor.u32 %v6254_v31, %v5151_v32  ;;  %v5311_v32 = vld [vmem:[%s7259_s7 + $0x1c8] sm:$0xf0]  ;;  %v5367_v46 = vld [vmem:[%s7259_s7 + $0x238] sm:$0xf0] }
 0x1cf   : > { %4709 = vmatpush.bf16.msra.mxu3 %v5178_v54  ;;  %v6282_v54 = vld [vmem:[%s7259_s7 + $0x164] sm:$0xf] }
 0x1d0   : > { %4671 = vmatpush.bf16.msra.mxu0 %v6126_v4  ;;  %v6314_v4 = vld [vmem:[%s7259_s7 + $0x264] sm:$0xf]  ;;  %v5266_v13 = vor.u32 %v6282_v54, %v5263_v56  ;;  %v5231_v56 = vld [vmem:[%s7259_s7 + $0x128] sm:$0xf0] }
 0x1d1   : > { %4684 = vmatpush.bf16.msra.mxu1 %v6190_v5  ;;  %v5391_v5 = vld [vmem:[%s7259_s7 + $0x268] sm:$0xf0]  ;;  %v6274_v54 = vld [vmem:[%s7259_s7 + $0x124] sm:$0xf] }
 0x1d2   : > { %4697 = vmatpush.bf16.msra.mxu2 %v5106_v7  ;;  %v7672_v7 = vpack.c.b16 %v2981_v47, %v2981_v47  ;;  %v5394_v15 = vor.u32 %v6314_v4, %v5391_v5  ;;  %v6324_v47 = vld [vmem:[%s7259_s7 + $0x2b4] sm:$0xf]  ;;  %v6306_v4 = vld [vmem:[%s7259_s7 + $0x224] sm:$0xf]  ;;  %v5359_v5 = vld [vmem:[%s7259_s7 + $0x228] sm:$0xf0] }
 0x1d3   : > { %4710 = vmatpush.bf16.msra.mxu3 %v5170_v14  ;;  %v5330_v14 = vor.u32 %v6298_v58, %v5327_v2  ;;  %v6290_v58 = vld [vmem:[%s7259_s7 + $0x1a4] sm:$0xf]  ;;  %v5295_v2 = vld [vmem:[%s7259_s7 + $0x1a8] sm:$0xf0] }
 0x1d4   : > { %4672 = vmatpush.bf16.msra.mxu0 %v6118_v20  ;;  %v5319_v20 = vld [vmem:[%s7259_s7 + $0x1d8] sm:$0xf0] }
 0x1d5   : > { %4685 = vmatpush.bf16.msra.mxu1 %v6182_v24  ;;  %v5447_v24 = vld [vmem:[%s7259_s7 + $0x2d8] sm:$0xf0]  ;;  %v5322_v26 = vor.u32 %v6296_v18, %v5319_v20  ;;  %v6272_v18 = vld [vmem:[%s7259_s7 + $0x114] sm:$0xf] }
 0x1d6   : > { %4698 = vmatpush.bf16.msra.mxu2 %v5098_v25  ;;  %v5258_v25 = vor.u32 %v6280_v16, %v5255_v17  ;;  %v5450_v31 = vor.u32 %v6328_v23, %v5447_v24  ;;  %v5298_v16 = vor.u32 %v6290_v58, %v5295_v2  ;;  %v5362_v17 = vor.u32 %v6306_v4, %v5359_v5  ;;  %v6288_v20 = vld [vmem:[%s7259_s7 + $0x194] sm:$0xf]  ;;  %v5287_v24 = vld [vmem:[%s7259_s7 + $0x198] sm:$0xf0] }
 0x1d7   : > { %4711 = vmatpush.bf16.msra.mxu3 %v5162_v29  ;;  %v5247_v29 = vld [vmem:[%s7259_s7 + $0x148] sm:$0xf0]  ;;  %v5426_v23 = vor.u32 %v6322_v8, %v5423_v11  ;;  %v5719_v2 = vld [vmem:[%s7259_s7 + $0x4f8] sm:$0xf0] }
 0x1d8   : > { %4673 = vmatpush.bf16.msra.mxu0 %v6110_v37  ;;  %v5250_v35 = vor.u32 %v6278_v28, %v5247_v29  ;;  %v5314_v37 = vor.u32 %v6294_v30, %v5311_v32  ;;  %v6320_v28 = vld [vmem:[%s7259_s7 + $0x294] sm:$0xf]  ;;  %v5415_v29 = vld [vmem:[%s7259_s7 + $0x298] sm:$0xf0]  ;;  %v6270_v32 = vld [vmem:[%s7259_s7 + $0x104] sm:$0xf] }
 0x1d9   : > { %4686 = vmatpush.bf16.msra.mxu1 %v6174_v43 }
 0x1da   : > { %4699 = vmatpush.bf16.msra.mxu2 %v5090_v44  ;;  %v5303_v44 = vld [vmem:[%s7259_s7 + $0x1b8] sm:$0xf0] }
 0x1db   : > { %4712 = vmatpush.bf16.msra.mxu3 %v5154_v48  ;;  %4674 = vmatmul.bf16.vlgmr.msra.gmra.mxu0 %v7667_v0  ;;  %v5431_v48 = vld [vmem:[%s7259_s7 + $0x2b8] sm:$0xf0] }
 0x1dc   : > { %4718 = vmatpush.bf16.msrb.mxu0 %v5274_v49  ;;  %4687 = vmatmul.bf16.vlgmr.msra.gmra.mxu1 %v7672_v7  ;;  %v5242_v49 = vor.u32 %v6276_v40, %v5239_v41  ;;  %v5418_v40 = vor.u32 %v6320_v28, %v5415_v29  ;;  %v5343_v41 = vld [vmem:[%s7259_s7 + $0x208] sm:$0xf0]  ;;  %v5511_v28 = vld [vmem:[%s7259_s7 + $0x358] sm:$0xf0]  ;;  %v6360_v29 = vld [vmem:[%s7259_s7 + $0x3d4] sm:$0xf] }
 0x1dd   : > { %4731 = vmatpush.bf16.msrb.mxu1 %v5338_v50  ;;  %4700 = vmatmul.bf16.vlgmr.msra.gmra.mxu2 %v7368_v52  ;;  %v6310_v52 = vld [vmem:[%s7259_s7 + $0x244] sm:$0xf]  ;;  %v5306_v50 = vor.u32 %v6292_v42, %v5303_v44  ;;  %v6348_v44 = vld [vmem:[%s7259_s7 + $0x374] sm:$0xf] }
 0x1de   : > { %4744 = vmatpush.bf16.msrb.mxu2 %v5402_v51  ;;  %4713 = vmatmul.bf16.vlgmr.msra.gmra.mxu3 %v7371_v53  ;;  %v5439_v53 = vld [vmem:[%s7259_s7 + $0x2c8] sm:$0xf0]  ;;  %v5378_v39 = vor.u32 %v6310_v52, %v5375_v33  ;;  %v5370_v51 = vor.u32 %v6308_v45, %v5367_v46  ;;  %v5290_v33 = vor.u32 %v6288_v20, %v5287_v24  ;;  %v6318_v42 = vld [vmem:[%s7259_s7 + $0x284] sm:$0xf]  ;;  %v5527_v45 = vld [vmem:[%s7259_s7 + $0x378] sm:$0xf0] }
 0x1df   : > { %4757 = vmatpush.bf16.msrb.mxu3 %v5466_v59  ;;  %v5442_v43 = vor.u32 %v6326_v34, %v5439_v53  ;;  %v5434_v59 = vor.u32 %v6324_v47, %v5431_v48  ;;  %v5215_v52 = vld [vmem:[%s7259_s7 + $0x108] sm:$0xf0]  ;;  %v6286_v53 = vld [vmem:[%s7259_s7 + $0x184] sm:$0xf]  ;;  %v6364_v46 = vld [vmem:[%s7259_s7 + $0x3f4] sm:$0xf]  ;;  %v5530_v8 = vor.u32 %v6348_v44, %v5527_v45 }
 0x1e0   : > { %4719 = vmatpush.bf16.msrb.mxu0 %v5266_v13  ;;  %v4467_v13 = vpop.f32.mrf.mxu0  ;;  %v4493_v22 = vpop.f32.mrf.mxu2  ;;  %v5218_v48 = vor.u32 %v6270_v32, %v5215_v52  ;;  %v6378_v20 = vld [vmem:[%s7259_s7 + $0x464] sm:$0xf]  ;;  %v6376_v32 = vld [vmem:[%s7259_s7 + $0x454] sm:$0xf]  ;;  %v5639_v52 = vld [vmem:[%s7259_s7 + $0x458] sm:$0xf0] }
 0x1e1   : > { %4732 = vmatpush.bf16.msrb.mxu1 %v5330_v14  ;;  %v5234_v14 = vor.u32 %v6274_v54, %v5231_v56  ;;  %v6390_v44 = vld [vmem:[%s7259_s7 + $0x4c4] sm:$0xf]  ;;  %v5695_v45 = vld [vmem:[%s7259_s7 + $0x4c8] sm:$0xf0] }
 0x1e2   : > { %4745 = vmatpush.bf16.msrb.mxu2 %v5394_v15  ;;  %v4480_v15 = vpop.f32.mrf.mxu1 }
 0x1e3   : > { %4758 = vmatpush.bf16.msrb.mxu3 %v5458_v19  ;;  %v5223_v19 = vld [vmem:[%s7259_s7 + $0x118] sm:$0xf0]  ;;  %v4481_v21 = vadd.f32 %v4480_v15, %v4467_v13  ;;  %v6346_v15 = vld [vmem:[%s7259_s7 + $0x364] sm:$0xf] }
 0x1e4   : > { %4720 = vmatpush.bf16.msrb.mxu0 %v5258_v25  ;;  %v6304_v25 = vld [vmem:[%s7259_s7 + $0x214] sm:$0xf] }
 0x1e5   : > { %4733 = vmatpush.bf16.msrb.mxu1 %v5322_v26  ;;  %v5351_v26 = vld [vmem:[%s7259_s7 + $0x218] sm:$0xf0]  ;;  %v4494_v30 = vadd.f32 %v4493_v22, %v4481_v21  ;;  %v5647_v21 = vld [vmem:[%s7259_s7 + $0x468] sm:$0xf0]  ;;  %v6394_v22 = vld [vmem:[%s7259_s7 + $0x4e4] sm:$0xf] }
 0x1e6   : > { %4746 = vmatpush.bf16.msrb.mxu2 %v5386_v27  ;;  %v4506_v27 = vpop.f32.mrf.mxu3  ;;  %v5354_v34 = vor.u32 %v6304_v25, %v5351_v26  ;;  %v5650_v26 = vor.u32 %v6378_v20, %v5647_v21  ;;  %v5551_v20 = vld [vmem:[%s7259_s7 + $0x3a8] sm:$0xf0]  ;;  %v6370_v21 = vld [vmem:[%s7259_s7 + $0x424] sm:$0xf] }
 0x1e7   : > { %4759 = vmatpush.bf16.msrb.mxu3 %v5450_v31  ;;  %v5226_v31 = vor.u32 %v6272_v18, %v5223_v19  ;;  %v5583_v19 = vld [vmem:[%s7259_s7 + $0x3e8] sm:$0xf0] }
 0x1e8   : > { %4721 = vmatpush.bf16.msrb.mxu0 %v5250_v35  ;;  %v5279_v35 = vld [vmem:[%s7259_s7 + $0x188] sm:$0xf0]  ;;  %v4469_v47 = vpop.f32.mrf.mxu0  ;;  %v4495_v4 = vpop.f32.mrf.mxu2 }
 0x1e9   : > { %4734 = vmatpush.bf16.msrb.mxu1 %v5314_v37  ;;  %v6302_v37 = vld [vmem:[%s7259_s7 + $0x204] sm:$0xf]  ;;  %v5282_v56 = vor.u32 %v6286_v53, %v5279_v35  ;;  %v5642_v35 = vor.u32 %v6376_v32, %v5639_v52  ;;  %v5623_v4 = vld [vmem:[%s7259_s7 + $0x438] sm:$0xf0]  ;;  %v6336_v32 = vld [vmem:[%s7259_s7 + $0x314] sm:$0xf] }
 0x1ea   : > { %4747 = vmatpush.bf16.msrb.mxu2 %v5378_v39  ;;  %v7725_v39 = vadd.f32 %v4506_v27, %v4494_v30  ;;  %v4482_v54 = vpop.f32.mrf.mxu1  ;;  %v5346_v58 = vor.u32 %v6302_v37, %v5343_v41  ;;  %v6344_v27 = vld [vmem:[%s7259_s7 + $0x354] sm:$0xf]  ;;  %v6342_v37 = vld [vmem:[%s7259_s7 + $0x344] sm:$0xf]  ;;  %v5567_v41 = vld [vmem:[%s7259_s7 + $0x3c8] sm:$0xf0] }
 0x1eb   : > { %4760 = vmatpush.bf16.msrb.mxu3 %v5442_v43  ;;  %v5407_v43 = vld [vmem:[%s7259_s7 + $0x288] sm:$0xf0]  ;;  %v5514_v53 = vor.u32 %v6344_v27, %v5511_v28  ;;  %v5479_v52 = vld [vmem:[%s7259_s7 + $0x318] sm:$0xf0] }
 0x1ec   : > { %4722 = vmatpush.bf16.msrb.mxu0 %v5242_v49  ;;  %v5591_v49 = vld [vmem:[%s7259_s7 + $0x3f8] sm:$0xf0]  ;;  %v5410_v5 = vor.u32 %v6318_v42, %v5407_v43  ;;  %v6374_v42 = vld [vmem:[%s7259_s7 + $0x444] sm:$0xf]  ;;  %v5631_v43 = vld [vmem:[%s7259_s7 + $0x448] sm:$0xf0] }
 0x1ed   : > { %4735 = vmatpush.bf16.msrb.mxu1 %v5306_v50  ;;  %v6380_v50 = vld [vmem:[%s7259_s7 + $0x474] sm:$0xf]  ;;  %v5594_v13 = vor.u32 %v6364_v46, %v5591_v49 }
 0x1ee   : > { %4748 = vmatpush.bf16.msrb.mxu2 %v5370_v51  ;;  %v5655_v51 = vld [vmem:[%s7259_s7 + $0x478] sm:$0xf0]  ;;  %v4508_v11 = vpop.f32.mrf.mxu3  ;;  %v6340_v49 = vld [vmem:[%s7259_s7 + $0x334] sm:$0xf] }
 0x1ef   : > { %4761 = vmatpush.bf16.msrb.mxu3 %v5434_v59  ;;  %v6396_v59 = vld [vmem:[%s7259_s7 + $0x4f4] sm:$0xf] }
 0x1f0   : > { %4723 = vmatpush.bf16.msrb.mxu0 %v5234_v14  ;;  %v5658_v14 = vor.u32 %v6380_v50, %v5655_v51  ;;  %v5722_v18 = vor.u32 %v6396_v59, %v5719_v2  ;;  %v5495_v50 = vld [vmem:[%s7259_s7 + $0x338] sm:$0xf0]  ;;  %v6356_v51 = vld [vmem:[%s7259_s7 + $0x3b4] sm:$0xf] }
 0x1f1   : > { %4736 = vmatpush.bf16.msrb.mxu1 %v5298_v16  ;;  %v5519_v16 = vld [vmem:[%s7259_s7 + $0x368] sm:$0xf0]  ;;  %v5559_v59 = vld [vmem:[%s7259_s7 + $0x3b8] sm:$0xf0]  ;;  %v6372_v2 = vld [vmem:[%s7259_s7 + $0x434] sm:$0xf] }
 0x1f2   : > { %4749 = vmatpush.bf16.msrb.mxu2 %v5362_v17  ;;  %v6362_v17 = vld [vmem:[%s7259_s7 + $0x3e4] sm:$0xf]  ;;  %v5522_v24 = vor.u32 %v6346_v15, %v5519_v16  ;;  %v5487_v16 = vld [vmem:[%s7259_s7 + $0x328] sm:$0xf0] }
 0x1f3   : > { %4762 = vmatpush.bf16.msrb.mxu3 %v5426_v23  ;;  %v5711_v23 = vld [vmem:[%s7259_s7 + $0x4e8] sm:$0xf0]  ;;  %v5586_v25 = vor.u32 %v6362_v17, %v5583_v19  ;;  %v6338_v15 = vld [vmem:[%s7259_s7 + $0x324] sm:$0xf] }
 0x1f4   : > { %4724 = vmatpush.bf16.msrb.mxu0 %v5226_v31  ;;  %v5714_v30 = vor.u32 %v6394_v22, %v5711_v23  ;;  %v5575_v31 = vld [vmem:[%s7259_s7 + $0x3d8] sm:$0xf0]  ;;  %v6354_v17 = vld [vmem:[%s7259_s7 + $0x3a4] sm:$0xf]  ;;  %v5615_v22 = vld [vmem:[%s7259_s7 + $0x428] sm:$0xf0]  ;;  %v5490_v27 = vor.u32 %v6338_v15, %v5487_v16 }
 0x1f5   : > { %4737 = vmatpush.bf16.msrb.mxu1 %v5290_v33  ;;  %v6392_v33 = vld [vmem:[%s7259_s7 + $0x4d4] sm:$0xf] }
 0x1f6   : > { %4750 = vmatpush.bf16.msrb.mxu2 %v5354_v34  ;;  %v5703_v34 = vld [vmem:[%s7259_s7 + $0x4d8] sm:$0xf0] }
 0x1f7   : > { %4763 = vmatpush.bf16.msrb.mxu3 %v5418_v40  ;;  %v5503_v40 = vld [vmem:[%s7259_s7 + $0x348] sm:$0xf0] }
 0x1f8   : > { %4725 = vmatpush.bf16.msrb.mxu0 %v5218_v48  ;;  %v4519_v46 = vpop.f32.mrf.mxu0  ;;  %v5634_v48 = vor.u32 %v6374_v42, %v5631_v43  ;;  %v5471_v42 = vld [vmem:[%s7259_s7 + $0x308] sm:$0xf0] }
 0x1f9   : > { %4738 = vmatpush.bf16.msrb.mxu1 %v5282_v56  ;;  %v4520_v54 = vadd.f32 %v4519_v46, %v7725_v39  ;;  %v4532_v56 = vpop.f32.mrf.mxu1  ;;  %v5562_v39 = vor.u32 %v6356_v51, %v5559_v59  ;;  %v6366_v46 = vld [vmem:[%s7259_s7 + $0x404] sm:$0xf]  ;;  %v5663_v51 = vld [vmem:[%s7259_s7 + $0x488] sm:$0xf0]  ;;  %v6428_v59 = vld [vmem:[%s7259_s7 + $0x5f4] sm:$0xf] }
 0x1fa   : > { %4751 = vmatpush.bf16.msrb.mxu2 %v5346_v58  ;;  %v5698_v58 = vor.u32 %v6390_v44, %v5695_v45  ;;  %v6350_v45 = vld [vmem:[%s7259_s7 + $0x384] sm:$0xf] }
 0x1fb   : > { %4764 = vmatpush.bf16.msrb.mxu3 %v5410_v5  ;;  %4726 = vmatmul.bf16.vlgmr.msrb.gmra.mxu0 %v7352_v36  ;;  %v6358_v36 = vld [vmem:[%s7259_s7 + $0x3c4] sm:$0xf]  ;;  %v6388_v5 = vld [vmem:[%s7259_s7 + $0x4b4] sm:$0xf]  ;;  %v4533_v11 = vadd.f32 %v4532_v56, %v4520_v54 }
 0x1fc   : > { %4770 = vmatpush.bf16.msra.mxu0 %v5530_v8  ;;  %4739 = vmatmul.bf16.vlgmr.msrb.gmra.mxu1 %v7357_v38  ;;  %v5506_v38 = vor.u32 %v6342_v37, %v5503_v40  ;;  %v5570_v47 = vor.u32 %v6358_v36, %v5567_v41  ;;  %v5687_v8 = vld [vmem:[%s7259_s7 + $0x4b8] sm:$0xf0]  ;;  %v6384_v40 = vld [vmem:[%s7259_s7 + $0x494] sm:$0xf]  ;;  %v6334_v41 = vld [vmem:[%s7259_s7 + $0x304] sm:$0xf] }
 0x1fd   : > { %4783 = vmatpush.bf16.msra.mxu1 %v5594_v13  ;;  %4752 = vmatmul.bf16.vlgmr.msrb.gmra.mxu2 %v7431_v9  ;;  %v5578_v9 = vor.u32 %v6360_v29, %v5575_v31  ;;  %v5498_v13 = vor.u32 %v6340_v49, %v5495_v50  ;;  %v5690_v19 = vor.u32 %v6388_v5, %v5687_v8  ;;  %v5607_v37 = vld [vmem:[%s7259_s7 + $0x418] sm:$0xf0]  ;;  %v5599_v49 = vld [vmem:[%s7259_s7 + $0x408] sm:$0xf0]  ;;  %v6382_v50 = vld [vmem:[%s7259_s7 + $0x484] sm:$0xf] }
 0x1fe   : > { %4796 = vmatpush.bf16.msra.mxu2 %v5658_v14  ;;  %4765 = vmatmul.bf16.vlgmr.msrb.gmra.mxu3 %v7435_v12  ;;  %v5706_v12 = vor.u32 %v6392_v33, %v5703_v34  ;;  %v5626_v14 = vor.u32 %v6372_v2, %v5623_v4  ;;  %v5618_v31 = vor.u32 %v6370_v21, %v5615_v22  ;;  %v6352_v33 = vld [vmem:[%s7259_s7 + $0x394] sm:$0xf]  ;;  %v5671_v36 = vld [vmem:[%s7259_s7 + $0x498] sm:$0xf0]  ;;  %v6426_v21 = vld [vmem:[%s7259_s7 + $0x5e4] sm:$0xf] }
 0x1ff   : > { %4809 = vmatpush.bf16.msra.mxu3 %v5722_v18  ;;  %v6412_v56 = vld [vmem:[%s7259_s7 + $0x574] sm:$0xf]  ;;  %v5474_v2 = vor.u32 %v6334_v41, %v5471_v42  ;;  %v5847_v4 = vld [vmem:[%s7259_s7 + $0x5f8] sm:$0xf0]  ;;  %v5666_v15 = vor.u32 %v6382_v50, %v5663_v51  ;;  %v6406_v41 = vld [vmem:[%s7259_s7 + $0x544] sm:$0xf] }
 0x200   : > { %4771 = vmatpush.bf16.msra.mxu0 %v5522_v24  ;;  %v4545_v18 = vpop.f32.mrf.mxu2  ;;  %v4521_v29 = vpop.f32.mrf.mxu0  ;;  %v6444_v5 = vld [vmem:[%s7259_s7 + $0x674] sm:$0xf]  ;;  %v5911_v8 = vld [vmem:[%s7259_s7 + $0x678] sm:$0xf0]  ;;  %v5759_v42 = vld [vmem:[%s7259_s7 + $0x548] sm:$0xf0] }
 0x201   : > { %4784 = vmatpush.bf16.msra.mxu1 %v5586_v25  ;;  %v4546_v23 = vadd.f32 %v4545_v18, %v4533_v11  ;;  %v4558_v24 = vpop.f32.mrf.mxu3  ;;  %v6386_v25 = vld [vmem:[%s7259_s7 + $0x4a4] sm:$0xf]  ;;  %v4534_v34 = vpop.f32.mrf.mxu1  ;;  %v5914_v18 = vor.u32 %v6444_v5, %v5911_v8  ;;  %v6436_v5 = vld [vmem:[%s7259_s7 + $0x634] sm:$0xf] }
 0x202   : > { %4797 = vmatpush.bf16.msra.mxu2 %v5650_v26  ;;  %v5679_v26 = vld [vmem:[%s7259_s7 + $0x4a8] sm:$0xf0]  ;;  %v6452_v8 = vld [vmem:[%s7259_s7 + $0x6b4] sm:$0xf] }
 0x203   : > { %4810 = vmatpush.bf16.msra.mxu3 %v5714_v30  ;;  %v7783_v28 = vadd.f32 %v4558_v24, %v4546_v23  ;;  %v5554_v30 = vor.u32 %v6354_v17, %v5551_v20  ;;  %v5850_v17 = vor.u32 %v6428_v59, %v5847_v4  ;;  %v5775_v20 = vld [vmem:[%s7259_s7 + $0x568] sm:$0xf0]  ;;  %v6442_v24 = vld [vmem:[%s7259_s7 + $0x664] sm:$0xf]  ;;  %v5815_v4 = vld [vmem:[%s7259_s7 + $0x5b8] sm:$0xf0] }
 0x204   : > { %4772 = vmatpush.bf16.msra.mxu0 %v5514_v53  ;;  %v5682_v53 = vor.u32 %v6386_v25, %v5679_v26  ;;  %v5839_v23 = vld [vmem:[%s7259_s7 + $0x5e8] sm:$0xf0]  ;;  %v6458_v26 = vld [vmem:[%s7259_s7 + $0x6e4] sm:$0xf] }
 0x205   : > { %4785 = vmatpush.bf16.msra.mxu1 %v5578_v9  ;;  %v5543_v9 = vld [vmem:[%s7259_s7 + $0x398] sm:$0xf0]  ;;  %v5903_v25 = vld [vmem:[%s7259_s7 + $0x668] sm:$0xf0] }
 0x206   : > { %4798 = vmatpush.bf16.msra.mxu2 %v5642_v35  ;;  %v6368_v35 = vld [vmem:[%s7259_s7 + $0x414] sm:$0xf]  ;;  %v5546_v43 = vor.u32 %v6352_v33, %v5543_v9 }
 0x207   : > { %4811 = vmatpush.bf16.msra.mxu3 %v5706_v12  ;;  %v5482_v12 = vor.u32 %v6336_v32, %v5479_v52  ;;  %v5610_v44 = vor.u32 %v6368_v35, %v5607_v37  ;;  %v6408_v32 = vld [vmem:[%s7259_s7 + $0x554] sm:$0xf]  ;;  %v5767_v52 = vld [vmem:[%s7259_s7 + $0x558] sm:$0xf0] }
 0x208   : > { %4773 = vmatpush.bf16.msra.mxu0 %v5506_v38  ;;  %v5535_v38 = vld [vmem:[%s7259_s7 + $0x388] sm:$0xf0]  ;;  %v6424_v33 = vld [vmem:[%s7259_s7 + $0x5d4] sm:$0xf]  ;;  %v5895_v35 = vld [vmem:[%s7259_s7 + $0x658] sm:$0xf0] }
 0x209   : > { %4786 = vmatpush.bf16.msra.mxu1 %v5570_v47  ;;  %v4547_v47 = vpop.f32.mrf.mxu2  ;;  %v4560_v54 = vpop.f32.mrf.mxu3  ;;  %v5538_v11 = vor.u32 %v6350_v45, %v5535_v38  ;;  %v6440_v9 = vld [vmem:[%s7259_s7 + $0x654] sm:$0xf]  ;;  %v5887_v45 = vld [vmem:[%s7259_s7 + $0x648] sm:$0xf0]  ;;  %v6454_v38 = vld [vmem:[%s7259_s7 + $0x6c4] sm:$0xf] }
 0x20a   : > { %4799 = vmatpush.bf16.msra.mxu2 %v5634_v48  ;;  %v5674_v48 = vor.u32 %v6384_v40, %v5671_v36  ;;  %v6456_v37 = vld [vmem:[%s7259_s7 + $0x6d4] sm:$0xf]  ;;  %v5959_v40 = vld [vmem:[%s7259_s7 + $0x6d8] sm:$0xf0] }
 0x20b   : > { %4812 = vmatpush.bf16.msra.mxu3 %v5698_v58  ;;  %v5783_v58 = vld [vmem:[%s7259_s7 + $0x578] sm:$0xf0]  ;;  %v6404_v54 = vld [vmem:[%s7259_s7 + $0x534] sm:$0xf] }
 0x20c   : > { %4774 = vmatpush.bf16.msra.mxu0 %v5498_v13  ;;  %v5602_v13 = vor.u32 %v6366_v46, %v5599_v49  ;;  %v5786_v16 = vor.u32 %v6412_v56, %v5783_v58  ;;  %v5951_v46 = vld [vmem:[%s7259_s7 + $0x6c8] sm:$0xf0]  ;;  %v5751_v56 = vld [vmem:[%s7259_s7 + $0x538] sm:$0xf0]  ;;  %v6420_v58 = vld [vmem:[%s7259_s7 + $0x5b4] sm:$0xf] }
 0x20d   : > { %4787 = vmatpush.bf16.msra.mxu1 %v5562_v39  ;;  %v6460_v39 = vld [vmem:[%s7259_s7 + $0x6f4] sm:$0xf]  ;;  %v5954_v59 = vor.u32 %v6454_v38, %v5951_v46  ;;  %v5855_v38 = vld [vmem:[%s7259_s7 + $0x608] sm:$0xf0]  ;;  %v6446_v46 = vld [vmem:[%s7259_s7 + $0x684] sm:$0xf] }
 0x20e   : > { %4800 = vmatpush.bf16.msra.mxu2 %v5626_v14  ;;  %v5975_v14 = vld [vmem:[%s7259_s7 + $0x6f8] sm:$0xf0] }
 0x20f   : > { %4813 = vmatpush.bf16.msra.mxu3 %v5690_v19  ;;  %v6410_v19 = vld [vmem:[%s7259_s7 + $0x564] sm:$0xf]  ;;  %v5978_v22 = vor.u32 %v6460_v39, %v5975_v14  ;;  %v5818_v39 = vor.u32 %v6420_v58, %v5815_v4  ;;  %v6103_v58 = vld [vmem:[%s7259_s7 + $0x7f8] sm:$0xf0] }
 0x210   : > { %4775 = vmatpush.bf16.msra.mxu0 %v5490_v27  ;;  %v5967_v27 = vld [vmem:[%s7259_s7 + $0x6e8] sm:$0xf0]  ;;  %v5778_v29 = vor.u32 %v6410_v19, %v5775_v20 }
 0x211   : > { %4788 = vmatpush.bf16.msra.mxu1 %v5554_v30  ;;  %v5842_v30 = vor.u32 %v6426_v21, %v5839_v23  ;;  %v5970_v34 = vor.u32 %v6458_v26, %v5967_v27  ;;  %v5807_v20 = vld [vmem:[%s7259_s7 + $0x5a8] sm:$0xf0]  ;;  %v6434_v21 = vld [vmem:[%s7259_s7 + $0x624] sm:$0xf] }
 0x212   : > { %4801 = vmatpush.bf16.msra.mxu2 %v5618_v31  ;;  %v5906_v31 = vor.u32 %v6442_v24, %v5903_v25  ;;  %v6450_v25 = vld [vmem:[%s7259_s7 + $0x6a4] sm:$0xf]  ;;  %v5935_v26 = vld [vmem:[%s7259_s7 + $0x6a8] sm:$0xf0] }
 0x213   : > { %4814 = vmatpush.bf16.msra.mxu3 %v5682_v53  ;;  %v5831_v53 = vld [vmem:[%s7259_s7 + $0x5d8] sm:$0xf0] }
 0x214   : > { %4776 = vmatpush.bf16.msra.mxu0 %v5482_v12  ;;  %v5834_v36 = vor.u32 %v6424_v33, %v5831_v53  ;;  %v5898_v12 = vor.u32 %v6440_v9, %v5895_v35  ;;  %v6400_v33 = vld [vmem:[%s7259_s7 + $0x514] sm:$0xf]  ;;  %v5938_v9 = vor.u32 %v6450_v25, %v5935_v26  ;;  %v5799_v35 = vld [vmem:[%s7259_s7 + $0x598] sm:$0xf0] }
 0x215   : > { %4789 = vmatpush.bf16.msra.mxu1 %v5546_v43  ;;  %v5823_v43 = vld [vmem:[%s7259_s7 + $0x5c8] sm:$0xf0]  ;;  %v6416_v53 = vld [vmem:[%s7259_s7 + $0x594] sm:$0xf] }
 0x216   : > { %4802 = vmatpush.bf16.msra.mxu2 %v5610_v44  ;;  %v6438_v44 = vld [vmem:[%s7259_s7 + $0x644] sm:$0xf] }
 0x217   : > { %4815 = vmatpush.bf16.msra.mxu3 %v5674_v48  ;;  %v5762_v48 = vor.u32 %v6406_v41, %v5759_v42  ;;  %v5890_v51 = vor.u32 %v6438_v44, %v5887_v45  ;;  %v6398_v41 = vld [vmem:[%s7259_s7 + $0x504] sm:$0xf]  ;;  %v5727_v42 = vld [vmem:[%s7259_s7 + $0x508] sm:$0xf0] }
 0x218   : > { %4777 = vmatpush.bf16.msra.mxu0 %v5474_v2  ;;  %v5791_v44 = vld [vmem:[%s7259_s7 + $0x588] sm:$0xf0]  ;;  %v6430_v45 = vld [vmem:[%s7259_s7 + $0x604] sm:$0xf] }
 0x219   : > { %4790 = vmatpush.bf16.msra.mxu1 %v5538_v11  ;;  %v4584_v49 = vpop.f32.mrf.mxu1  ;;  %v5943_v11 = vld [vmem:[%s7259_s7 + $0x6b8] sm:$0xf0] }
 0x21a   : > { %4803 = vmatpush.bf16.msra.mxu2 %v5602_v13  ;;  %v5754_v13 = vor.u32 %v6404_v54, %v5751_v56  ;;  %v5730_v56 = vor.u32 %v6398_v41, %v5727_v42  ;;  %v6143_v41 = vld [vmem:[%s7259_s7 + $0x848] sm:$0xf0]  ;;  %v6518_v42 = vld [vmem:[%s7259_s7 + $0x8c4] sm:$0xf] }
 0x21b   : > { %4816 = vmatpush.bf16.msra.mxu3 %v5666_v15  ;;  %4778 = vmatmul.bf16.vlgmr.msra.gmra.mxu0 %v7427_v6  ;;  %v5770_v6 = vor.u32 %v6408_v32, %v5767_v52  ;;  %v6402_v15 = vld [vmem:[%s7259_s7 + $0x524] sm:$0xf] }
 0x21c   : > { %4822 = vmatpush.bf16.msrb.mxu0 %v5786_v16  ;;  %4791 = vmatmul.bf16.vlgmr.msra.gmra.mxu1 %v7433_v10  ;;  %v5962_v10 = vor.u32 %v6456_v37, %v5959_v40  ;;  %v5743_v16 = vld [vmem:[%s7259_s7 + $0x528] sm:$0xf0]  ;;  %v6432_v37 = vld [vmem:[%s7259_s7 + $0x614] sm:$0xf]  ;;  %v5863_v40 = vld [vmem:[%s7259_s7 + $0x618] sm:$0xf0] }
 0x21d   : > { %4835 = vmatpush.bf16.msrb.mxu1 %v5850_v17  ;;  %4804 = vmatmul.bf16.vlgmr.msra.gmra.mxu2 %v7506_v57  ;;  %v6422_v57 = vld [vmem:[%s7259_s7 + $0x5c4] sm:$0xf] }
 0x21e   : > { %4848 = vmatpush.bf16.msrb.mxu2 %v5914_v18  ;;  %4817 = vmatmul.bf16.vlgmr.msra.gmra.mxu3 %v7513_v62  ;;  %v4571_v62 = vpop.f32.mrf.mxu0  ;;  %v5826_v50 = vor.u32 %v6422_v57, %v5823_v43  ;;  %v6418_v17 = vld [vmem:[%s7259_s7 + $0x5a4] sm:$0xf]  ;;  %v5946_v18 = vor.u32 %v6452_v8, %v5943_v11  ;;  %v5802_v57 = vor.u32 %v6416_v53, %v5799_v35  ;;  %v6231_v8 = vld [vmem:[%s7259_s7 + $0x8f8] sm:$0xf0]  ;;  %v6520_v53 = vld [vmem:[%s7259_s7 + $0x8d4] sm:$0xf] }
 0x21f   : > { %4861 = vmatpush.bf16.msrb.mxu3 %v5978_v22  ;;  %v4572_v47 = vadd.f32 %v4571_v62, %v7783_v28  ;;  %v5879_v28 = vld [vmem:[%s7259_s7 + $0x638] sm:$0xf0]  ;;  %v5871_v22 = vld [vmem:[%s7259_s7 + $0x628] sm:$0xf0]  ;;  %v5810_v32 = vor.u32 %v6418_v17, %v5807_v20  ;;  %v6414_v43 = vld [vmem:[%s7259_s7 + $0x584] sm:$0xf] }
 0x220   : > { %4823 = vmatpush.bf16.msrb.mxu0 %v5778_v29  ;;  %v5882_v14 = vor.u32 %v6436_v5, %v5879_v28  ;;  %v4597_v19 = vpop.f32.mrf.mxu2  ;;  %v5746_v29 = vor.u32 %v6402_v15, %v5743_v16  ;;  %v5874_v52 = vor.u32 %v6434_v21, %v5871_v22  ;;  %v5794_v4 = vor.u32 %v6414_v43, %v5791_v44  ;;  %v6524_v28 = vld [vmem:[%s7259_s7 + $0x8f4] sm:$0xf]  ;;  %v6474_v15 = vld [vmem:[%s7259_s7 + $0x764] sm:$0xf]  ;;  %v6031_v16 = vld [vmem:[%s7259_s7 + $0x768] sm:$0xf0] }
 0x221   : > { %4836 = vmatpush.bf16.msrb.mxu1 %v5842_v30  ;;  %v4585_v2 = vadd.f32 %v4584_v49, %v4572_v47  ;;  %v4610_v24 = vpop.f32.mrf.mxu3  ;;  %v4586_v30 = vpop.f32.mrf.mxu1  ;;  %v5919_v47 = vld [vmem:[%s7259_s7 + $0x688] sm:$0xf0]  ;;  %v6476_v49 = vld [vmem:[%s7259_s7 + $0x774] sm:$0xf]  ;;  %v5858_v5 = vor.u32 %v6430_v45, %v5855_v38  ;;  %v6490_v17 = vld [vmem:[%s7259_s7 + $0x7e4] sm:$0xf] }
 0x222   : > { %4849 = vmatpush.bf16.msrb.mxu2 %v5906_v31  ;;  %v5922_v11 = vor.u32 %v6446_v46, %v5919_v47  ;;  %v6506_v20 = vld [vmem:[%s7259_s7 + $0x864] sm:$0xf]  ;;  %v6159_v21 = vld [vmem:[%s7259_s7 + $0x868] sm:$0xf0]  ;;  %v6488_v30 = vld [vmem:[%s7259_s7 + $0x7d4] sm:$0xf] }
 0x223   : > { %4862 = vmatpush.bf16.msrb.mxu3 %v5970_v34  ;;  %v4598_v23 = vadd.f32 %v4597_v19, %v4585_v2  ;;  %v5735_v34 = vld [vmem:[%s7259_s7 + $0x518] sm:$0xf0]  ;;  %v6095_v19 = vld [vmem:[%s7259_s7 + $0x7e8] sm:$0xf0]  ;;  %v6522_v22 = vld [vmem:[%s7259_s7 + $0x8e4] sm:$0xf]  ;;  %v6162_v26 = vor.u32 %v6506_v20, %v6159_v21 }
 0x224   : > { %4824 = vmatpush.bf16.msrb.mxu0 %v5770_v6  ;;  %v6448_v6 = vld [vmem:[%s7259_s7 + $0x694] sm:$0xf]  ;;  %v6167_v2 = vld [vmem:[%s7259_s7 + $0x878] sm:$0xf0]  ;;  %v6098_v25 = vor.u32 %v6490_v17, %v6095_v19  ;;  %v6514_v17 = vld [vmem:[%s7259_s7 + $0x8a4] sm:$0xf] }
 0x225   : > { %4837 = vmatpush.bf16.msrb.mxu1 %v5834_v36  ;;  %v7854_v31 = vadd.f32 %v4610_v24, %v4598_v23  ;;  %v5927_v36 = vld [vmem:[%s7259_s7 + $0x698] sm:$0xf0]  ;;  %v6223_v23 = vld [vmem:[%s7259_s7 + $0x8e8] sm:$0xf0]  ;;  %v6034_v24 = vor.u32 %v6474_v15, %v6031_v16  ;;  %v6468_v38 = vld [vmem:[%s7259_s7 + $0x734] sm:$0xf] }
 0x226   : > { %4850 = vmatpush.bf16.msrb.mxu2 %v5898_v12  ;;  %v4573_v27 = vpop.f32.mrf.mxu0  ;;  %v5738_v12 = vor.u32 %v6400_v33, %v5735_v34  ;;  %v5930_v62 = vor.u32 %v6448_v6, %v5927_v36  ;;  %v6504_v33 = vld [vmem:[%s7259_s7 + $0x854] sm:$0xf]  ;;  %v6151_v34 = vld [vmem:[%s7259_s7 + $0x858] sm:$0xf0]  ;;  %v6015_v6 = vld [vmem:[%s7259_s7 + $0x748] sm:$0xf0] }
 0x227   : > { %4863 = vmatpush.bf16.msrb.mxu3 %v5962_v10  ;;  %v5866_v10 = vor.u32 %v6432_v37, %v5863_v40  ;;  %v6472_v27 = vld [vmem:[%s7259_s7 + $0x754] sm:$0xf]  ;;  %v6154_v37 = vor.u32 %v6504_v33, %v6151_v34  ;;  %v6470_v40 = vld [vmem:[%s7259_s7 + $0x744] sm:$0xf]  ;;  %v6079_v36 = vld [vmem:[%s7259_s7 + $0x7c8] sm:$0xf0] }
 0x228   : > { %4825 = vmatpush.bf16.msrb.mxu0 %v5762_v48  ;;  %v4599_v48 = vpop.f32.mrf.mxu2  ;;  %v6018_v43 = vor.u32 %v6470_v40, %v6015_v6  ;;  %v6007_v46 = vld [vmem:[%s7259_s7 + $0x738] sm:$0xf0]  ;;  %v6484_v47 = vld [vmem:[%s7259_s7 + $0x7b4] sm:$0xf]  ;;  %v6478_v40 = vld [vmem:[%s7259_s7 + $0x784] sm:$0xf] }
 0x229   : > { %4838 = vmatpush.bf16.msrb.mxu1 %v5826_v50  ;;  %v6039_v50 = vld [vmem:[%s7259_s7 + $0x778] sm:$0xf0]  ;;  %v4612_v54 = vpop.f32.mrf.mxu3  ;;  %v6512_v33 = vld [vmem:[%s7259_s7 + $0x894] sm:$0xf] }
 0x22a   : > { %4851 = vmatpush.bf16.msrb.mxu2 %v5890_v51  ;;  %v6492_v51 = vld [vmem:[%s7259_s7 + $0x7f4] sm:$0xf]  ;;  %v6183_v34 = vld [vmem:[%s7259_s7 + $0x898] sm:$0xf0] }
 0x22b   : > { %4864 = vmatpush.bf16.msrb.mxu3 %v5954_v59  ;;  %v6508_v59 = vld [vmem:[%s7259_s7 + $0x874] sm:$0xf]  ;;  %v6186_v6 = vor.u32 %v6512_v33, %v6183_v34 }
 0x22c   : > { %4826 = vmatpush.bf16.msrb.mxu0 %v5754_v13  ;;  %v6042_v13 = vor.u32 %v6476_v49, %v6039_v50  ;;  %v6071_v50 = vld [vmem:[%s7259_s7 + $0x7b8] sm:$0xf0]  ;;  %v6516_v54 = vld [vmem:[%s7259_s7 + $0x8b4] sm:$0xf] }
 0x22d   : > { %4839 = vmatpush.bf16.msrb.mxu1 %v5818_v39  ;;  %v6106_v39 = vor.u32 %v6492_v51, %v6103_v58  ;;  %v6500_v51 = vld [vmem:[%s7259_s7 + $0x834] sm:$0xf]  ;;  %v6010_v58 = vor.u32 %v6468_v38, %v6007_v46 }
 0x22e   : > { %4852 = vmatpush.bf16.msrb.mxu2 %v5882_v14  ;;  %v6170_v14 = vor.u32 %v6508_v59, %v6167_v2  ;;  %v6074_v59 = vor.u32 %v6484_v47, %v6071_v50 }
 0x22f   : > { %4865 = vmatpush.bf16.msrb.mxu3 %v5946_v18  ;;  %v6234_v18 = vor.u32 %v6524_v28, %v6231_v8  ;;  %v6482_v28 = vld [vmem:[%s7259_s7 + $0x7a4] sm:$0xf] }
 0x230   : > { %4827 = vmatpush.bf16.msrb.mxu0 %v5746_v29  ;;  %v6023_v29 = vld [vmem:[%s7259_s7 + $0x758] sm:$0xf0] }
 0x231   : > { %4840 = vmatpush.bf16.msrb.mxu1 %v5810_v32  ;;  %v6226_v32 = vor.u32 %v6522_v22, %v6223_v23 }
 0x232   : > { %4853 = vmatpush.bf16.msrb.mxu2 %v5874_v52  ;;  %v6087_v52 = vld [vmem:[%s7259_s7 + $0x7d8] sm:$0xf0] }
 0x233   : > { %4866 = vmatpush.bf16.msrb.mxu3 %v5938_v9  ;;  %v6215_v9 = vld [vmem:[%s7259_s7 + $0x8d8] sm:$0xf0]  ;;  %v6090_v35 = vor.u32 %v6488_v30, %v6087_v52 }
 0x234   : > { %4828 = vmatpush.bf16.msrb.mxu0 %v5738_v12  ;;  %v6502_v12 = vld [vmem:[%s7259_s7 + $0x844] sm:$0xf]  ;;  %v6055_v30 = vld [vmem:[%s7259_s7 + $0x798] sm:$0xf0] }
 0x235   : > { %4841 = vmatpush.bf16.msrb.mxu1 %v5802_v57  ;;  %v6207_v57 = vld [vmem:[%s7259_s7 + $0x8c8] sm:$0xf0]  ;;  %v6119_v52 = vld [vmem:[%s7259_s7 + $0x818] sm:$0xf0] }
 0x236   : > { %4854 = vmatpush.bf16.msrb.mxu2 %v5866_v10  ;;  %v6210_v48 = vor.u32 %v6518_v42, %v6207_v57 }
 0x237   : > { %4867 = vmatpush.bf16.msrb.mxu3 %v5930_v62  ;;  %v6146_v62 = vor.u32 %v6502_v12, %v6143_v41  ;;  %v6510_v41 = vld [vmem:[%s7259_s7 + $0x884] sm:$0xf] }
 0x238   : > { %4829 = vmatpush.bf16.msrb.mxu0 %v5730_v56  ;;  %v6199_v56 = vld [vmem:[%s7259_s7 + $0x8b8] sm:$0xf0] }
 0x239   : > { %4842 = vmatpush.bf16.msrb.mxu1 %v5794_v4  ;;  %v4636_v44 = vpop.f32.mrf.mxu1  ;;  %v6466_v4 = vld [vmem:[%s7259_s7 + $0x724] sm:$0xf]  ;;  %v6202_v8 = vor.u32 %v6516_v54, %v6199_v56 }
 0x23a   : > { %4855 = vmatpush.bf16.msrb.mxu2 %v5858_v5  ;;  %v5999_v5 = vld [vmem:[%s7259_s7 + $0x728] sm:$0xf0] }
 0x23b   : > { %4868 = vmatpush.bf16.msrb.mxu3 %v5922_v11  ;;  %4830 = vmatmul.bf16.vlgmr.msrb.gmra.mxu0 %v7511_v61  ;;  %v6026_v61 = vor.u32 %v6472_v27, %v6023_v29  ;;  %v6002_v20 = vor.u32 %v6466_v4, %v5999_v5  ;;  %v6480_v27 = vld [vmem:[%s7259_s7 + $0x794] sm:$0xf] }
 0x23c   : > { %4874 = vmatpush.bf16.msra.mxu0 %v6042_v13  ;;  %4843 = vmatmul.bf16.vlgmr.msrb.gmra.mxu1 %v7517_v1  ;;  %v6218_v1 = vor.u32 %v6520_v53, %v6215_v9  ;;  %v6063_v13 = vld [vmem:[%s7259_s7 + $0x7a8] sm:$0xf0]  ;;  %v6058_v9 = vor.u32 %v6480_v27, %v6055_v30 }
 0x23d   : > { %4887 = vmatpush.bf16.msra.mxu1 %v6106_v39  ;;  %4856 = vmatmul.bf16.vlgmr.msrb.gmra.mxu2 %v7588_v55  ;;  %v6486_v55 = vld [vmem:[%s7259_s7 + $0x7c4] sm:$0xf]  ;;  %v6066_v23 = vor.u32 %v6482_v28, %v6063_v13 }
 0x23e   : > { %4900 = vmatpush.bf16.msra.mxu2 %v6170_v14  ;;  %4869 = vmatmul.bf16.vlgmr.msrb.gmra.mxu3 %v7595_v63  ;;  %v4623_v63 = vpop.f32.mrf.mxu0  ;;  %v6082_v45 = vor.u32 %v6486_v55, %v6079_v36  ;;  %v6498_v39 = vld [vmem:[%s7259_s7 + $0x824] sm:$0xf]  ;;  %v6127_v14 = vld [vmem:[%s7259_s7 + $0x828] sm:$0xf0] }
 0x23f   : > { %4913 = vmatpush.bf16.msra.mxu3 %v6234_v18  ;;  %v4624_v10 = vadd.f32 %v4623_v63, %v7854_v31  ;;  %v6135_v31 = vld [vmem:[%s7259_s7 + $0x838] sm:$0xf0]  ;;  %v6191_v18 = vld [vmem:[%s7259_s7 + $0x8a8] sm:$0xf0] }
 0x240   : > { %4875 = vmatpush.bf16.msra.mxu0 %v6034_v24  ;;  %v6138_v2 = vor.u32 %v6500_v51, %v6135_v31  ;;  %v4649_v11 = vpop.f32.mrf.mxu2  ;;  %v6130_v24 = vor.u32 %v6498_v39, %v6127_v14  ;;  %v6194_v29 = vor.u32 %v6514_v17, %v6191_v18  ;;  %v6047_v55 = vld [vmem:[%s7259_s7 + $0x788] sm:$0xf0] }
 0x241   : > { %4888 = vmatpush.bf16.msra.mxu1 %v6098_v25  ;;  %v4637_v49 = vadd.f32 %v4636_v44, %v4624_v10  ;;  %v4662_v16 = vpop.f32.mrf.mxu3  ;;  %v4638_v21 = vpop.f32.mrf.mxu1  ;;  %v6464_v25 = vld [vmem:[%s7259_s7 + $0x714] sm:$0xf]  ;;  %v6111_v36 = vld [vmem:[%s7259_s7 + $0x808] sm:$0xf0]  ;;  %v6050_v10 = vor.u32 %v6478_v40, %v6047_v55 }
 0x242   : > { %4901 = vmatpush.bf16.msra.mxu2 %v6162_v26  ;;  %v5991_v26 = vld [vmem:[%s7259_s7 + $0x718] sm:$0xf0]  ;;  %v6175_v63 = vld [vmem:[%s7259_s7 + $0x888] sm:$0xf0] }
 0x243   : > { %4914 = vmatpush.bf16.msra.mxu3 %v6226_v32  ;;  %v4650_v15 = vadd.f32 %v4649_v11, %v4637_v49  ;;  %v6496_v32 = vld [vmem:[%s7259_s7 + $0x814] sm:$0xf]  ;;  %v5994_v53 = vor.u32 %v6464_v25, %v5991_v26  ;;  %v6178_v44 = vor.u32 %v6510_v41, %v6175_v63 }
 0x244   : > { %4876 = vmatpush.bf16.msra.mxu0 %v6026_v61  ;;  %v6122_v61 = vor.u32 %v6496_v32, %v6119_v52 }
 0x245   : > { %4889 = vmatpush.bf16.msra.mxu1 %v6090_v35  ;;  %v4663_v22 = vadd.f32 %v4662_v16, %v4650_v15  ;;  %v6462_v35 = vld [vmem:[%s7259_s7 + $0x704] sm:$0xf] }
 0x246   : > { %4902 = vmatpush.bf16.msra.mxu2 %v6154_v37  ;;  %v4625_v19 = vpop.f32.mrf.mxu0  ;;  %v5983_v37 = vld [vmem:[%s7259_s7 + $0x708] sm:$0xf0] }
 0x247   : > { %4915 = vmatpush.bf16.msra.mxu3 %v6218_v1  ;;  %v6494_v1 = vld [vmem:[%s7259_s7 + $0x804] sm:$0xf]  ;;  %v5986_v57 = vor.u32 %v6462_v35, %v5983_v37 }
 0x248   : > { %4877 = vmatpush.bf16.msra.mxu0 %v6018_v43  ;;  %v4651_v12 = vpop.f32.mrf.mxu2  ;;  %v6114_v43 = vor.u32 %v6494_v1, %v6111_v36 }
 0x249   : > { %4890 = vmatpush.bf16.msra.mxu1 %v6082_v45  ;;  %v4664_v42 = vpop.f32.mrf.mxu3 }
 0x24a   : > { %4903 = vmatpush.bf16.msra.mxu2 %v6146_v62 }
 0x24b   : > { %4916 = vmatpush.bf16.msra.mxu3 %v6210_v48 }
 0x24c   : > { %4878 = vmatpush.bf16.msra.mxu0 %v6010_v58 }
 0x24d   : > { %4891 = vmatpush.bf16.msra.mxu1 %v6074_v59 }
 0x24e   : > { %4904 = vmatpush.bf16.msra.mxu2 %v6138_v2 }
 0x24f   : > { %4917 = vmatpush.bf16.msra.mxu3 %v6202_v8 }
 0x250   : > { %4879 = vmatpush.bf16.msra.mxu0 %v6002_v20 }
 0x251   : > { %4892 = vmatpush.bf16.msra.mxu1 %v6066_v23 }
 0x252   : > { %4905 = vmatpush.bf16.msra.mxu2 %v6130_v24 }
 0x253   : > { %4918 = vmatpush.bf16.msra.mxu3 %v6194_v29 }
 0x254   : > { %4880 = vmatpush.bf16.msra.mxu0 %v5994_v53 }
 0x255   : > { %4893 = vmatpush.bf16.msra.mxu1 %v6058_v9 }
 0x256   : > { %4906 = vmatpush.bf16.msra.mxu2 %v6122_v61  ;;  %v4935_v61 = vld [vmem:[%s2637_s9] sm:$0x3] }
 0x257   : > { %4919 = vmatpush.bf16.msra.mxu3 %v6186_v6  ;;  %v4937_v40 = vperm.slane %v4935_v61, 0  ;;  %v4943_v6 = vld [vmem:[%s2642_s11] sm:$0x3]  ;;  %v4938_v42 = vperm.slane %v4935_v61, 1 }
 0x258   : > { %4881 = vmatpush.bf16.msra.mxu0 %v5986_v57  ;;  %v4675_v45 = vpop.f32.mrf.mxu0  ;;  %v4945_v12 = vperm.slane %v4943_v6, 0 }
 0x259   : > { %4894 = vmatpush.bf16.msra.mxu1 %v6050_v10  ;;  %v4676_v62 = vadd.f32 %v4675_v45, %v4663_v22  ;;  %v4688_v38 = vpop.f32.mrf.mxu1 }
 0x25a   : > { %4907 = vmatpush.bf16.msra.mxu2 %v6114_v43 }
 0x25b   : > { %4920 = vmatpush.bf16.msra.mxu3 %v6178_v44  ;;  %4882 = vmatmul.bf16.vlgmr.msra.gmra.mxu0 %v7593_v60  ;;  %v4689_v46 = vadd.f32 %v4688_v38, %v4676_v62  ;;  %v4946_v44 = vperm.slane %v4943_v6, 1 }
 0x25c   : > { %4895 = vmatmul.bf16.vlgmr.msra.gmra.mxu1 %v7599_v3 }
 0x25d   : > { %4908 = vmatmul.bf16.vlgmr.msra.gmra.mxu2 %v7667_v0  ;;  %v4941_v36 = vmul.f32 %v4937_v40, %v4689_v46 }
 0x25e   : > { %4921 = vmatmul.bf16.vlgmr.msra.gmra.mxu3 %v7672_v7 }
 0x25f   : > { %v4949_v45 = vadd.f32 %v4945_v12, %v4941_v36 }
 0x260   : > { %v4701_v47 = vpop.f32.mrf.mxu2  ;;  %v4677_v49 = vpop.f32.mrf.mxu0 }
 0x261   : > { %v4714_v48 = vpop.f32.mrf.mxu3  ;;  %v4690_v51 = vpop.f32.mrf.mxu1 }
 0x262   : > { %v4715_v50 = vadd.f32 %v4714_v48, %v4701_v47  ;;  %v4951_v48 = vmax.f32 %v4949_v45, 0.0 }
 0x268   : > { %v4703_v31 = vpop.f32.mrf.mxu2 }
 0x269   : > { %v4716_v54 = vpop.f32.mrf.mxu3 }
 0x278   : > { %v4727_v56 = vpop.f32.mrf.mxu0 }
 0x279   : > { %v4728_v58 = vadd.f32 %v4727_v56, %v4715_v50  ;;  %v4740_v60 = vpop.f32.mrf.mxu1 }
 0x27b   : > { %v4741_v59 = vadd.f32 %v4740_v60, %v4728_v58 }
 0x280   : > { %v4753_v3 = vpop.f32.mrf.mxu2  ;;  %v4729_v7 = vpop.f32.mrf.mxu0 }
 0x281   : > { %v4754_v2 = vadd.f32 %v4753_v3, %v4741_v59  ;;  %v4766_v0 = vpop.f32.mrf.mxu3  ;;  %v4742_v5 = vpop.f32.mrf.mxu1 }
 0x283   : > { %v4767_v4 = vadd.f32 %v4766_v0, %v4754_v2 }
 0x288   : > { %v4755_v28 = vpop.f32.mrf.mxu2 }
 0x289   : > { %v4768_v8 = vpop.f32.mrf.mxu3 }
 0x298   : > { %v4779_v11 = vpop.f32.mrf.mxu0 }
 0x299   : > { %v4792_v13 = vpop.f32.mrf.mxu1  ;;  %v4780_v21 = vadd.f32 %v4779_v11, %v4767_v4 }
 0x29b   : > { %v4793_v26 = vadd.f32 %v4792_v13, %v4780_v21 }
 0x2a0   : > { %v4805_v39 = vpop.f32.mrf.mxu2  ;;  %v4781_v15 = vpop.f32.mrf.mxu0 }
 0x2a1   : > { %v4818_v14 = vpop.f32.mrf.mxu3  ;;  %v4794_v16 = vpop.f32.mrf.mxu1  ;;  %v4806_v27 = vadd.f32 %v4805_v39, %v4793_v26 }
 0x2a3   : > { %v4819_v32 = vadd.f32 %v4818_v14, %v4806_v27 }
 0x2a8   : > { %v4807_v17 = vpop.f32.mrf.mxu2 }
 0x2a9   : > { %v4820_v18 = vpop.f32.mrf.mxu3 }
 0x2b8   : > { %v4831_v19 = vpop.f32.mrf.mxu0 }
 0x2b9   : > { %v4844_v20 = vpop.f32.mrf.mxu1  ;;  %v4832_v52 = vadd.f32 %v4831_v19, %v4819_v32 }
 0x2bb   : > { %v4845_v33 = vadd.f32 %v4844_v20, %v4832_v52 }
 0x2c0   : > { %v4857_v22 = vpop.f32.mrf.mxu2  ;;  %v4833_v24 = vpop.f32.mrf.mxu0 }
 0x2c1   : > { %v4870_v23 = vpop.f32.mrf.mxu3  ;;  %v4846_v25 = vpop.f32.mrf.mxu1  ;;  %v4858_v34 = vadd.f32 %v4857_v22, %v4845_v33 }
 0x2c3   : > { %v4871_v53 = vadd.f32 %v4870_v23, %v4858_v34 }
 0x2c8   : > { %v4859_v29 = vpop.f32.mrf.mxu2 }
 0x2c9   : > { %v4872_v30 = vpop.f32.mrf.mxu3 }
 0x2d8   : > { %v4883_v9 = vpop.f32.mrf.mxu0 }
 0x2d9   : > { %v4896_v35 = vpop.f32.mrf.mxu1  ;;  %v4884_v37 = vadd.f32 %v4883_v9, %v4871_v53 }
 0x2db   : > { %v4897_v55 = vadd.f32 %v4896_v35, %v4884_v37 }
 0x2e0   : > { %v4909_v1 = vpop.f32.mrf.mxu2  ;;  %v4885_v57 = vpop.f32.mrf.mxu0 }
 0x2e1   : > { %v4910_v41 = vadd.f32 %v4909_v1, %v4897_v55  ;;  %v4922_v63 = vpop.f32.mrf.mxu3  ;;  %v4898_v10 = vpop.f32.mrf.mxu1 }
 0x2e3   : > { %v4923_v43 = vadd.f32 %v4922_v63, %v4910_v41 }
 0x2e5   : > { %v4942_v62 = vmul.f32 %v4938_v42, %v4923_v43 }
 0x2e7   : > { %v4950_v38 = vadd.f32 %v4946_v44, %v4942_v62 }
 0x2e8   : > { %v4911_v47 = vpop.f32.mrf.mxu2 }
 0x2e9   : > { %v4952_v49 = vmax.f32 %v4950_v38, 0.0  ;;  %v4924_v50 = vpop.f32.mrf.mxu3 }
 0x2eb   : > { %v4953_v46 = vpack.c.bf16 %v4952_v49, %v4951_v48 }
 0x2ed   : > { %4954 = vst [vmem:[%s2648_s15] sm:$0xff] %v4953_v46 }
 0x2ee PF: > { %s14_s19 = sadd.s32 1, %s6606_s19   ;;  %s7980_s15 = smov %s6594_s16 }
 0x2ef   : > { %p11_p10 = scmp.ge.s32.totalorder %s14_s19, 4   ;;  %s7981_s16 = smov %s6668_s23 }
 0x2f0   : > { %s7982_s17 = smov %s6602_s18  ;;  %s7983_s18 = smov %s7985_s20 }
 0x2f1   :  { %13 = sbr.rel (!%p11_p10) target bundleno = 3 (0x3), region = 146 }

// kernel: forward.7
= control target key start
LH: loop header
LB: loop body
LE: loop exit
PB: predicated region body
PF: predicated region fallthrough
CT: control target
= control target key end

     0   :  { %s1273_s0 = inlined_call_operand.vmem [shape: bf16[2,1024], index: 0, kind: input, shape index: {}]   ;;  %s1274_s1 = inlined_call_operand.vmem [shape: bf16[1024,128], index: 1, kind: input, shape index: {}]   ;;  %s1275_s2 = inlined_call_operand.vmem [shape: f32[1,128], index: 2, kind: input, shape index: {}]   ;;  %s1276_s3 = inlined_call_operand.vmem [shape: f32[1,128], index: 3, kind: input, shape index: {}]   ;;  %s1277_s4 = inlined_call_operand.hbm [shape: f32[2,128], index: 4, kind: output, shape index: {}]  }
   0x1   :  { %v955_v0 = vld [vmem:[%s1274_s1 + $0x38] sm:$0xff]  ;;  %v954_v4 = vld [vmem:[%s1274_s1 + $0x30] sm:$0xff]  ;;  %v953_v8 = vld [vmem:[%s1274_s1 + $0x28] sm:$0xff] }
   0x2   :  { %v963_v1 = vld [vmem:[%s1274_s1 + $0x78] sm:$0xff]  ;;  %555 = vmatpush.bf16.msra.mxu0 %v955_v0  ;;  %v962_v5 = vld [vmem:[%s1274_s1 + $0x70] sm:$0xff]  ;;  %v961_v9 = vld [vmem:[%s1274_s1 + $0x68] sm:$0xff] }
   0x3   :  { %v971_v2 = vld [vmem:[%s1274_s1 + $0xb8] sm:$0xff]  ;;  %568 = vmatpush.bf16.msra.mxu1 %v963_v1  ;;  %v970_v6 = vld [vmem:[%s1274_s1 + $0xb0] sm:$0xff]  ;;  %v969_v10 = vld [vmem:[%s1274_s1 + $0xa8] sm:$0xff] }
   0x4   :  { %v979_v3 = vld [vmem:[%s1274_s1 + $0xf8] sm:$0xff]  ;;  %581 = vmatpush.bf16.msra.mxu2 %v971_v2  ;;  %v978_v7 = vld [vmem:[%s1274_s1 + $0xf0] sm:$0xff]  ;;  %v977_v11 = vld [vmem:[%s1274_s1 + $0xe8] sm:$0xff] }
   0x5   :  { %594 = vmatpush.bf16.msra.mxu3 %v979_v3  ;;  %v952_v12 = vld [vmem:[%s1274_s1 + $0x20] sm:$0xff]  ;;  %v951_v17 = vld [vmem:[%s1274_s1 + $0x18] sm:$0xff]  ;;  %v950_v21 = vld [vmem:[%s1274_s1 + $0x10] sm:$0xff] }
   0x6   :  { %556 = vmatpush.bf16.msra.mxu0 %v954_v4  ;;  %v960_v13 = vld [vmem:[%s1274_s1 + $0x60] sm:$0xff]  ;;  %v959_v18 = vld [vmem:[%s1274_s1 + $0x58] sm:$0xff]  ;;  %v958_v22 = vld [vmem:[%s1274_s1 + $0x50] sm:$0xff] }
   0x7   :  { %569 = vmatpush.bf16.msra.mxu1 %v962_v5  ;;  %v968_v14 = vld [vmem:[%s1274_s1 + $0xa0] sm:$0xff]  ;;  %v967_v19 = vld [vmem:[%s1274_s1 + $0x98] sm:$0xff] }
   0x8   :  { %582 = vmatpush.bf16.msra.mxu2 %v970_v6  ;;  %v976_v15 = vld [vmem:[%s1274_s1 + $0xe0] sm:$0xff]  ;;  %v975_v20 = vld [vmem:[%s1274_s1 + $0xd8] sm:$0xff] }
   0x9   :  { %595 = vmatpush.bf16.msra.mxu3 %v978_v7  ;;  %v24_v16 = vld [vmem:[%s1273_s0] sm:$0xff] }
   0xa   :  { %557 = vmatpush.bf16.msra.mxu0 %v953_v8  ;;  %154 = vst [vmem:[#allocation1] ss:$9 sm:$0xff] %v24_v16 }
   0xb   :  { %570 = vmatpush.bf16.msra.mxu1 %v961_v9 }
   0xc   :  { %583 = vmatpush.bf16.msra.mxu2 %v969_v10 }
   0xd   :  { %596 = vmatpush.bf16.msra.mxu3 %v977_v11 }
   0xe   :  { %558 = vmatpush.bf16.msra.mxu0 %v952_v12 }
   0xf   :  { %571 = vmatpush.bf16.msra.mxu1 %v960_v13 }
  0x10   :  { %584 = vmatpush.bf16.msra.mxu2 %v968_v14 }
  0x11   :  { %597 = vmatpush.bf16.msra.mxu3 %v976_v15 }
  0x12   :  { %559 = vmatpush.bf16.msra.mxu0 %v951_v17 }
  0x13   :  { %572 = vmatpush.bf16.msra.mxu1 %v959_v18 }
  0x14   :  { %9 = vsyncpa [#allocation4], 0  ;;  %585 = vmatpush.bf16.msra.mxu2 %v967_v19  ;;  %v966_v23 = vld [vmem:[%s1274_s1 + $0x90] sm:$0xff]  ;;  %v949_v25 = vld [vmem:[%s1274_s1 + $0x8] sm:$0xff]  ;;  %v1042_v11 = vmov 0.0   ;;  %s1043_s14 = smov [#allocation3]  }
  0x15   :  { %598 = vmatpush.bf16.msra.mxu3 %v975_v20  ;;  %v974_v24 = vld [vmem:[%s1274_s1 + $0xd0] sm:$0xff]  ;;  %v957_v26 = vld [vmem:[%s1274_s1 + $0x48] sm:$0xff]  ;;  %v948_v29 = vld [vmem:[%s1274_s1] sm:$0xff]  ;;  %22 = vst [vmem:[#allocation2] sm:$0x3] %v1042_v11  ;;  %s681_s15 = sshll.u32 %s1043_s14, 4  ;;  %s682_s15 = int_to_ptr.vmem [resolvable:$true] %s681_s15 }
  0x16   :  { %560 = vmatpush.bf16.msra.mxu0 %v950_v21  ;;  %v965_v27 = vld [vmem:[%s1274_s1 + $0x88] sm:$0xff]  ;;  %v956_v30 = vld [vmem:[%s1274_s1 + $0x40] sm:$0xff]  ;;  %v987_v33 = vld [vmem:[%s1274_s1 + $0x138] sm:$0xff]  ;;  %s683_s18 = sshll.u32 %s1277_s4, 4  ;;  %s684_s18 = int_to_ptr.hbm [resolvable:$true] %s683_s18 }
  0x17   :  { %573 = vmatpush.bf16.msra.mxu1 %v958_v22  ;;  %v973_v28 = vld [vmem:[%s1274_s1 + $0xc8] sm:$0xff]  ;;  %v964_v31 = vld [vmem:[%s1274_s1 + $0x80] sm:$0xff]  ;;  %v995_v34 = vld [vmem:[%s1274_s1 + $0x178] sm:$0xff] }
  0x18   :  { %586 = vmatpush.bf16.msra.mxu2 %v966_v23  ;;  %v972_v32 = vld [vmem:[%s1274_s1 + $0xc0] sm:$0xff]  ;;  %v1003_v35 = vld [vmem:[%s1274_s1 + $0x1b8] sm:$0xff]  ;;  %v986_v37 = vld [vmem:[%s1274_s1 + $0x130] sm:$0xff] }
  0x19   :  { %599 = vmatpush.bf16.msra.mxu3 %v974_v24  ;;  %v1011_v36 = vld [vmem:[%s1274_s1 + $0x1f8] sm:$0xff]  ;;  %v155_v39 = vld [vmem:[#allocation1] sm:$0xff]  ;;  %v994_v40 = vld [vmem:[%s1274_s1 + $0x170] sm:$0xff] }
  0x1a   :  { %561 = vmatpush.bf16.msra.mxu0 %v949_v25  ;;  %v157_v38 = vld [vmem:[#allocation1 + $0x12] sm:$0xff]  ;;  %v158_v41 = vld [vmem:[#allocation1 + $0x1b] sm:$0xff]  ;;  %v156_v42 = vld [vmem:[#allocation1 + $0x9] sm:$0xff] }
  0x1b   :  { %574 = vmatpush.bf16.msra.mxu1 %v957_v26  ;;  %v1002_v43 = vld [vmem:[%s1274_s1 + $0x1b0] sm:$0xff]  ;;  %v985_v45 = vld [vmem:[%s1274_s1 + $0x128] sm:$0xff]  ;;  %v984_v49 = vld [vmem:[%s1274_s1 + $0x120] sm:$0xff] }
  0x1c   :  { %587 = vmatpush.bf16.msra.mxu2 %v965_v27  ;;  %v1010_v44 = vld [vmem:[%s1274_s1 + $0x1f0] sm:$0xff]  ;;  %v993_v46 = vld [vmem:[%s1274_s1 + $0x168] sm:$0xff]  ;;  %v992_v50 = vld [vmem:[%s1274_s1 + $0x160] sm:$0xff] }
  0x1d   :  { %600 = vmatpush.bf16.msra.mxu3 %v973_v28  ;;  %v1001_v47 = vld [vmem:[%s1274_s1 + $0x1a8] sm:$0xff]  ;;  %v1000_v51 = vld [vmem:[%s1274_s1 + $0x1a0] sm:$0xff]  ;;  %v983_v53 = vld [vmem:[%s1274_s1 + $0x118] sm:$0xff] }
  0x1e   :  { %562 = vmatpush.bf16.msra.mxu0 %v948_v29  ;;  %v1009_v48 = vld [vmem:[%s1274_s1 + $0x1e8] sm:$0xff]  ;;  %v1008_v52 = vld [vmem:[%s1274_s1 + $0x1e0] sm:$0xff]  ;;  %v991_v54 = vld [vmem:[%s1274_s1 + $0x158] sm:$0xff] }
  0x1f   :  { %575 = vmatpush.bf16.msra.mxu1 %v956_v30  ;;  %v999_v55 = vld [vmem:[%s1274_s1 + $0x198] sm:$0xff]  ;;  %v982_v57 = vld [vmem:[%s1274_s1 + $0x110] sm:$0xff]  ;;  %v981_v61 = vld [vmem:[%s1274_s1 + $0x108] sm:$0xff] }
  0x20   :  { %588 = vmatpush.bf16.msra.mxu2 %v964_v31  ;;  %v1007_v56 = vld [vmem:[%s1274_s1 + $0x1d8] sm:$0xff]  ;;  %v990_v58 = vld [vmem:[%s1274_s1 + $0x150] sm:$0xff]  ;;  %v989_v62 = vld [vmem:[%s1274_s1 + $0x148] sm:$0xff] }
  0x21   :  { %601 = vmatpush.bf16.msra.mxu3 %v972_v32  ;;  %563 = vmatmul.bf16.vlgmr.msra.gmra.mxu0 %v155_v39  ;;  %v998_v59 = vld [vmem:[%s1274_s1 + $0x190] sm:$0xff]  ;;  %v997_v63 = vld [vmem:[%s1274_s1 + $0x188] sm:$0xff]  ;;  %v980_v1 = vld [vmem:[%s1274_s1 + $0x100] sm:$0xff] }
  0x22   :  { %607 = vmatpush.bf16.msrb.mxu0 %v987_v33  ;;  %576 = vmatmul.bf16.vlgmr.msra.gmra.mxu1 %v156_v42  ;;  %v1006_v60 = vld [vmem:[%s1274_s1 + $0x1d0] sm:$0xff]  ;;  %v1005_v0 = vld [vmem:[%s1274_s1 + $0x1c8] sm:$0xff]  ;;  %v988_v2 = vld [vmem:[%s1274_s1 + $0x140] sm:$0xff] }
  0x23   :  { %620 = vmatpush.bf16.msrb.mxu1 %v995_v34  ;;  %589 = vmatmul.bf16.vlgmr.msra.gmra.mxu2 %v157_v38  ;;  %v996_v3 = vld [vmem:[%s1274_s1 + $0x180] sm:$0xff]  ;;  %v160_v6 = vld [vmem:[#allocation1 + $0x2d] sm:$0xff]  ;;  %v161_v7 = vld [vmem:[#allocation1 + $0x36] sm:$0xff] }
  0x24   :  { %633 = vmatpush.bf16.msrb.mxu2 %v1003_v35  ;;  %602 = vmatmul.bf16.vlgmr.msra.gmra.mxu3 %v158_v41  ;;  %v1004_v4 = vld [vmem:[%s1274_s1 + $0x1c0] sm:$0xff]  ;;  %v23_v30 = vld [vmem:[#allocation2] sm:$0x3] }
  0x25   :  { %646 = vmatpush.bf16.msrb.mxu3 %v1011_v36  ;;  %v159_v5 = vld [vmem:[#allocation1 + $0x24] sm:$0xff]  ;;  %v1014_v35 = vld [vmem:[%s1275_s2] ss:$0 sm:$0xff] }
  0x26   :  { %608 = vmatpush.bf16.msrb.mxu0 %v986_v37  ;;  %v162_v8 = vld [vmem:[#allocation1 + $0x3f] sm:$0xff] }
  0x27   :  { %621 = vmatpush.bf16.msrb.mxu1 %v994_v40  ;;  %v1015_v36 = vld [vmem:[%s1276_s3] ss:$0 sm:$0xff] }
  0x28   :  { %634 = vmatpush.bf16.msrb.mxu2 %v1002_v43 }
  0x29   :  { %647 = vmatpush.bf16.msrb.mxu3 %v1010_v44 }
  0x2a   :  { %609 = vmatpush.bf16.msrb.mxu0 %v985_v45 }
  0x2b   :  { %622 = vmatpush.bf16.msrb.mxu1 %v993_v46 }
  0x2c   :  { %635 = vmatpush.bf16.msrb.mxu2 %v1001_v47 }
  0x2d   :  { %648 = vmatpush.bf16.msrb.mxu3 %v1009_v48 }
  0x2e   :  { %610 = vmatpush.bf16.msrb.mxu0 %v984_v49 }
  0x2f   :  { %623 = vmatpush.bf16.msrb.mxu1 %v992_v50 }
  0x30   :  { %636 = vmatpush.bf16.msrb.mxu2 %v1000_v51 }
  0x31   :  { %649 = vmatpush.bf16.msrb.mxu3 %v1008_v52 }
  0x32   :  { %611 = vmatpush.bf16.msrb.mxu0 %v983_v53 }
  0x33   :  { %624 = vmatpush.bf16.msrb.mxu1 %v991_v54 }
  0x34   :  { %637 = vmatpush.bf16.msrb.mxu2 %v999_v55 }
  0x35   :  { %650 = vmatpush.bf16.msrb.mxu3 %v1007_v56 }
  0x36   :  { %612 = vmatpush.bf16.msrb.mxu0 %v982_v57 }
  0x37   :  { %625 = vmatpush.bf16.msrb.mxu1 %v990_v58 }
  0x38   :  { %638 = vmatpush.bf16.msrb.mxu2 %v998_v59 }
  0x39   :  { %651 = vmatpush.bf16.msrb.mxu3 %v1006_v60 }
  0x3a   :  { %613 = vmatpush.bf16.msrb.mxu0 %v981_v61 }
  0x3b   :  { %626 = vmatpush.bf16.msrb.mxu1 %v989_v62 }
  0x3c   :  { %639 = vmatpush.bf16.msrb.mxu2 %v997_v63 }
  0x3d   :  { %652 = vmatpush.bf16.msrb.mxu3 %v1005_v0 }
  0x3e   :  { %614 = vmatpush.bf16.msrb.mxu0 %v980_v1 }
  0x3f   :  { %627 = vmatpush.bf16.msrb.mxu1 %v988_v2 }
  0x40   :  { %640 = vmatpush.bf16.msrb.mxu2 %v996_v3 }
  0x41   :  { %653 = vmatpush.bf16.msrb.mxu3 %v1004_v4  ;;  %615 = vmatmul.bf16.vlgmr.msrb.gmra.mxu0 %v159_v5 }
  0x42   :  { %628 = vmatmul.bf16.vlgmr.msrb.gmra.mxu1 %v160_v6 }
  0x43   :  { %641 = vmatmul.bf16.vlgmr.msrb.gmra.mxu2 %v161_v7 }
  0x44   :  { %654 = vmatmul.bf16.vlgmr.msrb.gmra.mxu3 %v162_v8 }
  0x9e   :  { %v564_v9 = vpop.f32.mrf.mxu0 }
  0x9f   :  { %v577_v10 = vpop.f32.mrf.mxu1 }
  0xa0   :  { %v578_v18 = vadd.f32 %v577_v10, %v564_v9 }
  0xa6   :  { %v590_v12 = vpop.f32.mrf.mxu2  ;;  %v566_v14 = vpop.f32.mrf.mxu0 }
  0xa7   :  { %v603_v13 = vpop.f32.mrf.mxu3  ;;  %v579_v15 = vpop.f32.mrf.mxu1  ;;  %v591_v19 = vadd.f32 %v590_v12, %v578_v18 }
  0xa9   :  { %v604_v20 = vadd.f32 %v603_v13, %v591_v19 }
  0xae   :  { %v592_v16 = vpop.f32.mrf.mxu2 }
  0xaf   :  { %v605_v17 = vpop.f32.mrf.mxu3 }
  0xbe   :  { %v616_v21 = vpop.f32.mrf.mxu0 }
  0xbf   :  { %v629_v22 = vpop.f32.mrf.mxu1  ;;  %v617_v23 = vadd.f32 %v616_v21, %v604_v20 }
  0xc1   :  { %v630_v24 = vadd.f32 %v629_v22, %v617_v23 }
  0xc6   :  { %v642_v25 = vpop.f32.mrf.mxu2  ;;  %v618_v28 = vpop.f32.mrf.mxu0 }
  0xc7   :  { %v655_v26 = vpop.f32.mrf.mxu3  ;;  %v643_v27 = vadd.f32 %v642_v25, %v630_v24  ;;  %v631_v29 = vpop.f32.mrf.mxu1 }
  0xc9   :  { %v656_v31 = vadd.f32 %v655_v26, %v643_v27 }
  0xcb   :  { %v659_v32 = vadd.f32 %v656_v31, %v23_v30 }
  0xcd   :  { %660 = vst [vmem:[#allocation2] sm:$0x3] %v659_v32 }
  0xce   :  { %v644_v33 = vpop.f32.mrf.mxu2 }
  0xcf   :  { %v657_v34 = vpop.f32.mrf.mxu3 }
  0xd4   :  { %v664_v37 = vld [vmem:[#allocation2] sm:$0x3] }
  0xd5   :  { %v669_v38 = vmul.f32 %v1014_v35, %v664_v37 }
  0xd7   :  { %v674_v39 = vadd.f32 %v1015_v36, %v669_v38 }
  0xd9   :  { %675 = vst [vmem:[#allocation3] sm:$0x3] %v674_v39 }
  0xda   :  { %686 = dma.vmem_to_hbm [thread:$0]  %s682_s15, 32, %s684_s18, [#allocation4]  }
  0xdb   :  { %1040 = dma.done.wait [#allocation4], 32  }
  0xdc   :  { %1041 = vsyncadd [#allocation4], 4294967264 }
  0xdd   :  { %691 = vsyncpa [#allocation4], 1 }

// kernel: forward.6
= control target key start
LH: loop header
LB: loop body
LE: loop exit
PB: predicated region body
PF: predicated region fallthrough
CT: control target
= control target key end

     0   :  { %s8775_s15 = smov 0   ;;  %s8777_s16 = smov 0   ;;  %s10534_s0 = inlined_call_operand.vmem [shape: bf16[2,2048], index: 0, kind: input, shape index: {}]   ;;  %s10535_s1 = inlined_call_operand.vmem [shape: bf16[2048,1024], index: 1, kind: input, shape index: {}]   ;;  %s10536_s2 = inlined_call_operand.vmem [shape: f32[1,1024], index: 2, kind: input, shape index: {}]   ;;  %s10537_s3 = inlined_call_operand.vmem [shape: f32[1,1024], index: 3, kind: input, shape index: {}]   ;;  %s10538_s4 = inlined_call_operand.vmem [shape: bf16[2,1024], index: 4, kind: output, shape index: {}]  }
   0x1   :  { %s8779_s17 = smov 0   ;;  %s8781_s18 = smov 0  }
   0x2   :  { %s8783_s19 = smov 0  }
   0x3 LB: > { %s26_s20 = sadd.s32 1, %s8728_s18  ;;  %p68_p1 = scmp.ne.s32.totalorder %s8720_s16, %s8716_s15  ;;  %s8732_s19 = sphi %s8783_s19, %s14_s19   ;;  %s8728_s18 = sphi %s8781_s18, %s10547_s18   ;;  %s8724_s17 = sphi %s8779_s17, %s10546_s17   ;;  %s8720_s16 = sphi %s8777_s16, %s10545_s16   ;;  %s8716_s15 = sphi %s8775_s15, %s10544_s15  }
   0x4   : > { %p28_p0 = scmp.ge.s32.totalorder %s26_s20, 2  ;;  %p69_p2 = scmp.eq.s32.totalorder %s8732_s19, 0 }
   0x5   : > { %s61_s22 = sadd.s32 1, %s8720_s16  ;;  %p6008_p5 = scmp.ge.s32.totalorder %s8732_s19, 2 }
   0x6   : > { %s10549_s20 = smov (%p28_p0, %s26_s20), 0  ;;  %p70_p3 = por %p69_p2, %p68_p1 }
   0x7   : > { %s57_s21 = ssub.s32 %s8728_s18, %s10549_s20  ;;  %180 = sbr.rel (%p6008_p5) target bundleno = 274 (0x112), region = 20 }
   0x8   : > { %p59_p4 = scmp.eq.s32.totalorder %s57_s21, 0 }
   0xa   : > { %s8810_s23 = scalar_select %p59_p4, %s8720_s16, %s61_s22  }
   0xc   : > { %183 = sbr.rel (!%p70_p3) target bundleno = 274 (0x112), region = 24  ;;  %s185_s24 = sand.u32 (%p70_p3), 1, %s8720_s16  }
   0xd   : > { %s8069_s25 = sshll.u32 (%p70_p3), %s8728_s18, 4  ;;  %s8815_s26 = sshll.u32 (%p70_p3), %s185_s24, 12 }
   0xe   : > { %s8820_s29 = scalar_lea.vmem (%p70_p3), %s10535_s1, %s8069_s25   ;;  %s187_s30 = scalar_lea.vmem (%p70_p3), [#allocation3], %s8815_s26  }
   0xf   : > { %s10539_s5 = smov (%p70_p3), %s187_s30  ;;  %s10540_s6 = smov (%p70_p3), %s8820_s29 }
  0x10   : > { %s8830_s7 = smov (%p70_p3), 0   ;;  %s8832_s8 = smov (%p70_p3), 0  }
  0x11 LB: >> { %v207_v0 = vld [vmem:[%s8740_s6] sm:$0xff]  ;;  %s719_s9 = sadd.s32 1, %s8744_s7  ;;  %s203_s8 = sadd.s32 1, %s8748_s8   ;;  %s8748_s8 = sphi %s8832_s8, %s203_s8   ;;  %s8744_s7 = sphi %s8830_s7, %s10543_s7   ;;  %s8740_s6 = sphi %s10540_s6, %s10542_s6   ;;  %s8736_s5 = sphi %s10539_s5, %s10541_s5  }
  0x12   : >> { %v209_v1 = vld [vmem:[%s8740_s6 + $0x20] sm:$0xff]  ;;  %208 = vst [vmem:[%s8736_s5] sm:$0xff] %v207_v0  ;;  %p720_p6 = scmp.ge.s32.totalorder %s719_s9, 2  ;;  %p200_p7 = scmp.ge.s32.totalorder %s203_s8, 2  }
  0x13   : >> { %v211_v2 = vld [vmem:[%s8740_s6 + $0x40] sm:$0xff]  ;;  %210 = vst [vmem:[%s8736_s5 + $0x10] sm:$0xff] %v209_v1 }
  0x14   : >> { %v213_v3 = vld [vmem:[%s8740_s6 + $0x60] sm:$0xff]  ;;  %212 = vst [vmem:[%s8736_s5 + $0x20] sm:$0xff] %v211_v2  ;;  %s10551_s9 = smov (%p720_p6, %s719_s9), 0 }
  0x15   : >> { %v215_v4 = vld [vmem:[%s8740_s6 + $0x80] sm:$0xff]  ;;  %214 = vst [vmem:[%s8736_s5 + $0x30] sm:$0xff] %v213_v3  ;;  %s6012_s10 = sshll.u32 %s10551_s9, 3  ;;  %s10543_s7 = smov %s10551_s9 }
  0x16   : >> { %v217_v5 = vld [vmem:[%s8740_s6 + $0xa0] sm:$0xff]  ;;  %216 = vst [vmem:[%s8736_s5 + $0x40] sm:$0xff] %v215_v4  ;;  %s9110_s11 = scalar_lea.vmem %s8820_s29, %s6012_s10   ;;  %s9114_s12 = scalar_lea.vmem %s187_s30, %s6012_s10 [#allocation3]  }
  0x17   : >> { %v219_v6 = vld [vmem:[%s8740_s6 + $0xc0] sm:$0xff]  ;;  %218 = vst [vmem:[%s8736_s5 + $0x50] sm:$0xff] %v217_v5 }
  0x18   : >> { %v221_v7 = vld [vmem:[%s8740_s6 + $0xe0] sm:$0xff]  ;;  %220 = vst [vmem:[%s8736_s5 + $0x60] sm:$0xff] %v219_v6 }
  0x19   : >> { %v223_v8 = vld [vmem:[%s8740_s6 + $0x100] sm:$0xff]  ;;  %222 = vst [vmem:[%s8736_s5 + $0x70] sm:$0xff] %v221_v7 }
  0x1a   : >> { %v225_v9 = vld [vmem:[%s8740_s6 + $0x120] sm:$0xff]  ;;  %224 = vst [vmem:[%s8736_s5 + $0x80] sm:$0xff] %v223_v8 }
  0x1b   : >> { %v227_v10 = vld [vmem:[%s8740_s6 + $0x140] sm:$0xff]  ;;  %226 = vst [vmem:[%s8736_s5 + $0x90] sm:$0xff] %v225_v9 }
  0x1c   : >> { %v229_v11 = vld [vmem:[%s8740_s6 + $0x160] sm:$0xff]  ;;  %228 = vst [vmem:[%s8736_s5 + $0xa0] sm:$0xff] %v227_v10 }
  0x1d   : >> { %v231_v12 = vld [vmem:[%s8740_s6 + $0x180] sm:$0xff]  ;;  %230 = vst [vmem:[%s8736_s5 + $0xb0] sm:$0xff] %v229_v11 }
  0x1e   : >> { %v233_v13 = vld [vmem:[%s8740_s6 + $0x1a0] sm:$0xff]  ;;  %232 = vst [vmem:[%s8736_s5 + $0xc0] sm:$0xff] %v231_v12 }
  0x1f   : >> { %v235_v14 = vld [vmem:[%s8740_s6 + $0x1c0] sm:$0xff]  ;;  %234 = vst [vmem:[%s8736_s5 + $0xd0] sm:$0xff] %v233_v13 }
  0x20   : >> { %v237_v15 = vld [vmem:[%s8740_s6 + $0x1e0] sm:$0xff]  ;;  %236 = vst [vmem:[%s8736_s5 + $0xe0] sm:$0xff] %v235_v14 }
  0x21   : >> { %v239_v16 = vld [vmem:[%s8740_s6 + $0x200] sm:$0xff]  ;;  %238 = vst [vmem:[%s8736_s5 + $0xf0] sm:$0xff] %v237_v15 }
  0x22   : >> { %v241_v17 = vld [vmem:[%s8740_s6 + $0x220] sm:$0xff]  ;;  %240 = vst [vmem:[%s8736_s5 + $0x100] sm:$0xff] %v239_v16 }
  0x23   : >> { %v243_v18 = vld [vmem:[%s8740_s6 + $0x240] sm:$0xff]  ;;  %242 = vst [vmem:[%s8736_s5 + $0x110] sm:$0xff] %v241_v17 }
  0x24   : >> { %v245_v19 = vld [vmem:[%s8740_s6 + $0x260] sm:$0xff]  ;;  %244 = vst [vmem:[%s8736_s5 + $0x120] sm:$0xff] %v243_v18 }
  0x25   : >> { %v247_v20 = vld [vmem:[%s8740_s6 + $0x280] sm:$0xff]  ;;  %246 = vst [vmem:[%s8736_s5 + $0x130] sm:$0xff] %v245_v19 }
  0x26   : >> { %v249_v21 = vld [vmem:[%s8740_s6 + $0x2a0] sm:$0xff]  ;;  %248 = vst [vmem:[%s8736_s5 + $0x140] sm:$0xff] %v247_v20 }
  0x27   : >> { %v251_v22 = vld [vmem:[%s8740_s6 + $0x2c0] sm:$0xff]  ;;  %250 = vst [vmem:[%s8736_s5 + $0x150] sm:$0xff] %v249_v21 }
  0x28   : >> { %v253_v23 = vld [vmem:[%s8740_s6 + $0x2e0] sm:$0xff]  ;;  %252 = vst [vmem:[%s8736_s5 + $0x160] sm:$0xff] %v251_v22 }
  0x29   : >> { %v255_v24 = vld [vmem:[%s8740_s6 + $0x300] sm:$0xff]  ;;  %254 = vst [vmem:[%s8736_s5 + $0x170] sm:$0xff] %v253_v23 }
  0x2a   : >> { %v257_v25 = vld [vmem:[%s8740_s6 + $0x320] sm:$0xff]  ;;  %256 = vst [vmem:[%s8736_s5 + $0x180] sm:$0xff] %v255_v24 }
  0x2b   : >> { %v259_v26 = vld [vmem:[%s8740_s6 + $0x340] sm:$0xff]  ;;  %258 = vst [vmem:[%s8736_s5 + $0x190] sm:$0xff] %v257_v25 }
  0x2c   : >> { %v261_v27 = vld [vmem:[%s8740_s6 + $0x360] sm:$0xff]  ;;  %260 = vst [vmem:[%s8736_s5 + $0x1a0] sm:$0xff] %v259_v26 }
  0x2d   : >> { %v263_v28 = vld [vmem:[%s8740_s6 + $0x380] sm:$0xff]  ;;  %262 = vst [vmem:[%s8736_s5 + $0x1b0] sm:$0xff] %v261_v27 }
  0x2e   : >> { %v265_v29 = vld [vmem:[%s8740_s6 + $0x3a0] sm:$0xff]  ;;  %264 = vst [vmem:[%s8736_s5 + $0x1c0] sm:$0xff] %v263_v28 }
  0x2f   : >> { %v267_v30 = vld [vmem:[%s8740_s6 + $0x3c0] sm:$0xff]  ;;  %266 = vst [vmem:[%s8736_s5 + $0x1d0] sm:$0xff] %v265_v29 }
  0x30   : >> { %v269_v31 = vld [vmem:[%s8740_s6 + $0x3e0] sm:$0xff]  ;;  %268 = vst [vmem:[%s8736_s5 + $0x1e0] sm:$0xff] %v267_v30 }
  0x31   : >> { %v271_v32 = vld [vmem:[%s8740_s6 + $0x400] sm:$0xff]  ;;  %270 = vst [vmem:[%s8736_s5 + $0x1f0] sm:$0xff] %v269_v31 }
  0x32   : >> { %v273_v33 = vld [vmem:[%s8740_s6 + $0x420] sm:$0xff]  ;;  %272 = vst [vmem:[%s8736_s5 + $0x200] sm:$0xff] %v271_v32 }
  0x33   : >> { %v275_v34 = vld [vmem:[%s8740_s6 + $0x440] sm:$0xff]  ;;  %274 = vst [vmem:[%s8736_s5 + $0x210] sm:$0xff] %v273_v33 }
  0x34   : >> { %v277_v35 = vld [vmem:[%s8740_s6 + $0x460] sm:$0xff]  ;;  %276 = vst [vmem:[%s8736_s5 + $0x220] sm:$0xff] %v275_v34 }
  0x35   : >> { %v279_v36 = vld [vmem:[%s8740_s6 + $0x480] sm:$0xff]  ;;  %278 = vst [vmem:[%s8736_s5 + $0x230] sm:$0xff] %v277_v35 }
  0x36   : >> { %v281_v37 = vld [vmem:[%s8740_s6 + $0x4a0] sm:$0xff]  ;;  %280 = vst [vmem:[%s8736_s5 + $0x240] sm:$0xff] %v279_v36 }
  0x37   : >> { %v283_v38 = vld [vmem:[%s8740_s6 + $0x4c0] sm:$0xff]  ;;  %282 = vst [vmem:[%s8736_s5 + $0x250] sm:$0xff] %v281_v37 }
  0x38   : >> { %v285_v39 = vld [vmem:[%s8740_s6 + $0x4e0] sm:$0xff]  ;;  %284 = vst [vmem:[%s8736_s5 + $0x260] sm:$0xff] %v283_v38 }
  0x39   : >> { %v287_v40 = vld [vmem:[%s8740_s6 + $0x500] sm:$0xff]  ;;  %286 = vst [vmem:[%s8736_s5 + $0x270] sm:$0xff] %v285_v39 }
  0x3a   : >> { %v289_v41 = vld [vmem:[%s8740_s6 + $0x520] sm:$0xff]  ;;  %288 = vst [vmem:[%s8736_s5 + $0x280] sm:$0xff] %v287_v40 }
  0x3b   : >> { %v291_v42 = vld [vmem:[%s8740_s6 + $0x540] sm:$0xff]  ;;  %290 = vst [vmem:[%s8736_s5 + $0x290] sm:$0xff] %v289_v41 }
  0x3c   : >> { %v293_v43 = vld [vmem:[%s8740_s6 + $0x560] sm:$0xff]  ;;  %292 = vst [vmem:[%s8736_s5 + $0x2a0] sm:$0xff] %v291_v42 }
  0x3d   : >> { %v295_v44 = vld [vmem:[%s8740_s6 + $0x580] sm:$0xff]  ;;  %294 = vst [vmem:[%s8736_s5 + $0x2b0] sm:$0xff] %v293_v43 }
  0x3e   : >> { %v297_v45 = vld [vmem:[%s8740_s6 + $0x5a0] sm:$0xff]  ;;  %296 = vst [vmem:[%s8736_s5 + $0x2c0] sm:$0xff] %v295_v44 }
  0x3f   : >> { %v299_v46 = vld [vmem:[%s8740_s6 + $0x5c0] sm:$0xff]  ;;  %298 = vst [vmem:[%s8736_s5 + $0x2d0] sm:$0xff] %v297_v45 }
  0x40   : >> { %v301_v47 = vld [vmem:[%s8740_s6 + $0x5e0] sm:$0xff]  ;;  %300 = vst [vmem:[%s8736_s5 + $0x2e0] sm:$0xff] %v299_v46 }
  0x41   : >> { %v303_v48 = vld [vmem:[%s8740_s6 + $0x600] sm:$0xff]  ;;  %302 = vst [vmem:[%s8736_s5 + $0x2f0] sm:$0xff] %v301_v47 }
  0x42   : >> { %v305_v49 = vld [vmem:[%s8740_s6 + $0x620] sm:$0xff]  ;;  %304 = vst [vmem:[%s8736_s5 + $0x300] sm:$0xff] %v303_v48 }
  0x43   : >> { %v307_v50 = vld [vmem:[%s8740_s6 + $0x640] sm:$0xff]  ;;  %306 = vst [vmem:[%s8736_s5 + $0x310] sm:$0xff] %v305_v49 }
  0x44   : >> { %v309_v51 = vld [vmem:[%s8740_s6 + $0x660] sm:$0xff]  ;;  %308 = vst [vmem:[%s8736_s5 + $0x320] sm:$0xff] %v307_v50 }
  0x45   : >> { %v311_v52 = vld [vmem:[%s8740_s6 + $0x680] sm:$0xff]  ;;  %310 = vst [vmem:[%s8736_s5 + $0x330] sm:$0xff] %v309_v51 }
  0x46   : >> { %v313_v53 = vld [vmem:[%s8740_s6 + $0x6a0] sm:$0xff]  ;;  %312 = vst [vmem:[%s8736_s5 + $0x340] sm:$0xff] %v311_v52 }
  0x47   : >> { %v315_v54 = vld [vmem:[%s8740_s6 + $0x6c0] sm:$0xff]  ;;  %314 = vst [vmem:[%s8736_s5 + $0x350] sm:$0xff] %v313_v53 }
  0x48   : >> { %v317_v55 = vld [vmem:[%s8740_s6 + $0x6e0] sm:$0xff]  ;;  %316 = vst [vmem:[%s8736_s5 + $0x360] sm:$0xff] %v315_v54 }
  0x49   : >> { %v319_v56 = vld [vmem:[%s8740_s6 + $0x700] sm:$0xff]  ;;  %318 = vst [vmem:[%s8736_s5 + $0x370] sm:$0xff] %v317_v55 }
  0x4a   : >> { %v321_v57 = vld [vmem:[%s8740_s6 + $0x720] sm:$0xff]  ;;  %320 = vst [vmem:[%s8736_s5 + $0x380] sm:$0xff] %v319_v56 }
  0x4b   : >> { %v323_v58 = vld [vmem:[%s8740_s6 + $0x740] sm:$0xff]  ;;  %322 = vst [vmem:[%s8736_s5 + $0x390] sm:$0xff] %v321_v57 }
  0x4c   : >> { %v325_v59 = vld [vmem:[%s8740_s6 + $0x760] sm:$0xff]  ;;  %324 = vst [vmem:[%s8736_s5 + $0x3a0] sm:$0xff] %v323_v58 }
  0x4d   : >> { %v327_v60 = vld [vmem:[%s8740_s6 + $0x780] sm:$0xff]  ;;  %326 = vst [vmem:[%s8736_s5 + $0x3b0] sm:$0xff] %v325_v59 }
  0x4e   : >> { %v329_v61 = vld [vmem:[%s8740_s6 + $0x7a0] sm:$0xff]  ;;  %328 = vst [vmem:[%s8736_s5 + $0x3c0] sm:$0xff] %v327_v60 }
  0x4f   : >> { %v331_v62 = vld [vmem:[%s8740_s6 + $0x7c0] sm:$0xff]  ;;  %330 = vst [vmem:[%s8736_s5 + $0x3d0] sm:$0xff] %v329_v61 }
  0x50   : >> { %v333_v63 = vld [vmem:[%s8740_s6 + $0x7e0] sm:$0xff]  ;;  %332 = vst [vmem:[%s8736_s5 + $0x3e0] sm:$0xff] %v331_v62 }
  0x51   : >> { %v335_v0 = vld [vmem:[%s8740_s6 + $0x800] sm:$0xff]  ;;  %334 = vst [vmem:[%s8736_s5 + $0x3f0] sm:$0xff] %v333_v63 }
  0x52   : >> { %v337_v1 = vld [vmem:[%s8740_s6 + $0x820] sm:$0xff]  ;;  %336 = vst [vmem:[%s8736_s5 + $0x400] sm:$0xff] %v335_v0 }
  0x53   : >> { %v339_v2 = vld [vmem:[%s8740_s6 + $0x840] sm:$0xff]  ;;  %338 = vst [vmem:[%s8736_s5 + $0x410] sm:$0xff] %v337_v1 }
  0x54   : >> { %v341_v3 = vld [vmem:[%s8740_s6 + $0x860] sm:$0xff]  ;;  %340 = vst [vmem:[%s8736_s5 + $0x420] sm:$0xff] %v339_v2 }
  0x55   : >> { %v343_v4 = vld [vmem:[%s8740_s6 + $0x880] sm:$0xff]  ;;  %342 = vst [vmem:[%s8736_s5 + $0x430] sm:$0xff] %v341_v3 }
  0x56   : >> { %v345_v5 = vld [vmem:[%s8740_s6 + $0x8a0] sm:$0xff]  ;;  %344 = vst [vmem:[%s8736_s5 + $0x440] sm:$0xff] %v343_v4 }
  0x57   : >> { %v347_v6 = vld [vmem:[%s8740_s6 + $0x8c0] sm:$0xff]  ;;  %346 = vst [vmem:[%s8736_s5 + $0x450] sm:$0xff] %v345_v5 }
  0x58   : >> { %v349_v7 = vld [vmem:[%s8740_s6 + $0x8e0] sm:$0xff]  ;;  %348 = vst [vmem:[%s8736_s5 + $0x460] sm:$0xff] %v347_v6 }
  0x59   : >> { %v351_v8 = vld [vmem:[%s8740_s6 + $0x900] sm:$0xff]  ;;  %350 = vst [vmem:[%s8736_s5 + $0x470] sm:$0xff] %v349_v7 }
  0x5a   : >> { %v353_v9 = vld [vmem:[%s8740_s6 + $0x920] sm:$0xff]  ;;  %352 = vst [vmem:[%s8736_s5 + $0x480] sm:$0xff] %v351_v8 }
  0x5b   : >> { %v355_v10 = vld [vmem:[%s8740_s6 + $0x940] sm:$0xff]  ;;  %354 = vst [vmem:[%s8736_s5 + $0x490] sm:$0xff] %v353_v9 }
  0x5c   : >> { %v357_v11 = vld [vmem:[%s8740_s6 + $0x960] sm:$0xff]  ;;  %356 = vst [vmem:[%s8736_s5 + $0x4a0] sm:$0xff] %v355_v10 }
  0x5d   : >> { %v359_v12 = vld [vmem:[%s8740_s6 + $0x980] sm:$0xff]  ;;  %358 = vst [vmem:[%s8736_s5 + $0x4b0] sm:$0xff] %v357_v11 }
  0x5e   : >> { %v361_v13 = vld [vmem:[%s8740_s6 + $0x9a0] sm:$0xff]  ;;  %360 = vst [vmem:[%s8736_s5 + $0x4c0] sm:$0xff] %v359_v12 }
  0x5f   : >> { %v363_v14 = vld [vmem:[%s8740_s6 + $0x9c0] sm:$0xff]  ;;  %362 = vst [vmem:[%s8736_s5 + $0x4d0] sm:$0xff] %v361_v13 }
  0x60   : >> { %v365_v15 = vld [vmem:[%s8740_s6 + $0x9e0] sm:$0xff]  ;;  %364 = vst [vmem:[%s8736_s5 + $0x4e0] sm:$0xff] %v363_v14 }
  0x61   : >> { %v367_v16 = vld [vmem:[%s8740_s6 + $0xa00] sm:$0xff]  ;;  %366 = vst [vmem:[%s8736_s5 + $0x4f0] sm:$0xff] %v365_v15 }
  0x62   : >> { %v369_v17 = vld [vmem:[%s8740_s6 + $0xa20] sm:$0xff]  ;;  %368 = vst [vmem:[%s8736_s5 + $0x500] sm:$0xff] %v367_v16 }
  0x63   : >> { %v371_v18 = vld [vmem:[%s8740_s6 + $0xa40] sm:$0xff]  ;;  %370 = vst [vmem:[%s8736_s5 + $0x510] sm:$0xff] %v369_v17 }
  0x64   : >> { %v373_v19 = vld [vmem:[%s8740_s6 + $0xa60] sm:$0xff]  ;;  %372 = vst [vmem:[%s8736_s5 + $0x520] sm:$0xff] %v371_v18 }
  0x65   : >> { %v375_v20 = vld [vmem:[%s8740_s6 + $0xa80] sm:$0xff]  ;;  %374 = vst [vmem:[%s8736_s5 + $0x530] sm:$0xff] %v373_v19 }
  0x66   : >> { %v377_v21 = vld [vmem:[%s8740_s6 + $0xaa0] sm:$0xff]  ;;  %376 = vst [vmem:[%s8736_s5 + $0x540] sm:$0xff] %v375_v20 }
  0x67   : >> { %v379_v22 = vld [vmem:[%s8740_s6 + $0xac0] sm:$0xff]  ;;  %378 = vst [vmem:[%s8736_s5 + $0x550] sm:$0xff] %v377_v21 }
  0x68   : >> { %v381_v23 = vld [vmem:[%s8740_s6 + $0xae0] sm:$0xff]  ;;  %380 = vst [vmem:[%s8736_s5 + $0x560] sm:$0xff] %v379_v22 }
  0x69   : >> { %v383_v24 = vld [vmem:[%s8740_s6 + $0xb00] sm:$0xff]  ;;  %382 = vst [vmem:[%s8736_s5 + $0x570] sm:$0xff] %v381_v23 }
  0x6a   : >> { %v385_v25 = vld [vmem:[%s8740_s6 + $0xb20] sm:$0xff]  ;;  %384 = vst [vmem:[%s8736_s5 + $0x580] sm:$0xff] %v383_v24 }
  0x6b   : >> { %v387_v26 = vld [vmem:[%s8740_s6 + $0xb40] sm:$0xff]  ;;  %386 = vst [vmem:[%s8736_s5 + $0x590] sm:$0xff] %v385_v25 }
  0x6c   : >> { %v389_v27 = vld [vmem:[%s8740_s6 + $0xb60] sm:$0xff]  ;;  %388 = vst [vmem:[%s8736_s5 + $0x5a0] sm:$0xff] %v387_v26 }
  0x6d   : >> { %v391_v28 = vld [vmem:[%s8740_s6 + $0xb80] sm:$0xff]  ;;  %390 = vst [vmem:[%s8736_s5 + $0x5b0] sm:$0xff] %v389_v27 }
  0x6e   : >> { %v393_v29 = vld [vmem:[%s8740_s6 + $0xba0] sm:$0xff]  ;;  %392 = vst [vmem:[%s8736_s5 + $0x5c0] sm:$0xff] %v391_v28 }
  0x6f   : >> { %v395_v30 = vld [vmem:[%s8740_s6 + $0xbc0] sm:$0xff]  ;;  %394 = vst [vmem:[%s8736_s5 + $0x5d0] sm:$0xff] %v393_v29 }
  0x70   : >> { %v397_v31 = vld [vmem:[%s8740_s6 + $0xbe0] sm:$0xff]  ;;  %396 = vst [vmem:[%s8736_s5 + $0x5e0] sm:$0xff] %v395_v30 }
  0x71   : >> { %v399_v32 = vld [vmem:[%s8740_s6 + $0xc00] sm:$0xff]  ;;  %398 = vst [vmem:[%s8736_s5 + $0x5f0] sm:$0xff] %v397_v31 }
  0x72   : >> { %v401_v33 = vld [vmem:[%s8740_s6 + $0xc20] sm:$0xff]  ;;  %400 = vst [vmem:[%s8736_s5 + $0x600] sm:$0xff] %v399_v32 }
  0x73   : >> { %v403_v34 = vld [vmem:[%s8740_s6 + $0xc40] sm:$0xff]  ;;  %402 = vst [vmem:[%s8736_s5 + $0x610] sm:$0xff] %v401_v33 }
  0x74   : >> { %v405_v35 = vld [vmem:[%s8740_s6 + $0xc60] sm:$0xff]  ;;  %404 = vst [vmem:[%s8736_s5 + $0x620] sm:$0xff] %v403_v34 }
  0x75   : >> { %v407_v36 = vld [vmem:[%s8740_s6 + $0xc80] sm:$0xff]  ;;  %406 = vst [vmem:[%s8736_s5 + $0x630] sm:$0xff] %v405_v35 }
  0x76   : >> { %v409_v37 = vld [vmem:[%s8740_s6 + $0xca0] sm:$0xff]  ;;  %408 = vst [vmem:[%s8736_s5 + $0x640] sm:$0xff] %v407_v36 }
  0x77   : >> { %v411_v38 = vld [vmem:[%s8740_s6 + $0xcc0] sm:$0xff]  ;;  %410 = vst [vmem:[%s8736_s5 + $0x650] sm:$0xff] %v409_v37 }
  0x78   : >> { %v413_v39 = vld [vmem:[%s8740_s6 + $0xce0] sm:$0xff]  ;;  %412 = vst [vmem:[%s8736_s5 + $0x660] sm:$0xff] %v411_v38 }
  0x79   : >> { %v415_v40 = vld [vmem:[%s8740_s6 + $0xd00] sm:$0xff]  ;;  %414 = vst [vmem:[%s8736_s5 + $0x670] sm:$0xff] %v413_v39 }
  0x7a   : >> { %v417_v41 = vld [vmem:[%s8740_s6 + $0xd20] sm:$0xff]  ;;  %416 = vst [vmem:[%s8736_s5 + $0x680] sm:$0xff] %v415_v40 }
  0x7b   : >> { %v419_v42 = vld [vmem:[%s8740_s6 + $0xd40] sm:$0xff]  ;;  %418 = vst [vmem:[%s8736_s5 + $0x690] sm:$0xff] %v417_v41 }
  0x7c   : >> { %v421_v43 = vld [vmem:[%s8740_s6 + $0xd60] sm:$0xff]  ;;  %420 = vst [vmem:[%s8736_s5 + $0x6a0] sm:$0xff] %v419_v42 }
  0x7d   : >> { %v423_v44 = vld [vmem:[%s8740_s6 + $0xd80] sm:$0xff]  ;;  %422 = vst [vmem:[%s8736_s5 + $0x6b0] sm:$0xff] %v421_v43 }
  0x7e   : >> { %v425_v45 = vld [vmem:[%s8740_s6 + $0xda0] sm:$0xff]  ;;  %424 = vst [vmem:[%s8736_s5 + $0x6c0] sm:$0xff] %v423_v44 }
  0x7f   : >> { %v427_v46 = vld [vmem:[%s8740_s6 + $0xdc0] sm:$0xff]  ;;  %426 = vst [vmem:[%s8736_s5 + $0x6d0] sm:$0xff] %v425_v45 }
  0x80   : >> { %v429_v47 = vld [vmem:[%s8740_s6 + $0xde0] sm:$0xff]  ;;  %428 = vst [vmem:[%s8736_s5 + $0x6e0] sm:$0xff] %v427_v46 }
  0x81   : >> { %v431_v48 = vld [vmem:[%s8740_s6 + $0xe00] sm:$0xff]  ;;  %430 = vst [vmem:[%s8736_s5 + $0x6f0] sm:$0xff] %v429_v47 }
  0x82   : >> { %v433_v49 = vld [vmem:[%s8740_s6 + $0xe20] sm:$0xff]  ;;  %432 = vst [vmem:[%s8736_s5 + $0x700] sm:$0xff] %v431_v48 }
  0x83   : >> { %v435_v50 = vld [vmem:[%s8740_s6 + $0xe40] sm:$0xff]  ;;  %434 = vst [vmem:[%s8736_s5 + $0x710] sm:$0xff] %v433_v49 }
  0x84   : >> { %v437_v51 = vld [vmem:[%s8740_s6 + $0xe60] sm:$0xff]  ;;  %436 = vst [vmem:[%s8736_s5 + $0x720] sm:$0xff] %v435_v50 }
  0x85   : >> { %v439_v52 = vld [vmem:[%s8740_s6 + $0xe80] sm:$0xff]  ;;  %438 = vst [vmem:[%s8736_s5 + $0x730] sm:$0xff] %v437_v51 }
  0x86   : >> { %v441_v53 = vld [vmem:[%s8740_s6 + $0xea0] sm:$0xff]  ;;  %440 = vst [vmem:[%s8736_s5 + $0x740] sm:$0xff] %v439_v52 }
  0x87   : >> { %v443_v54 = vld [vmem:[%s8740_s6 + $0xec0] sm:$0xff]  ;;  %442 = vst [vmem:[%s8736_s5 + $0x750] sm:$0xff] %v441_v53 }
  0x88   : >> { %v445_v55 = vld [vmem:[%s8740_s6 + $0xee0] sm:$0xff]  ;;  %444 = vst [vmem:[%s8736_s5 + $0x760] sm:$0xff] %v443_v54 }
  0x89   : >> { %v447_v56 = vld [vmem:[%s8740_s6 + $0xf00] sm:$0xff]  ;;  %446 = vst [vmem:[%s8736_s5 + $0x770] sm:$0xff] %v445_v55 }
  0x8a   : >> { %v449_v57 = vld [vmem:[%s8740_s6 + $0xf20] sm:$0xff]  ;;  %448 = vst [vmem:[%s8736_s5 + $0x780] sm:$0xff] %v447_v56 }
  0x8b   : >> { %v451_v58 = vld [vmem:[%s8740_s6 + $0xf40] sm:$0xff]  ;;  %450 = vst [vmem:[%s8736_s5 + $0x790] sm:$0xff] %v449_v57 }
  0x8c   : >> { %v453_v59 = vld [vmem:[%s8740_s6 + $0xf60] sm:$0xff]  ;;  %452 = vst [vmem:[%s8736_s5 + $0x7a0] sm:$0xff] %v451_v58 }
  0x8d   : >> { %v455_v60 = vld [vmem:[%s8740_s6 + $0xf80] sm:$0xff]  ;;  %454 = vst [vmem:[%s8736_s5 + $0x7b0] sm:$0xff] %v453_v59 }
  0x8e   : >> { %v457_v61 = vld [vmem:[%s8740_s6 + $0xfa0] sm:$0xff]  ;;  %456 = vst [vmem:[%s8736_s5 + $0x7c0] sm:$0xff] %v455_v60 }
  0x8f   : >> { %v459_v62 = vld [vmem:[%s8740_s6 + $0xfc0] sm:$0xff]  ;;  %458 = vst [vmem:[%s8736_s5 + $0x7d0] sm:$0xff] %v457_v61 }
  0x90   : >> { %v461_v63 = vld [vmem:[%s8740_s6 + $0xfe0] sm:$0xff]  ;;  %460 = vst [vmem:[%s8736_s5 + $0x7e0] sm:$0xff] %v459_v62 }
  0x91   : >> { %v463_v0 = vld [vmem:[%s8740_s6 + $0x1000] sm:$0xff]  ;;  %462 = vst [vmem:[%s8736_s5 + $0x7f0] sm:$0xff] %v461_v63 }
  0x92   : >> { %v465_v1 = vld [vmem:[%s8740_s6 + $0x1020] sm:$0xff]  ;;  %464 = vst [vmem:[%s8736_s5 + $0x800] sm:$0xff] %v463_v0 }
  0x93   : >> { %v467_v2 = vld [vmem:[%s8740_s6 + $0x1040] sm:$0xff]  ;;  %466 = vst [vmem:[%s8736_s5 + $0x810] sm:$0xff] %v465_v1 }
  0x94   : >> { %v469_v3 = vld [vmem:[%s8740_s6 + $0x1060] sm:$0xff]  ;;  %468 = vst [vmem:[%s8736_s5 + $0x820] sm:$0xff] %v467_v2 }
  0x95   : >> { %v471_v4 = vld [vmem:[%s8740_s6 + $0x1080] sm:$0xff]  ;;  %470 = vst [vmem:[%s8736_s5 + $0x830] sm:$0xff] %v469_v3 }
  0x96   : >> { %v473_v5 = vld [vmem:[%s8740_s6 + $0x10a0] sm:$0xff]  ;;  %472 = vst [vmem:[%s8736_s5 + $0x840] sm:$0xff] %v471_v4 }
  0x97   : >> { %v475_v6 = vld [vmem:[%s8740_s6 + $0x10c0] sm:$0xff]  ;;  %474 = vst [vmem:[%s8736_s5 + $0x850] sm:$0xff] %v473_v5 }
  0x98   : >> { %v477_v7 = vld [vmem:[%s8740_s6 + $0x10e0] sm:$0xff]  ;;  %476 = vst [vmem:[%s8736_s5 + $0x860] sm:$0xff] %v475_v6 }
  0x99   : >> { %v479_v8 = vld [vmem:[%s8740_s6 + $0x1100] sm:$0xff]  ;;  %478 = vst [vmem:[%s8736_s5 + $0x870] sm:$0xff] %v477_v7 }
  0x9a   : >> { %v481_v9 = vld [vmem:[%s8740_s6 + $0x1120] sm:$0xff]  ;;  %480 = vst [vmem:[%s8736_s5 + $0x880] sm:$0xff] %v479_v8 }
  0x9b   : >> { %v483_v10 = vld [vmem:[%s8740_s6 + $0x1140] sm:$0xff]  ;;  %482 = vst [vmem:[%s8736_s5 + $0x890] sm:$0xff] %v481_v9 }
  0x9c   : >> { %v485_v11 = vld [vmem:[%s8740_s6 + $0x1160] sm:$0xff]  ;;  %484 = vst [vmem:[%s8736_s5 + $0x8a0] sm:$0xff] %v483_v10 }
  0x9d   : >> { %v487_v12 = vld [vmem:[%s8740_s6 + $0x1180] sm:$0xff]  ;;  %486 = vst [vmem:[%s8736_s5 + $0x8b0] sm:$0xff] %v485_v11 }
  0x9e   : >> { %v489_v13 = vld [vmem:[%s8740_s6 + $0x11a0] sm:$0xff]  ;;  %488 = vst [vmem:[%s8736_s5 + $0x8c0] sm:$0xff] %v487_v12 }
  0x9f   : >> { %v491_v14 = vld [vmem:[%s8740_s6 + $0x11c0] sm:$0xff]  ;;  %490 = vst [vmem:[%s8736_s5 + $0x8d0] sm:$0xff] %v489_v13 }
  0xa0   : >> { %v493_v15 = vld [vmem:[%s8740_s6 + $0x11e0] sm:$0xff]  ;;  %492 = vst [vmem:[%s8736_s5 + $0x8e0] sm:$0xff] %v491_v14 }
  0xa1   : >> { %v495_v16 = vld [vmem:[%s8740_s6 + $0x1200] sm:$0xff]  ;;  %494 = vst [vmem:[%s8736_s5 + $0x8f0] sm:$0xff] %v493_v15 }
  0xa2   : >> { %v497_v17 = vld [vmem:[%s8740_s6 + $0x1220] sm:$0xff]  ;;  %496 = vst [vmem:[%s8736_s5 + $0x900] sm:$0xff] %v495_v16 }
  0xa3   : >> { %v499_v18 = vld [vmem:[%s8740_s6 + $0x1240] sm:$0xff]  ;;  %498 = vst [vmem:[%s8736_s5 + $0x910] sm:$0xff] %v497_v17 }
  0xa4   : >> { %v501_v19 = vld [vmem:[%s8740_s6 + $0x1260] sm:$0xff]  ;;  %500 = vst [vmem:[%s8736_s5 + $0x920] sm:$0xff] %v499_v18 }
  0xa5   : >> { %v503_v20 = vld [vmem:[%s8740_s6 + $0x1280] sm:$0xff]  ;;  %502 = vst [vmem:[%s8736_s5 + $0x930] sm:$0xff] %v501_v19 }
  0xa6   : >> { %v505_v21 = vld [vmem:[%s8740_s6 + $0x12a0] sm:$0xff]  ;;  %504 = vst [vmem:[%s8736_s5 + $0x940] sm:$0xff] %v503_v20 }
  0xa7   : >> { %v507_v22 = vld [vmem:[%s8740_s6 + $0x12c0] sm:$0xff]  ;;  %506 = vst [vmem:[%s8736_s5 + $0x950] sm:$0xff] %v505_v21 }
  0xa8   : >> { %v509_v23 = vld [vmem:[%s8740_s6 + $0x12e0] sm:$0xff]  ;;  %508 = vst [vmem:[%s8736_s5 + $0x960] sm:$0xff] %v507_v22 }
  0xa9   : >> { %v511_v24 = vld [vmem:[%s8740_s6 + $0x1300] sm:$0xff]  ;;  %510 = vst [vmem:[%s8736_s5 + $0x970] sm:$0xff] %v509_v23 }
  0xaa   : >> { %v513_v25 = vld [vmem:[%s8740_s6 + $0x1320] sm:$0xff]  ;;  %512 = vst [vmem:[%s8736_s5 + $0x980] sm:$0xff] %v511_v24 }
  0xab   : >> { %v515_v26 = vld [vmem:[%s8740_s6 + $0x1340] sm:$0xff]  ;;  %514 = vst [vmem:[%s8736_s5 + $0x990] sm:$0xff] %v513_v25 }
  0xac   : >> { %v517_v27 = vld [vmem:[%s8740_s6 + $0x1360] sm:$0xff]  ;;  %516 = vst [vmem:[%s8736_s5 + $0x9a0] sm:$0xff] %v515_v26 }
  0xad   : >> { %v519_v28 = vld [vmem:[%s8740_s6 + $0x1380] sm:$0xff]  ;;  %518 = vst [vmem:[%s8736_s5 + $0x9b0] sm:$0xff] %v517_v27 }
  0xae   : >> { %v521_v29 = vld [vmem:[%s8740_s6 + $0x13a0] sm:$0xff]  ;;  %520 = vst [vmem:[%s8736_s5 + $0x9c0] sm:$0xff] %v519_v28 }
  0xaf   : >> { %v523_v30 = vld [vmem:[%s8740_s6 + $0x13c0] sm:$0xff]  ;;  %522 = vst [vmem:[%s8736_s5 + $0x9d0] sm:$0xff] %v521_v29 }
  0xb0   : >> { %v525_v31 = vld [vmem:[%s8740_s6 + $0x13e0] sm:$0xff]  ;;  %524 = vst [vmem:[%s8736_s5 + $0x9e0] sm:$0xff] %v523_v30 }
  0xb1   : >> { %v527_v32 = vld [vmem:[%s8740_s6 + $0x1400] sm:$0xff]  ;;  %526 = vst [vmem:[%s8736_s5 + $0x9f0] sm:$0xff] %v525_v31 }
  0xb2   : >> { %v529_v33 = vld [vmem:[%s8740_s6 + $0x1420] sm:$0xff]  ;;  %528 = vst [vmem:[%s8736_s5 + $0xa00] sm:$0xff] %v527_v32 }
  0xb3   : >> { %v531_v34 = vld [vmem:[%s8740_s6 + $0x1440] sm:$0xff]  ;;  %530 = vst [vmem:[%s8736_s5 + $0xa10] sm:$0xff] %v529_v33 }
  0xb4   : >> { %v533_v35 = vld [vmem:[%s8740_s6 + $0x1460] sm:$0xff]  ;;  %532 = vst [vmem:[%s8736_s5 + $0xa20] sm:$0xff] %v531_v34 }
  0xb5   : >> { %v535_v36 = vld [vmem:[%s8740_s6 + $0x1480] sm:$0xff]  ;;  %534 = vst [vmem:[%s8736_s5 + $0xa30] sm:$0xff] %v533_v35 }
  0xb6   : >> { %v537_v37 = vld [vmem:[%s8740_s6 + $0x14a0] sm:$0xff]  ;;  %536 = vst [vmem:[%s8736_s5 + $0xa40] sm:$0xff] %v535_v36 }
  0xb7   : >> { %v539_v38 = vld [vmem:[%s8740_s6 + $0x14c0] sm:$0xff]  ;;  %538 = vst [vmem:[%s8736_s5 + $0xa50] sm:$0xff] %v537_v37 }
  0xb8   : >> { %v541_v39 = vld [vmem:[%s8740_s6 + $0x14e0] sm:$0xff]  ;;  %540 = vst [vmem:[%s8736_s5 + $0xa60] sm:$0xff] %v539_v38 }
  0xb9   : >> { %v543_v40 = vld [vmem:[%s8740_s6 + $0x1500] sm:$0xff]  ;;  %542 = vst [vmem:[%s8736_s5 + $0xa70] sm:$0xff] %v541_v39 }
  0xba   : >> { %v545_v41 = vld [vmem:[%s8740_s6 + $0x1520] sm:$0xff]  ;;  %544 = vst [vmem:[%s8736_s5 + $0xa80] sm:$0xff] %v543_v40 }
  0xbb   : >> { %v547_v42 = vld [vmem:[%s8740_s6 + $0x1540] sm:$0xff]  ;;  %546 = vst [vmem:[%s8736_s5 + $0xa90] sm:$0xff] %v545_v41 }
  0xbc   : >> { %v549_v43 = vld [vmem:[%s8740_s6 + $0x1560] sm:$0xff]  ;;  %548 = vst [vmem:[%s8736_s5 + $0xaa0] sm:$0xff] %v547_v42 }
  0xbd   : >> { %v551_v44 = vld [vmem:[%s8740_s6 + $0x1580] sm:$0xff]  ;;  %550 = vst [vmem:[%s8736_s5 + $0xab0] sm:$0xff] %v549_v43 }
  0xbe   : >> { %v553_v45 = vld [vmem:[%s8740_s6 + $0x15a0] sm:$0xff]  ;;  %552 = vst [vmem:[%s8736_s5 + $0xac0] sm:$0xff] %v551_v44 }
  0xbf   : >> { %v555_v46 = vld [vmem:[%s8740_s6 + $0x15c0] sm:$0xff]  ;;  %554 = vst [vmem:[%s8736_s5 + $0xad0] sm:$0xff] %v553_v45 }
  0xc0   : >> { %v557_v47 = vld [vmem:[%s8740_s6 + $0x15e0] sm:$0xff]  ;;  %556 = vst [vmem:[%s8736_s5 + $0xae0] sm:$0xff] %v555_v46 }
  0xc1   : >> { %v559_v48 = vld [vmem:[%s8740_s6 + $0x1600] sm:$0xff]  ;;  %558 = vst [vmem:[%s8736_s5 + $0xaf0] sm:$0xff] %v557_v47 }
  0xc2   : >> { %v561_v49 = vld [vmem:[%s8740_s6 + $0x1620] sm:$0xff]  ;;  %560 = vst [vmem:[%s8736_s5 + $0xb00] sm:$0xff] %v559_v48 }
  0xc3   : >> { %v563_v50 = vld [vmem:[%s8740_s6 + $0x1640] sm:$0xff]  ;;  %562 = vst [vmem:[%s8736_s5 + $0xb10] sm:$0xff] %v561_v49 }
  0xc4   : >> { %v565_v51 = vld [vmem:[%s8740_s6 + $0x1660] sm:$0xff]  ;;  %564 = vst [vmem:[%s8736_s5 + $0xb20] sm:$0xff] %v563_v50 }
  0xc5   : >> { %v567_v52 = vld [vmem:[%s8740_s6 + $0x1680] sm:$0xff]  ;;  %566 = vst [vmem:[%s8736_s5 + $0xb30] sm:$0xff] %v565_v51 }
  0xc6   : >> { %v569_v53 = vld [vmem:[%s8740_s6 + $0x16a0] sm:$0xff]  ;;  %568 = vst [vmem:[%s8736_s5 + $0xb40] sm:$0xff] %v567_v52 }
  0xc7   : >> { %v571_v54 = vld [vmem:[%s8740_s6 + $0x16c0] sm:$0xff]  ;;  %570 = vst [vmem:[%s8736_s5 + $0xb50] sm:$0xff] %v569_v53 }
  0xc8   : >> { %v573_v55 = vld [vmem:[%s8740_s6 + $0x16e0] sm:$0xff]  ;;  %572 = vst [vmem:[%s8736_s5 + $0xb60] sm:$0xff] %v571_v54 }
  0xc9   : >> { %v575_v56 = vld [vmem:[%s8740_s6 + $0x1700] sm:$0xff]  ;;  %574 = vst [vmem:[%s8736_s5 + $0xb70] sm:$0xff] %v573_v55 }
  0xca   : >> { %v577_v57 = vld [vmem:[%s8740_s6 + $0x1720] sm:$0xff]  ;;  %576 = vst [vmem:[%s8736_s5 + $0xb80] sm:$0xff] %v575_v56 }
  0xcb   : >> { %v579_v58 = vld [vmem:[%s8740_s6 + $0x1740] sm:$0xff]  ;;  %578 = vst [vmem:[%s8736_s5 + $0xb90] sm:$0xff] %v577_v57 }
  0xcc   : >> { %v581_v59 = vld [vmem:[%s8740_s6 + $0x1760] sm:$0xff]  ;;  %580 = vst [vmem:[%s8736_s5 + $0xba0] sm:$0xff] %v579_v58 }
  0xcd   : >> { %v583_v60 = vld [vmem:[%s8740_s6 + $0x1780] sm:$0xff]  ;;  %582 = vst [vmem:[%s8736_s5 + $0xbb0] sm:$0xff] %v581_v59 }
  0xce   : >> { %v585_v61 = vld [vmem:[%s8740_s6 + $0x17a0] sm:$0xff]  ;;  %584 = vst [vmem:[%s8736_s5 + $0xbc0] sm:$0xff] %v583_v60 }
  0xcf   : >> { %v587_v62 = vld [vmem:[%s8740_s6 + $0x17c0] sm:$0xff]  ;;  %586 = vst [vmem:[%s8736_s5 + $0xbd0] sm:$0xff] %v585_v61 }
  0xd0   : >> { %v589_v63 = vld [vmem:[%s8740_s6 + $0x17e0] sm:$0xff]  ;;  %588 = vst [vmem:[%s8736_s5 + $0xbe0] sm:$0xff] %v587_v62 }
  0xd1   : >> { %v591_v0 = vld [vmem:[%s8740_s6 + $0x1800] sm:$0xff]  ;;  %590 = vst [vmem:[%s8736_s5 + $0xbf0] sm:$0xff] %v589_v63 }
  0xd2   : >> { %v593_v1 = vld [vmem:[%s8740_s6 + $0x1820] sm:$0xff]  ;;  %592 = vst [vmem:[%s8736_s5 + $0xc00] sm:$0xff] %v591_v0 }
  0xd3   : >> { %v595_v2 = vld [vmem:[%s8740_s6 + $0x1840] sm:$0xff]  ;;  %594 = vst [vmem:[%s8736_s5 + $0xc10] sm:$0xff] %v593_v1 }
  0xd4   : >> { %v597_v3 = vld [vmem:[%s8740_s6 + $0x1860] sm:$0xff]  ;;  %596 = vst [vmem:[%s8736_s5 + $0xc20] sm:$0xff] %v595_v2 }
  0xd5   : >> { %v599_v4 = vld [vmem:[%s8740_s6 + $0x1880] sm:$0xff]  ;;  %598 = vst [vmem:[%s8736_s5 + $0xc30] sm:$0xff] %v597_v3 }
  0xd6   : >> { %v601_v5 = vld [vmem:[%s8740_s6 + $0x18a0] sm:$0xff]  ;;  %600 = vst [vmem:[%s8736_s5 + $0xc40] sm:$0xff] %v599_v4 }
  0xd7   : >> { %v603_v6 = vld [vmem:[%s8740_s6 + $0x18c0] sm:$0xff]  ;;  %602 = vst [vmem:[%s8736_s5 + $0xc50] sm:$0xff] %v601_v5 }
  0xd8   : >> { %v605_v7 = vld [vmem:[%s8740_s6 + $0x18e0] sm:$0xff]  ;;  %604 = vst [vmem:[%s8736_s5 + $0xc60] sm:$0xff] %v603_v6 }
  0xd9   : >> { %v607_v8 = vld [vmem:[%s8740_s6 + $0x1900] sm:$0xff]  ;;  %606 = vst [vmem:[%s8736_s5 + $0xc70] sm:$0xff] %v605_v7 }
  0xda   : >> { %v609_v9 = vld [vmem:[%s8740_s6 + $0x1920] sm:$0xff]  ;;  %608 = vst [vmem:[%s8736_s5 + $0xc80] sm:$0xff] %v607_v8 }
  0xdb   : >> { %v611_v10 = vld [vmem:[%s8740_s6 + $0x1940] sm:$0xff]  ;;  %610 = vst [vmem:[%s8736_s5 + $0xc90] sm:$0xff] %v609_v9 }
  0xdc   : >> { %v613_v11 = vld [vmem:[%s8740_s6 + $0x1960] sm:$0xff]  ;;  %612 = vst [vmem:[%s8736_s5 + $0xca0] sm:$0xff] %v611_v10 }
  0xdd   : >> { %v615_v12 = vld [vmem:[%s8740_s6 + $0x1980] sm:$0xff]  ;;  %614 = vst [vmem:[%s8736_s5 + $0xcb0] sm:$0xff] %v613_v11 }
  0xde   : >> { %v617_v13 = vld [vmem:[%s8740_s6 + $0x19a0] sm:$0xff]  ;;  %616 = vst [vmem:[%s8736_s5 + $0xcc0] sm:$0xff] %v615_v12 }
  0xdf   : >> { %v619_v14 = vld [vmem:[%s8740_s6 + $0x19c0] sm:$0xff]  ;;  %618 = vst [vmem:[%s8736_s5 + $0xcd0] sm:$0xff] %v617_v13 }
  0xe0   : >> { %v621_v15 = vld [vmem:[%s8740_s6 + $0x19e0] sm:$0xff]  ;;  %620 = vst [vmem:[%s8736_s5 + $0xce0] sm:$0xff] %v619_v14 }
  0xe1   : >> { %v623_v16 = vld [vmem:[%s8740_s6 + $0x1a00] sm:$0xff]  ;;  %622 = vst [vmem:[%s8736_s5 + $0xcf0] sm:$0xff] %v621_v15 }
  0xe2   : >> { %v625_v17 = vld [vmem:[%s8740_s6 + $0x1a20] sm:$0xff]  ;;  %624 = vst [vmem:[%s8736_s5 + $0xd00] sm:$0xff] %v623_v16 }
  0xe3   : >> { %v627_v18 = vld [vmem:[%s8740_s6 + $0x1a40] sm:$0xff]  ;;  %626 = vst [vmem:[%s8736_s5 + $0xd10] sm:$0xff] %v625_v17 }
  0xe4   : >> { %v629_v19 = vld [vmem:[%s8740_s6 + $0x1a60] sm:$0xff]  ;;  %628 = vst [vmem:[%s8736_s5 + $0xd20] sm:$0xff] %v627_v18 }
  0xe5   : >> { %v631_v20 = vld [vmem:[%s8740_s6 + $0x1a80] sm:$0xff]  ;;  %630 = vst [vmem:[%s8736_s5 + $0xd30] sm:$0xff] %v629_v19 }
  0xe6   : >> { %v633_v21 = vld [vmem:[%s8740_s6 + $0x1aa0] sm:$0xff]  ;;  %632 = vst [vmem:[%s8736_s5 + $0xd40] sm:$0xff] %v631_v20 }
  0xe7   : >> { %v635_v22 = vld [vmem:[%s8740_s6 + $0x1ac0] sm:$0xff]  ;;  %634 = vst [vmem:[%s8736_s5 + $0xd50] sm:$0xff] %v633_v21 }
  0xe8   : >> { %v637_v23 = vld [vmem:[%s8740_s6 + $0x1ae0] sm:$0xff]  ;;  %636 = vst [vmem:[%s8736_s5 + $0xd60] sm:$0xff] %v635_v22 }
  0xe9   : >> { %v639_v24 = vld [vmem:[%s8740_s6 + $0x1b00] sm:$0xff]  ;;  %638 = vst [vmem:[%s8736_s5 + $0xd70] sm:$0xff] %v637_v23 }
  0xea   : >> { %v641_v25 = vld [vmem:[%s8740_s6 + $0x1b20] sm:$0xff]  ;;  %640 = vst [vmem:[%s8736_s5 + $0xd80] sm:$0xff] %v639_v24 }
  0xeb   : >> { %v643_v26 = vld [vmem:[%s8740_s6 + $0x1b40] sm:$0xff]  ;;  %642 = vst [vmem:[%s8736_s5 + $0xd90] sm:$0xff] %v641_v25 }
  0xec   : >> { %v645_v27 = vld [vmem:[%s8740_s6 + $0x1b60] sm:$0xff]  ;;  %644 = vst [vmem:[%s8736_s5 + $0xda0] sm:$0xff] %v643_v26 }
  0xed   : >> { %v647_v28 = vld [vmem:[%s8740_s6 + $0x1b80] sm:$0xff]  ;;  %646 = vst [vmem:[%s8736_s5 + $0xdb0] sm:$0xff] %v645_v27 }
  0xee   : >> { %v649_v29 = vld [vmem:[%s8740_s6 + $0x1ba0] sm:$0xff]  ;;  %648 = vst [vmem:[%s8736_s5 + $0xdc0] sm:$0xff] %v647_v28 }
  0xef   : >> { %v651_v30 = vld [vmem:[%s8740_s6 + $0x1bc0] sm:$0xff]  ;;  %650 = vst [vmem:[%s8736_s5 + $0xdd0] sm:$0xff] %v649_v29 }
  0xf0   : >> { %v653_v31 = vld [vmem:[%s8740_s6 + $0x1be0] sm:$0xff]  ;;  %652 = vst [vmem:[%s8736_s5 + $0xde0] sm:$0xff] %v651_v30 }
  0xf1   : >> { %v655_v32 = vld [vmem:[%s8740_s6 + $0x1c00] sm:$0xff]  ;;  %654 = vst [vmem:[%s8736_s5 + $0xdf0] sm:$0xff] %v653_v31 }
  0xf2   : >> { %v657_v33 = vld [vmem:[%s8740_s6 + $0x1c20] sm:$0xff]  ;;  %656 = vst [vmem:[%s8736_s5 + $0xe00] sm:$0xff] %v655_v32 }
  0xf3   : >> { %v659_v34 = vld [vmem:[%s8740_s6 + $0x1c40] sm:$0xff]  ;;  %658 = vst [vmem:[%s8736_s5 + $0xe10] sm:$0xff] %v657_v33 }
  0xf4   : >> { %v661_v35 = vld [vmem:[%s8740_s6 + $0x1c60] sm:$0xff]  ;;  %660 = vst [vmem:[%s8736_s5 + $0xe20] sm:$0xff] %v659_v34 }
  0xf5   : >> { %v663_v36 = vld [vmem:[%s8740_s6 + $0x1c80] sm:$0xff]  ;;  %662 = vst [vmem:[%s8736_s5 + $0xe30] sm:$0xff] %v661_v35 }
  0xf6   : >> { %v665_v37 = vld [vmem:[%s8740_s6 + $0x1ca0] sm:$0xff]  ;;  %664 = vst [vmem:[%s8736_s5 + $0xe40] sm:$0xff] %v663_v36 }
  0xf7   : >> { %v667_v38 = vld [vmem:[%s8740_s6 + $0x1cc0] sm:$0xff]  ;;  %666 = vst [vmem:[%s8736_s5 + $0xe50] sm:$0xff] %v665_v37 }
  0xf8   : >> { %v669_v39 = vld [vmem:[%s8740_s6 + $0x1ce0] sm:$0xff]  ;;  %668 = vst [vmem:[%s8736_s5 + $0xe60] sm:$0xff] %v667_v38 }
  0xf9   : >> { %v671_v40 = vld [vmem:[%s8740_s6 + $0x1d00] sm:$0xff]  ;;  %670 = vst [vmem:[%s8736_s5 + $0xe70] sm:$0xff] %v669_v39 }
  0xfa   : >> { %v673_v41 = vld [vmem:[%s8740_s6 + $0x1d20] sm:$0xff]  ;;  %672 = vst [vmem:[%s8736_s5 + $0xe80] sm:$0xff] %v671_v40 }
  0xfb   : >> { %v675_v42 = vld [vmem:[%s8740_s6 + $0x1d40] sm:$0xff]  ;;  %674 = vst [vmem:[%s8736_s5 + $0xe90] sm:$0xff] %v673_v41 }
  0xfc   : >> { %v677_v43 = vld [vmem:[%s8740_s6 + $0x1d60] sm:$0xff]  ;;  %676 = vst [vmem:[%s8736_s5 + $0xea0] sm:$0xff] %v675_v42 }
  0xfd   : >> { %v679_v44 = vld [vmem:[%s8740_s6 + $0x1d80] sm:$0xff]  ;;  %678 = vst [vmem:[%s8736_s5 + $0xeb0] sm:$0xff] %v677_v43 }
  0xfe   : >> { %v681_v45 = vld [vmem:[%s8740_s6 + $0x1da0] sm:$0xff]  ;;  %680 = vst [vmem:[%s8736_s5 + $0xec0] sm:$0xff] %v679_v44 }
  0xff   : >> { %v683_v46 = vld [vmem:[%s8740_s6 + $0x1dc0] sm:$0xff]  ;;  %682 = vst [vmem:[%s8736_s5 + $0xed0] sm:$0xff] %v681_v45 }
 0x100   : >> { %v685_v47 = vld [vmem:[%s8740_s6 + $0x1de0] sm:$0xff]  ;;  %684 = vst [vmem:[%s8736_s5 + $0xee0] sm:$0xff] %v683_v46 }
 0x101   : >> { %v687_v48 = vld [vmem:[%s8740_s6 + $0x1e00] sm:$0xff]  ;;  %686 = vst [vmem:[%s8736_s5 + $0xef0] sm:$0xff] %v685_v47 }
 0x102   : >> { %v689_v49 = vld [vmem:[%s8740_s6 + $0x1e20] sm:$0xff]  ;;  %688 = vst [vmem:[%s8736_s5 + $0xf00] sm:$0xff] %v687_v48 }
 0x103   : >> { %v691_v50 = vld [vmem:[%s8740_s6 + $0x1e40] sm:$0xff]  ;;  %690 = vst [vmem:[%s8736_s5 + $0xf10] sm:$0xff] %v689_v49 }
 0x104   : >> { %v693_v51 = vld [vmem:[%s8740_s6 + $0x1e60] sm:$0xff]  ;;  %692 = vst [vmem:[%s8736_s5 + $0xf20] sm:$0xff] %v691_v50 }
 0x105   : >> { %v695_v52 = vld [vmem:[%s8740_s6 + $0x1e80] sm:$0xff]  ;;  %694 = vst [vmem:[%s8736_s5 + $0xf30] sm:$0xff] %v693_v51 }
 0x106   : >> { %v697_v53 = vld [vmem:[%s8740_s6 + $0x1ea0] sm:$0xff]  ;;  %696 = vst [vmem:[%s8736_s5 + $0xf40] sm:$0xff] %v695_v52 }
 0x107   : >> { %v699_v54 = vld [vmem:[%s8740_s6 + $0x1ec0] sm:$0xff]  ;;  %698 = vst [vmem:[%s8736_s5 + $0xf50] sm:$0xff] %v697_v53 }
 0x108   : >> { %v701_v55 = vld [vmem:[%s8740_s6 + $0x1ee0] sm:$0xff]  ;;  %700 = vst [vmem:[%s8736_s5 + $0xf60] sm:$0xff] %v699_v54 }
 0x109   : >> { %v703_v56 = vld [vmem:[%s8740_s6 + $0x1f00] sm:$0xff]  ;;  %702 = vst [vmem:[%s8736_s5 + $0xf70] sm:$0xff] %v701_v55 }
 0x10a   : >> { %v705_v57 = vld [vmem:[%s8740_s6 + $0x1f20] sm:$0xff]  ;;  %704 = vst [vmem:[%s8736_s5 + $0xf80] sm:$0xff] %v703_v56 }
 0x10b   : >> { %v707_v58 = vld [vmem:[%s8740_s6 + $0x1f40] sm:$0xff]  ;;  %706 = vst [vmem:[%s8736_s5 + $0xf90] sm:$0xff] %v705_v57 }
 0x10c   : >> { %v709_v59 = vld [vmem:[%s8740_s6 + $0x1f60] sm:$0xff]  ;;  %708 = vst [vmem:[%s8736_s5 + $0xfa0] sm:$0xff] %v707_v58 }
 0x10d   : >> { %v711_v60 = vld [vmem:[%s8740_s6 + $0x1f80] sm:$0xff]  ;;  %710 = vst [vmem:[%s8736_s5 + $0xfb0] sm:$0xff] %v709_v59  ;;  %202 = sbr.rel (!%p200_p7) target bundleno = 17 (0x11), region = 127 }
 0x10e   : >> { %v713_v61 = vld [vmem:[%s8740_s6 + $0x1fa0] sm:$0xff]  ;;  %712 = vst [vmem:[%s8736_s5 + $0xfc0] sm:$0xff] %v711_v60 }
 0x10f   : >> { %v715_v62 = vld [vmem:[%s8740_s6 + $0x1fc0] sm:$0xff]  ;;  %714 = vst [vmem:[%s8736_s5 + $0xfd0] sm:$0xff] %v713_v61 }
 0x110   : >> { %v717_v63 = vld [vmem:[%s8740_s6 + $0x1fe0] sm:$0xff]  ;;  %716 = vst [vmem:[%s8736_s5 + $0xfe0] sm:$0xff] %v715_v62  ;;  %s10542_s6 = smov %s9110_s11 }
 0x111   : >> { %718 = vst [vmem:[%s8736_s5 + $0xff0] sm:$0xff] %v717_v63  ;;  %s10541_s5 = smov %s9114_s12 }
 0x112 PF: > { %p6014_p8 = scmp.ge.s32.totalorder %s8732_s19, 1  ;;  %p1798_p9 = scmp.lt.s32.totalorder %s8732_s19, 3 }
 0x114   : > { %p1799_p10 = pnand %p6014_p8, %p1798_p9 }
 0x115   : > { %s1805_s13 = sand.u32 (!%p1799_p10), 1, %s8716_s15   ;;  %s6016_s26 = sshll.u32 (!%p1799_p10), %s8724_s17, 2 }
 0x116   : > { %1802 = sbr.rel (%p1799_p10) target bundleno = 965 (0x3c5), region = 69  ;;  %s6015_s14 = sshll.u32 (!%p1799_p10), %s1805_s13, 12 }
 0x117   : > { %s9384_s21 = scalar_lea.vmem (!%p1799_p10), [#allocation3], %s6015_s14  ;;  %p1849_p11 = scmp.lt.s32.totalorder (!%p1799_p10), %s6016_s26, 7 }
 0x11b   : > { %v6133_v0 = vld [vmem:[%s9384_s21 + $0xe0] sm:$0xf]  ;;  %v8100_v1 = vld [vmem:[%s9384_s21 + $0xec] sm:$0xf0]  ;;  %vm5818_vm0 = vcmask 1041408   ;;  %s10553_s26 = smov (!%p1849_p11, %s6016_s26), 7 }
 0x11c   : > { %v6261_v2 = vld [vmem:[%s9384_s21 + $0x1e0] sm:$0xf]  ;;  %v6134_v3 = vor.u32 %v8100_v1, %v6133_v0  ;;  %v8132_v4 = vld [vmem:[%s9384_s21 + $0x1ec] sm:$0xf0]  ;;  %s1851_s29 = scalar_lea.vmem %s10536_s2, %s10553_s26  ;;  %s1856_s6 = scalar_lea.vmem %s10537_s3, %s10553_s26  ;;  %vm5820_vm1 = vcmask 1045508   ;;  %vm5822_vm2 = vcmask 1043456  }
 0x11d   : > { %v6389_v5 = vld [vmem:[%s9384_s21 + $0x2e0] sm:$0xf]  ;;  %v8164_v6 = vld [vmem:[%s9384_s21 + $0x2ec] sm:$0xf0]  ;;  %v6262_v7 = vor.u32 %v8132_v4, %v6261_v2  ;;  %vm5877_vm3 = vcmask 1040384   ;;  %vm5881_vm4 = vcmask 1042434   ;;  %s1861_s8 = scalar_lea.vmem %s10538_s4, %s10553_s26 }
 0x11e   : > { %v6390_v8 = vor.u32 %v8164_v6, %v6389_v5  ;;  %v6517_v9 = vld [vmem:[%s9384_s21 + $0x3e0] sm:$0xf]  ;;  %v8196_v10 = vld [vmem:[%s9384_s21 + $0x3ec] sm:$0xf0]  ;;  %4979 = vmatpush.bf16.msra.mxu0 %v6134_v3 }
 0x11f   : > { %v6117_v11 = vld [vmem:[%s9384_s21 + $0xc0] sm:$0xf]  ;;  %v6518_v12 = vor.u32 %v8196_v10, %v6517_v9  ;;  %v8096_v13 = vld [vmem:[%s9384_s21 + $0xcc] sm:$0xf0]  ;;  %4992 = vmatpush.bf16.msra.mxu1 %v6262_v7 }
 0x120   : > { %v6245_v14 = vld [vmem:[%s9384_s21 + $0x1c0] sm:$0xf]  ;;  %v8128_v15 = vld [vmem:[%s9384_s21 + $0x1cc] sm:$0xf0]  ;;  %5005 = vmatpush.bf16.msra.mxu2 %v6390_v8  ;;  %v6118_v16 = vor.u32 %v8096_v13, %v6117_v11 }
 0x121   : > { %v6246_v17 = vor.u32 %v8128_v15, %v6245_v14  ;;  %v6373_v18 = vld [vmem:[%s9384_s21 + $0x2c0] sm:$0xf]  ;;  %v8160_v19 = vld [vmem:[%s9384_s21 + $0x2cc] sm:$0xf0]  ;;  %5018 = vmatpush.bf16.msra.mxu3 %v6518_v12 }
 0x122   : > { %v6501_v20 = vld [vmem:[%s9384_s21 + $0x3c0] sm:$0xf]  ;;  %v6374_v21 = vor.u32 %v8160_v19, %v6373_v18  ;;  %v8192_v22 = vld [vmem:[%s9384_s21 + $0x3cc] sm:$0xf0]  ;;  %4980 = vmatpush.bf16.msra.mxu0 %v6118_v16 }
 0x123   : > { %v6101_v23 = vld [vmem:[%s9384_s21 + $0xa0] sm:$0xf]  ;;  %v8092_v24 = vld [vmem:[%s9384_s21 + $0xac] sm:$0xf0]  ;;  %v6502_v25 = vor.u32 %v8192_v22, %v6501_v20  ;;  %4993 = vmatpush.bf16.msra.mxu1 %v6246_v17 }
 0x124   : > { %v6229_v26 = vld [vmem:[%s9384_s21 + $0x1a0] sm:$0xf]  ;;  %v8124_v27 = vld [vmem:[%s9384_s21 + $0x1ac] sm:$0xf0]  ;;  %v6102_v29 = vor.u32 %v8092_v24, %v6101_v23  ;;  %5006 = vmatpush.bf16.msra.mxu2 %v6374_v21 }
 0x125   : > { %v6357_v28 = vld [vmem:[%s9384_s21 + $0x2a0] sm:$0xf]  ;;  %v8156_v30 = vld [vmem:[%s9384_s21 + $0x2ac] sm:$0xf0]  ;;  %v6230_v33 = vor.u32 %v8124_v27, %v6229_v26  ;;  %5019 = vmatpush.bf16.msra.mxu3 %v6502_v25 }
 0x126   : > { %v6485_v31 = vld [vmem:[%s9384_s21 + $0x3a0] sm:$0xf]  ;;  %v8188_v32 = vld [vmem:[%s9384_s21 + $0x3ac] sm:$0xf0]  ;;  %v6358_v34 = vor.u32 %v8156_v30, %v6357_v28  ;;  %4981 = vmatpush.bf16.msra.mxu0 %v6102_v29 }
 0x127   : > { %v6085_v35 = vld [vmem:[%s9384_s21 + $0x80] sm:$0xf]  ;;  %v8088_v36 = vld [vmem:[%s9384_s21 + $0x8c] sm:$0xf0]  ;;  %v6486_v38 = vor.u32 %v8188_v32, %v6485_v31  ;;  %4994 = vmatpush.bf16.msra.mxu1 %v6230_v33 }
 0x128   : > { %v6213_v37 = vld [vmem:[%s9384_s21 + $0x180] sm:$0xf]  ;;  %v8120_v39 = vld [vmem:[%s9384_s21 + $0x18c] sm:$0xf0]  ;;  %v6086_v44 = vor.u32 %v8088_v36, %v6085_v35  ;;  %5007 = vmatpush.bf16.msra.mxu2 %v6358_v34 }
 0x129   : > { %v6341_v40 = vld [vmem:[%s9384_s21 + $0x280] sm:$0xf]  ;;  %v8152_v41 = vld [vmem:[%s9384_s21 + $0x28c] sm:$0xf0]  ;;  %v6214_v45 = vor.u32 %v8120_v39, %v6213_v37  ;;  %5020 = vmatpush.bf16.msra.mxu3 %v6486_v38 }
 0x12a   : > { %v6469_v42 = vld [vmem:[%s9384_s21 + $0x380] sm:$0xf]  ;;  %v8184_v43 = vld [vmem:[%s9384_s21 + $0x38c] sm:$0xf0]  ;;  %v6342_v46 = vor.u32 %v8152_v41, %v6341_v40  ;;  %4982 = vmatpush.bf16.msra.mxu0 %v6086_v44 }
 0x12b   : > { %v6069_v47 = vld [vmem:[%s9384_s21 + $0x60] sm:$0xf]  ;;  %v8084_v48 = vld [vmem:[%s9384_s21 + $0x6c] sm:$0xf0]  ;;  %v6470_v50 = vor.u32 %v8184_v43, %v6469_v42  ;;  %4995 = vmatpush.bf16.msra.mxu1 %v6214_v45 }
 0x12c   : > { %v6197_v49 = vld [vmem:[%s9384_s21 + $0x160] sm:$0xf]  ;;  %v8116_v51 = vld [vmem:[%s9384_s21 + $0x16c] sm:$0xf0]  ;;  %v6070_v56 = vor.u32 %v8084_v48, %v6069_v47  ;;  %5008 = vmatpush.bf16.msra.mxu2 %v6342_v46 }
 0x12d   : > { %v6325_v52 = vld [vmem:[%s9384_s21 + $0x260] sm:$0xf]  ;;  %v8148_v53 = vld [vmem:[%s9384_s21 + $0x26c] sm:$0xf0]  ;;  %v6198_v57 = vor.u32 %v8116_v51, %v6197_v49  ;;  %5021 = vmatpush.bf16.msra.mxu3 %v6470_v50 }
 0x12e   : > { %v6453_v54 = vld [vmem:[%s9384_s21 + $0x360] sm:$0xf]  ;;  %v8180_v55 = vld [vmem:[%s9384_s21 + $0x36c] sm:$0xf0]  ;;  %v6326_v58 = vor.u32 %v8148_v53, %v6325_v52  ;;  %4983 = vmatpush.bf16.msra.mxu0 %v6070_v56 }
 0x12f   : > { %v6053_v59 = vld [vmem:[%s9384_s21 + $0x40] sm:$0xf]  ;;  %v8080_v60 = vld [vmem:[%s9384_s21 + $0x4c] sm:$0xf0]  ;;  %v6454_v62 = vor.u32 %v8180_v55, %v6453_v54  ;;  %4996 = vmatpush.bf16.msra.mxu1 %v6198_v57 }
 0x130   : > { %v6181_v61 = vld [vmem:[%s9384_s21 + $0x140] sm:$0xf]  ;;  %v8112_v63 = vld [vmem:[%s9384_s21 + $0x14c] sm:$0xf0]  ;;  %v6054_v4 = vor.u32 %v8080_v60, %v6053_v59  ;;  %5009 = vmatpush.bf16.msra.mxu2 %v6326_v58  ;;  %v1869_v59 = vld [vmem:[%s10534_s0] sm:$0xff] }
 0x131   : > { %v6309_v0 = vld [vmem:[%s9384_s21 + $0x240] sm:$0xf]  ;;  %v8144_v1 = vld [vmem:[%s9384_s21 + $0x24c] sm:$0xf0]  ;;  %v6182_v5 = vor.u32 %v8112_v63, %v6181_v61  ;;  %5022 = vmatpush.bf16.msra.mxu3 %v6454_v62  ;;  %2384 = vst [vmem:[#allocation1] ss:$9 sm:$0xff] %v1869_v59 }
 0x132   : > { %v6437_v2 = vld [vmem:[%s9384_s21 + $0x340] sm:$0xf]  ;;  %v8176_v3 = vld [vmem:[%s9384_s21 + $0x34c] sm:$0xf0]  ;;  %v6310_v6 = vor.u32 %v8144_v1, %v6309_v0  ;;  %4984 = vmatpush.bf16.msra.mxu0 %v6054_v4 }
 0x133   : > { %v6037_v7 = vld [vmem:[%s9384_s21 + $0x20] sm:$0xf]  ;;  %v8076_v8 = vld [vmem:[%s9384_s21 + $0x2c] sm:$0xf0]  ;;  %v6438_v10 = vor.u32 %v8176_v3, %v6437_v2  ;;  %4997 = vmatpush.bf16.msra.mxu1 %v6182_v5 }
 0x134   : > { %v6165_v9 = vld [vmem:[%s9384_s21 + $0x120] sm:$0xf]  ;;  %v8108_v11 = vld [vmem:[%s9384_s21 + $0x12c] sm:$0xf0]  ;;  %v6038_v16 = vor.u32 %v8076_v8, %v6037_v7  ;;  %5010 = vmatpush.bf16.msra.mxu2 %v6310_v6 }
 0x135   : > { %v6293_v12 = vld [vmem:[%s9384_s21 + $0x220] sm:$0xf]  ;;  %v8140_v13 = vld [vmem:[%s9384_s21 + $0x22c] sm:$0xf0]  ;;  %v6166_v19 = vor.u32 %v8108_v11, %v6165_v9  ;;  %5023 = vmatpush.bf16.msra.mxu3 %v6438_v10 }
 0x136   : > { %v6421_v14 = vld [vmem:[%s9384_s21 + $0x320] sm:$0xf]  ;;  %v8172_v15 = vld [vmem:[%s9384_s21 + $0x32c] sm:$0xf0]  ;;  %v6294_v20 = vor.u32 %v8140_v13, %v6293_v12  ;;  %4985 = vmatpush.bf16.msra.mxu0 %v6038_v16 }
 0x137   : > { %v6021_v17 = vld [vmem:[%s9384_s21] sm:$0xf]  ;;  %v8072_v18 = vld [vmem:[%s9384_s21 + $0xc] sm:$0xf0]  ;;  %v6422_v24 = vor.u32 %v8172_v15, %v6421_v14  ;;  %4998 = vmatpush.bf16.msra.mxu1 %v6166_v19 }
 0x138   : > { %v6149_v21 = vld [vmem:[%s9384_s21 + $0x100] sm:$0xf]  ;;  %v8104_v22 = vld [vmem:[%s9384_s21 + $0x10c] sm:$0xf0]  ;;  %v6022_v31 = vor.u32 %v8072_v18, %v6021_v17  ;;  %5011 = vmatpush.bf16.msra.mxu2 %v6294_v20 }
 0x139   : > { %v6277_v23 = vld [vmem:[%s9384_s21 + $0x200] sm:$0xf]  ;;  %v8136_v25 = vld [vmem:[%s9384_s21 + $0x20c] sm:$0xf0]  ;;  %v6150_v35 = vor.u32 %v8104_v22, %v6149_v21  ;;  %5024 = vmatpush.bf16.msra.mxu3 %v6422_v24  ;;  %v9491_v21 = vld [vmem:[#allocation1] sm:$0xff] }
 0x13a   : > { %v6405_v26 = vld [vmem:[%s9384_s21 + $0x300] sm:$0xf]  ;;  %v8168_v27 = vld [vmem:[%s9384_s21 + $0x30c] sm:$0xf0]  ;;  %v6278_v36 = vor.u32 %v8136_v25, %v6277_v23  ;;  %4986 = vmatpush.bf16.msra.mxu0 %v6022_v31 }
 0x13b   : > { %v6645_v28 = vld [vmem:[%s9384_s21 + $0x4e0] sm:$0xf]  ;;  %v8228_v29 = vld [vmem:[%s9384_s21 + $0x4ec] sm:$0xf0]  ;;  %v6406_v39 = vor.u32 %v8168_v27, %v6405_v26  ;;  %4999 = vmatpush.bf16.msra.mxu1 %v6150_v35 }
 0x13c   : > { %v6773_v30 = vld [vmem:[%s9384_s21 + $0x5e0] sm:$0xf]  ;;  %v8260_v32 = vld [vmem:[%s9384_s21 + $0x5ec] sm:$0xf0]  ;;  %v6646_v40 = vor.u32 %v8228_v29, %v6645_v28  ;;  %5012 = vmatpush.bf16.msra.mxu2 %v6278_v36 }
 0x13d   : > { %v6901_v33 = vld [vmem:[%s9384_s21 + $0x6e0] sm:$0xf]  ;;  %v8292_v34 = vld [vmem:[%s9384_s21 + $0x6ec] sm:$0xf0]  ;;  %v6774_v41 = vor.u32 %v8260_v32, %v6773_v30  ;;  %5025 = vmatpush.bf16.msra.mxu3 %v6406_v39  ;;  %4987 = vmatmul.bf16.vlgmr.msra.gmra.mxu0 %v9491_v21 }
 0x13e   : > { %v7029_v37 = vld [vmem:[%s9384_s21 + $0x7e0] sm:$0xf]  ;;  %v8324_v38 = vld [vmem:[%s9384_s21 + $0x7ec] sm:$0xf0]  ;;  %v6902_v42 = vor.u32 %v8292_v34, %v6901_v33  ;;  %5031 = vmatpush.bf16.msrb.mxu0 %v6646_v40 }
 0x13f   : > { %v6629_v43 = vld [vmem:[%s9384_s21 + $0x4c0] sm:$0xf]  ;;  %v8224_v44 = vld [vmem:[%s9384_s21 + $0x4cc] sm:$0xf0]  ;;  %v7030_v46 = vor.u32 %v8324_v38, %v7029_v37  ;;  %5044 = vmatpush.bf16.msrb.mxu1 %v6774_v41 }
 0x140   : > { %v6757_v45 = vld [vmem:[%s9384_s21 + $0x5c0] sm:$0xf]  ;;  %v8256_v47 = vld [vmem:[%s9384_s21 + $0x5cc] sm:$0xf0]  ;;  %v6630_v52 = vor.u32 %v8224_v44, %v6629_v43  ;;  %5057 = vmatpush.bf16.msrb.mxu2 %v6902_v42 }
 0x141   : > { %v6885_v48 = vld [vmem:[%s9384_s21 + $0x6c0] sm:$0xf]  ;;  %v8288_v49 = vld [vmem:[%s9384_s21 + $0x6cc] sm:$0xf0]  ;;  %v6758_v55 = vor.u32 %v8256_v47, %v6757_v45  ;;  %5070 = vmatpush.bf16.msrb.mxu3 %v7030_v46 }
 0x142   : > { %v7013_v50 = vld [vmem:[%s9384_s21 + $0x7c0] sm:$0xf]  ;;  %v8320_v51 = vld [vmem:[%s9384_s21 + $0x7cc] sm:$0xf0]  ;;  %v6886_v56 = vor.u32 %v8288_v49, %v6885_v48  ;;  %5032 = vmatpush.bf16.msrb.mxu0 %v6630_v52 }
 0x143   : > { %v6613_v53 = vld [vmem:[%s9384_s21 + $0x4a0] sm:$0xf]  ;;  %v8220_v54 = vld [vmem:[%s9384_s21 + $0x4ac] sm:$0xf0]  ;;  %v7014_v60 = vor.u32 %v8320_v51, %v7013_v50  ;;  %5045 = vmatpush.bf16.msrb.mxu1 %v6758_v55 }
 0x144   : > { %v6741_v57 = vld [vmem:[%s9384_s21 + $0x5a0] sm:$0xf]  ;;  %v8252_v58 = vld [vmem:[%s9384_s21 + $0x5ac] sm:$0xf0]  ;;  %v6614_v1 = vor.u32 %v8220_v54, %v6613_v53  ;;  %5058 = vmatpush.bf16.msrb.mxu2 %v6886_v56 }
 0x145   : > { %v6869_v61 = vld [vmem:[%s9384_s21 + $0x6a0] sm:$0xf]  ;;  %v8284_v62 = vld [vmem:[%s9384_s21 + $0x6ac] sm:$0xf0]  ;;  %v6742_v2 = vor.u32 %v8252_v58, %v6741_v57  ;;  %5071 = vmatpush.bf16.msrb.mxu3 %v7014_v60 }
 0x146   : > { %v6997_v63 = vld [vmem:[%s9384_s21 + $0x7a0] sm:$0xf]  ;;  %v8316_v0 = vld [vmem:[%s9384_s21 + $0x7ac] sm:$0xf0]  ;;  %v6870_v3 = vor.u32 %v8284_v62, %v6869_v61  ;;  %5033 = vmatpush.bf16.msrb.mxu0 %v6614_v1  ;;  %v9534_v1 = vld [vmem:[#allocation1 + $0x3f] sm:$0xff] }
 0x147   : > { %v6597_v4 = vld [vmem:[%s9384_s21 + $0x480] sm:$0xf]  ;;  %v8216_v5 = vld [vmem:[%s9384_s21 + $0x48c] sm:$0xf0]  ;;  %v6998_v7 = vor.u32 %v8316_v0, %v6997_v63  ;;  %5046 = vmatpush.bf16.msrb.mxu1 %v6742_v2  ;;  %v9536_v2 = vld [vmem:[#allocation1 + $0x2d] sm:$0xff] }
 0x148   : > { %v6725_v6 = vld [vmem:[%s9384_s21 + $0x580] sm:$0xf]  ;;  %v8248_v8 = vld [vmem:[%s9384_s21 + $0x58c] sm:$0xf0]  ;;  %v6598_v14 = vor.u32 %v8216_v5, %v6597_v4  ;;  %5059 = vmatpush.bf16.msrb.mxu2 %v6870_v3 }
 0x149   : > { %v6853_v9 = vld [vmem:[%s9384_s21 + $0x680] sm:$0xf]  ;;  %v8280_v10 = vld [vmem:[%s9384_s21 + $0x68c] sm:$0xf0]  ;;  %v6726_v18 = vor.u32 %v8248_v8, %v6725_v6  ;;  %5072 = vmatpush.bf16.msrb.mxu3 %v6998_v7 }
 0x14a   : > { %v6981_v11 = vld [vmem:[%s9384_s21 + $0x780] sm:$0xf]  ;;  %v8312_v12 = vld [vmem:[%s9384_s21 + $0x78c] sm:$0xf0]  ;;  %v6854_v19 = vor.u32 %v8280_v10, %v6853_v9  ;;  %5034 = vmatpush.bf16.msrb.mxu0 %v6598_v14 }
 0x14b   : > { %v6581_v13 = vld [vmem:[%s9384_s21 + $0x460] sm:$0xf]  ;;  %v8212_v15 = vld [vmem:[%s9384_s21 + $0x46c] sm:$0xf0]  ;;  %v6982_v23 = vor.u32 %v8312_v12, %v6981_v11  ;;  %5047 = vmatpush.bf16.msrb.mxu1 %v6726_v18 }
 0x14c   : > { %v6709_v16 = vld [vmem:[%s9384_s21 + $0x560] sm:$0xf]  ;;  %v8244_v17 = vld [vmem:[%s9384_s21 + $0x56c] sm:$0xf0]  ;;  %v6582_v29 = vor.u32 %v8212_v15, %v6581_v13  ;;  %5060 = vmatpush.bf16.msrb.mxu2 %v6854_v19 }
 0x14d   : > { %v9489_v20 = vld [vmem:[#allocation1 + $0x12] sm:$0xff]  ;;  %v9493_v22 = vld [vmem:[#allocation1 + $0x1b] sm:$0xff]  ;;  %v6837_v24 = vld [vmem:[%s9384_s21 + $0x660] sm:$0xf]  ;;  %v6710_v30 = vor.u32 %v8244_v17, %v6709_v16  ;;  %5073 = vmatpush.bf16.msrb.mxu3 %v6982_v23 }
 0x14e   : > { %v8276_v25 = vld [vmem:[%s9384_s21 + $0x66c] sm:$0xf0]  ;;  %5013 = vmatmul.bf16.vlgmr.msra.gmra.mxu2 %v9489_v20  ;;  %v9498_v26 = vld [vmem:[#allocation1 + $0x9] sm:$0xff]  ;;  %5026 = vmatmul.bf16.vlgmr.msra.gmra.mxu3 %v9493_v22 }
 0x14f   : > { %v6965_v27 = vld [vmem:[%s9384_s21 + $0x760] sm:$0xf]  ;;  %v8308_v28 = vld [vmem:[%s9384_s21 + $0x76c] sm:$0xf0]  ;;  %5000 = vmatmul.bf16.vlgmr.msra.gmra.mxu1 %v9498_v26  ;;  %v6838_v31 = vor.u32 %v8276_v25, %v6837_v24  ;;  %5035 = vmatpush.bf16.msrb.mxu0 %v6582_v29 }
 0x150   : > { %v6565_v32 = vld [vmem:[%s9384_s21 + $0x440] sm:$0xf]  ;;  %v8208_v33 = vld [vmem:[%s9384_s21 + $0x44c] sm:$0xf0]  ;;  %v6966_v35 = vor.u32 %v8308_v28, %v6965_v27  ;;  %5048 = vmatpush.bf16.msrb.mxu1 %v6710_v30 }
 0x151   : > { %v6693_v34 = vld [vmem:[%s9384_s21 + $0x540] sm:$0xf]  ;;  %v8240_v36 = vld [vmem:[%s9384_s21 + $0x54c] sm:$0xf0]  ;;  %v6566_v41 = vor.u32 %v8208_v33, %v6565_v32  ;;  %5061 = vmatpush.bf16.msrb.mxu2 %v6838_v31 }
 0x152   : > { %v6821_v37 = vld [vmem:[%s9384_s21 + $0x640] sm:$0xf]  ;;  %v8272_v38 = vld [vmem:[%s9384_s21 + $0x64c] sm:$0xf0]  ;;  %v6694_v43 = vor.u32 %v8240_v36, %v6693_v34  ;;  %5074 = vmatpush.bf16.msrb.mxu3 %v6966_v35 }
 0x153   : > { %v6949_v39 = vld [vmem:[%s9384_s21 + $0x740] sm:$0xf]  ;;  %v8304_v40 = vld [vmem:[%s9384_s21 + $0x74c] sm:$0xf0]  ;;  %v6822_v44 = vor.u32 %v8272_v38, %v6821_v37  ;;  %5036 = vmatpush.bf16.msrb.mxu0 %v6566_v41 }
 0x154   : > { %v6549_v42 = vld [vmem:[%s9384_s21 + $0x420] sm:$0xf]  ;;  %v8204_v45 = vld [vmem:[%s9384_s21 + $0x42c] sm:$0xf0]  ;;  %v6950_v48 = vor.u32 %v8304_v40, %v6949_v39  ;;  %5049 = vmatpush.bf16.msrb.mxu1 %v6694_v43 }
 0x155   : > { %v6677_v46 = vld [vmem:[%s9384_s21 + $0x520] sm:$0xf]  ;;  %v8236_v47 = vld [vmem:[%s9384_s21 + $0x52c] sm:$0xf0]  ;;  %v6550_v55 = vor.u32 %v8204_v45, %v6549_v42  ;;  %5062 = vmatpush.bf16.msrb.mxu2 %v6822_v44 }
 0x156   : > { %v6805_v49 = vld [vmem:[%s9384_s21 + $0x620] sm:$0xf]  ;;  %v8268_v50 = vld [vmem:[%s9384_s21 + $0x62c] sm:$0xf0]  ;;  %v6678_v62 = vor.u32 %v8236_v47, %v6677_v46  ;;  %5075 = vmatpush.bf16.msrb.mxu3 %v6950_v48 }
 0x157   : > { %v6933_v51 = vld [vmem:[%s9384_s21 + $0x720] sm:$0xf]  ;;  %v8300_v52 = vld [vmem:[%s9384_s21 + $0x72c] sm:$0xf0]  ;;  %v6806_v63 = vor.u32 %v8268_v50, %v6805_v49  ;;  %5037 = vmatpush.bf16.msrb.mxu0 %v6550_v55 }
 0x158   : > { %v6533_v53 = vld [vmem:[%s9384_s21 + $0x400] sm:$0xf]  ;;  %v8200_v54 = vld [vmem:[%s9384_s21 + $0x40c] sm:$0xf0]  ;;  %v6934_v3 = vor.u32 %v8300_v52, %v6933_v51  ;;  %5050 = vmatpush.bf16.msrb.mxu1 %v6678_v62 }
 0x159   : > { %v6661_v56 = vld [vmem:[%s9384_s21 + $0x500] sm:$0xf]  ;;  %v8232_v57 = vld [vmem:[%s9384_s21 + $0x50c] sm:$0xf0]  ;;  %v6534_v9 = vor.u32 %v8200_v54, %v6533_v53  ;;  %5063 = vmatpush.bf16.msrb.mxu2 %v6806_v63 }
 0x15a   : > { %v6789_v58 = vld [vmem:[%s9384_s21 + $0x600] sm:$0xf]  ;;  %v8264_v59 = vld [vmem:[%s9384_s21 + $0x60c] sm:$0xf0]  ;;  %v6662_v13 = vor.u32 %v8232_v57, %v6661_v56  ;;  %5076 = vmatpush.bf16.msrb.mxu3 %v6934_v3 }
 0x15b   : > { %v9527_v60 = vld [vmem:[#allocation1 + $0x36] sm:$0xff]  ;;  %v1870_v61 = vld [vmem:[%s10534_s0 + $0x8] sm:$0xff]  ;;  %v6790_v14 = vor.u32 %v8264_v59, %v6789_v58  ;;  %5038 = vmatpush.bf16.msrb.mxu0 %v6534_v9 }
 0x15c   : > { %v9532_v0 = vld [vmem:[#allocation1 + $0x24] sm:$0xff]  ;;  %v8296_v5 = vld [vmem:[%s9384_s21 + $0x70c] sm:$0xf0]  ;;  %5051 = vmatpush.bf16.msrb.mxu1 %v6662_v13 }
 0x15d   : > { %v6917_v4 = vld [vmem:[%s9384_s21 + $0x700] sm:$0xf]  ;;  %2394 = vst [vmem:[#allocation1] ss:$9 sm:$0xff] %v1870_v61  ;;  %v8356_v7 = vld [vmem:[%s9384_s21 + $0x8ec] sm:$0xf0]  ;;  %5064 = vmatpush.bf16.msrb.mxu2 %v6790_v14 }
 0x15e   : > { %v7157_v6 = vld [vmem:[%s9384_s21 + $0x8e0] sm:$0xf]  ;;  %v8388_v10 = vld [vmem:[%s9384_s21 + $0x9ec] sm:$0xf0]  ;;  %v6918_v17 = vor.u32 %v8296_v5, %v6917_v4  ;;  %5039 = vmatmul.bf16.vlgmr.msrb.gmra.mxu0 %v9532_v0 }
 0x15f   : > { %v7285_v8 = vld [vmem:[%s9384_s21 + $0x9e0] sm:$0xf]  ;;  %v8420_v12 = vld [vmem:[%s9384_s21 + $0xaec] sm:$0xf0]  ;;  %v7158_v18 = vor.u32 %v8356_v7, %v7157_v6  ;;  %5052 = vmatmul.bf16.vlgmr.msrb.gmra.mxu1 %v9536_v2 }
 0x160   : > { %v7413_v11 = vld [vmem:[%s9384_s21 + $0xae0] sm:$0xf]  ;;  %v8452_v16 = vld [vmem:[%s9384_s21 + $0xbec] sm:$0xf0]  ;;  %v7286_v19 = vor.u32 %v8388_v10, %v7285_v8  ;;  %5077 = vmatpush.bf16.msrb.mxu3 %v6918_v17  ;;  %5065 = vmatmul.bf16.vlgmr.msrb.gmra.mxu2 %v9527_v60 }
 0x161   : > { %v7541_v15 = vld [vmem:[%s9384_s21 + $0xbe0] sm:$0xf]  ;;  %v7414_v23 = vor.u32 %v8420_v12, %v7413_v11  ;;  %v8352_v25 = vld [vmem:[%s9384_s21 + $0x8cc] sm:$0xf0]  ;;  %5083 = vmatpush.bf16.msra.mxu0 %v7158_v18 }
 0x162   : > { %v7141_v24 = vld [vmem:[%s9384_s21 + $0x8c0] sm:$0xf]  ;;  %v7542_v28 = vor.u32 %v8452_v16, %v7541_v15  ;;  %v8384_v29 = vld [vmem:[%s9384_s21 + $0x9cc] sm:$0xf0]  ;;  %5096 = vmatpush.bf16.msra.mxu1 %v7286_v19 }
 0x163   : > { %v7269_v27 = vld [vmem:[%s9384_s21 + $0x9c0] sm:$0xf]  ;;  %v8416_v31 = vld [vmem:[%s9384_s21 + $0xacc] sm:$0xf0]  ;;  %v7142_v34 = vor.u32 %v8352_v25, %v7141_v24  ;;  %5109 = vmatpush.bf16.msra.mxu2 %v7414_v23  ;;  %5078 = vmatmul.bf16.vlgmr.msrb.gmra.mxu3 %v9534_v1 }
 0x164   : > { %v7397_v30 = vld [vmem:[%s9384_s21 + $0xac0] sm:$0xf]  ;;  %v8448_v33 = vld [vmem:[%s9384_s21 + $0xbcc] sm:$0xf0]  ;;  %v7270_v35 = vor.u32 %v8384_v29, %v7269_v27  ;;  %5122 = vmatpush.bf16.msra.mxu3 %v7542_v28 }
 0x165   : > { %v7525_v32 = vld [vmem:[%s9384_s21 + $0xbc0] sm:$0xf]  ;;  %v7398_v36 = vor.u32 %v8416_v31, %v7397_v30  ;;  %v8348_v38 = vld [vmem:[%s9384_s21 + $0x8ac] sm:$0xf0]  ;;  %5084 = vmatpush.bf16.msra.mxu0 %v7142_v34 }
 0x166   : > { %v7125_v37 = vld [vmem:[%s9384_s21 + $0x8a0] sm:$0xf]  ;;  %v7526_v40 = vor.u32 %v8448_v33, %v7525_v32  ;;  %v8380_v41 = vld [vmem:[%s9384_s21 + $0x9ac] sm:$0xf0]  ;;  %5097 = vmatpush.bf16.msra.mxu1 %v7270_v35 }
 0x167   : > { %v7253_v39 = vld [vmem:[%s9384_s21 + $0x9a0] sm:$0xf]  ;;  %v8412_v43 = vld [vmem:[%s9384_s21 + $0xaac] sm:$0xf0]  ;;  %v7126_v46 = vor.u32 %v8348_v38, %v7125_v37  ;;  %5110 = vmatpush.bf16.msra.mxu2 %v7398_v36 }
 0x168   : > { %v7381_v42 = vld [vmem:[%s9384_s21 + $0xaa0] sm:$0xf]  ;;  %v8444_v45 = vld [vmem:[%s9384_s21 + $0xbac] sm:$0xf0]  ;;  %v7254_v47 = vor.u32 %v8380_v41, %v7253_v39  ;;  %5123 = vmatpush.bf16.msra.mxu3 %v7526_v40 }
 0x169   : > { %v7509_v44 = vld [vmem:[%s9384_s21 + $0xba0] sm:$0xf]  ;;  %v7382_v48 = vor.u32 %v8412_v43, %v7381_v42  ;;  %v8344_v50 = vld [vmem:[%s9384_s21 + $0x88c] sm:$0xf0]  ;;  %5085 = vmatpush.bf16.msra.mxu0 %v7126_v46 }
 0x16a   : > { %v7109_v49 = vld [vmem:[%s9384_s21 + $0x880] sm:$0xf]  ;;  %v7510_v52 = vor.u32 %v8444_v45, %v7509_v44  ;;  %v8376_v53 = vld [vmem:[%s9384_s21 + $0x98c] sm:$0xf0]  ;;  %5098 = vmatpush.bf16.msra.mxu1 %v7254_v47 }
 0x16b   : > { %v7237_v51 = vld [vmem:[%s9384_s21 + $0x980] sm:$0xf]  ;;  %v8408_v55 = vld [vmem:[%s9384_s21 + $0xa8c] sm:$0xf0]  ;;  %v7110_v58 = vor.u32 %v8344_v50, %v7109_v49  ;;  %5111 = vmatpush.bf16.msra.mxu2 %v7382_v48 }
 0x16c   : > { %v7365_v54 = vld [vmem:[%s9384_s21 + $0xa80] sm:$0xf]  ;;  %v8440_v57 = vld [vmem:[%s9384_s21 + $0xb8c] sm:$0xf0]  ;;  %v7238_v59 = vor.u32 %v8376_v53, %v7237_v51  ;;  %5124 = vmatpush.bf16.msra.mxu3 %v7510_v52 }
 0x16d   : > { %v7493_v56 = vld [vmem:[%s9384_s21 + $0xb80] sm:$0xf]  ;;  %v7366_v61 = vor.u32 %v8408_v55, %v7365_v54  ;;  %v8340_v63 = vld [vmem:[%s9384_s21 + $0x86c] sm:$0xf0]  ;;  %5086 = vmatpush.bf16.msra.mxu0 %v7110_v58 }
 0x16e   : > { %v7093_v62 = vld [vmem:[%s9384_s21 + $0x860] sm:$0xf]  ;;  %v7494_v4 = vor.u32 %v8440_v57, %v7493_v56  ;;  %v8372_v5 = vld [vmem:[%s9384_s21 + $0x96c] sm:$0xf0]  ;;  %5099 = vmatpush.bf16.msra.mxu1 %v7238_v59 }
 0x16f   : > { %v7221_v3 = vld [vmem:[%s9384_s21 + $0x960] sm:$0xf]  ;;  %v8404_v7 = vld [vmem:[%s9384_s21 + $0xa6c] sm:$0xf0]  ;;  %v7094_v10 = vor.u32 %v8340_v63, %v7093_v62  ;;  %5112 = vmatpush.bf16.msra.mxu2 %v7366_v61 }
 0x170   : > { %v7349_v6 = vld [vmem:[%s9384_s21 + $0xa60] sm:$0xf]  ;;  %v8436_v9 = vld [vmem:[%s9384_s21 + $0xb6c] sm:$0xf0]  ;;  %v7222_v11 = vor.u32 %v8372_v5, %v7221_v3  ;;  %5125 = vmatpush.bf16.msra.mxu3 %v7494_v4 }
 0x171   : > { %v7477_v8 = vld [vmem:[%s9384_s21 + $0xb60] sm:$0xf]  ;;  %v7350_v12 = vor.u32 %v8404_v7, %v7349_v6  ;;  %v8336_v14 = vld [vmem:[%s9384_s21 + $0x84c] sm:$0xf0]  ;;  %5087 = vmatpush.bf16.msra.mxu0 %v7094_v10 }
 0x172   : > { %v7077_v13 = vld [vmem:[%s9384_s21 + $0x840] sm:$0xf]  ;;  %v7478_v16 = vor.u32 %v8436_v9, %v7477_v8  ;;  %v8368_v17 = vld [vmem:[%s9384_s21 + $0x94c] sm:$0xf0]  ;;  %5100 = vmatpush.bf16.msra.mxu1 %v7222_v11 }
 0x173   : > { %v7205_v15 = vld [vmem:[%s9384_s21 + $0x940] sm:$0xf]  ;;  %v8400_v19 = vld [vmem:[%s9384_s21 + $0xa4c] sm:$0xf0]  ;;  %v7078_v25 = vor.u32 %v8336_v14, %v7077_v13  ;;  %5113 = vmatpush.bf16.msra.mxu2 %v7350_v12  ;;  %v2395_v12 = vld [vmem:[#allocation1] sm:$0xff] }
 0x174   : > { %v7333_v18 = vld [vmem:[%s9384_s21 + $0xa40] sm:$0xf]  ;;  %v8432_v24 = vld [vmem:[%s9384_s21 + $0xb4c] sm:$0xf0]  ;;  %v7206_v27 = vor.u32 %v8368_v17, %v7205_v15  ;;  %5126 = vmatpush.bf16.msra.mxu3 %v7478_v16 }
 0x175   : > { %v7461_v23 = vld [vmem:[%s9384_s21 + $0xb40] sm:$0xf]  ;;  %v7334_v28 = vor.u32 %v8400_v19, %v7333_v18  ;;  %v8332_v30 = vld [vmem:[%s9384_s21 + $0x82c] sm:$0xf0]  ;;  %5088 = vmatpush.bf16.msra.mxu0 %v7078_v25 }
 0x176   : > { %v7061_v29 = vld [vmem:[%s9384_s21 + $0x820] sm:$0xf]  ;;  %v7462_v32 = vor.u32 %v8432_v24, %v7461_v23  ;;  %v8364_v33 = vld [vmem:[%s9384_s21 + $0x92c] sm:$0xf0]  ;;  %5101 = vmatpush.bf16.msra.mxu1 %v7206_v27 }
 0x177   : > { %v7189_v31 = vld [vmem:[%s9384_s21 + $0x920] sm:$0xf]  ;;  %v8396_v35 = vld [vmem:[%s9384_s21 + $0xa2c] sm:$0xf0]  ;;  %v7062_v38 = vor.u32 %v8332_v30, %v7061_v29  ;;  %5114 = vmatpush.bf16.msra.mxu2 %v7334_v28 }
 0x178   : > { %v7317_v34 = vld [vmem:[%s9384_s21 + $0xa20] sm:$0xf]  ;;  %v8428_v37 = vld [vmem:[%s9384_s21 + $0xb2c] sm:$0xf0]  ;;  %v7190_v41 = vor.u32 %v8364_v33, %v7189_v31  ;;  %5127 = vmatpush.bf16.msra.mxu3 %v7462_v32 }
 0x179   : > { %v7445_v36 = vld [vmem:[%s9384_s21 + $0xb20] sm:$0xf]  ;;  %v8328_v40 = vld [vmem:[%s9384_s21 + $0x80c] sm:$0xf0]  ;;  %v7318_v42 = vor.u32 %v8396_v35, %v7317_v34  ;;  %5089 = vmatpush.bf16.msra.mxu0 %v7062_v38 }
 0x17a   : > { %v7045_v39 = vld [vmem:[%s9384_s21 + $0x800] sm:$0xf]  ;;  %v8360_v44 = vld [vmem:[%s9384_s21 + $0x90c] sm:$0xf0]  ;;  %v7446_v46 = vor.u32 %v8428_v37, %v7445_v36  ;;  %5102 = vmatpush.bf16.msra.mxu1 %v7190_v41 }
 0x17b   : > { %v7173_v43 = vld [vmem:[%s9384_s21 + $0x900] sm:$0xf]  ;;  %v8392_v47 = vld [vmem:[%s9384_s21 + $0xa0c] sm:$0xf0]  ;;  %v7046_v53 = vor.u32 %v8328_v40, %v7045_v39  ;;  %5115 = vmatpush.bf16.msra.mxu2 %v7318_v42 }
 0x17c   : > { %v7301_v45 = vld [vmem:[%s9384_s21 + $0xa00] sm:$0xf]  ;;  %v8424_v49 = vld [vmem:[%s9384_s21 + $0xb0c] sm:$0xf0]  ;;  %v7174_v57 = vor.u32 %v8360_v44, %v7173_v43  ;;  %5128 = vmatpush.bf16.msra.mxu3 %v7446_v46 }
 0x17d   : > { %v7429_v48 = vld [vmem:[%s9384_s21 + $0xb00] sm:$0xf]  ;;  %v8484_v51 = vld [vmem:[%s9384_s21 + $0xcec] sm:$0xf0]  ;;  %v7302_v58 = vor.u32 %v8392_v47, %v7301_v45  ;;  %5090 = vmatpush.bf16.msra.mxu0 %v7046_v53 }
 0x17e   : > { %v7669_v50 = vld [vmem:[%s9384_s21 + $0xce0] sm:$0xf]  ;;  %v8516_v54 = vld [vmem:[%s9384_s21 + $0xdec] sm:$0xf0]  ;;  %v7430_v62 = vor.u32 %v8424_v49, %v7429_v48  ;;  %5103 = vmatpush.bf16.msra.mxu1 %v7174_v57 }
 0x17f   : > { %v7797_v52 = vld [vmem:[%s9384_s21 + $0xde0] sm:$0xf]  ;;  %v8548_v56 = vld [vmem:[%s9384_s21 + $0xeec] sm:$0xf0]  ;;  %v7670_v63 = vor.u32 %v8484_v51, %v7669_v50  ;;  %5116 = vmatpush.bf16.msra.mxu2 %v7302_v58 }
 0x180   : > { %v7925_v55 = vld [vmem:[%s9384_s21 + $0xee0] sm:$0xf]  ;;  %v8580_v61 = vld [vmem:[%s9384_s21 + $0xfec] sm:$0xf0]  ;;  %v7798_v3 = vor.u32 %v8516_v54, %v7797_v52  ;;  %5129 = vmatpush.bf16.msra.mxu3 %v7430_v62  ;;  %5091 = vmatmul.bf16.vlgmr.msra.gmra.mxu0 %v2395_v12 }
 0x181   : > { %v8053_v59 = vld [vmem:[%s9384_s21 + $0xfe0] sm:$0xf]  ;;  %v7926_v4 = vor.u32 %v8548_v56, %v7925_v55  ;;  %v8480_v6 = vld [vmem:[%s9384_s21 + $0xccc] sm:$0xf0]  ;;  %5135 = vmatpush.bf16.msrb.mxu0 %v7670_v63 }
 0x182   : > { %v7653_v5 = vld [vmem:[%s9384_s21 + $0xcc0] sm:$0xf]  ;;  %v8054_v8 = vor.u32 %v8580_v61, %v8053_v59  ;;  %v8512_v9 = vld [vmem:[%s9384_s21 + $0xdcc] sm:$0xf0]  ;;  %5148 = vmatpush.bf16.msrb.mxu1 %v7798_v3 }
 0x183   : > { %v7781_v7 = vld [vmem:[%s9384_s21 + $0xdc0] sm:$0xf]  ;;  %v8544_v11 = vld [vmem:[%s9384_s21 + $0xecc] sm:$0xf0]  ;;  %v7654_v18 = vor.u32 %v8480_v6, %v7653_v5  ;;  %5161 = vmatpush.bf16.msrb.mxu2 %v7926_v4 }
 0x184   : > { %v7909_v10 = vld [vmem:[%s9384_s21 + $0xec0] sm:$0xf]  ;;  %v8576_v14 = vld [vmem:[%s9384_s21 + $0xfcc] sm:$0xf0]  ;;  %v7782_v19 = vor.u32 %v8512_v9, %v7781_v7  ;;  %5174 = vmatpush.bf16.msrb.mxu3 %v8054_v8 }
 0x185   : > { %v8037_v13 = vld [vmem:[%s9384_s21 + $0xfc0] sm:$0xf]  ;;  %v2397_v15 = vld [vmem:[#allocation1 + $0x12] sm:$0xff]  ;;  %v2398_v17 = vld [vmem:[#allocation1 + $0x1b] sm:$0xff]  ;;  %v7910_v23 = vor.u32 %v8544_v11, %v7909_v10  ;;  %5136 = vmatpush.bf16.msrb.mxu0 %v7654_v18 }
 0x186   : > { %v2396_v16 = vld [vmem:[#allocation1 + $0x9] sm:$0xff]  ;;  %v8476_v25 = vld [vmem:[%s9384_s21 + $0xcac] sm:$0xf0]  ;;  %v8038_v28 = vor.u32 %v8576_v14, %v8037_v13  ;;  %5117 = vmatmul.bf16.vlgmr.msra.gmra.mxu2 %v2397_v15  ;;  %5130 = vmatmul.bf16.vlgmr.msra.gmra.mxu3 %v2398_v17 }
 0x187   : > { %v7637_v24 = vld [vmem:[%s9384_s21 + $0xca0] sm:$0xf]  ;;  %v8508_v29 = vld [vmem:[%s9384_s21 + $0xdac] sm:$0xf0]  ;;  %5104 = vmatmul.bf16.vlgmr.msra.gmra.mxu1 %v2396_v16  ;;  %5162 = vmatpush.bf16.msrb.mxu2 %v7910_v23 }
 0x188   : > { %v7765_v27 = vld [vmem:[%s9384_s21 + $0xda0] sm:$0xf]  ;;  %v8540_v31 = vld [vmem:[%s9384_s21 + $0xeac] sm:$0xf0]  ;;  %v7638_v34 = vor.u32 %v8476_v25, %v7637_v24  ;;  %5149 = vmatpush.bf16.msrb.mxu1 %v7782_v19  ;;  %5175 = vmatpush.bf16.msrb.mxu3 %v8038_v28 }
 0x189   : > { %v7893_v30 = vld [vmem:[%s9384_s21 + $0xea0] sm:$0xf]  ;;  %v8572_v33 = vld [vmem:[%s9384_s21 + $0xfac] sm:$0xf0]  ;;  %v7766_v35 = vor.u32 %v8508_v29, %v7765_v27 }
 0x18a   : > { %v8021_v32 = vld [vmem:[%s9384_s21 + $0xfa0] sm:$0xf]  ;;  %v7894_v36 = vor.u32 %v8540_v31, %v7893_v30  ;;  %v8472_v38 = vld [vmem:[%s9384_s21 + $0xc8c] sm:$0xf0]  ;;  %5137 = vmatpush.bf16.msrb.mxu0 %v7638_v34 }
 0x18b   : > { %v7621_v37 = vld [vmem:[%s9384_s21 + $0xc80] sm:$0xf]  ;;  %v8022_v40 = vor.u32 %v8572_v33, %v8021_v32  ;;  %v8504_v41 = vld [vmem:[%s9384_s21 + $0xd8c] sm:$0xf0] }
 0x18c   : > { %v7749_v39 = vld [vmem:[%s9384_s21 + $0xd80] sm:$0xf]  ;;  %v8536_v43 = vld [vmem:[%s9384_s21 + $0xe8c] sm:$0xf0]  ;;  %v7622_v46 = vor.u32 %v8472_v38, %v7621_v37  ;;  %5150 = vmatpush.bf16.msrb.mxu1 %v7766_v35  ;;  %5163 = vmatpush.bf16.msrb.mxu2 %v7894_v36  ;;  %v8098_v38 = vld [vmem:[%s9384_s21 + $0xe4] sm:$0xf] }
 0x18d   : > { %v7877_v42 = vld [vmem:[%s9384_s21 + $0xe80] sm:$0xf]  ;;  %v8568_v45 = vld [vmem:[%s9384_s21 + $0xf8c] sm:$0xf0]  ;;  %v7750_v47 = vor.u32 %v8504_v41, %v7749_v39  ;;  %5176 = vmatpush.bf16.msrb.mxu3 %v8022_v40  ;;  %v6135_v39 = vld [vmem:[%s9384_s21 + $0xf0] sm:$0xf0] }
 0x18e   : > { %v8005_v44 = vld [vmem:[%s9384_s21 + $0xf80] sm:$0xf]  ;;  %v7878_v48 = vor.u32 %v8536_v43, %v7877_v42  ;;  %v8468_v50 = vld [vmem:[%s9384_s21 + $0xc6c] sm:$0xf0]  ;;  %5138 = vmatpush.bf16.msrb.mxu0 %v7622_v46  ;;  %v8130_v40 = vld [vmem:[%s9384_s21 + $0x1e4] sm:$0xf] }
 0x18f   : > { %v7605_v49 = vld [vmem:[%s9384_s21 + $0xc60] sm:$0xf]  ;;  %v8006_v52 = vor.u32 %v8568_v45, %v8005_v44  ;;  %v8500_v53 = vld [vmem:[%s9384_s21 + $0xd6c] sm:$0xf0]  ;;  %v6263_v42 = vld [vmem:[%s9384_s21 + $0x1f0] sm:$0xf0] }
 0x190   : > { %v7733_v51 = vld [vmem:[%s9384_s21 + $0xd60] sm:$0xf]  ;;  %v8532_v55 = vld [vmem:[%s9384_s21 + $0xe6c] sm:$0xf0]  ;;  %v7606_v58 = vor.u32 %v8468_v50, %v7605_v49  ;;  %5151 = vmatpush.bf16.msrb.mxu1 %v7750_v47  ;;  %5164 = vmatpush.bf16.msrb.mxu2 %v7878_v48  ;;  %v8162_v43 = vld [vmem:[%s9384_s21 + $0x2e4] sm:$0xf]  ;;  %v6138_v50 = vor.u32 %v8098_v38, %v6135_v39 }
 0x191   : > { %v7861_v54 = vld [vmem:[%s9384_s21 + $0xe60] sm:$0xf]  ;;  %v8564_v57 = vld [vmem:[%s9384_s21 + $0xf6c] sm:$0xf0]  ;;  %v7734_v59 = vor.u32 %v8500_v53, %v7733_v51  ;;  %5177 = vmatpush.bf16.msrb.mxu3 %v8006_v52  ;;  %v6391_v44 = vld [vmem:[%s9384_s21 + $0x2f0] sm:$0xf0]  ;;  %v6266_v51 = vor.u32 %v8130_v40, %v6263_v42 }
 0x192   : > { %v7989_v56 = vld [vmem:[%s9384_s21 + $0xf60] sm:$0xf]  ;;  %v7862_v61 = vor.u32 %v8532_v55, %v7861_v54  ;;  %v8464_v63 = vld [vmem:[%s9384_s21 + $0xc4c] sm:$0xf0]  ;;  %5139 = vmatpush.bf16.msrb.mxu0 %v7606_v58  ;;  %v8194_v47 = vld [vmem:[%s9384_s21 + $0x3e4] sm:$0xf]  ;;  %v6394_v52 = vor.u32 %v8162_v43, %v6391_v44 }
 0x193   : > { %v7589_v62 = vld [vmem:[%s9384_s21 + $0xc40] sm:$0xf]  ;;  %v7990_v4 = vor.u32 %v8564_v57, %v7989_v56  ;;  %v8496_v5 = vld [vmem:[%s9384_s21 + $0xd4c] sm:$0xf0]  ;;  %v6519_v48 = vld [vmem:[%s9384_s21 + $0x3f0] sm:$0xf0] }
 0x194   : > { %v7717_v3 = vld [vmem:[%s9384_s21 + $0xd40] sm:$0xf]  ;;  %v8528_v7 = vld [vmem:[%s9384_s21 + $0xe4c] sm:$0xf0]  ;;  %v7590_v10 = vor.u32 %v8464_v63, %v7589_v62  ;;  %5152 = vmatpush.bf16.msrb.mxu1 %v7734_v59  ;;  %5165 = vmatpush.bf16.msrb.mxu2 %v7862_v61  ;;  %v8094_v53 = vld [vmem:[%s9384_s21 + $0xc4] sm:$0xf]  ;;  %v6522_v56 = vor.u32 %v8194_v47, %v6519_v48 }
 0x195   : > { %v7845_v6 = vld [vmem:[%s9384_s21 + $0xe40] sm:$0xf]  ;;  %v8560_v9 = vld [vmem:[%s9384_s21 + $0xf4c] sm:$0xf0]  ;;  %v7718_v11 = vor.u32 %v8496_v5, %v7717_v3  ;;  %5178 = vmatpush.bf16.msrb.mxu3 %v7990_v4  ;;  %v6119_v54 = vld [vmem:[%s9384_s21 + $0xd0] sm:$0xf0] }
 0x196   : > { %v7973_v8 = vld [vmem:[%s9384_s21 + $0xf40] sm:$0xf]  ;;  %v7846_v12 = vor.u32 %v8528_v7, %v7845_v6  ;;  %v8460_v14 = vld [vmem:[%s9384_s21 + $0xc2c] sm:$0xf0]  ;;  %5140 = vmatpush.bf16.msrb.mxu0 %v7590_v10  ;;  %v8126_v55 = vld [vmem:[%s9384_s21 + $0x1c4] sm:$0xf]  ;;  %v6122_v6 = vor.u32 %v8094_v53, %v6119_v54 }
 0x197   : > { %v7573_v13 = vld [vmem:[%s9384_s21 + $0xc20] sm:$0xf]  ;;  %v7974_v16 = vor.u32 %v8560_v9, %v7973_v8  ;;  %v8492_v17 = vld [vmem:[%s9384_s21 + $0xd2c] sm:$0xf0]  ;;  %v6247_v57 = vld [vmem:[%s9384_s21 + $0x1d0] sm:$0xf0] }
 0x198   : > { %v7701_v15 = vld [vmem:[%s9384_s21 + $0xd20] sm:$0xf]  ;;  %v8524_v19 = vld [vmem:[%s9384_s21 + $0xe2c] sm:$0xf0]  ;;  %v7574_v25 = vor.u32 %v8460_v14, %v7573_v13  ;;  %5153 = vmatpush.bf16.msrb.mxu1 %v7718_v11  ;;  %5166 = vmatpush.bf16.msrb.mxu2 %v7846_v12  ;;  %v8158_v58 = vld [vmem:[%s9384_s21 + $0x2c4] sm:$0xf]  ;;  %v6250_v7 = vor.u32 %v8126_v55, %v6247_v57 }
 0x199   : > { %v7829_v18 = vld [vmem:[%s9384_s21 + $0xe20] sm:$0xf]  ;;  %v8556_v24 = vld [vmem:[%s9384_s21 + $0xf2c] sm:$0xf0]  ;;  %v7702_v29 = vor.u32 %v8492_v17, %v7701_v15  ;;  %5179 = vmatpush.bf16.msrb.mxu3 %v7974_v16  ;;  %v6375_v59 = vld [vmem:[%s9384_s21 + $0x2d0] sm:$0xf0] }
 0x19a   : > { %v7957_v23 = vld [vmem:[%s9384_s21 + $0xf20] sm:$0xf]  ;;  %v8456_v28 = vld [vmem:[%s9384_s21 + $0xc0c] sm:$0xf0]  ;;  %v7830_v30 = vor.u32 %v8524_v19, %v7829_v18  ;;  %5141 = vmatpush.bf16.msrb.mxu0 %v7574_v25  ;;  %v8190_v62 = vld [vmem:[%s9384_s21 + $0x3c4] sm:$0xf]  ;;  %v6378_v8 = vor.u32 %v8158_v58, %v6375_v59 }
 0x19b   : > { %v7557_v27 = vld [vmem:[%s9384_s21 + $0xc00] sm:$0xf]  ;;  %v8488_v32 = vld [vmem:[%s9384_s21 + $0xd0c] sm:$0xf0]  ;;  %v7958_v34 = vor.u32 %v8556_v24, %v7957_v23  ;;  %v6503_v63 = vld [vmem:[%s9384_s21 + $0x3d0] sm:$0xf0] }
 0x19c   : > { %v7685_v31 = vld [vmem:[%s9384_s21 + $0xd00] sm:$0xf]  ;;  %v8520_v35 = vld [vmem:[%s9384_s21 + $0xe0c] sm:$0xf0]  ;;  %v7558_v41 = vor.u32 %v8456_v28, %v7557_v27  ;;  %5154 = vmatpush.bf16.msrb.mxu1 %v7702_v29  ;;  %5167 = vmatpush.bf16.msrb.mxu2 %v7830_v30  ;;  %v2400_v4 = vld [vmem:[#allocation1 + $0x2d] sm:$0xff]  ;;  %v6506_v12 = vor.u32 %v8190_v62, %v6503_v63 }
 0x19d   : > { %v7813_v33 = vld [vmem:[%s9384_s21 + $0xe00] sm:$0xf]  ;;  %v8552_v37 = vld [vmem:[%s9384_s21 + $0xf0c] sm:$0xf0]  ;;  %v7686_v45 = vor.u32 %v8488_v32, %v7685_v31  ;;  %5180 = vmatpush.bf16.msrb.mxu3 %v7958_v34  ;;  %v2402_v5 = vld [vmem:[#allocation1 + $0x3f] sm:$0xff] }
 0x19e   : > { %v7941_v36 = vld [vmem:[%s9384_s21 + $0xf00] sm:$0xf]  ;;  %v7814_v46 = vor.u32 %v8520_v35, %v7813_v33  ;;  %5142 = vmatpush.bf16.msrb.mxu0 %v7558_v41  ;;  %v2401_v3 = vld [vmem:[#allocation1 + $0x36] sm:$0xff]  ;;  %v8090_v9 = vld [vmem:[%s9384_s21 + $0xa4] sm:$0xf] }
 0x19f   : > { %v7942_v49 = vor.u32 %v8552_v37, %v7941_v36  ;;  %v2399_v61 = vld [vmem:[#allocation1 + $0x24] sm:$0xff]  ;;  %v6103_v10 = vld [vmem:[%s9384_s21 + $0xb0] sm:$0xf0]  ;;  %v8122_v11 = vld [vmem:[%s9384_s21 + $0x1a4] sm:$0xf] }
 0x1a0   : > { %5155 = vmatpush.bf16.msrb.mxu1 %v7686_v45  ;;  %5168 = vmatpush.bf16.msrb.mxu2 %v7814_v46  ;;  %v6231_v13 = vld [vmem:[%s9384_s21 + $0x1b0] sm:$0xf0]  ;;  %v8154_v14 = vld [vmem:[%s9384_s21 + $0x2a4] sm:$0xf]  ;;  %v6106_v18 = vor.u32 %v8090_v9, %v6103_v10 }
 0x1a1   : > { %5181 = vmatpush.bf16.msrb.mxu3 %v7942_v49  ;;  %5143 = vmatmul.bf16.vlgmr.msrb.gmra.mxu0 %v2399_v61  ;;  %v6359_v15 = vld [vmem:[%s9384_s21 + $0x2b0] sm:$0xf0]  ;;  %v8186_v16 = vld [vmem:[%s9384_s21 + $0x3a4] sm:$0xf]  ;;  %v6234_v19 = vor.u32 %v8122_v11, %v6231_v13 }
 0x1a2   : > { %5187 = vmatpush.bf16.msra.mxu0 %v6138_v50  ;;  %v6487_v17 = vld [vmem:[%s9384_s21 + $0x3b0] sm:$0xf0]  ;;  %v6362_v23 = vor.u32 %v8154_v14, %v6359_v15  ;;  %v8086_v24 = vld [vmem:[%s9384_s21 + $0x84] sm:$0xf] }
 0x1a3   : > { %5169 = vmatmul.bf16.vlgmr.msrb.gmra.mxu2 %v2401_v3  ;;  %5156 = vmatmul.bf16.vlgmr.msrb.gmra.mxu1 %v2400_v4  ;;  %v6087_v25 = vld [vmem:[%s9384_s21 + $0x90] sm:$0xf0]  ;;  %v8118_v27 = vld [vmem:[%s9384_s21 + $0x184] sm:$0xf]  ;;  %v6490_v28 = vor.u32 %v8186_v16, %v6487_v17 }
 0x1a4   : > { %5200 = vmatpush.bf16.msra.mxu1 %v6266_v51  ;;  %5213 = vmatpush.bf16.msra.mxu2 %v6394_v52  ;;  %v6215_v29 = vld [vmem:[%s9384_s21 + $0x190] sm:$0xf0]  ;;  %v8150_v30 = vld [vmem:[%s9384_s21 + $0x284] sm:$0xf]  ;;  %v6090_v34 = vor.u32 %v8086_v24, %v6087_v25 }
 0x1a5   : > { %5226 = vmatpush.bf16.msra.mxu3 %v6522_v56  ;;  %v6343_v31 = vld [vmem:[%s9384_s21 + $0x290] sm:$0xf0]  ;;  %v8182_v32 = vld [vmem:[%s9384_s21 + $0x384] sm:$0xf]  ;;  %v6218_v35 = vor.u32 %v8118_v27, %v6215_v29 }
 0x1a6   : > { %5182 = vmatmul.bf16.vlgmr.msrb.gmra.mxu3 %v2402_v5  ;;  %5188 = vmatpush.bf16.msra.mxu0 %v6122_v6  ;;  %v6471_v33 = vld [vmem:[%s9384_s21 + $0x390] sm:$0xf0]  ;;  %v6346_v36 = vor.u32 %v8150_v30, %v6343_v31  ;;  %v8082_v37 = vld [vmem:[%s9384_s21 + $0x64] sm:$0xf] }
 0x1a7   : > { %v6071_v38 = vld [vmem:[%s9384_s21 + $0x70] sm:$0xf0]  ;;  %v8114_v39 = vld [vmem:[%s9384_s21 + $0x164] sm:$0xf]  ;;  %v6474_v40 = vor.u32 %v8182_v32, %v6471_v33 }
 0x1a8   : > { %5201 = vmatpush.bf16.msra.mxu1 %v6250_v7  ;;  %5214 = vmatpush.bf16.msra.mxu2 %v6378_v8  ;;  %v6199_v41 = vld [vmem:[%s9384_s21 + $0x170] sm:$0xf0]  ;;  %v8146_v42 = vld [vmem:[%s9384_s21 + $0x264] sm:$0xf]  ;;  %v6074_v46 = vor.u32 %v8082_v37, %v6071_v38 }
 0x1a9   : > { %5227 = vmatpush.bf16.msra.mxu3 %v6506_v12  ;;  %v6327_v43 = vld [vmem:[%s9384_s21 + $0x270] sm:$0xf0]  ;;  %v8178_v44 = vld [vmem:[%s9384_s21 + $0x364] sm:$0xf]  ;;  %v6202_v47 = vor.u32 %v8114_v39, %v6199_v41 }
 0x1aa   : > { %5189 = vmatpush.bf16.msra.mxu0 %v6106_v18  ;;  %v6455_v45 = vld [vmem:[%s9384_s21 + $0x370] sm:$0xf0]  ;;  %v6330_v48 = vor.u32 %v8146_v42, %v6327_v43  ;;  %v8078_v49 = vld [vmem:[%s9384_s21 + $0x44] sm:$0xf] }
 0x1ab   : > { %v6055_v50 = vld [vmem:[%s9384_s21 + $0x50] sm:$0xf0]  ;;  %v8110_v51 = vld [vmem:[%s9384_s21 + $0x144] sm:$0xf]  ;;  %v6458_v52 = vor.u32 %v8178_v44, %v6455_v45 }
 0x1ac   : > { %5202 = vmatpush.bf16.msra.mxu1 %v6234_v19  ;;  %5215 = vmatpush.bf16.msra.mxu2 %v6362_v23  ;;  %v6183_v53 = vld [vmem:[%s9384_s21 + $0x150] sm:$0xf0]  ;;  %v8142_v54 = vld [vmem:[%s9384_s21 + $0x244] sm:$0xf]  ;;  %v6058_v58 = vor.u32 %v8078_v49, %v6055_v50 }
 0x1ad   : > { %5228 = vmatpush.bf16.msra.mxu3 %v6490_v28  ;;  %v6311_v55 = vld [vmem:[%s9384_s21 + $0x250] sm:$0xf0]  ;;  %v8174_v56 = vld [vmem:[%s9384_s21 + $0x344] sm:$0xf]  ;;  %v6186_v59 = vor.u32 %v8110_v51, %v6183_v53 }
 0x1ae   : > { %5190 = vmatpush.bf16.msra.mxu0 %v6090_v34  ;;  %v6439_v57 = vld [vmem:[%s9384_s21 + $0x350] sm:$0xf0]  ;;  %v6314_v61 = vor.u32 %v8142_v54, %v6311_v55  ;;  %v8074_v62 = vld [vmem:[%s9384_s21 + $0x24] sm:$0xf] }
 0x1af   : > { %v6039_v63 = vld [vmem:[%s9384_s21 + $0x30] sm:$0xf0]  ;;  %v8106_v3 = vld [vmem:[%s9384_s21 + $0x124] sm:$0xf]  ;;  %v6442_v4 = vor.u32 %v8174_v56, %v6439_v57 }
 0x1b0   : > { %5203 = vmatpush.bf16.msra.mxu1 %v6218_v35  ;;  %5216 = vmatpush.bf16.msra.mxu2 %v6346_v36  ;;  %v6167_v5 = vld [vmem:[%s9384_s21 + $0x130] sm:$0xf0]  ;;  %v8138_v6 = vld [vmem:[%s9384_s21 + $0x224] sm:$0xf]  ;;  %v6042_v10 = vor.u32 %v8074_v62, %v6039_v63 }
 0x1b1   : > { %5229 = vmatpush.bf16.msra.mxu3 %v6474_v40  ;;  %v6295_v7 = vld [vmem:[%s9384_s21 + $0x230] sm:$0xf0]  ;;  %v8170_v8 = vld [vmem:[%s9384_s21 + $0x324] sm:$0xf]  ;;  %v6170_v13 = vor.u32 %v8106_v3, %v6167_v5 }
 0x1b2   : > { %5191 = vmatpush.bf16.msra.mxu0 %v6074_v46  ;;  %v6423_v9 = vld [vmem:[%s9384_s21 + $0x330] sm:$0xf0]  ;;  %v8070_v11 = vld [vmem:[%s9384_s21 + $0x4] sm:$0xf]  ;;  %v6298_v14 = vor.u32 %v8138_v6, %v6295_v7 }
 0x1b3   : > { %v6023_v12 = vld [vmem:[%s9384_s21 + $0x10] sm:$0xf0]  ;;  %v8102_v15 = vld [vmem:[%s9384_s21 + $0x104] sm:$0xf]  ;;  %v6426_v18 = vor.u32 %v8170_v8, %v6423_v9 }
 0x1b4   : > { %5204 = vmatpush.bf16.msra.mxu1 %v6202_v47  ;;  %5217 = vmatpush.bf16.msra.mxu2 %v6330_v48  ;;  %v6151_v16 = vld [vmem:[%s9384_s21 + $0x110] sm:$0xf0]  ;;  %v8134_v17 = vld [vmem:[%s9384_s21 + $0x204] sm:$0xf]  ;;  %v6026_v29 = vor.u32 %v8070_v11, %v6023_v12 }
 0x1b5   : > { %5230 = vmatpush.bf16.msra.mxu3 %v6458_v52  ;;  %v6279_v19 = vld [vmem:[%s9384_s21 + $0x210] sm:$0xf0]  ;;  %v8166_v23 = vld [vmem:[%s9384_s21 + $0x304] sm:$0xf]  ;;  %v6154_v33 = vor.u32 %v8102_v15, %v6151_v16 }
 0x1b6   : > { %5192 = vmatpush.bf16.msra.mxu0 %v6058_v58  ;;  %v6407_v24 = vld [vmem:[%s9384_s21 + $0x310] sm:$0xf0]  ;;  %v8226_v25 = vld [vmem:[%s9384_s21 + $0x4e4] sm:$0xf]  ;;  %v6282_v34 = vor.u32 %v8134_v17, %v6279_v19 }
 0x1b7   : > { %v6647_v27 = vld [vmem:[%s9384_s21 + $0x4f0] sm:$0xf0]  ;;  %v8258_v28 = vld [vmem:[%s9384_s21 + $0x5e4] sm:$0xf]  ;;  %v6410_v37 = vor.u32 %v8166_v23, %v6407_v24 }
 0x1b8   : > { %5205 = vmatpush.bf16.msra.mxu1 %v6186_v59  ;;  %5218 = vmatpush.bf16.msra.mxu2 %v6314_v61  ;;  %v6775_v30 = vld [vmem:[%s9384_s21 + $0x5f0] sm:$0xf0]  ;;  %v8290_v31 = vld [vmem:[%s9384_s21 + $0x6e4] sm:$0xf]  ;;  %v6650_v38 = vor.u32 %v8226_v25, %v6647_v27 }
 0x1b9   : > { %5231 = vmatpush.bf16.msra.mxu3 %v6442_v4  ;;  %v6903_v32 = vld [vmem:[%s9384_s21 + $0x6f0] sm:$0xf0]  ;;  %v8322_v35 = vld [vmem:[%s9384_s21 + $0x7e4] sm:$0xf]  ;;  %v6778_v39 = vor.u32 %v8258_v28, %v6775_v30 }
 0x1ba   : > { %5193 = vmatpush.bf16.msra.mxu0 %v6042_v10  ;;  %v7031_v36 = vld [vmem:[%s9384_s21 + $0x7f0] sm:$0xf0]  ;;  %v6906_v40 = vor.u32 %v8290_v31, %v6903_v32  ;;  %v8222_v41 = vld [vmem:[%s9384_s21 + $0x4c4] sm:$0xf] }
 0x1bb   : > { %v6631_v42 = vld [vmem:[%s9384_s21 + $0x4d0] sm:$0xf0]  ;;  %v8254_v43 = vld [vmem:[%s9384_s21 + $0x5c4] sm:$0xf]  ;;  %v7034_v44 = vor.u32 %v8322_v35, %v7031_v36 }
 0x1bc   : > { %5206 = vmatpush.bf16.msra.mxu1 %v6170_v13  ;;  %5219 = vmatpush.bf16.msra.mxu2 %v6298_v14  ;;  %v6759_v45 = vld [vmem:[%s9384_s21 + $0x5d0] sm:$0xf0]  ;;  %v8286_v46 = vld [vmem:[%s9384_s21 + $0x6c4] sm:$0xf]  ;;  %v6634_v50 = vor.u32 %v8222_v41, %v6631_v42 }
 0x1bd   : > { %5232 = vmatpush.bf16.msra.mxu3 %v6426_v18  ;;  %v6887_v47 = vld [vmem:[%s9384_s21 + $0x6d0] sm:$0xf0]  ;;  %v8318_v48 = vld [vmem:[%s9384_s21 + $0x7c4] sm:$0xf]  ;;  %v6762_v51 = vor.u32 %v8254_v43, %v6759_v45  ;;  %v4988_v43 = vpop.f32.mrf.mxu0 }
 0x1be   : > { %5194 = vmatpush.bf16.msra.mxu0 %v6026_v29  ;;  %v7015_v49 = vld [vmem:[%s9384_s21 + $0x7d0] sm:$0xf0]  ;;  %v6890_v52 = vor.u32 %v8286_v46, %v6887_v47  ;;  %v8218_v53 = vld [vmem:[%s9384_s21 + $0x4a4] sm:$0xf] }
 0x1bf   : > { %v6615_v54 = vld [vmem:[%s9384_s21 + $0x4b0] sm:$0xf0]  ;;  %v8250_v55 = vld [vmem:[%s9384_s21 + $0x5a4] sm:$0xf]  ;;  %v7018_v56 = vor.u32 %v8318_v48, %v7015_v49 }
 0x1c0   : > { %5207 = vmatpush.bf16.msra.mxu1 %v6154_v33  ;;  %5220 = vmatpush.bf16.msra.mxu2 %v6282_v34  ;;  %v6743_v57 = vld [vmem:[%s9384_s21 + $0x5b0] sm:$0xf0]  ;;  %v8282_v58 = vld [vmem:[%s9384_s21 + $0x6a4] sm:$0xf]  ;;  %v6618_v63 = vor.u32 %v8218_v53, %v6615_v54 }
 0x1c1   : > { %5233 = vmatpush.bf16.msra.mxu3 %v6410_v37  ;;  %v6871_v59 = vld [vmem:[%s9384_s21 + $0x6b0] sm:$0xf0]  ;;  %v8314_v61 = vld [vmem:[%s9384_s21 + $0x7a4] sm:$0xf]  ;;  %5195 = vmatmul.bf16.vlgmr.msra.gmra.mxu0 %v9491_v21  ;;  %v6746_v3 = vor.u32 %v8250_v55, %v6743_v57 }
 0x1c2   : > { %5239 = vmatpush.bf16.msrb.mxu0 %v6650_v38  ;;  %v6999_v62 = vld [vmem:[%s9384_s21 + $0x7b0] sm:$0xf0]  ;;  %v6874_v4 = vor.u32 %v8282_v58, %v6871_v59  ;;  %v8214_v5 = vld [vmem:[%s9384_s21 + $0x484] sm:$0xf] }
 0x1c3   : > { %5221 = vmatmul.bf16.vlgmr.msra.gmra.mxu2 %v9489_v20  ;;  %5208 = vmatmul.bf16.vlgmr.msra.gmra.mxu1 %v9498_v26  ;;  %v6599_v6 = vld [vmem:[%s9384_s21 + $0x490] sm:$0xf0]  ;;  %v8246_v7 = vld [vmem:[%s9384_s21 + $0x584] sm:$0xf]  ;;  %v7002_v8 = vor.u32 %v8314_v61, %v6999_v62 }
 0x1c4   : > { %5252 = vmatpush.bf16.msrb.mxu1 %v6778_v39  ;;  %5265 = vmatpush.bf16.msrb.mxu2 %v6906_v40  ;;  %v6727_v9 = vld [vmem:[%s9384_s21 + $0x590] sm:$0xf0]  ;;  %v8278_v10 = vld [vmem:[%s9384_s21 + $0x684] sm:$0xf]  ;;  %v6602_v14 = vor.u32 %v8214_v5, %v6599_v6 }
 0x1c5   : > { %5278 = vmatpush.bf16.msrb.mxu3 %v7034_v44  ;;  %v6855_v11 = vld [vmem:[%s9384_s21 + $0x690] sm:$0xf0]  ;;  %v8310_v12 = vld [vmem:[%s9384_s21 + $0x784] sm:$0xf]  ;;  %v6730_v15 = vor.u32 %v8246_v7, %v6727_v9 }
 0x1c6   : > { %5234 = vmatmul.bf16.vlgmr.msra.gmra.mxu3 %v9493_v22  ;;  %5240 = vmatpush.bf16.msrb.mxu0 %v6634_v50  ;;  %v6983_v13 = vld [vmem:[%s9384_s21 + $0x790] sm:$0xf0]  ;;  %v6858_v16 = vor.u32 %v8278_v10, %v6855_v11  ;;  %v8210_v17 = vld [vmem:[%s9384_s21 + $0x464] sm:$0xf] }
 0x1c7   : > { %v6583_v18 = vld [vmem:[%s9384_s21 + $0x470] sm:$0xf0]  ;;  %v8242_v19 = vld [vmem:[%s9384_s21 + $0x564] sm:$0xf]  ;;  %v6986_v23 = vor.u32 %v8310_v12, %v6983_v13 }
 0x1c8   : > { %5253 = vmatpush.bf16.msrb.mxu1 %v6762_v51  ;;  %5266 = vmatpush.bf16.msrb.mxu2 %v6890_v52  ;;  %v6711_v24 = vld [vmem:[%s9384_s21 + $0x570] sm:$0xf0]  ;;  %v8274_v25 = vld [vmem:[%s9384_s21 + $0x664] sm:$0xf]  ;;  %v6586_v30 = vor.u32 %v8210_v17, %v6583_v18 }
 0x1c9   : > { %5279 = vmatpush.bf16.msrb.mxu3 %v7018_v56  ;;  %v6839_v27 = vld [vmem:[%s9384_s21 + $0x670] sm:$0xf0]  ;;  %v8306_v28 = vld [vmem:[%s9384_s21 + $0x764] sm:$0xf]  ;;  %v6714_v31 = vor.u32 %v8242_v19, %v6711_v24 }
 0x1ca   : > { %5241 = vmatpush.bf16.msrb.mxu0 %v6618_v63  ;;  %v6967_v29 = vld [vmem:[%s9384_s21 + $0x770] sm:$0xf0]  ;;  %v6842_v32 = vor.u32 %v8274_v25, %v6839_v27  ;;  %v8206_v33 = vld [vmem:[%s9384_s21 + $0x444] sm:$0xf] }
 0x1cb   : > { %v6567_v34 = vld [vmem:[%s9384_s21 + $0x450] sm:$0xf0]  ;;  %v8238_v35 = vld [vmem:[%s9384_s21 + $0x544] sm:$0xf]  ;;  %v6970_v36 = vor.u32 %v8306_v28, %v6967_v29 }
 0x1cc   : > { %5254 = vmatpush.bf16.msrb.mxu1 %v6746_v3  ;;  %5267 = vmatpush.bf16.msrb.mxu2 %v6874_v4  ;;  %v6695_v37 = vld [vmem:[%s9384_s21 + $0x550] sm:$0xf0]  ;;  %v8270_v38 = vld [vmem:[%s9384_s21 + $0x644] sm:$0xf]  ;;  %v6570_v42 = vor.u32 %v8206_v33, %v6567_v34  ;;  %v5001_v49 = vpop.f32.mrf.mxu1 }
 0x1cd   : > { %5280 = vmatpush.bf16.msrb.mxu3 %v7002_v8  ;;  %v6823_v39 = vld [vmem:[%s9384_s21 + $0x650] sm:$0xf0]  ;;  %v8302_v40 = vld [vmem:[%s9384_s21 + $0x744] sm:$0xf]  ;;  %v6698_v44 = vor.u32 %v8238_v35, %v6695_v37  ;;  %v5002_v54 = vadd.f32 %v5001_v49, %v4988_v43 }
 0x1ce   : > { %5242 = vmatpush.bf16.msrb.mxu0 %v6602_v14  ;;  %v6951_v41 = vld [vmem:[%s9384_s21 + $0x750] sm:$0xf0]  ;;  %v6826_v45 = vor.u32 %v8270_v38, %v6823_v39  ;;  %v8202_v46 = vld [vmem:[%s9384_s21 + $0x424] sm:$0xf] }
 0x1cf   : > { %v6551_v47 = vld [vmem:[%s9384_s21 + $0x430] sm:$0xf0]  ;;  %v8234_v48 = vld [vmem:[%s9384_s21 + $0x524] sm:$0xf]  ;;  %v6954_v50 = vor.u32 %v8302_v40, %v6951_v41 }
 0x1d0   : > { %5255 = vmatpush.bf16.msrb.mxu1 %v6730_v15  ;;  %5268 = vmatpush.bf16.msrb.mxu2 %v6858_v16  ;;  %v6679_v51 = vld [vmem:[%s9384_s21 + $0x530] sm:$0xf0]  ;;  %v8266_v52 = vld [vmem:[%s9384_s21 + $0x624] sm:$0xf]  ;;  %v6554_v57 = vor.u32 %v8202_v46, %v6551_v47 }
 0x1d1   : > { %5281 = vmatpush.bf16.msrb.mxu3 %v6986_v23  ;;  %v6807_v53 = vld [vmem:[%s9384_s21 + $0x630] sm:$0xf0]  ;;  %v8298_v55 = vld [vmem:[%s9384_s21 + $0x724] sm:$0xf]  ;;  %v6682_v61 = vor.u32 %v8234_v48, %v6679_v51  ;;  %v5014_v5 = vpop.f32.mrf.mxu2  ;;  %v5027_v11 = vpop.f32.mrf.mxu3 }
 0x1d2   : > { %5243 = vmatpush.bf16.msrb.mxu0 %v6586_v30  ;;  %v6935_v56 = vld [vmem:[%s9384_s21 + $0x730] sm:$0xf0]  ;;  %v8198_v58 = vld [vmem:[%s9384_s21 + $0x404] sm:$0xf]  ;;  %v6810_v62 = vor.u32 %v8266_v52, %v6807_v53  ;;  %v5015_v10 = vadd.f32 %v5014_v5, %v5002_v54  ;;  %v4990_v23 = vpop.f32.mrf.mxu0 }
 0x1d3   : > { %v6535_v59 = vld [vmem:[%s9384_s21 + $0x410] sm:$0xf0]  ;;  %v8230_v63 = vld [vmem:[%s9384_s21 + $0x504] sm:$0xf]  ;;  %v6938_v6 = vor.u32 %v8298_v55, %v6935_v56 }
 0x1d4   : > { %5256 = vmatpush.bf16.msrb.mxu1 %v6714_v31  ;;  %5269 = vmatpush.bf16.msrb.mxu2 %v6842_v32  ;;  %v6663_v3 = vld [vmem:[%s9384_s21 + $0x510] sm:$0xf0]  ;;  %v8262_v4 = vld [vmem:[%s9384_s21 + $0x604] sm:$0xf]  ;;  %v6538_v15 = vor.u32 %v8198_v58, %v6535_v59  ;;  %v9810_v19 = vadd.f32 %v5027_v11, %v5015_v10  ;;  %v5003_v29 = vpop.f32.mrf.mxu1 }
 0x1d5   : > { %5282 = vmatpush.bf16.msrb.mxu3 %v6970_v36  ;;  %v6791_v7 = vld [vmem:[%s9384_s21 + $0x610] sm:$0xf0]  ;;  %v8294_v8 = vld [vmem:[%s9384_s21 + $0x704] sm:$0xf]  ;;  %v6666_v24 = vor.u32 %v8230_v63, %v6663_v3 }
 0x1d6   : > { %5244 = vmatpush.bf16.msrb.mxu0 %v6570_v42  ;;  %v6919_v9 = vld [vmem:[%s9384_s21 + $0x710] sm:$0xf0]  ;;  %v8354_v12 = vld [vmem:[%s9384_s21 + $0x8e4] sm:$0xf]  ;;  %v6794_v25 = vor.u32 %v8262_v4, %v6791_v7 }
 0x1d7   : > { %v7159_v13 = vld [vmem:[%s9384_s21 + $0x8f0] sm:$0xf0]  ;;  %v8386_v14 = vld [vmem:[%s9384_s21 + $0x9e4] sm:$0xf]  ;;  %v6922_v30 = vor.u32 %v8294_v8, %v6919_v9 }
 0x1d8   : > { %5257 = vmatpush.bf16.msrb.mxu1 %v6698_v44  ;;  %5270 = vmatpush.bf16.msrb.mxu2 %v6826_v45  ;;  %v7287_v16 = vld [vmem:[%s9384_s21 + $0x9f0] sm:$0xf0]  ;;  %v8418_v17 = vld [vmem:[%s9384_s21 + $0xae4] sm:$0xf]  ;;  %v7162_v31 = vor.u32 %v8354_v12, %v7159_v13 }
 0x1d9   : > { %5283 = vmatpush.bf16.msrb.mxu3 %v6954_v50  ;;  %v7415_v18 = vld [vmem:[%s9384_s21 + $0xaf0] sm:$0xf0]  ;;  %v8450_v27 = vld [vmem:[%s9384_s21 + $0xbe4] sm:$0xf]  ;;  %v7290_v32 = vor.u32 %v8386_v14, %v7287_v16  ;;  %v5016_v43 = vpop.f32.mrf.mxu2  ;;  %v5029_v45 = vpop.f32.mrf.mxu3 }
 0x1da   : > { %5245 = vmatpush.bf16.msrb.mxu0 %v6554_v57  ;;  %v7543_v28 = vld [vmem:[%s9384_s21 + $0xbf0] sm:$0xf0]  ;;  %v7418_v33 = vor.u32 %v8418_v17, %v7415_v18  ;;  %v8350_v34 = vld [vmem:[%s9384_s21 + $0x8c4] sm:$0xf] }
 0x1db   : > { %v7143_v35 = vld [vmem:[%s9384_s21 + $0x8d0] sm:$0xf0]  ;;  %v8382_v36 = vld [vmem:[%s9384_s21 + $0x9c4] sm:$0xf]  ;;  %v7546_v37 = vor.u32 %v8450_v27, %v7543_v28  ;;  %v5040_v10 = vpop.f32.mrf.mxu0 }
 0x1dc   : > { %5258 = vmatpush.bf16.msrb.mxu1 %v6682_v61  ;;  %5271 = vmatpush.bf16.msrb.mxu2 %v6810_v62  ;;  %v7271_v38 = vld [vmem:[%s9384_s21 + $0x9d0] sm:$0xf0]  ;;  %v8414_v39 = vld [vmem:[%s9384_s21 + $0xac4] sm:$0xf]  ;;  %v7146_v44 = vor.u32 %v8350_v34, %v7143_v35  ;;  %v5041_v16 = vadd.f32 %v5040_v10, %v9810_v19  ;;  %v5053_v17 = vpop.f32.mrf.mxu1 }
 0x1dd   : > { %5284 = vmatpush.bf16.msrb.mxu3 %v6938_v6  ;;  %v7399_v40 = vld [vmem:[%s9384_s21 + $0xad0] sm:$0xf0]  ;;  %v8446_v41 = vld [vmem:[%s9384_s21 + $0xbc4] sm:$0xf]  ;;  %v7274_v46 = vor.u32 %v8382_v36, %v7271_v38 }
 0x1de   : > { %5246 = vmatpush.bf16.msrb.mxu0 %v6538_v15  ;;  %v7527_v42 = vld [vmem:[%s9384_s21 + $0xbd0] sm:$0xf0]  ;;  %v7402_v47 = vor.u32 %v8414_v39, %v7399_v40  ;;  %v8346_v48 = vld [vmem:[%s9384_s21 + $0x8a4] sm:$0xf]  ;;  %v5054_v29 = vadd.f32 %v5053_v17, %v5041_v16 }
 0x1df   : > { %v7127_v49 = vld [vmem:[%s9384_s21 + $0x8b0] sm:$0xf0]  ;;  %v8378_v50 = vld [vmem:[%s9384_s21 + $0x9a4] sm:$0xf]  ;;  %v7530_v51 = vor.u32 %v8446_v41, %v7527_v42 }
 0x1e0   : > { %5259 = vmatpush.bf16.msrb.mxu1 %v6666_v24  ;;  %5272 = vmatpush.bf16.msrb.mxu2 %v6794_v25  ;;  %v7255_v52 = vld [vmem:[%s9384_s21 + $0x9b0] sm:$0xf0]  ;;  %v8410_v53 = vld [vmem:[%s9384_s21 + $0xaa4] sm:$0xf]  ;;  %v7130_v57 = vor.u32 %v8346_v48, %v7127_v49 }
 0x1e1   : > { %5285 = vmatpush.bf16.msrb.mxu3 %v6922_v30  ;;  %v7383_v54 = vld [vmem:[%s9384_s21 + $0xab0] sm:$0xf0]  ;;  %5247 = vmatmul.bf16.vlgmr.msrb.gmra.mxu0 %v9532_v0  ;;  %v8442_v55 = vld [vmem:[%s9384_s21 + $0xba4] sm:$0xf]  ;;  %v7258_v58 = vor.u32 %v8378_v50, %v7255_v52 }
 0x1e2   : > { %5291 = vmatpush.bf16.msra.mxu0 %v7162_v31  ;;  %v7511_v56 = vld [vmem:[%s9384_s21 + $0xbb0] sm:$0xf0]  ;;  %v7386_v59 = vor.u32 %v8410_v53, %v7383_v54  ;;  %v8342_v61 = vld [vmem:[%s9384_s21 + $0x884] sm:$0xf] }
 0x1e3   : > { %5273 = vmatmul.bf16.vlgmr.msrb.gmra.mxu2 %v9527_v60  ;;  %5260 = vmatmul.bf16.vlgmr.msrb.gmra.mxu1 %v9536_v2  ;;  %v7111_v62 = vld [vmem:[%s9384_s21 + $0x890] sm:$0xf0]  ;;  %v8374_v63 = vld [vmem:[%s9384_s21 + $0x984] sm:$0xf]  ;;  %v7514_v3 = vor.u32 %v8442_v55, %v7511_v56  ;;  %v5066_v35 = vpop.f32.mrf.mxu2 }
 0x1e4   : > { %5304 = vmatpush.bf16.msra.mxu1 %v7290_v32  ;;  %5317 = vmatpush.bf16.msra.mxu2 %v7418_v33  ;;  %v7239_v4 = vld [vmem:[%s9384_s21 + $0x990] sm:$0xf0]  ;;  %v8406_v5 = vld [vmem:[%s9384_s21 + $0xa84] sm:$0xf]  ;;  %v7114_v9 = vor.u32 %v8342_v61, %v7111_v62  ;;  %v5067_v40 = vadd.f32 %v5066_v35, %v5054_v29  ;;  %v5055_v52 = vpop.f32.mrf.mxu1 }
 0x1e5   : > { %5330 = vmatpush.bf16.msra.mxu3 %v7546_v37  ;;  %v7367_v6 = vld [vmem:[%s9384_s21 + $0xa90] sm:$0xf0]  ;;  %v8438_v7 = vld [vmem:[%s9384_s21 + $0xb84] sm:$0xf]  ;;  %v7242_v11 = vor.u32 %v8374_v63, %v7239_v4 }
 0x1e6   : > { %5286 = vmatmul.bf16.vlgmr.msrb.gmra.mxu3 %v9534_v1  ;;  %5292 = vmatpush.bf16.msra.mxu0 %v7146_v44  ;;  %v7495_v8 = vld [vmem:[%s9384_s21 + $0xb90] sm:$0xf0]  ;;  %v7370_v12 = vor.u32 %v8406_v5, %v7367_v6  ;;  %v8338_v13 = vld [vmem:[%s9384_s21 + $0x864] sm:$0xf]  ;;  %v5079_v41 = vpop.f32.mrf.mxu3 }
 0x1e7   : > { %v7095_v14 = vld [vmem:[%s9384_s21 + $0x870] sm:$0xf0]  ;;  %v8370_v15 = vld [vmem:[%s9384_s21 + $0x964] sm:$0xf]  ;;  %v7498_v18 = vor.u32 %v8438_v7, %v7495_v8  ;;  %v9859_v45 = vadd.f32 %v5079_v41, %v5067_v40 }
 0x1e8   : > { %5305 = vmatpush.bf16.msra.mxu1 %v7274_v46  ;;  %5318 = vmatpush.bf16.msra.mxu2 %v7402_v47  ;;  %v7223_v23 = vld [vmem:[%s9384_s21 + $0x970] sm:$0xf0]  ;;  %v8402_v24 = vld [vmem:[%s9384_s21 + $0xa64] sm:$0xf]  ;;  %v7098_v30 = vor.u32 %v8338_v13, %v7095_v14  ;;  %v5042_v46 = vpop.f32.mrf.mxu0 }
 0x1e9   : > { %5331 = vmatpush.bf16.msra.mxu3 %v7530_v51  ;;  %v7351_v25 = vld [vmem:[%s9384_s21 + $0xa70] sm:$0xf0]  ;;  %v8434_v27 = vld [vmem:[%s9384_s21 + $0xb64] sm:$0xf]  ;;  %v7226_v19 = vor.u32 %v8370_v15, %v7223_v23 }
 0x1ea   : > { %5293 = vmatpush.bf16.msra.mxu0 %v7130_v57  ;;  %v7479_v28 = vld [vmem:[%s9384_s21 + $0xb70] sm:$0xf0]  ;;  %v7354_v31 = vor.u32 %v8402_v24, %v7351_v25  ;;  %v8334_v32 = vld [vmem:[%s9384_s21 + $0x844] sm:$0xf] }
 0x1eb   : > { %v7079_v33 = vld [vmem:[%s9384_s21 + $0x850] sm:$0xf0]  ;;  %v8366_v34 = vld [vmem:[%s9384_s21 + $0x944] sm:$0xf]  ;;  %v7482_v36 = vor.u32 %v8434_v27, %v7479_v28  ;;  %v5068_v7 = vpop.f32.mrf.mxu2 }
 0x1ec   : > { %5306 = vmatpush.bf16.msra.mxu1 %v7258_v58  ;;  %5319 = vmatpush.bf16.msra.mxu2 %v7386_v59  ;;  %v7207_v37 = vld [vmem:[%s9384_s21 + $0x950] sm:$0xf0]  ;;  %v8398_v38 = vld [vmem:[%s9384_s21 + $0xa44] sm:$0xf]  ;;  %v7082_v44 = vor.u32 %v8334_v32, %v7079_v33 }
 0x1ed   : > { %5332 = vmatpush.bf16.msra.mxu3 %v7514_v3  ;;  %v7335_v39 = vld [vmem:[%s9384_s21 + $0xa50] sm:$0xf0]  ;;  %v8430_v42 = vld [vmem:[%s9384_s21 + $0xb44] sm:$0xf]  ;;  %v7210_v47 = vor.u32 %v8366_v34, %v7207_v37 }
 0x1ee   : > { %5294 = vmatpush.bf16.msra.mxu0 %v7114_v9  ;;  %v7463_v43 = vld [vmem:[%s9384_s21 + $0xb50] sm:$0xf0]  ;;  %v7338_v48 = vor.u32 %v8398_v38, %v7335_v39  ;;  %v8330_v49 = vld [vmem:[%s9384_s21 + $0x824] sm:$0xf] }
 0x1ef   : > { %v7063_v50 = vld [vmem:[%s9384_s21 + $0x830] sm:$0xf0]  ;;  %v8362_v51 = vld [vmem:[%s9384_s21 + $0x924] sm:$0xf]  ;;  %v7466_v53 = vor.u32 %v8430_v42, %v7463_v43 }
 0x1f0   : > { %5307 = vmatpush.bf16.msra.mxu1 %v7242_v11  ;;  %5320 = vmatpush.bf16.msra.mxu2 %v7370_v12  ;;  %v7191_v54 = vld [vmem:[%s9384_s21 + $0x930] sm:$0xf0]  ;;  %v8394_v55 = vld [vmem:[%s9384_s21 + $0xa24] sm:$0xf]  ;;  %v7066_v59 = vor.u32 %v8330_v49, %v7063_v50  ;;  %v5081_v12 = vpop.f32.mrf.mxu3 }
 0x1f1   : > { %5333 = vmatpush.bf16.msra.mxu3 %v7498_v18  ;;  %v7319_v56 = vld [vmem:[%s9384_s21 + $0xa30] sm:$0xf0]  ;;  %v8426_v57 = vld [vmem:[%s9384_s21 + $0xb24] sm:$0xf]  ;;  %v7194_v63 = vor.u32 %v8362_v51, %v7191_v54 }
 0x1f2   : > { %5295 = vmatpush.bf16.msra.mxu0 %v7098_v30  ;;  %v7447_v58 = vld [vmem:[%s9384_s21 + $0xb30] sm:$0xf0]  ;;  %v8326_v61 = vld [vmem:[%s9384_s21 + $0x804] sm:$0xf]  ;;  %v7322_v3 = vor.u32 %v8394_v55, %v7319_v56 }
 0x1f3   : > { %v7047_v62 = vld [vmem:[%s9384_s21 + $0x810] sm:$0xf0]  ;;  %v8358_v4 = vld [vmem:[%s9384_s21 + $0x904] sm:$0xf]  ;;  %v7450_v8 = vor.u32 %v8426_v57, %v7447_v58 }
 0x1f4   : > { %5308 = vmatpush.bf16.msra.mxu1 %v7226_v19  ;;  %5321 = vmatpush.bf16.msra.mxu2 %v7354_v31  ;;  %v7175_v5 = vld [vmem:[%s9384_s21 + $0x910] sm:$0xf0]  ;;  %v8390_v6 = vld [vmem:[%s9384_s21 + $0xa04] sm:$0xf]  ;;  %v7050_v16 = vor.u32 %v8326_v61, %v7047_v62 }
 0x1f5   : > { %5334 = vmatpush.bf16.msra.mxu3 %v7482_v36  ;;  %v7303_v9 = vld [vmem:[%s9384_s21 + $0xa10] sm:$0xf0]  ;;  %v8422_v10 = vld [vmem:[%s9384_s21 + $0xb04] sm:$0xf]  ;;  %v7178_v24 = vor.u32 %v8358_v4, %v7175_v5 }
 0x1f6   : > { %5296 = vmatpush.bf16.msra.mxu0 %v7082_v44  ;;  %v7431_v11 = vld [vmem:[%s9384_s21 + $0xb10] sm:$0xf0]  ;;  %v8482_v13 = vld [vmem:[%s9384_s21 + $0xce4] sm:$0xf]  ;;  %v7306_v25 = vor.u32 %v8390_v6, %v7303_v9 }
 0x1f7   : > { %v7671_v14 = vld [vmem:[%s9384_s21 + $0xcf0] sm:$0xf0]  ;;  %v8514_v15 = vld [vmem:[%s9384_s21 + $0xde4] sm:$0xf]  ;;  %v7434_v29 = vor.u32 %v8422_v10, %v7431_v11 }
 0x1f8   : > { %5309 = vmatpush.bf16.msra.mxu1 %v7210_v47  ;;  %5322 = vmatpush.bf16.msra.mxu2 %v7338_v48  ;;  %v7799_v17 = vld [vmem:[%s9384_s21 + $0xdf0] sm:$0xf0]  ;;  %v8546_v18 = vld [vmem:[%s9384_s21 + $0xee4] sm:$0xf]  ;;  %v7674_v30 = vor.u32 %v8482_v13, %v7671_v14  ;;  %v8654_v48 = vld [vmem:[#allocation1] sm:$0xff] }
 0x1f9   : > { %5335 = vmatpush.bf16.msra.mxu3 %v7466_v53  ;;  %v7927_v23 = vld [vmem:[%s9384_s21 + $0xef0] sm:$0xf0]  ;;  %v8578_v27 = vld [vmem:[%s9384_s21 + $0xfe4] sm:$0xf]  ;;  %v7802_v19 = vor.u32 %v8514_v15, %v7799_v17  ;;  %v8655_v53 = vld [vmem:[#allocation1 + $0x12] sm:$0xff] }
 0x1fa   : > { %5297 = vmatpush.bf16.msra.mxu0 %v7066_v59  ;;  %v8055_v28 = vld [vmem:[%s9384_s21 + $0xff0] sm:$0xf0]  ;;  %v7930_v31 = vor.u32 %v8546_v18, %v7927_v23  ;;  %v8478_v32 = vld [vmem:[%s9384_s21 + $0xcc4] sm:$0xf] }
 0x1fb   : > { %v7655_v33 = vld [vmem:[%s9384_s21 + $0xcd0] sm:$0xf0]  ;;  %v8510_v34 = vld [vmem:[%s9384_s21 + $0xdc4] sm:$0xf]  ;;  %v8058_v35 = vor.u32 %v8578_v27, %v8055_v28 }
 0x1fc   : > { %5310 = vmatpush.bf16.msra.mxu1 %v7194_v63  ;;  %5323 = vmatpush.bf16.msra.mxu2 %v7322_v3  ;;  %v7783_v36 = vld [vmem:[%s9384_s21 + $0xdd0] sm:$0xf0]  ;;  %v8542_v37 = vld [vmem:[%s9384_s21 + $0xec4] sm:$0xf]  ;;  %v7658_v41 = vor.u32 %v8478_v32, %v7655_v33 }
 0x1fd   : > { %5336 = vmatpush.bf16.msra.mxu3 %v7450_v8  ;;  %v7911_v38 = vld [vmem:[%s9384_s21 + $0xed0] sm:$0xf0]  ;;  %v8574_v39 = vld [vmem:[%s9384_s21 + $0xfc4] sm:$0xf]  ;;  %v7786_v42 = vor.u32 %v8510_v34, %v7783_v36  ;;  %v5092_v8 = vpop.f32.mrf.mxu0 }
 0x1fe   : > { %5298 = vmatpush.bf16.msra.mxu0 %v7050_v16  ;;  %v8039_v40 = vld [vmem:[%s9384_s21 + $0xfd0] sm:$0xf0]  ;;  %v7914_v43 = vor.u32 %v8542_v37, %v7911_v38  ;;  %v8474_v44 = vld [vmem:[%s9384_s21 + $0xca4] sm:$0xf]  ;;  %v5093_v11 = vadd.f32 %v5092_v8, %v9859_v45 }
 0x1ff   : > { %v7639_v46 = vld [vmem:[%s9384_s21 + $0xcb0] sm:$0xf0]  ;;  %v8506_v47 = vld [vmem:[%s9384_s21 + $0xda4] sm:$0xf]  ;;  %v8042_v49 = vor.u32 %v8574_v39, %v8039_v40 }
 0x200   : > { %5311 = vmatpush.bf16.msra.mxu1 %v7178_v24  ;;  %5324 = vmatpush.bf16.msra.mxu2 %v7306_v25  ;;  %v7767_v50 = vld [vmem:[%s9384_s21 + $0xdb0] sm:$0xf0]  ;;  %v8538_v51 = vld [vmem:[%s9384_s21 + $0xea4] sm:$0xf]  ;;  %v7642_v58 = vor.u32 %v8474_v44, %v7639_v46 }
 0x201   : > { %5337 = vmatpush.bf16.msra.mxu3 %v7434_v29  ;;  %5299 = vmatmul.bf16.vlgmr.msra.gmra.mxu0 %v8654_v48  ;;  %v7895_v52 = vld [vmem:[%s9384_s21 + $0xeb0] sm:$0xf0]  ;;  %v8656_v54 = vld [vmem:[#allocation1 + $0x9] sm:$0xff]  ;;  %v7770_v59 = vor.u32 %v8506_v47, %v7767_v50 }
 0x202   : > { %5343 = vmatpush.bf16.msrb.mxu0 %v7674_v30  ;;  %v8570_v55 = vld [vmem:[%s9384_s21 + $0xfa4] sm:$0xf]  ;;  %v8023_v56 = vld [vmem:[%s9384_s21 + $0xfb0] sm:$0xf0]  ;;  %v7898_v61 = vor.u32 %v8538_v51, %v7895_v52 }
 0x203   : > { %5325 = vmatmul.bf16.vlgmr.msra.gmra.mxu2 %v8655_v53  ;;  %5312 = vmatmul.bf16.vlgmr.msra.gmra.mxu1 %v8656_v54  ;;  %v8657_v57 = vld [vmem:[#allocation1 + $0x1b] sm:$0xff]  ;;  %v8470_v62 = vld [vmem:[%s9384_s21 + $0xc84] sm:$0xf]  ;;  %v8026_v4 = vor.u32 %v8570_v55, %v8023_v56 }
 0x204   : > { %5356 = vmatpush.bf16.msrb.mxu1 %v7802_v19  ;;  %5369 = vmatpush.bf16.msrb.mxu2 %v7930_v31  ;;  %v7623_v63 = vld [vmem:[%s9384_s21 + $0xc90] sm:$0xf0]  ;;  %v8502_v3 = vld [vmem:[%s9384_s21 + $0xd84] sm:$0xf]  ;;  %v5105_v13 = vpop.f32.mrf.mxu1 }
 0x205   : > { %5382 = vmatpush.bf16.msrb.mxu3 %v8058_v35  ;;  %v7751_v5 = vld [vmem:[%s9384_s21 + $0xd90] sm:$0xf0]  ;;  %v8534_v6 = vld [vmem:[%s9384_s21 + $0xe84] sm:$0xf]  ;;  %v7626_v12 = vor.u32 %v8470_v62, %v7623_v63  ;;  %v5106_v24 = vadd.f32 %v5105_v13, %v5093_v11  ;;  %v5094_v44 = vpop.f32.mrf.mxu0  ;;  %v6141_v13 = vld [vmem:[%s9384_s21 + $0xe8] sm:$0xf] }
 0x206   : > { %5338 = vmatmul.bf16.vlgmr.msra.gmra.mxu3 %v8657_v57  ;;  %5344 = vmatpush.bf16.msrb.mxu0 %v7658_v41  ;;  %v7879_v7 = vld [vmem:[%s9384_s21 + $0xe90] sm:$0xf0]  ;;  %v8566_v9 = vld [vmem:[%s9384_s21 + $0xf84] sm:$0xf]  ;;  %v7754_v14 = vor.u32 %v8502_v3, %v7751_v5  ;;  %v6109_v44 = vld [vmem:[%s9384_s21 + $0xa8] sm:$0xf] }
 0x207   : > { %v8007_v10 = vld [vmem:[%s9384_s21 + $0xf90] sm:$0xf0]  ;;  %v7882_v15 = vor.u32 %v8534_v6, %v7879_v7  ;;  %v8466_v16 = vld [vmem:[%s9384_s21 + $0xc64] sm:$0xf] }
 0x208   : > { %5357 = vmatpush.bf16.msrb.mxu1 %v7786_v42  ;;  %5370 = vmatpush.bf16.msrb.mxu2 %v7914_v43  ;;  %v7607_v17 = vld [vmem:[%s9384_s21 + $0xc70] sm:$0xf0]  ;;  %v8498_v18 = vld [vmem:[%s9384_s21 + $0xd64] sm:$0xf]  ;;  %v8010_v23 = vor.u32 %v8566_v9, %v8007_v10 }
 0x209   : > { %5383 = vmatpush.bf16.msrb.mxu3 %v8042_v49  ;;  %v7735_v25 = vld [vmem:[%s9384_s21 + $0xd70] sm:$0xf0]  ;;  %v8530_v27 = vld [vmem:[%s9384_s21 + $0xe64] sm:$0xf]  ;;  %v7610_v30 = vor.u32 %v8466_v16, %v7607_v17  ;;  %v5118_v36 = vpop.f32.mrf.mxu2  ;;  %v5131_v41 = vpop.f32.mrf.mxu3 }
 0x20a   : > { %5345 = vmatpush.bf16.msrb.mxu0 %v7642_v58  ;;  %v7863_v45 = vld [vmem:[%s9384_s21 + $0xe70] sm:$0xf0]  ;;  %v8562_v28 = vld [vmem:[%s9384_s21 + $0xf64] sm:$0xf]  ;;  %v7738_v19 = vor.u32 %v8498_v18, %v7735_v25  ;;  %v5119_v40 = vadd.f32 %v5118_v36, %v5106_v24  ;;  %v8133_v18 = vld [vmem:[%s9384_s21 + $0x1f4] sm:$0xf0] }
 0x20b   : > { %v7991_v29 = vld [vmem:[%s9384_s21 + $0xf70] sm:$0xf0]  ;;  %v7866_v31 = vor.u32 %v8530_v27, %v7863_v45  ;;  %v8462_v32 = vld [vmem:[%s9384_s21 + $0xc44] sm:$0xf]  ;;  %v8165_v24 = vld [vmem:[%s9384_s21 + $0x2f4] sm:$0xf0] }
 0x20c   : > { %5358 = vmatpush.bf16.msrb.mxu1 %v7770_v59  ;;  %5371 = vmatpush.bf16.msrb.mxu2 %v7898_v61  ;;  %v7591_v33 = vld [vmem:[%s9384_s21 + $0xc50] sm:$0xf0]  ;;  %v8494_v34 = vld [vmem:[%s9384_s21 + $0xd44] sm:$0xf]  ;;  %v7994_v35 = vor.u32 %v8562_v28, %v7991_v29  ;;  %v5107_v47 = vpop.f32.mrf.mxu1  ;;  %v9926_v48 = vadd.f32 %v5131_v41, %v5119_v40  ;;  %v6525_v45 = vld [vmem:[%s9384_s21 + $0x3e8] sm:$0xf] }
 0x20d   : > { %5384 = vmatpush.bf16.msrb.mxu3 %v8026_v4  ;;  %v7719_v37 = vld [vmem:[%s9384_s21 + $0xd50] sm:$0xf0]  ;;  %v8526_v38 = vld [vmem:[%s9384_s21 + $0xe44] sm:$0xf]  ;;  %v7594_v46 = vor.u32 %v8462_v32, %v7591_v33  ;;  %v8197_v28 = vld [vmem:[%s9384_s21 + $0x3f4] sm:$0xf0] }
 0x20e   : > { %5346 = vmatpush.bf16.msrb.mxu0 %v7626_v12  ;;  %v7847_v39 = vld [vmem:[%s9384_s21 + $0xe50] sm:$0xf0]  ;;  %v8558_v42 = vld [vmem:[%s9384_s21 + $0xf44] sm:$0xf]  ;;  %v7722_v49 = vor.u32 %v8494_v34, %v7719_v37  ;;  %v6125_v32 = vld [vmem:[%s9384_s21 + $0xc8] sm:$0xf] }
 0x20f   : > { %v7975_v43 = vld [vmem:[%s9384_s21 + $0xf50] sm:$0xf0]  ;;  %v7850_v50 = vor.u32 %v8526_v38, %v7847_v39  ;;  %v8458_v51 = vld [vmem:[%s9384_s21 + $0xc24] sm:$0xf]  ;;  %v8097_v33 = vld [vmem:[%s9384_s21 + $0xd4] sm:$0xf0] }
 0x210   : > { %5359 = vmatpush.bf16.msrb.mxu1 %v7754_v14  ;;  %5372 = vmatpush.bf16.msrb.mxu2 %v7882_v15  ;;  %v7575_v52 = vld [vmem:[%s9384_s21 + $0xc30] sm:$0xf0]  ;;  %v8490_v53 = vld [vmem:[%s9384_s21 + $0xd24] sm:$0xf]  ;;  %v7978_v54 = vor.u32 %v8558_v42, %v7975_v43  ;;  %v8101_v14 = vld [vmem:[%s9384_s21 + $0xf4] sm:$0xf0]  ;;  %v6126_v41 = vor.u32 %v8097_v33, %v6125_v32 }
 0x211   : > { %5385 = vmatpush.bf16.msrb.mxu3 %v8010_v23  ;;  %v7703_v55 = vld [vmem:[%s9384_s21 + $0xd30] sm:$0xf0]  ;;  %v8522_v56 = vld [vmem:[%s9384_s21 + $0xe24] sm:$0xf]  ;;  %v7578_v61 = vor.u32 %v8458_v51, %v7575_v52  ;;  %v5120_v12 = vpop.f32.mrf.mxu2  ;;  %v6269_v15 = vld [vmem:[%s9384_s21 + $0x1e8] sm:$0xf]  ;;  %v5133_v16 = vpop.f32.mrf.mxu3 }
 0x212   : > { %5347 = vmatpush.bf16.msrb.mxu0 %v7610_v30  ;;  %v7831_v57 = vld [vmem:[%s9384_s21 + $0xe30] sm:$0xf0]  ;;  %v8554_v58 = vld [vmem:[%s9384_s21 + $0xf24] sm:$0xf]  ;;  %v7706_v3 = vor.u32 %v8490_v53, %v7703_v55  ;;  %v6397_v23 = vld [vmem:[%s9384_s21 + $0x2e8] sm:$0xf]  ;;  %v6142_v30 = vor.u32 %v8101_v14, %v6141_v13 }
 0x213   : > { %v7959_v59 = vld [vmem:[%s9384_s21 + $0xf30] sm:$0xf0]  ;;  %v8454_v62 = vld [vmem:[%s9384_s21 + $0xc04] sm:$0xf]  ;;  %v7834_v4 = vor.u32 %v8522_v56, %v7831_v57  ;;  %v6253_v34 = vld [vmem:[%s9384_s21 + $0x1c8] sm:$0xf] }
 0x214   : > { %5360 = vmatpush.bf16.msrb.mxu1 %v7738_v19  ;;  %5373 = vmatpush.bf16.msrb.mxu2 %v7866_v31  ;;  %v7559_v63 = vld [vmem:[%s9384_s21 + $0xc10] sm:$0xf0]  ;;  %v8486_v5 = vld [vmem:[%s9384_s21 + $0xd04] sm:$0xf]  ;;  %v7962_v8 = vor.u32 %v8554_v58, %v7959_v59  ;;  %v6270_v19 = vor.u32 %v8133_v18, %v6269_v15  ;;  %v6398_v31 = vor.u32 %v8165_v24, %v6397_v23  ;;  %v8129_v36 = vld [vmem:[%s9384_s21 + $0x1d4] sm:$0xf0] }
 0x215   : > { %5386 = vmatpush.bf16.msrb.mxu3 %v7994_v35  ;;  %v7687_v6 = vld [vmem:[%s9384_s21 + $0xd10] sm:$0xf0]  ;;  %v8518_v7 = vld [vmem:[%s9384_s21 + $0xe04] sm:$0xf]  ;;  %v7562_v17 = vor.u32 %v8454_v62, %v7559_v63  ;;  %v6526_v35 = vor.u32 %v8197_v28, %v6525_v45  ;;  %v6381_v37 = vld [vmem:[%s9384_s21 + $0x2c8] sm:$0xf]  ;;  %v6254_v42 = vor.u32 %v8129_v36, %v6253_v34 }
 0x216   : > { %5348 = vmatpush.bf16.msrb.mxu0 %v7594_v46  ;;  %v7815_v9 = vld [vmem:[%s9384_s21 + $0xe10] sm:$0xf0]  ;;  %v8550_v10 = vld [vmem:[%s9384_s21 + $0xf04] sm:$0xf]  ;;  %v7690_v25 = vor.u32 %v8486_v5, %v7687_v6  ;;  %v8161_v38 = vld [vmem:[%s9384_s21 + $0x2d4] sm:$0xf0] }
 0x217   : > { %v7943_v11 = vld [vmem:[%s9384_s21 + $0xf10] sm:$0xf0]  ;;  %v7818_v27 = vor.u32 %v8518_v7, %v7815_v9  ;;  %v6509_v39 = vld [vmem:[%s9384_s21 + $0x3c8] sm:$0xf]  ;;  %v8193_v40 = vld [vmem:[%s9384_s21 + $0x3d4] sm:$0xf0]  ;;  %v6382_v43 = vor.u32 %v8161_v38, %v6381_v37 }
 0x218   : > { %5361 = vmatpush.bf16.msrb.mxu1 %v7722_v49  ;;  %5374 = vmatpush.bf16.msrb.mxu2 %v7850_v50  ;;  %v7946_v29 = vor.u32 %v8550_v10, %v7943_v11  ;;  %v8093_v46 = vld [vmem:[%s9384_s21 + $0xb4] sm:$0xf0]  ;;  %v6237_v47 = vld [vmem:[%s9384_s21 + $0x1a8] sm:$0xf]  ;;  %v8658_v49 = vld [vmem:[#allocation1 + $0x24] sm:$0xff]  ;;  %v6510_v50 = vor.u32 %v8193_v40, %v6509_v39 }
 0x219   : > { %5387 = vmatpush.bf16.msrb.mxu3 %v7978_v54  ;;  %v8125_v51 = vld [vmem:[%s9384_s21 + $0x1b4] sm:$0xf0]  ;;  %v6365_v52 = vld [vmem:[%s9384_s21 + $0x2a8] sm:$0xf]  ;;  %v8659_v54 = vld [vmem:[#allocation1 + $0x36] sm:$0xff]  ;;  %v6110_v59 = vor.u32 %v8093_v46, %v6109_v44 }
 0x21a   : > { %5349 = vmatpush.bf16.msrb.mxu0 %v7578_v61  ;;  %v8157_v53 = vld [vmem:[%s9384_s21 + $0x2b4] sm:$0xf0]  ;;  %v8660_v55 = vld [vmem:[#allocation1 + $0x2d] sm:$0xff]  ;;  %v6238_v61 = vor.u32 %v8125_v51, %v6237_v47 }
 0x21b   : > { %v6493_v56 = vld [vmem:[%s9384_s21 + $0x3a8] sm:$0xf]  ;;  %v8189_v57 = vld [vmem:[%s9384_s21 + $0x3b4] sm:$0xf0]  ;;  %v6366_v62 = vor.u32 %v8157_v53, %v6365_v52 }
 0x21c   : > { %5362 = vmatpush.bf16.msrb.mxu1 %v7706_v3  ;;  %5375 = vmatpush.bf16.msrb.mxu2 %v7834_v4  ;;  %v8661_v58 = vld [vmem:[#allocation1 + $0x3f] sm:$0xff]  ;;  %v6093_v63 = vld [vmem:[%s9384_s21 + $0x88] sm:$0xf]  ;;  %v6494_v5 = vor.u32 %v8189_v57, %v6493_v56 }
 0x21d   : > { %5388 = vmatpush.bf16.msrb.mxu3 %v7962_v8  ;;  %v8089_v3 = vld [vmem:[%s9384_s21 + $0x94] sm:$0xf0]  ;;  %v6221_v4 = vld [vmem:[%s9384_s21 + $0x188] sm:$0xf] }
 0x21e   : > { %5350 = vmatpush.bf16.msrb.mxu0 %v7562_v17  ;;  %v8121_v6 = vld [vmem:[%s9384_s21 + $0x194] sm:$0xf0]  ;;  %v6349_v7 = vld [vmem:[%s9384_s21 + $0x288] sm:$0xf]  ;;  %v5144_v9 = vpop.f32.mrf.mxu0  ;;  %v6094_v13 = vor.u32 %v8089_v3, %v6093_v63 }
 0x21f   : > { %v8153_v8 = vld [vmem:[%s9384_s21 + $0x294] sm:$0xf0]  ;;  %v6477_v10 = vld [vmem:[%s9384_s21 + $0x388] sm:$0xf]  ;;  %v5145_v12 = vadd.f32 %v5144_v9, %v9926_v48  ;;  %v6222_v15 = vor.u32 %v8121_v6, %v6221_v4 }
 0x220   : > { %5363 = vmatpush.bf16.msrb.mxu1 %v7690_v25  ;;  %5376 = vmatpush.bf16.msrb.mxu2 %v7818_v27  ;;  %v8185_v11 = vld [vmem:[%s9384_s21 + $0x394] sm:$0xf0]  ;;  %v5157_v14 = vpop.f32.mrf.mxu1  ;;  %v6350_v16 = vor.u32 %v8153_v8, %v6349_v7  ;;  %v6077_v17 = vld [vmem:[%s9384_s21 + $0x68] sm:$0xf] }
 0x221   : > { %5389 = vmatpush.bf16.msrb.mxu3 %v7946_v29  ;;  %5351 = vmatmul.bf16.vlgmr.msrb.gmra.mxu0 %v8658_v49  ;;  %v8085_v18 = vld [vmem:[%s9384_s21 + $0x74] sm:$0xf0]  ;;  %v6205_v23 = vld [vmem:[%s9384_s21 + $0x168] sm:$0xf]  ;;  %v6478_v24 = vor.u32 %v8185_v11, %v6477_v10  ;;  %v5158_v25 = vadd.f32 %v5157_v14, %v5145_v12 }
 0x222   : > { %5395 = vmatpush.bf16.msra.mxu0 %v6142_v30  ;;  %v8117_v27 = vld [vmem:[%s9384_s21 + $0x174] sm:$0xf0]  ;;  %v6333_v45 = vld [vmem:[%s9384_s21 + $0x268] sm:$0xf]  ;;  %v6078_v30 = vor.u32 %v8085_v18, %v6077_v17 }
 0x223   : > { %5377 = vmatmul.bf16.vlgmr.msrb.gmra.mxu2 %v8659_v54  ;;  %5364 = vmatmul.bf16.vlgmr.msrb.gmra.mxu1 %v8660_v55  ;;  %v8149_v48 = vld [vmem:[%s9384_s21 + $0x274] sm:$0xf0]  ;;  %v6461_v28 = vld [vmem:[%s9384_s21 + $0x368] sm:$0xf] }
 0x224   : > { %5408 = vmatpush.bf16.msra.mxu1 %v6270_v19  ;;  %5421 = vmatpush.bf16.msra.mxu2 %v6398_v31  ;;  %v8181_v29 = vld [vmem:[%s9384_s21 + $0x374] sm:$0xf0]  ;;  %v6206_v19 = vor.u32 %v8117_v27, %v6205_v23  ;;  %v6334_v31 = vor.u32 %v8149_v48, %v6333_v45  ;;  %v6061_v32 = vld [vmem:[%s9384_s21 + $0x48] sm:$0xf] }
 0x225   : > { %5434 = vmatpush.bf16.msra.mxu3 %v6526_v35  ;;  %v8081_v33 = vld [vmem:[%s9384_s21 + $0x54] sm:$0xf0]  ;;  %v6189_v34 = vld [vmem:[%s9384_s21 + $0x148] sm:$0xf]  ;;  %v6462_v35 = vor.u32 %v8181_v29, %v6461_v28 }
 0x226   : > { %5390 = vmatmul.bf16.vlgmr.msrb.gmra.mxu3 %v8661_v58  ;;  %5396 = vmatpush.bf16.msra.mxu0 %v6126_v41  ;;  %v5170_v36 = vpop.f32.mrf.mxu2  ;;  %v8113_v37 = vld [vmem:[%s9384_s21 + $0x154] sm:$0xf0]  ;;  %v6317_v38 = vld [vmem:[%s9384_s21 + $0x248] sm:$0xf]  ;;  %v5146_v44 = vpop.f32.mrf.mxu0  ;;  %v6062_v46 = vor.u32 %v8081_v33, %v6061_v32 }
 0x227   : > { %v8145_v39 = vld [vmem:[%s9384_s21 + $0x254] sm:$0xf0]  ;;  %v5171_v40 = vadd.f32 %v5170_v36, %v5158_v25  ;;  %v6045_v52 = vld [vmem:[%s9384_s21 + $0x28] sm:$0xf] }
 0x228   : > { %5409 = vmatpush.bf16.msra.mxu1 %v6254_v42  ;;  %5422 = vmatpush.bf16.msra.mxu2 %v6382_v43  ;;  %v6445_v42 = vld [vmem:[%s9384_s21 + $0x348] sm:$0xf]  ;;  %v8177_v43 = vld [vmem:[%s9384_s21 + $0x354] sm:$0xf0]  ;;  %v5159_v47 = vpop.f32.mrf.mxu1  ;;  %v6318_v51 = vor.u32 %v8145_v39, %v6317_v38 }
 0x229   : > { %5435 = vmatpush.bf16.msra.mxu3 %v6510_v50  ;;  %v5183_v41 = vpop.f32.mrf.mxu3  ;;  %v6190_v50 = vor.u32 %v8113_v37, %v6189_v34  ;;  %v8077_v53 = vld [vmem:[%s9384_s21 + $0x34] sm:$0xf0]  ;;  %v6173_v54 = vld [vmem:[%s9384_s21 + $0x128] sm:$0xf]  ;;  %v6446_v55 = vor.u32 %v8177_v43, %v6445_v42 }
 0x22a   : > { %5397 = vmatpush.bf16.msra.mxu0 %v6110_v59  ;;  %v9993_v49 = vadd.f32 %v5183_v41, %v5171_v40  ;;  %v8109_v56 = vld [vmem:[%s9384_s21 + $0x134] sm:$0xf0]  ;;  %v6301_v57 = vld [vmem:[%s9384_s21 + $0x228] sm:$0xf] }
 0x22b   : > { %v8141_v58 = vld [vmem:[%s9384_s21 + $0x234] sm:$0xf0]  ;;  %v6429_v59 = vld [vmem:[%s9384_s21 + $0x328] sm:$0xf]  ;;  %v6174_v4 = vor.u32 %v8109_v56, %v6173_v54 }
 0x22c   : > { %5410 = vmatpush.bf16.msra.mxu1 %v6238_v61  ;;  %5423 = vmatpush.bf16.msra.mxu2 %v6366_v62  ;;  %v8173_v61 = vld [vmem:[%s9384_s21 + $0x334] sm:$0xf0]  ;;  %v6046_v62 = vor.u32 %v8077_v53, %v6045_v52  ;;  %v6029_v63 = vld [vmem:[%s9384_s21 + $0x8] sm:$0xf] }
 0x22d   : > { %5436 = vmatpush.bf16.msra.mxu3 %v6494_v5  ;;  %v8073_v3 = vld [vmem:[%s9384_s21 + $0x14] sm:$0xf0]  ;;  %v6302_v5 = vor.u32 %v8141_v58, %v6301_v57  ;;  %v6157_v6 = vld [vmem:[%s9384_s21 + $0x108] sm:$0xf]  ;;  %v6430_v9 = vor.u32 %v8173_v61, %v6429_v59 }
 0x22e   : > { %5398 = vmatpush.bf16.msra.mxu0 %v6094_v13  ;;  %v8105_v7 = vld [vmem:[%s9384_s21 + $0x114] sm:$0xf0]  ;;  %v6285_v8 = vld [vmem:[%s9384_s21 + $0x208] sm:$0xf]  ;;  %v5172_v13 = vpop.f32.mrf.mxu2  ;;  %v6030_v18 = vor.u32 %v8073_v3, %v6029_v63 }
 0x22f   : > { %v8137_v10 = vld [vmem:[%s9384_s21 + $0x214] sm:$0xf0]  ;;  %v6413_v11 = vld [vmem:[%s9384_s21 + $0x308] sm:$0xf]  ;;  %v6158_v27 = vor.u32 %v8105_v7, %v6157_v6 }
 0x230   : > { %5411 = vmatpush.bf16.msra.mxu1 %v6222_v15  ;;  %5424 = vmatpush.bf16.msra.mxu2 %v6350_v16  ;;  %v8169_v12 = vld [vmem:[%s9384_s21 + $0x314] sm:$0xf0]  ;;  %v6653_v14 = vld [vmem:[%s9384_s21 + $0x4e8] sm:$0xf]  ;;  %v6286_v45 = vor.u32 %v8137_v10, %v6285_v8 }
 0x231   : > { %5437 = vmatpush.bf16.msra.mxu3 %v6478_v24  ;;  %v8229_v15 = vld [vmem:[%s9384_s21 + $0x4f4] sm:$0xf0]  ;;  %v6781_v16 = vld [vmem:[%s9384_s21 + $0x5e8] sm:$0xf]  ;;  %v5185_v17 = vpop.f32.mrf.mxu3  ;;  %v6414_v29 = vor.u32 %v8169_v12, %v6413_v11 }
 0x232   : > { %5399 = vmatpush.bf16.msra.mxu0 %v6078_v30  ;;  %v8261_v23 = vld [vmem:[%s9384_s21 + $0x5f4] sm:$0xf0]  ;;  %v6909_v24 = vld [vmem:[%s9384_s21 + $0x6e8] sm:$0xf]  ;;  %v6654_v30 = vor.u32 %v8229_v15, %v6653_v14 }
 0x233   : > { %v8293_v25 = vld [vmem:[%s9384_s21 + $0x6f4] sm:$0xf0]  ;;  %v7037_v48 = vld [vmem:[%s9384_s21 + $0x7e8] sm:$0xf] }
 0x234   : > { %5412 = vmatpush.bf16.msra.mxu1 %v6206_v19  ;;  %5425 = vmatpush.bf16.msra.mxu2 %v6334_v31  ;;  %v8325_v28 = vld [vmem:[%s9384_s21 + $0x7f4] sm:$0xf0]  ;;  %v6782_v19 = vor.u32 %v8261_v23, %v6781_v16  ;;  %v6910_v31 = vor.u32 %v8293_v25, %v6909_v24  ;;  %v6637_v32 = vld [vmem:[%s9384_s21 + $0x4c8] sm:$0xf] }
 0x235   : > { %5438 = vmatpush.bf16.msra.mxu3 %v6462_v35  ;;  %v8225_v33 = vld [vmem:[%s9384_s21 + $0x4d4] sm:$0xf0]  ;;  %v6765_v34 = vld [vmem:[%s9384_s21 + $0x5c8] sm:$0xf]  ;;  %v7038_v35 = vor.u32 %v8325_v28, %v7037_v48 }
 0x236   : > { %5400 = vmatpush.bf16.msra.mxu0 %v6062_v46  ;;  %v8257_v36 = vld [vmem:[%s9384_s21 + $0x5d4] sm:$0xf0]  ;;  %v6893_v37 = vld [vmem:[%s9384_s21 + $0x6c8] sm:$0xf]  ;;  %v6638_v41 = vor.u32 %v8225_v33, %v6637_v32 }
 0x237   : > { %v8289_v38 = vld [vmem:[%s9384_s21 + $0x6d4] sm:$0xf0]  ;;  %v7021_v39 = vld [vmem:[%s9384_s21 + $0x7c8] sm:$0xf]  ;;  %v6766_v42 = vor.u32 %v8257_v36, %v6765_v34 }
 0x238   : > { %5413 = vmatpush.bf16.msra.mxu1 %v6190_v50  ;;  %5426 = vmatpush.bf16.msra.mxu2 %v6318_v51  ;;  %v8321_v40 = vld [vmem:[%s9384_s21 + $0x7d4] sm:$0xf0]  ;;  %v6894_v43 = vor.u32 %v8289_v38, %v6893_v37  ;;  %v6621_v44 = vld [vmem:[%s9384_s21 + $0x4a8] sm:$0xf] }
 0x239   : > { %5439 = vmatpush.bf16.msra.mxu3 %v6446_v55  ;;  %v8221_v46 = vld [vmem:[%s9384_s21 + $0x4b4] sm:$0xf0]  ;;  %v6749_v47 = vld [vmem:[%s9384_s21 + $0x5a8] sm:$0xf]  ;;  %v7022_v50 = vor.u32 %v8321_v40, %v7021_v39 }
 0x23a   : > { %5401 = vmatpush.bf16.msra.mxu0 %v6046_v62  ;;  %v8253_v51 = vld [vmem:[%s9384_s21 + $0x5b4] sm:$0xf0]  ;;  %v6877_v52 = vld [vmem:[%s9384_s21 + $0x6a8] sm:$0xf]  ;;  %v6622_v56 = vor.u32 %v8221_v46, %v6621_v44 }
 0x23b   : > { %v8285_v53 = vld [vmem:[%s9384_s21 + $0x6b4] sm:$0xf0]  ;;  %v7005_v54 = vld [vmem:[%s9384_s21 + $0x7a8] sm:$0xf]  ;;  %v6750_v57 = vor.u32 %v8253_v51, %v6749_v47 }
 0x23c   : > { %5414 = vmatpush.bf16.msra.mxu1 %v6174_v4  ;;  %5427 = vmatpush.bf16.msra.mxu2 %v6302_v5  ;;  %v8317_v55 = vld [vmem:[%s9384_s21 + $0x7b4] sm:$0xf0]  ;;  %v6878_v58 = vor.u32 %v8285_v53, %v6877_v52  ;;  %v6605_v59 = vld [vmem:[%s9384_s21 + $0x488] sm:$0xf] }
 0x23d   : > { %5440 = vmatpush.bf16.msra.mxu3 %v6430_v9  ;;  %v8217_v61 = vld [vmem:[%s9384_s21 + $0x494] sm:$0xf0]  ;;  %v6733_v62 = vld [vmem:[%s9384_s21 + $0x588] sm:$0xf]  ;;  %v7006_v63 = vor.u32 %v8317_v55, %v7005_v54 }
 0x23e   : > { %5402 = vmatpush.bf16.msra.mxu0 %v6030_v18  ;;  %v8249_v3 = vld [vmem:[%s9384_s21 + $0x594] sm:$0xf0]  ;;  %v6861_v4 = vld [vmem:[%s9384_s21 + $0x688] sm:$0xf]  ;;  %v6606_v8 = vor.u32 %v8217_v61, %v6605_v59  ;;  %v5196_v9 = vpop.f32.mrf.mxu0 }
 0x23f   : > { %v8281_v5 = vld [vmem:[%s9384_s21 + $0x694] sm:$0xf0]  ;;  %v6989_v6 = vld [vmem:[%s9384_s21 + $0x788] sm:$0xf]  ;;  %v6734_v10 = vor.u32 %v8249_v3, %v6733_v62 }
 0x240   : > { %5415 = vmatpush.bf16.msra.mxu1 %v6158_v27  ;;  %5428 = vmatpush.bf16.msra.mxu2 %v6286_v45  ;;  %v8313_v7 = vld [vmem:[%s9384_s21 + $0x794] sm:$0xf0]  ;;  %v6862_v11 = vor.u32 %v8281_v5, %v6861_v4  ;;  %v6589_v12 = vld [vmem:[%s9384_s21 + $0x468] sm:$0xf]  ;;  %v5209_v15 = vpop.f32.mrf.mxu1 }
 0x241   : > { %5441 = vmatpush.bf16.msra.mxu3 %v6414_v29  ;;  %5403 = vmatmul.bf16.vlgmr.msra.gmra.mxu0 %v9491_v21  ;;  %v8213_v13 = vld [vmem:[%s9384_s21 + $0x474] sm:$0xf0]  ;;  %v6717_v14 = vld [vmem:[%s9384_s21 + $0x568] sm:$0xf]  ;;  %v6990_v16 = vor.u32 %v8313_v7, %v6989_v6  ;;  %v5210_v24 = vadd.f32 %v5209_v15, %v5196_v9 }
 0x242   : > { %5447 = vmatpush.bf16.msrb.mxu0 %v6654_v30  ;;  %v8245_v17 = vld [vmem:[%s9384_s21 + $0x574] sm:$0xf0]  ;;  %v6845_v18 = vld [vmem:[%s9384_s21 + $0x668] sm:$0xf]  ;;  %v6590_v45 = vor.u32 %v8213_v13, %v6589_v12 }
 0x243   : > { %5429 = vmatmul.bf16.vlgmr.msra.gmra.mxu2 %v9489_v20  ;;  %5416 = vmatmul.bf16.vlgmr.msra.gmra.mxu1 %v9498_v26  ;;  %v8277_v23 = vld [vmem:[%s9384_s21 + $0x674] sm:$0xf0]  ;;  %v6973_v25 = vld [vmem:[%s9384_s21 + $0x768] sm:$0xf]  ;;  %v6718_v48 = vor.u32 %v8245_v17, %v6717_v14 }
 0x244   : > { %5460 = vmatpush.bf16.msrb.mxu1 %v6782_v19  ;;  %5473 = vmatpush.bf16.msrb.mxu2 %v6910_v31  ;;  %v8309_v27 = vld [vmem:[%s9384_s21 + $0x774] sm:$0xf0]  ;;  %v6846_v28 = vor.u32 %v8277_v23, %v6845_v18  ;;  %v6573_v29 = vld [vmem:[%s9384_s21 + $0x448] sm:$0xf] }
 0x245   : > { %5486 = vmatpush.bf16.msrb.mxu3 %v7038_v35  ;;  %v8209_v30 = vld [vmem:[%s9384_s21 + $0x454] sm:$0xf0]  ;;  %v6701_v19 = vld [vmem:[%s9384_s21 + $0x548] sm:$0xf]  ;;  %v6974_v32 = vor.u32 %v8309_v27, %v6973_v25 }
 0x246   : > { %5442 = vmatmul.bf16.vlgmr.msra.gmra.mxu3 %v9493_v22  ;;  %5448 = vmatpush.bf16.msrb.mxu0 %v6638_v41  ;;  %v5222_v31 = vpop.f32.mrf.mxu2  ;;  %v8241_v33 = vld [vmem:[%s9384_s21 + $0x554] sm:$0xf0]  ;;  %v6829_v34 = vld [vmem:[%s9384_s21 + $0x648] sm:$0xf]  ;;  %v6574_v40 = vor.u32 %v8209_v30, %v6573_v29 }
 0x247   : > { %v8273_v35 = vld [vmem:[%s9384_s21 + $0x654] sm:$0xf0]  ;;  %v5223_v36 = vadd.f32 %v5222_v31, %v5210_v24  ;;  %v6957_v38 = vld [vmem:[%s9384_s21 + $0x748] sm:$0xf] }
 0x248   : > { %5461 = vmatpush.bf16.msrb.mxu1 %v6766_v42  ;;  %5474 = vmatpush.bf16.msrb.mxu2 %v6894_v43  ;;  %v8305_v39 = vld [vmem:[%s9384_s21 + $0x754] sm:$0xf0]  ;;  %v5198_v42 = vpop.f32.mrf.mxu0  ;;  %v6702_v43 = vor.u32 %v8241_v33, %v6701_v19  ;;  %v6830_v44 = vor.u32 %v8273_v35, %v6829_v34  ;;  %v6557_v46 = vld [vmem:[%s9384_s21 + $0x428] sm:$0xf]  ;;  %v5211_v51 = vpop.f32.mrf.mxu1 }
 0x249   : > { %5487 = vmatpush.bf16.msrb.mxu3 %v7022_v50  ;;  %v5235_v37 = vpop.f32.mrf.mxu3  ;;  %v8205_v47 = vld [vmem:[%s9384_s21 + $0x434] sm:$0xf0]  ;;  %v6685_v50 = vld [vmem:[%s9384_s21 + $0x528] sm:$0xf]  ;;  %v6958_v52 = vor.u32 %v8305_v39, %v6957_v38 }
 0x24a   : > { %5449 = vmatpush.bf16.msrb.mxu0 %v6622_v56  ;;  %v10063_v41 = vadd.f32 %v5235_v37, %v5223_v36  ;;  %v8237_v53 = vld [vmem:[%s9384_s21 + $0x534] sm:$0xf0]  ;;  %v6813_v54 = vld [vmem:[%s9384_s21 + $0x628] sm:$0xf] }
 0x24b   : > { %v8269_v55 = vld [vmem:[%s9384_s21 + $0x634] sm:$0xf0]  ;;  %v6941_v56 = vld [vmem:[%s9384_s21 + $0x728] sm:$0xf]  ;;  %v6686_v62 = vor.u32 %v8237_v53, %v6685_v50 }
 0x24c   : > { %5462 = vmatpush.bf16.msrb.mxu1 %v6750_v57  ;;  %5475 = vmatpush.bf16.msrb.mxu2 %v6878_v58  ;;  %v8301_v57 = vld [vmem:[%s9384_s21 + $0x734] sm:$0xf0]  ;;  %v6558_v58 = vor.u32 %v8205_v47, %v6557_v46  ;;  %v6541_v59 = vld [vmem:[%s9384_s21 + $0x408] sm:$0xf] }
 0x24d   : > { %5488 = vmatpush.bf16.msrb.mxu3 %v7006_v63  ;;  %v8201_v61 = vld [vmem:[%s9384_s21 + $0x414] sm:$0xf0]  ;;  %v6814_v63 = vor.u32 %v8269_v55, %v6813_v54  ;;  %v6669_v3 = vld [vmem:[%s9384_s21 + $0x508] sm:$0xf]  ;;  %v6942_v7 = vor.u32 %v8301_v57, %v6941_v56 }
 0x24e   : > { %5450 = vmatpush.bf16.msrb.mxu0 %v6606_v8  ;;  %v8233_v4 = vld [vmem:[%s9384_s21 + $0x514] sm:$0xf0]  ;;  %v6797_v5 = vld [vmem:[%s9384_s21 + $0x608] sm:$0xf]  ;;  %v5224_v6 = vpop.f32.mrf.mxu2  ;;  %v6542_v15 = vor.u32 %v8201_v61, %v6541_v59 }
 0x24f   : > { %v8265_v8 = vld [vmem:[%s9384_s21 + $0x614] sm:$0xf0]  ;;  %v6925_v9 = vld [vmem:[%s9384_s21 + $0x708] sm:$0xf]  ;;  %v6670_v23 = vor.u32 %v8233_v4, %v6669_v3 }
 0x250   : > { %5463 = vmatpush.bf16.msrb.mxu1 %v6734_v10  ;;  %5476 = vmatpush.bf16.msrb.mxu2 %v6862_v11  ;;  %v8297_v10 = vld [vmem:[%s9384_s21 + $0x714] sm:$0xf0]  ;;  %v7165_v12 = vld [vmem:[%s9384_s21 + $0x8e8] sm:$0xf]  ;;  %v6798_v24 = vor.u32 %v8265_v8, %v6797_v5 }
 0x251   : > { %5489 = vmatpush.bf16.msrb.mxu3 %v6990_v16  ;;  %v5237_v11 = vpop.f32.mrf.mxu3  ;;  %v8357_v13 = vld [vmem:[%s9384_s21 + $0x8f4] sm:$0xf0]  ;;  %v7293_v14 = vld [vmem:[%s9384_s21 + $0x9e8] sm:$0xf] }
 0x252   : > { %5451 = vmatpush.bf16.msrb.mxu0 %v6590_v45  ;;  %v8389_v16 = vld [vmem:[%s9384_s21 + $0x9f4] sm:$0xf0]  ;;  %v7421_v17 = vld [vmem:[%s9384_s21 + $0xae8] sm:$0xf]  ;;  %v6926_v45 = vor.u32 %v8297_v10, %v6925_v9 }
 0x253   : > { %v8421_v18 = vld [vmem:[%s9384_s21 + $0xaf4] sm:$0xf0]  ;;  %v7549_v25 = vld [vmem:[%s9384_s21 + $0xbe8] sm:$0xf] }
 0x254   : > { %5464 = vmatpush.bf16.msrb.mxu1 %v6718_v48  ;;  %5477 = vmatpush.bf16.msrb.mxu2 %v6846_v28  ;;  %v8453_v27 = vld [vmem:[%s9384_s21 + $0xbf4] sm:$0xf0]  ;;  %v7166_v48 = vor.u32 %v8357_v13, %v7165_v12  ;;  %v7294_v28 = vor.u32 %v8389_v16, %v7293_v14  ;;  %v7422_v29 = vor.u32 %v8421_v18, %v7421_v17  ;;  %v7149_v30 = vld [vmem:[%s9384_s21 + $0x8c8] sm:$0xf] }
 0x255   : > { %5490 = vmatpush.bf16.msrb.mxu3 %v6974_v32  ;;  %v8353_v19 = vld [vmem:[%s9384_s21 + $0x8d4] sm:$0xf0]  ;;  %v7277_v31 = vld [vmem:[%s9384_s21 + $0x9c8] sm:$0xf]  ;;  %v7550_v32 = vor.u32 %v8453_v27, %v7549_v25 }
 0x256   : > { %5452 = vmatpush.bf16.msrb.mxu0 %v6574_v40  ;;  %v8385_v33 = vld [vmem:[%s9384_s21 + $0x9d4] sm:$0xf0]  ;;  %v7405_v34 = vld [vmem:[%s9384_s21 + $0xac8] sm:$0xf]  ;;  %v7150_v38 = vor.u32 %v8353_v19, %v7149_v30 }
 0x257   : > { %v8417_v35 = vld [vmem:[%s9384_s21 + $0xad4] sm:$0xf0]  ;;  %v7533_v36 = vld [vmem:[%s9384_s21 + $0xbc8] sm:$0xf]  ;;  %v7278_v39 = vor.u32 %v8385_v33, %v7277_v31 }
 0x258   : > { %5465 = vmatpush.bf16.msrb.mxu1 %v6702_v43  ;;  %5478 = vmatpush.bf16.msrb.mxu2 %v6830_v44  ;;  %v8449_v37 = vld [vmem:[%s9384_s21 + $0xbd4] sm:$0xf0]  ;;  %v7406_v40 = vor.u32 %v8417_v35, %v7405_v34  ;;  %v7133_v42 = vld [vmem:[%s9384_s21 + $0x8a8] sm:$0xf] }
 0x259   : > { %5491 = vmatpush.bf16.msrb.mxu3 %v6958_v52  ;;  %v8349_v43 = vld [vmem:[%s9384_s21 + $0x8b4] sm:$0xf0]  ;;  %v7261_v44 = vld [vmem:[%s9384_s21 + $0x9a8] sm:$0xf]  ;;  %v7534_v46 = vor.u32 %v8449_v37, %v7533_v36 }
 0x25a   : > { %5453 = vmatpush.bf16.msrb.mxu0 %v6558_v58  ;;  %v8381_v47 = vld [vmem:[%s9384_s21 + $0x9b4] sm:$0xf0]  ;;  %v7389_v50 = vld [vmem:[%s9384_s21 + $0xaa8] sm:$0xf]  ;;  %v7134_v54 = vor.u32 %v8349_v43, %v7133_v42 }
 0x25b   : > { %v8413_v51 = vld [vmem:[%s9384_s21 + $0xab4] sm:$0xf0]  ;;  %v7517_v52 = vld [vmem:[%s9384_s21 + $0xba8] sm:$0xf]  ;;  %v7262_v55 = vor.u32 %v8381_v47, %v7261_v44 }
 0x25c   : > { %5466 = vmatpush.bf16.msrb.mxu1 %v6686_v62  ;;  %5479 = vmatpush.bf16.msrb.mxu2 %v6814_v63  ;;  %v8445_v53 = vld [vmem:[%s9384_s21 + $0xbb4] sm:$0xf0]  ;;  %v7390_v56 = vor.u32 %v8413_v51, %v7389_v50  ;;  %v7117_v57 = vld [vmem:[%s9384_s21 + $0x888] sm:$0xf] }
 0x25d   : > { %5492 = vmatpush.bf16.msrb.mxu3 %v6942_v7  ;;  %v8345_v58 = vld [vmem:[%s9384_s21 + $0x894] sm:$0xf0]  ;;  %v7245_v59 = vld [vmem:[%s9384_s21 + $0x988] sm:$0xf]  ;;  %v7518_v61 = vor.u32 %v8445_v53, %v7517_v52 }
 0x25e   : > { %5454 = vmatpush.bf16.msrb.mxu0 %v6542_v15  ;;  %v8377_v62 = vld [vmem:[%s9384_s21 + $0x994] sm:$0xf0]  ;;  %v7373_v63 = vld [vmem:[%s9384_s21 + $0xa88] sm:$0xf]  ;;  %v7118_v6 = vor.u32 %v8345_v58, %v7117_v57  ;;  %v5248_v7 = vpop.f32.mrf.mxu0 }
 0x25f   : > { %v8409_v3 = vld [vmem:[%s9384_s21 + $0xa94] sm:$0xf0]  ;;  %v7501_v4 = vld [vmem:[%s9384_s21 + $0xb88] sm:$0xf]  ;;  %v7246_v8 = vor.u32 %v8377_v62, %v7245_v59  ;;  %v5249_v13 = vadd.f32 %v5248_v7, %v10063_v41 }
 0x260   : > { %5467 = vmatpush.bf16.msrb.mxu1 %v6670_v23  ;;  %5480 = vmatpush.bf16.msrb.mxu2 %v6798_v24  ;;  %v8441_v5 = vld [vmem:[%s9384_s21 + $0xb94] sm:$0xf0]  ;;  %v7374_v9 = vor.u32 %v8409_v3, %v7373_v63  ;;  %v7101_v10 = vld [vmem:[%s9384_s21 + $0x868] sm:$0xf]  ;;  %v5261_v14 = vpop.f32.mrf.mxu1 }
 0x261   : > { %5493 = vmatpush.bf16.msrb.mxu3 %v6926_v45  ;;  %5455 = vmatmul.bf16.vlgmr.msrb.gmra.mxu0 %v9532_v0  ;;  %v8341_v11 = vld [vmem:[%s9384_s21 + $0x874] sm:$0xf0]  ;;  %v7229_v12 = vld [vmem:[%s9384_s21 + $0x968] sm:$0xf]  ;;  %v7502_v15 = vor.u32 %v8441_v5, %v7501_v4  ;;  %v5262_v25 = vadd.f32 %v5261_v14, %v5249_v13 }
 0x262   : > { %5499 = vmatpush.bf16.msra.mxu0 %v7166_v48  ;;  %v8373_v16 = vld [vmem:[%s9384_s21 + $0x974] sm:$0xf0]  ;;  %v7357_v17 = vld [vmem:[%s9384_s21 + $0xa68] sm:$0xf]  ;;  %v7102_v27 = vor.u32 %v8341_v11, %v7101_v10 }
 0x263   : > { %5481 = vmatmul.bf16.vlgmr.msrb.gmra.mxu2 %v9527_v60  ;;  %5468 = vmatmul.bf16.vlgmr.msrb.gmra.mxu1 %v9536_v2  ;;  %v8405_v18 = vld [vmem:[%s9384_s21 + $0xa74] sm:$0xf0]  ;;  %v7485_v23 = vld [vmem:[%s9384_s21 + $0xb68] sm:$0xf]  ;;  %v7230_v41 = vor.u32 %v8373_v16, %v7229_v12 }
 0x264   : > { %5512 = vmatpush.bf16.msra.mxu1 %v7294_v28  ;;  %5525 = vmatpush.bf16.msra.mxu2 %v7422_v29  ;;  %v8437_v24 = vld [vmem:[%s9384_s21 + $0xb74] sm:$0xf0]  ;;  %v7358_v45 = vor.u32 %v8405_v18, %v7357_v17  ;;  %v7085_v48 = vld [vmem:[%s9384_s21 + $0x848] sm:$0xf] }
 0x265   : > { %5538 = vmatpush.bf16.msra.mxu3 %v7550_v32  ;;  %v8337_v28 = vld [vmem:[%s9384_s21 + $0x854] sm:$0xf0]  ;;  %v7213_v29 = vld [vmem:[%s9384_s21 + $0x948] sm:$0xf]  ;;  %v7486_v19 = vor.u32 %v8437_v24, %v7485_v23 }
 0x266   : > { %5494 = vmatmul.bf16.vlgmr.msrb.gmra.mxu3 %v9534_v1  ;;  %5500 = vmatpush.bf16.msra.mxu0 %v7150_v38  ;;  %v5274_v30 = vpop.f32.mrf.mxu2  ;;  %v8369_v31 = vld [vmem:[%s9384_s21 + $0x954] sm:$0xf0]  ;;  %v7341_v32 = vld [vmem:[%s9384_s21 + $0xa48] sm:$0xf]  ;;  %v7086_v38 = vor.u32 %v8337_v28, %v7085_v48 }
 0x267   : > { %v8401_v33 = vld [vmem:[%s9384_s21 + $0xa54] sm:$0xf0]  ;;  %v5275_v34 = vadd.f32 %v5274_v30, %v5262_v25  ;;  %v7469_v36 = vld [vmem:[%s9384_s21 + $0xb48] sm:$0xf]  ;;  %v7214_v42 = vor.u32 %v8369_v31, %v7213_v29 }
 0x268   : > { %5513 = vmatpush.bf16.msra.mxu1 %v7278_v39  ;;  %5526 = vmatpush.bf16.msra.mxu2 %v7406_v40  ;;  %v8433_v37 = vld [vmem:[%s9384_s21 + $0xb54] sm:$0xf0]  ;;  %v5250_v40 = vpop.f32.mrf.mxu0  ;;  %v7342_v43 = vor.u32 %v8401_v33, %v7341_v32  ;;  %v7069_v44 = vld [vmem:[%s9384_s21 + $0x828] sm:$0xf]  ;;  %v5263_v50 = vpop.f32.mrf.mxu1 }
 0x269   : > { %5539 = vmatpush.bf16.msra.mxu3 %v7534_v46  ;;  %v5287_v35 = vpop.f32.mrf.mxu3  ;;  %v8333_v46 = vld [vmem:[%s9384_s21 + $0x834] sm:$0xf0]  ;;  %v7197_v47 = vld [vmem:[%s9384_s21 + $0x928] sm:$0xf]  ;;  %v7470_v51 = vor.u32 %v8433_v37, %v7469_v36 }
 0x26a   : > { %5501 = vmatpush.bf16.msra.mxu0 %v7134_v54  ;;  %v10134_v39 = vadd.f32 %v5287_v35, %v5275_v34  ;;  %v8365_v52 = vld [vmem:[%s9384_s21 + $0x934] sm:$0xf0]  ;;  %v7325_v53 = vld [vmem:[%s9384_s21 + $0xa28] sm:$0xf]  ;;  %v7070_v57 = vor.u32 %v8333_v46, %v7069_v44 }
 0x26b   : > { %v8397_v54 = vld [vmem:[%s9384_s21 + $0xa34] sm:$0xf0]  ;;  %v7053_v58 = vld [vmem:[%s9384_s21 + $0x808] sm:$0xf] }
 0x26c   : > { %5514 = vmatpush.bf16.msra.mxu1 %v7262_v55  ;;  %5527 = vmatpush.bf16.msra.mxu2 %v7390_v56  ;;  %v7453_v55 = vld [vmem:[%s9384_s21 + $0xb28] sm:$0xf]  ;;  %v8429_v56 = vld [vmem:[%s9384_s21 + $0xb34] sm:$0xf0]  ;;  %v7326_v62 = vor.u32 %v8397_v54, %v7325_v53 }
 0x26d   : > { %5540 = vmatpush.bf16.msra.mxu3 %v7518_v61  ;;  %v8329_v59 = vld [vmem:[%s9384_s21 + $0x814] sm:$0xf0]  ;;  %v7198_v61 = vor.u32 %v8365_v52, %v7197_v47  ;;  %v7181_v63 = vld [vmem:[%s9384_s21 + $0x908] sm:$0xf] }
 0x26e   : > { %5502 = vmatpush.bf16.msra.mxu0 %v7118_v6  ;;  %v8361_v3 = vld [vmem:[%s9384_s21 + $0x914] sm:$0xf0]  ;;  %v7309_v4 = vld [vmem:[%s9384_s21 + $0xa08] sm:$0xf]  ;;  %v5276_v5 = vpop.f32.mrf.mxu2  ;;  %v7454_v6 = vor.u32 %v8429_v56, %v7453_v55  ;;  %v7054_v14 = vor.u32 %v8329_v59, %v7053_v58 }
 0x26f   : > { %v8393_v7 = vld [vmem:[%s9384_s21 + $0xa14] sm:$0xf0]  ;;  %v7677_v11 = vld [vmem:[%s9384_s21 + $0xce8] sm:$0xf]  ;;  %v7182_v18 = vor.u32 %v8361_v3, %v7181_v63 }
 0x270   : > { %5515 = vmatpush.bf16.msra.mxu1 %v7246_v8  ;;  %5528 = vmatpush.bf16.msra.mxu2 %v7374_v9  ;;  %v7437_v8 = vld [vmem:[%s9384_s21 + $0xb08] sm:$0xf]  ;;  %v8425_v9 = vld [vmem:[%s9384_s21 + $0xb14] sm:$0xf0]  ;;  %v7310_v23 = vor.u32 %v8393_v7, %v7309_v4 }
 0x271   : > { %5541 = vmatpush.bf16.msra.mxu3 %v7502_v15  ;;  %v5289_v10 = vpop.f32.mrf.mxu3  ;;  %v8485_v12 = vld [vmem:[%s9384_s21 + $0xcf4] sm:$0xf0]  ;;  %v7805_v13 = vld [vmem:[%s9384_s21 + $0xde8] sm:$0xf] }
 0x272   : > { %5503 = vmatpush.bf16.msra.mxu0 %v7102_v27  ;;  %v8517_v15 = vld [vmem:[%s9384_s21 + $0xdf4] sm:$0xf0]  ;;  %v7933_v16 = vld [vmem:[%s9384_s21 + $0xee8] sm:$0xf]  ;;  %v7438_v27 = vor.u32 %v8425_v9, %v7437_v8 }
 0x273   : > { %v8549_v17 = vld [vmem:[%s9384_s21 + $0xef4] sm:$0xf0]  ;;  %v8061_v24 = vld [vmem:[%s9384_s21 + $0xfe8] sm:$0xf] }
 0x274   : > { %5516 = vmatpush.bf16.msra.mxu1 %v7230_v41  ;;  %5529 = vmatpush.bf16.msra.mxu2 %v7358_v45  ;;  %v8581_v25 = vld [vmem:[%s9384_s21 + $0xff4] sm:$0xf0]  ;;  %v7678_v41 = vor.u32 %v8485_v12, %v7677_v11  ;;  %v7806_v45 = vor.u32 %v8517_v15, %v7805_v13  ;;  %v7934_v48 = vor.u32 %v8549_v17, %v7933_v16  ;;  %v7661_v28 = vld [vmem:[%s9384_s21 + $0xcc8] sm:$0xf] }
 0x275   : > { %5542 = vmatpush.bf16.msra.mxu3 %v7486_v19  ;;  %v8481_v29 = vld [vmem:[%s9384_s21 + $0xcd4] sm:$0xf0]  ;;  %v7789_v30 = vld [vmem:[%s9384_s21 + $0xdc8] sm:$0xf]  ;;  %v8062_v19 = vor.u32 %v8581_v25, %v8061_v24 }
 0x276   : > { %5504 = vmatpush.bf16.msra.mxu0 %v7086_v38  ;;  %v8513_v31 = vld [vmem:[%s9384_s21 + $0xdd4] sm:$0xf0]  ;;  %v7917_v32 = vld [vmem:[%s9384_s21 + $0xec8] sm:$0xf]  ;;  %v7662_v36 = vor.u32 %v8481_v29, %v7661_v28 }
 0x277   : > { %v8545_v33 = vld [vmem:[%s9384_s21 + $0xed4] sm:$0xf0]  ;;  %v8045_v34 = vld [vmem:[%s9384_s21 + $0xfc8] sm:$0xf]  ;;  %v7790_v37 = vor.u32 %v8513_v31, %v7789_v30 }
 0x278   : > { %5517 = vmatpush.bf16.msra.mxu1 %v7214_v42  ;;  %5530 = vmatpush.bf16.msra.mxu2 %v7342_v43  ;;  %v8577_v35 = vld [vmem:[%s9384_s21 + $0xfd4] sm:$0xf0]  ;;  %v7918_v38 = vor.u32 %v8545_v33, %v7917_v32  ;;  %v7645_v40 = vld [vmem:[%s9384_s21 + $0xca8] sm:$0xf] }
 0x279   : > { %5543 = vmatpush.bf16.msra.mxu3 %v7470_v51  ;;  %v8477_v42 = vld [vmem:[%s9384_s21 + $0xcb4] sm:$0xf0]  ;;  %v7773_v43 = vld [vmem:[%s9384_s21 + $0xda8] sm:$0xf]  ;;  %v8046_v46 = vor.u32 %v8577_v35, %v8045_v34 }
 0x27a   : > { %5505 = vmatpush.bf16.msra.mxu0 %v7070_v57  ;;  %v8662_v44 = vld [vmem:[#allocation1] sm:$0xff]  ;;  %v7901_v50 = vld [vmem:[%s9384_s21 + $0xea8] sm:$0xf]  ;;  %v7646_v57 = vor.u32 %v8477_v42, %v7645_v40 }
 0x27b   : > { %v8509_v47 = vld [vmem:[%s9384_s21 + $0xdb4] sm:$0xf0]  ;;  %v8663_v52 = vld [vmem:[#allocation1 + $0x12] sm:$0xff]  ;;  %v8664_v53 = vld [vmem:[#allocation1 + $0x9] sm:$0xff] }
 0x27c   : > { %5518 = vmatpush.bf16.msra.mxu1 %v7198_v61  ;;  %5531 = vmatpush.bf16.msra.mxu2 %v7326_v62  ;;  %v8541_v51 = vld [vmem:[%s9384_s21 + $0xeb4] sm:$0xf0]  ;;  %v8029_v54 = vld [vmem:[%s9384_s21 + $0xfa8] sm:$0xf]  ;;  %v7774_v58 = vor.u32 %v8509_v47, %v7773_v43 }
 0x27d   : > { %5544 = vmatpush.bf16.msra.mxu3 %v7454_v6  ;;  %v8573_v55 = vld [vmem:[%s9384_s21 + $0xfb4] sm:$0xf0]  ;;  %v7902_v59 = vor.u32 %v8541_v51, %v7901_v50  ;;  %v7629_v61 = vld [vmem:[%s9384_s21 + $0xc88] sm:$0xf] }
 0x27e   : > { %5506 = vmatpush.bf16.msra.mxu0 %v7054_v14  ;;  %v8665_v56 = vld [vmem:[#allocation1 + $0x1b] sm:$0xff]  ;;  %v7757_v63 = vld [vmem:[%s9384_s21 + $0xd88] sm:$0xf]  ;;  %v8030_v3 = vor.u32 %v8573_v55, %v8029_v54  ;;  %v5300_v7 = vpop.f32.mrf.mxu0 }
 0x27f   : > { %v8473_v62 = vld [vmem:[%s9384_s21 + $0xc94] sm:$0xf0]  ;;  %v7885_v5 = vld [vmem:[%s9384_s21 + $0xe88] sm:$0xf]  ;;  %v5301_v10 = vadd.f32 %v5300_v7, %v10134_v39 }
 0x280   : > { %5519 = vmatpush.bf16.msra.mxu1 %v7182_v18  ;;  %5532 = vmatpush.bf16.msra.mxu2 %v7310_v23  ;;  %v8505_v4 = vld [vmem:[%s9384_s21 + $0xd94] sm:$0xf0]  ;;  %v8013_v8 = vld [vmem:[%s9384_s21 + $0xf88] sm:$0xf]  ;;  %v7630_v11 = vor.u32 %v8473_v62, %v7629_v61  ;;  %v5313_v12 = vpop.f32.mrf.mxu1 }
 0x281   : > { %5545 = vmatpush.bf16.msra.mxu3 %v7438_v27  ;;  %5507 = vmatmul.bf16.vlgmr.msra.gmra.mxu0 %v8662_v44  ;;  %v8537_v6 = vld [vmem:[%s9384_s21 + $0xe94] sm:$0xf0]  ;;  %v7758_v13 = vor.u32 %v8505_v4, %v7757_v63  ;;  %v7613_v15 = vld [vmem:[%s9384_s21 + $0xc68] sm:$0xf]  ;;  %v5314_v23 = vadd.f32 %v5313_v12, %v5301_v10 }
 0x282   : > { %5551 = vmatpush.bf16.msrb.mxu0 %v7678_v41  ;;  %v8569_v9 = vld [vmem:[%s9384_s21 + $0xf94] sm:$0xf0]  ;;  %v7886_v14 = vor.u32 %v8537_v6, %v7885_v5  ;;  %v7741_v17 = vld [vmem:[%s9384_s21 + $0xd68] sm:$0xf] }
 0x283   : > { %5533 = vmatmul.bf16.vlgmr.msra.gmra.mxu2 %v8663_v52  ;;  %5520 = vmatmul.bf16.vlgmr.msra.gmra.mxu1 %v8664_v53  ;;  %v8469_v16 = vld [vmem:[%s9384_s21 + $0xc74] sm:$0xf0]  ;;  %v8014_v18 = vor.u32 %v8569_v9, %v8013_v8  ;;  %v7869_v25 = vld [vmem:[%s9384_s21 + $0xe68] sm:$0xf] }
 0x284   : > { %5564 = vmatpush.bf16.msrb.mxu1 %v7806_v45  ;;  %5577 = vmatpush.bf16.msrb.mxu2 %v7934_v48  ;;  %v8501_v24 = vld [vmem:[%s9384_s21 + $0xd74] sm:$0xf0]  ;;  %v7997_v27 = vld [vmem:[%s9384_s21 + $0xf68] sm:$0xf]  ;;  %v7614_v45 = vor.u32 %v8469_v16, %v7613_v15  ;;  %v8131_v15 = vld [vmem:[%s9384_s21 + $0x1ec] sm:$0xf] }
 0x285   : > { %5590 = vmatpush.bf16.msrb.mxu3 %v8062_v19  ;;  %v8533_v39 = vld [vmem:[%s9384_s21 + $0xe74] sm:$0xf0]  ;;  %v7742_v48 = vor.u32 %v8501_v24, %v7741_v17  ;;  %v7597_v29 = vld [vmem:[%s9384_s21 + $0xc48] sm:$0xf]  ;;  %v6399_v24 = vld [vmem:[%s9384_s21 + $0x2f8] sm:$0xf0] }
 0x286   : > { %5546 = vmatmul.bf16.vlgmr.msra.gmra.mxu3 %v8665_v56  ;;  %5552 = vmatpush.bf16.msrb.mxu0 %v7662_v36  ;;  %v8565_v41 = vld [vmem:[%s9384_s21 + $0xf74] sm:$0xf0]  ;;  %v7870_v28 = vor.u32 %v8533_v39, %v7869_v25  ;;  %v7725_v19 = vld [vmem:[%s9384_s21 + $0xd48] sm:$0xf]  ;;  %v5326_v32 = vpop.f32.mrf.mxu2  ;;  %v5302_v42 = vpop.f32.mrf.mxu0 }
 0x287   : > { %v8465_v30 = vld [vmem:[%s9384_s21 + $0xc54] sm:$0xf0]  ;;  %v7998_v31 = vor.u32 %v8565_v41, %v7997_v27  ;;  %v7853_v34 = vld [vmem:[%s9384_s21 + $0xe48] sm:$0xf]  ;;  %v5327_v36 = vadd.f32 %v5326_v32, %v5314_v23  ;;  %v8163_v23 = vld [vmem:[%s9384_s21 + $0x2ec] sm:$0xf] }
 0x288   : > { %5565 = vmatpush.bf16.msrb.mxu1 %v7790_v37  ;;  %5578 = vmatpush.bf16.msrb.mxu2 %v7918_v38  ;;  %v8497_v33 = vld [vmem:[%s9384_s21 + $0xd54] sm:$0xf0]  ;;  %v7981_v38 = vld [vmem:[%s9384_s21 + $0xf48] sm:$0xf]  ;;  %v7598_v43 = vor.u32 %v8465_v30, %v7597_v29  ;;  %v5315_v44 = vpop.f32.mrf.mxu1  ;;  %v8195_v27 = vld [vmem:[%s9384_s21 + $0x3ec] sm:$0xf]  ;;  %v6402_v29 = vor.u32 %v8163_v23, %v6399_v24 }
 0x289   : > { %5591 = vmatpush.bf16.msrb.mxu3 %v8046_v46  ;;  %v8529_v35 = vld [vmem:[%s9384_s21 + $0xe54] sm:$0xf0]  ;;  %v5339_v37 = vpop.f32.mrf.mxu3  ;;  %v7726_v47 = vor.u32 %v8497_v33, %v7725_v19  ;;  %v7581_v51 = vld [vmem:[%s9384_s21 + $0xc28] sm:$0xf]  ;;  %v6527_v41 = vld [vmem:[%s9384_s21 + $0x3f8] sm:$0xf0] }
 0x28a   : > { %5553 = vmatpush.bf16.msrb.mxu0 %v7646_v57  ;;  %v8561_v40 = vld [vmem:[%s9384_s21 + $0xf54] sm:$0xf0]  ;;  %v10201_v46 = vadd.f32 %v5339_v37, %v5327_v36  ;;  %v7854_v50 = vor.u32 %v8529_v35, %v7853_v34  ;;  %v7709_v53 = vld [vmem:[%s9384_s21 + $0xd28] sm:$0xf]  ;;  %v8095_v30 = vld [vmem:[%s9384_s21 + $0xcc] sm:$0xf]  ;;  %v6530_v32 = vor.u32 %v8195_v27, %v6527_v41 }
 0x28b   : > { %v8461_v52 = vld [vmem:[%s9384_s21 + $0xc34] sm:$0xf0]  ;;  %v7982_v54 = vor.u32 %v8561_v40, %v7981_v38  ;;  %v7837_v56 = vld [vmem:[%s9384_s21 + $0xe28] sm:$0xf]  ;;  %v6127_v19 = vld [vmem:[%s9384_s21 + $0xd8] sm:$0xf0] }
 0x28c   : > { %5566 = vmatpush.bf16.msrb.mxu1 %v7774_v58  ;;  %5579 = vmatpush.bf16.msrb.mxu2 %v7902_v59  ;;  %v8493_v55 = vld [vmem:[%s9384_s21 + $0xd34] sm:$0xf0]  ;;  %v7965_v58 = vld [vmem:[%s9384_s21 + $0xf28] sm:$0xf]  ;;  %v7582_v61 = vor.u32 %v8461_v52, %v7581_v51  ;;  %v6255_v33 = vld [vmem:[%s9384_s21 + $0x1d8] sm:$0xf0]  ;;  %v6130_v38 = vor.u32 %v8095_v30, %v6127_v19 }
 0x28d   : > { %5592 = vmatpush.bf16.msrb.mxu3 %v8030_v3  ;;  %v8525_v57 = vld [vmem:[%s9384_s21 + $0xe34] sm:$0xf0]  ;;  %v7565_v62 = vld [vmem:[%s9384_s21 + $0xc08] sm:$0xf]  ;;  %v7710_v3 = vor.u32 %v8493_v55, %v7709_v53  ;;  %v8159_v34 = vld [vmem:[%s9384_s21 + $0x2cc] sm:$0xf] }
 0x28e   : > { %5554 = vmatpush.bf16.msrb.mxu0 %v7630_v11  ;;  %v8557_v59 = vld [vmem:[%s9384_s21 + $0xf34] sm:$0xf0]  ;;  %v7838_v4 = vor.u32 %v8525_v57, %v7837_v56  ;;  %v7693_v5 = vld [vmem:[%s9384_s21 + $0xd08] sm:$0xf]  ;;  %v5328_v12 = vpop.f32.mrf.mxu2  ;;  %v6383_v35 = vld [vmem:[%s9384_s21 + $0x2d8] sm:$0xf0] }
 0x28f   : > { %v8457_v63 = vld [vmem:[%s9384_s21 + $0xc14] sm:$0xf0]  ;;  %v7821_v7 = vld [vmem:[%s9384_s21 + $0xe08] sm:$0xf]  ;;  %v7966_v8 = vor.u32 %v8557_v59, %v7965_v58  ;;  %v8191_v36 = vld [vmem:[%s9384_s21 + $0x3cc] sm:$0xf]  ;;  %v6386_v42 = vor.u32 %v8159_v34, %v6383_v35 }
 0x290   : > { %5567 = vmatpush.bf16.msrb.mxu1 %v7758_v13  ;;  %5580 = vmatpush.bf16.msrb.mxu2 %v7886_v14  ;;  %v8489_v6 = vld [vmem:[%s9384_s21 + $0xd14] sm:$0xf0]  ;;  %v7949_v10 = vld [vmem:[%s9384_s21 + $0xf08] sm:$0xf]  ;;  %v8099_v13 = vld [vmem:[%s9384_s21 + $0xec] sm:$0xf]  ;;  %v7566_v17 = vor.u32 %v8457_v63, %v7565_v62 }
 0x291   : > { %5593 = vmatpush.bf16.msrb.mxu3 %v8014_v18  ;;  %v8521_v9 = vld [vmem:[%s9384_s21 + $0xe14] sm:$0xf0]  ;;  %v6143_v14 = vld [vmem:[%s9384_s21 + $0xf8] sm:$0xf0]  ;;  %v5341_v16 = vpop.f32.mrf.mxu3  ;;  %v7694_v25 = vor.u32 %v8489_v6, %v7693_v5  ;;  %v8155_v53 = vld [vmem:[%s9384_s21 + $0x2ac] sm:$0xf] }
 0x292   : > { %5555 = vmatpush.bf16.msrb.mxu0 %v7614_v45  ;;  %v8553_v11 = vld [vmem:[%s9384_s21 + $0xf14] sm:$0xf0]  ;;  %v6271_v18 = vld [vmem:[%s9384_s21 + $0x1f8] sm:$0xf0]  ;;  %v7822_v39 = vor.u32 %v8521_v9, %v7821_v7  ;;  %v8667_v55 = vld [vmem:[#allocation1 + $0x36] sm:$0xff] }
 0x293   : > { %v7950_v45 = vor.u32 %v8553_v11, %v7949_v10  ;;  %v6511_v37 = vld [vmem:[%s9384_s21 + $0x3d8] sm:$0xf0]  ;;  %v8668_v56 = vld [vmem:[#allocation1 + $0x2d] sm:$0xff] }
 0x294   : > { %5568 = vmatpush.bf16.msrb.mxu1 %v7742_v48  ;;  %5581 = vmatpush.bf16.msrb.mxu2 %v7870_v28  ;;  %v6146_v48 = vor.u32 %v8099_v13, %v6143_v14  ;;  %v6274_v28 = vor.u32 %v8131_v15, %v6271_v18  ;;  %v6111_v44 = vld [vmem:[%s9384_s21 + $0xb8] sm:$0xf0]  ;;  %v6514_v51 = vor.u32 %v8191_v36, %v6511_v37  ;;  %v8187_v57 = vld [vmem:[%s9384_s21 + $0x3ac] sm:$0xf] }
 0x295   : > { %5594 = vmatpush.bf16.msrb.mxu3 %v7998_v31  ;;  %v8127_v31 = vld [vmem:[%s9384_s21 + $0x1cc] sm:$0xf]  ;;  %v6239_v52 = vld [vmem:[%s9384_s21 + $0x1b8] sm:$0xf0] }
 0x296   : > { %5556 = vmatpush.bf16.msrb.mxu0 %v7598_v43  ;;  %v6258_v40 = vor.u32 %v8127_v31, %v6255_v33  ;;  %v8091_v43 = vld [vmem:[%s9384_s21 + $0xac] sm:$0xf]  ;;  %v6495_v58 = vld [vmem:[%s9384_s21 + $0x3b8] sm:$0xf0] }
 0x297   : > { %v8669_v59 = vld [vmem:[#allocation1 + $0x3f] sm:$0xff]  ;;  %v8119_v5 = vld [vmem:[%s9384_s21 + $0x18c] sm:$0xf]  ;;  %v6498_v6 = vor.u32 %v8187_v57, %v6495_v58 }
 0x298   : > { %5569 = vmatpush.bf16.msrb.mxu1 %v7726_v47  ;;  %5582 = vmatpush.bf16.msrb.mxu2 %v7854_v50  ;;  %v8123_v47 = vld [vmem:[%s9384_s21 + $0x1ac] sm:$0xf]  ;;  %v8666_v50 = vld [vmem:[#allocation1 + $0x24] sm:$0xff] }
 0x299   : > { %5595 = vmatpush.bf16.msrb.mxu3 %v7982_v54  ;;  %v6367_v54 = vld [vmem:[%s9384_s21 + $0x2b8] sm:$0xf0]  ;;  %v6242_v62 = vor.u32 %v8123_v47, %v6239_v52  ;;  %v8183_v11 = vld [vmem:[%s9384_s21 + $0x38c] sm:$0xf] }
 0x29a   : > { %5557 = vmatpush.bf16.msrb.mxu0 %v7582_v61  ;;  %v6114_v61 = vor.u32 %v8091_v43, %v6111_v44  ;;  %v6370_v63 = vor.u32 %v8155_v53, %v6367_v54  ;;  %v6223_v7 = vld [vmem:[%s9384_s21 + $0x198] sm:$0xf0]  ;;  %v8083_v18 = vld [vmem:[%s9384_s21 + $0x6c] sm:$0xf] }
 0x29b   : > { %v6351_v9 = vld [vmem:[%s9384_s21 + $0x298] sm:$0xf0]  ;;  %v6226_v16 = vor.u32 %v8119_v5, %v6223_v7  ;;  %v8115_v24 = vld [vmem:[%s9384_s21 + $0x16c] sm:$0xf] }
 0x29c   : > { %5570 = vmatpush.bf16.msrb.mxu1 %v7710_v3  ;;  %5583 = vmatpush.bf16.msrb.mxu2 %v7838_v4  ;;  %v8087_v3 = vld [vmem:[%s9384_s21 + $0x8c] sm:$0xf]  ;;  %v6095_v4 = vld [vmem:[%s9384_s21 + $0x98] sm:$0xf0] }
 0x29d   : > { %5596 = vmatpush.bf16.msrb.mxu3 %v7966_v8  ;;  %v8151_v8 = vld [vmem:[%s9384_s21 + $0x28c] sm:$0xf]  ;;  %v6479_v12 = vld [vmem:[%s9384_s21 + $0x398] sm:$0xf0]  ;;  %v6098_v14 = vor.u32 %v8087_v3, %v6095_v4 }
 0x29e   : > { %5558 = vmatpush.bf16.msrb.mxu0 %v7566_v17  ;;  %v5352_v10 = vpop.f32.mrf.mxu0  ;;  %v6354_v17 = vor.u32 %v8151_v8, %v6351_v9  ;;  %v6079_v23 = vld [vmem:[%s9384_s21 + $0x78] sm:$0xf0]  ;;  %v8147_v41 = vld [vmem:[%s9384_s21 + $0x26c] sm:$0xf] }
 0x29f   : > { %v5353_v13 = vadd.f32 %v5352_v10, %v10201_v46  ;;  %v6207_v27 = vld [vmem:[%s9384_s21 + $0x178] sm:$0xf0]  ;;  %v8079_v19 = vld [vmem:[%s9384_s21 + $0x4c] sm:$0xf] }
 0x2a0   : > { %5571 = vmatpush.bf16.msrb.mxu1 %v7694_v25  ;;  %5584 = vmatpush.bf16.msrb.mxu2 %v7822_v39  ;;  %v5365_v15 = vpop.f32.mrf.mxu1  ;;  %v6482_v25 = vor.u32 %v8183_v11, %v6479_v12  ;;  %v6335_v46 = vld [vmem:[%s9384_s21 + $0x278] sm:$0xf0]  ;;  %v8143_v36 = vld [vmem:[%s9384_s21 + $0x24c] sm:$0xf] }
 0x2a1   : > { %5597 = vmatpush.bf16.msrb.mxu3 %v7950_v45  ;;  %5559 = vmatmul.bf16.vlgmr.msrb.gmra.mxu0 %v8666_v50  ;;  %v5366_v39 = vadd.f32 %v5365_v15, %v5353_v13  ;;  %v8179_v45 = vld [vmem:[%s9384_s21 + $0x36c] sm:$0xf]  ;;  %v6338_v30 = vor.u32 %v8147_v41, %v6335_v46  ;;  %v6063_v31 = vld [vmem:[%s9384_s21 + $0x58] sm:$0xf0] }
 0x2a2   : > { %5603 = vmatpush.bf16.msra.mxu0 %v6146_v48  ;;  %v6463_v48 = vld [vmem:[%s9384_s21 + $0x378] sm:$0xf0]  ;;  %v6066_v47 = vor.u32 %v8079_v19, %v6063_v31  ;;  %v8075_v54 = vld [vmem:[%s9384_s21 + $0x2c] sm:$0xf] }
 0x2a3   : > { %5585 = vmatmul.bf16.vlgmr.msrb.gmra.mxu2 %v8667_v55  ;;  %5572 = vmatmul.bf16.vlgmr.msrb.gmra.mxu1 %v8668_v56  ;;  %v6466_v33 = vor.u32 %v8179_v45, %v6463_v48  ;;  %v6191_v35 = vld [vmem:[%s9384_s21 + $0x158] sm:$0xf0]  ;;  %v8107_v56 = vld [vmem:[%s9384_s21 + $0x12c] sm:$0xf] }
 0x2a4   : > { %5616 = vmatpush.bf16.msra.mxu1 %v6274_v28  ;;  %5629 = vmatpush.bf16.msra.mxu2 %v6402_v29  ;;  %v6082_v28 = vor.u32 %v8083_v18, %v6079_v23  ;;  %v6210_v29 = vor.u32 %v8115_v24, %v6207_v27  ;;  %v6319_v37 = vld [vmem:[%s9384_s21 + $0x258] sm:$0xf0]  ;;  %v8071_v5 = vld [vmem:[%s9384_s21 + $0xc] sm:$0xf] }
 0x2a5   : > { %5642 = vmatpush.bf16.msra.mxu3 %v6530_v32  ;;  %v8111_v32 = vld [vmem:[%s9384_s21 + $0x14c] sm:$0xf]  ;;  %v6447_v43 = vld [vmem:[%s9384_s21 + $0x358] sm:$0xf0]  ;;  %v6322_v53 = vor.u32 %v8143_v36, %v6319_v37 }
 0x2a6   : > { %5598 = vmatmul.bf16.vlgmr.msrb.gmra.mxu3 %v8669_v59  ;;  %5604 = vmatpush.bf16.msra.mxu0 %v6130_v38  ;;  %v5378_v34 = vpop.f32.mrf.mxu2  ;;  %v5354_v44 = vpop.f32.mrf.mxu0  ;;  %v6194_v52 = vor.u32 %v8111_v32, %v6191_v35  ;;  %v6047_v55 = vld [vmem:[%s9384_s21 + $0x38] sm:$0xf0]  ;;  %v8139_v59 = vld [vmem:[%s9384_s21 + $0x22c] sm:$0xf] }
 0x2a7   : > { %v5379_v38 = vadd.f32 %v5378_v34, %v5366_v39  ;;  %v6175_v58 = vld [vmem:[%s9384_s21 + $0x138] sm:$0xf0]  ;;  %v6050_v4 = vor.u32 %v8075_v54, %v6047_v55  ;;  %v8103_v10 = vld [vmem:[%s9384_s21 + $0x10c] sm:$0xf] }
 0x2a8   : > { %5617 = vmatpush.bf16.msra.mxu1 %v6258_v40  ;;  %5630 = vmatpush.bf16.msra.mxu2 %v6386_v42  ;;  %v8175_v42 = vld [vmem:[%s9384_s21 + $0x34c] sm:$0xf]  ;;  %v5367_v50 = vpop.f32.mrf.mxu1  ;;  %v6431_v3 = vld [vmem:[%s9384_s21 + $0x338] sm:$0xf0]  ;;  %v6178_v8 = vor.u32 %v8107_v56, %v6175_v58 }
 0x2a9   : > { %5643 = vmatpush.bf16.msra.mxu3 %v6514_v51  ;;  %v5391_v40 = vpop.f32.mrf.mxu3  ;;  %v6450_v57 = vor.u32 %v8175_v42, %v6447_v43  ;;  %v6159_v11 = vld [vmem:[%s9384_s21 + $0x118] sm:$0xf0]  ;;  %v8135_v12 = vld [vmem:[%s9384_s21 + $0x20c] sm:$0xf] }
 0x2aa   : > { %5605 = vmatpush.bf16.msra.mxu0 %v6114_v61  ;;  %v5392_v51 = vadd.f32 %v5391_v40, %v5379_v38  ;;  %v6303_v61 = vld [vmem:[%s9384_s21 + $0x238] sm:$0xf0]  ;;  %v8167_v15 = vld [vmem:[%s9384_s21 + $0x30c] sm:$0xf]  ;;  %v6162_v46 = vor.u32 %v8103_v10, %v6159_v11 }
 0x2ab   : > { %v6306_v9 = vor.u32 %v8139_v59, %v6303_v61  ;;  %v6655_v18 = vld [vmem:[%s9384_s21 + $0x4f8] sm:$0xf0]  ;;  %v8259_v23 = vld [vmem:[%s9384_s21 + $0x5ec] sm:$0xf] }
 0x2ac   : > { %5618 = vmatpush.bf16.msra.mxu1 %v6242_v62  ;;  %5631 = vmatpush.bf16.msra.mxu2 %v6370_v63  ;;  %v5815_v62 = vrot.slane %v5392_v51, 6  ;;  %v8171_v63 = vld [vmem:[%s9384_s21 + $0x32c] sm:$0xf]  ;;  %v6783_v39 = vld [vmem:[%s9384_s21 + $0x5f8] sm:$0xf0] }
 0x2ad   : > { %5644 = vmatpush.bf16.msra.mxu3 %v6498_v6  ;;  %v6031_v6 = vld [vmem:[%s9384_s21 + $0x18] sm:$0xf0]  ;;  %v6434_v13 = vor.u32 %v8171_v63, %v6431_v3  ;;  %v8291_v27 = vld [vmem:[%s9384_s21 + $0x6ec] sm:$0xf]  ;;  %v6786_v19 = vor.u32 %v8259_v23, %v6783_v39 }
 0x2ae   : > { %5606 = vmatpush.bf16.msra.mxu0 %v6098_v14  ;;  %v10280_v7 = vsel %vm5818_vm0, %v9993_v49, %v5815_v62  ;;  %v6287_v14 = vld [vmem:[%s9384_s21 + $0x218] sm:$0xf0]  ;;  %v5380_v49 = vpop.f32.mrf.mxu2  ;;  %v8323_v48 = vld [vmem:[%s9384_s21 + $0x7ec] sm:$0xf] }
 0x2af   : > { %v6911_v41 = vld [vmem:[%s9384_s21 + $0x6f8] sm:$0xf0]  ;;  %v6290_v45 = vor.u32 %v8135_v12, %v6287_v14  ;;  %v8223_v32 = vld [vmem:[%s9384_s21 + $0x4cc] sm:$0xf] }
 0x2b0   : > { %5619 = vmatpush.bf16.msra.mxu1 %v6226_v16  ;;  %5632 = vmatpush.bf16.msra.mxu2 %v6354_v17  ;;  %v6415_v16 = vld [vmem:[%s9384_s21 + $0x318] sm:$0xf0]  ;;  %v8227_v17 = vld [vmem:[%s9384_s21 + $0x4ec] sm:$0xf]  ;;  %v6914_v31 = vor.u32 %v8291_v27, %v6911_v41 }
 0x2b1   : > { %5645 = vmatpush.bf16.msra.mxu3 %v6482_v25  ;;  %v5393_v24 = vpop.f32.mrf.mxu3  ;;  %v6034_v25 = vor.u32 %v8071_v5, %v6031_v6  ;;  %v8255_v34 = vld [vmem:[%s9384_s21 + $0x5cc] sm:$0xf]  ;;  %v6767_v36 = vld [vmem:[%s9384_s21 + $0x5d8] sm:$0xf0] }
 0x2b2   : > { %5607 = vmatpush.bf16.msra.mxu0 %v6082_v28  ;;  %v7039_v28 = vld [vmem:[%s9384_s21 + $0x7f8] sm:$0xf0]  ;;  %v8287_v37 = vld [vmem:[%s9384_s21 + $0x6cc] sm:$0xf]  ;;  %v6770_v44 = vor.u32 %v8255_v34, %v6767_v36 }
 0x2b3   : > { %v7042_v35 = vor.u32 %v8323_v48, %v7039_v28  ;;  %v6895_v38 = vld [vmem:[%s9384_s21 + $0x6d8] sm:$0xf0]  ;;  %v8319_v40 = vld [vmem:[%s9384_s21 + $0x7cc] sm:$0xf] }
 0x2b4   : > { %5620 = vmatpush.bf16.msra.mxu1 %v6210_v29  ;;  %5633 = vmatpush.bf16.msra.mxu2 %v6338_v30  ;;  %v6418_v29 = vor.u32 %v8167_v15, %v6415_v16  ;;  %v6658_v30 = vor.u32 %v8227_v17, %v6655_v18  ;;  %v7023_v42 = vld [vmem:[%s9384_s21 + $0x7d8] sm:$0xf0]  ;;  %v8219_v50 = vld [vmem:[%s9384_s21 + $0x4ac] sm:$0xf] }
 0x2b5   : > { %5646 = vmatpush.bf16.msra.mxu3 %v6466_v33  ;;  %v6639_v33 = vld [vmem:[%s9384_s21 + $0x4d8] sm:$0xf0]  ;;  %v8283_v55 = vld [vmem:[%s9384_s21 + $0x6ac] sm:$0xf] }
 0x2b6   : > { %5608 = vmatpush.bf16.msra.mxu0 %v6066_v47  ;;  %v6642_v43 = vor.u32 %v8223_v32, %v6639_v33  ;;  %v6898_v47 = vor.u32 %v8287_v37, %v6895_v38  ;;  %v6623_v51 = vld [vmem:[%s9384_s21 + $0x4b8] sm:$0xf0]  ;;  %v8247_v3 = vld [vmem:[%s9384_s21 + $0x58c] sm:$0xf] }
 0x2b7   : > { %v6751_v54 = vld [vmem:[%s9384_s21 + $0x5b8] sm:$0xf0]  ;;  %v6626_v59 = vor.u32 %v8219_v50, %v6623_v51  ;;  %v8311_v6 = vld [vmem:[%s9384_s21 + $0x78c] sm:$0xf] }
 0x2b8   : > { %5621 = vmatpush.bf16.msra.mxu1 %v6194_v52  ;;  %5634 = vmatpush.bf16.msra.mxu2 %v6322_v53  ;;  %v8251_v52 = vld [vmem:[%s9384_s21 + $0x5ac] sm:$0xf]  ;;  %v7026_v53 = vor.u32 %v8319_v40, %v7023_v42  ;;  %v6879_v56 = vld [vmem:[%s9384_s21 + $0x6b8] sm:$0xf0] }
 0x2b9   : > { %5647 = vmatpush.bf16.msra.mxu3 %v6450_v57  ;;  %v8315_v57 = vld [vmem:[%s9384_s21 + $0x7ac] sm:$0xf]  ;;  %v7007_v58 = vld [vmem:[%s9384_s21 + $0x7b8] sm:$0xf0]  ;;  %v6754_v61 = vor.u32 %v8251_v52, %v6751_v54  ;;  %v6882_v62 = vor.u32 %v8283_v55, %v6879_v56 }
 0x2ba   : > { %5609 = vmatpush.bf16.msra.mxu0 %v6050_v4  ;;  %v6607_v63 = vld [vmem:[%s9384_s21 + $0x498] sm:$0xf0]  ;;  %v8211_v12 = vld [vmem:[%s9384_s21 + $0x46c] sm:$0xf] }
 0x2bb   : > { %v6735_v4 = vld [vmem:[%s9384_s21 + $0x598] sm:$0xf0]  ;;  %v8243_v14 = vld [vmem:[%s9384_s21 + $0x56c] sm:$0xf] }
 0x2bc   : > { %5622 = vmatpush.bf16.msra.mxu1 %v6178_v8  ;;  %5635 = vmatpush.bf16.msra.mxu2 %v6306_v9  ;;  %v6863_v5 = vld [vmem:[%s9384_s21 + $0x698] sm:$0xf0]  ;;  %v6738_v10 = vor.u32 %v8247_v3, %v6735_v4  ;;  %v8275_v17 = vld [vmem:[%s9384_s21 + $0x66c] sm:$0xf] }
 0x2bd   : > { %5648 = vmatpush.bf16.msra.mxu3 %v6434_v13  ;;  %v6991_v8 = vld [vmem:[%s9384_s21 + $0x798] sm:$0xf0]  ;;  %v8307_v24 = vld [vmem:[%s9384_s21 + $0x76c] sm:$0xf] }
 0x2be   : > { %5610 = vmatpush.bf16.msra.mxu0 %v6034_v25  ;;  %v5404_v9 = vpop.f32.mrf.mxu0  ;;  %v6591_v13 = vld [vmem:[%s9384_s21 + $0x478] sm:$0xf0]  ;;  %v6994_v16 = vor.u32 %v8311_v6, %v6991_v8  ;;  %v8239_v48 = vld [vmem:[%s9384_s21 + $0x54c] sm:$0xf] }
 0x2bf   : > { %v6719_v49 = vld [vmem:[%s9384_s21 + $0x578] sm:$0xf0]  ;;  %v6594_v39 = vor.u32 %v8211_v12, %v6591_v13  ;;  %v8303_v34 = vld [vmem:[%s9384_s21 + $0x74c] sm:$0xf] }
 0x2c0   : > { %5623 = vmatpush.bf16.msra.mxu1 %v6162_v46  ;;  %5636 = vmatpush.bf16.msra.mxu2 %v6290_v45  ;;  %v5417_v15 = vpop.f32.mrf.mxu1  ;;  %v6847_v18 = vld [vmem:[%s9384_s21 + $0x678] sm:$0xf0]  ;;  %v6722_v27 = vor.u32 %v8243_v14, %v6719_v49  ;;  %v8207_v46 = vld [vmem:[%s9384_s21 + $0x44c] sm:$0xf] }
 0x2c1   : > { %5649 = vmatpush.bf16.msra.mxu3 %v6418_v29  ;;  %5611 = vmatmul.bf16.vlgmr.msra.gmra.mxu0 %v9491_v21  ;;  %v7010_v21 = vor.u32 %v8315_v57, %v7007_v58  ;;  %v5418_v23 = vadd.f32 %v5417_v15, %v5404_v9  ;;  %v6975_v25 = vld [vmem:[%s9384_s21 + $0x778] sm:$0xf0]  ;;  %v6850_v41 = vor.u32 %v8275_v17, %v6847_v18  ;;  %v8299_v55 = vld [vmem:[%s9384_s21 + $0x72c] sm:$0xf] }
 0x2c2   : > { %5655 = vmatpush.bf16.msrb.mxu0 %v6658_v30  ;;  %v6575_v45 = vld [vmem:[%s9384_s21 + $0x458] sm:$0xf0]  ;;  %v6978_v29 = vor.u32 %v8307_v24, %v6975_v25  ;;  %v8199_v58 = vld [vmem:[%s9384_s21 + $0x40c] sm:$0xf] }
 0x2c3   : > { %5637 = vmatmul.bf16.vlgmr.msra.gmra.mxu2 %v9489_v20  ;;  %5624 = vmatmul.bf16.vlgmr.msra.gmra.mxu1 %v9498_v26  ;;  %v8215_v20 = vld [vmem:[%s9384_s21 + $0x48c] sm:$0xf]  ;;  %v6703_v30 = vld [vmem:[%s9384_s21 + $0x558] sm:$0xf0]  ;;  %v6578_v36 = vor.u32 %v8207_v46, %v6575_v45 }
 0x2c4   : > { %5668 = vmatpush.bf16.msrb.mxu1 %v6786_v19  ;;  %5681 = vmatpush.bf16.msrb.mxu2 %v6914_v31  ;;  %v6610_v26 = vor.u32 %v8215_v20, %v6607_v63  ;;  %v8271_v19 = vld [vmem:[%s9384_s21 + $0x64c] sm:$0xf]  ;;  %v6831_v31 = vld [vmem:[%s9384_s21 + $0x658] sm:$0xf0]  ;;  %v6706_v40 = vor.u32 %v8239_v48, %v6703_v30 }
 0x2c5   : > { %5694 = vmatpush.bf16.msrb.mxu3 %v7042_v35  ;;  %v6959_v35 = vld [vmem:[%s9384_s21 + $0x758] sm:$0xf0]  ;;  %v6834_v42 = vor.u32 %v8271_v19, %v6831_v31  ;;  %v8231_v20 = vld [vmem:[%s9384_s21 + $0x50c] sm:$0xf] }
 0x2c6   : > { %5650 = vmatmul.bf16.vlgmr.msra.gmra.mxu3 %v9493_v22  ;;  %5656 = vmatpush.bf16.msrb.mxu0 %v6642_v43  ;;  %v8279_v22 = vld [vmem:[%s9384_s21 + $0x68c] sm:$0xf]  ;;  %v5430_v28 = vpop.f32.mrf.mxu2  ;;  %v5406_v38 = vpop.f32.mrf.mxu0  ;;  %v6962_v51 = vor.u32 %v8303_v34, %v6959_v35  ;;  %v6687_v52 = vld [vmem:[%s9384_s21 + $0x538] sm:$0xf0] }
 0x2c7   : > { %v6866_v11 = vor.u32 %v8279_v22, %v6863_v5  ;;  %v5431_v32 = vadd.f32 %v5430_v28, %v5418_v23  ;;  %v8203_v43 = vld [vmem:[%s9384_s21 + $0x42c] sm:$0xf]  ;;  %v6815_v54 = vld [vmem:[%s9384_s21 + $0x638] sm:$0xf0] }
 0x2c8   : > { %5669 = vmatpush.bf16.msrb.mxu1 %v6770_v44  ;;  %5682 = vmatpush.bf16.msrb.mxu2 %v6898_v47  ;;  %v6559_v44 = vld [vmem:[%s9384_s21 + $0x438] sm:$0xf0]  ;;  %v8235_v47 = vld [vmem:[%s9384_s21 + $0x52c] sm:$0xf]  ;;  %v5419_v50 = vpop.f32.mrf.mxu1 }
 0x2c9   : > { %5695 = vmatpush.bf16.msrb.mxu3 %v7026_v53  ;;  %v5443_v33 = vpop.f32.mrf.mxu3  ;;  %v8267_v53 = vld [vmem:[%s9384_s21 + $0x62c] sm:$0xf]  ;;  %v6943_v56 = vld [vmem:[%s9384_s21 + $0x738] sm:$0xf0]  ;;  %v6562_v57 = vor.u32 %v8203_v43, %v6559_v44 }
 0x2ca   : > { %5657 = vmatpush.bf16.msrb.mxu0 %v6626_v59  ;;  %v10340_v37 = vadd.f32 %v5443_v33, %v5431_v32  ;;  %v6543_v59 = vld [vmem:[%s9384_s21 + $0x418] sm:$0xf0]  ;;  %v8263_v3 = vld [vmem:[%s9384_s21 + $0x60c] sm:$0xf]  ;;  %v6946_v4 = vor.u32 %v8299_v55, %v6943_v56 }
 0x2cb   : > { %v6671_v63 = vld [vmem:[%s9384_s21 + $0x518] sm:$0xf0]  ;;  %v8295_v5 = vld [vmem:[%s9384_s21 + $0x70c] sm:$0xf] }
 0x2cc   : > { %5670 = vmatpush.bf16.msrb.mxu1 %v6754_v61  ;;  %5683 = vmatpush.bf16.msrb.mxu2 %v6882_v62  ;;  %v6690_v61 = vor.u32 %v8235_v47, %v6687_v52  ;;  %v6818_v62 = vor.u32 %v8267_v53, %v6815_v54  ;;  %v6799_v22 = vld [vmem:[%s9384_s21 + $0x618] sm:$0xf0]  ;;  %v8419_v13 = vld [vmem:[%s9384_s21 + $0xaec] sm:$0xf]  ;;  %v6674_v15 = vor.u32 %v8231_v20, %v6671_v63 }
 0x2cd   : > { %5696 = vmatpush.bf16.msrb.mxu3 %v7010_v21  ;;  %v6927_v6 = vld [vmem:[%s9384_s21 + $0x718] sm:$0xf0]  ;;  %v8451_v49 = vld [vmem:[%s9384_s21 + $0xbec] sm:$0xf] }
 0x2ce   : > { %5658 = vmatpush.bf16.msrb.mxu0 %v6610_v26  ;;  %v5432_v21 = vpop.f32.mrf.mxu2  ;;  %v8355_v26 = vld [vmem:[%s9384_s21 + $0x8ec] sm:$0xf]  ;;  %v7167_v9 = vld [vmem:[%s9384_s21 + $0x8f8] sm:$0xf0]  ;;  %v6930_v18 = vor.u32 %v8295_v5, %v6927_v6 }
 0x2cf   : > { %v7295_v12 = vld [vmem:[%s9384_s21 + $0x9f8] sm:$0xf0]  ;;  %v7170_v23 = vor.u32 %v8355_v26, %v7167_v9  ;;  %v8415_v48 = vld [vmem:[%s9384_s21 + $0xacc] sm:$0xf] }
 0x2d0   : > { %5671 = vmatpush.bf16.msrb.mxu1 %v6738_v10  ;;  %5684 = vmatpush.bf16.msrb.mxu2 %v6866_v11  ;;  %v8387_v10 = vld [vmem:[%s9384_s21 + $0x9ec] sm:$0xf]  ;;  %v6546_v11 = vor.u32 %v8199_v58, %v6543_v59  ;;  %v7423_v14 = vld [vmem:[%s9384_s21 + $0xaf8] sm:$0xf0] }
 0x2d1   : > { %5697 = vmatpush.bf16.msrb.mxu3 %v6994_v16  ;;  %v5445_v8 = vpop.f32.mrf.mxu3  ;;  %v6802_v16 = vor.u32 %v8263_v3, %v6799_v22  ;;  %v7551_v17 = vld [vmem:[%s9384_s21 + $0xbf8] sm:$0xf0]  ;;  %v7298_v24 = vor.u32 %v8387_v10, %v7295_v12  ;;  %v7426_v25 = vor.u32 %v8419_v13, %v7423_v14  ;;  %v8347_v33 = vld [vmem:[%s9384_s21 + $0x8ac] sm:$0xf] }
 0x2d2   : > { %5659 = vmatpush.bf16.msrb.mxu0 %v6594_v39  ;;  %v8351_v39 = vld [vmem:[%s9384_s21 + $0x8cc] sm:$0xf]  ;;  %v7554_v46 = vor.u32 %v8451_v49, %v7551_v17  ;;  %v7279_v45 = vld [vmem:[%s9384_s21 + $0x9d8] sm:$0xf0] }
 0x2d3   : > { %v7407_v28 = vld [vmem:[%s9384_s21 + $0xad8] sm:$0xf0]  ;;  %v8379_v35 = vld [vmem:[%s9384_s21 + $0x9ac] sm:$0xf] }
 0x2d4   : > { %5672 = vmatpush.bf16.msrb.mxu1 %v6722_v27  ;;  %5685 = vmatpush.bf16.msrb.mxu2 %v6850_v41  ;;  %v7151_v27 = vld [vmem:[%s9384_s21 + $0x8d8] sm:$0xf0]  ;;  %v8383_v41 = vld [vmem:[%s9384_s21 + $0x9cc] sm:$0xf]  ;;  %v7410_v32 = vor.u32 %v8415_v48, %v7407_v28 }
 0x2d5   : > { %5698 = vmatpush.bf16.msrb.mxu3 %v6978_v29  ;;  %v8447_v29 = vld [vmem:[%s9384_s21 + $0xbcc] sm:$0xf]  ;;  %v7535_v30 = vld [vmem:[%s9384_s21 + $0xbd8] sm:$0xf0]  ;;  %v7154_v19 = vor.u32 %v8351_v39, %v7151_v27  ;;  %v7282_v31 = vor.u32 %v8383_v41, %v7279_v45 }
 0x2d6   : > { %5660 = vmatpush.bf16.msrb.mxu0 %v6578_v36  ;;  %v7135_v34 = vld [vmem:[%s9384_s21 + $0x8b8] sm:$0xf0]  ;;  %v7538_v36 = vor.u32 %v8447_v29, %v7535_v30  ;;  %v8443_v43 = vld [vmem:[%s9384_s21 + $0xbac] sm:$0xf] }
 0x2d7   : > { %v7263_v38 = vld [vmem:[%s9384_s21 + $0x9b8] sm:$0xf0]  ;;  %v7138_v47 = vor.u32 %v8347_v33, %v7135_v34  ;;  %v8407_v54 = vld [vmem:[%s9384_s21 + $0xa8c] sm:$0xf] }
 0x2d8   : > { %5673 = vmatpush.bf16.msrb.mxu1 %v6706_v40  ;;  %5686 = vmatpush.bf16.msrb.mxu2 %v6834_v42  ;;  %v8411_v40 = vld [vmem:[%s9384_s21 + $0xaac] sm:$0xf]  ;;  %v7391_v42 = vld [vmem:[%s9384_s21 + $0xab8] sm:$0xf0] }
 0x2d9   : > { %5699 = vmatpush.bf16.msrb.mxu3 %v6962_v51  ;;  %v7519_v44 = vld [vmem:[%s9384_s21 + $0xbb8] sm:$0xf0]  ;;  %v7394_v50 = vor.u32 %v8411_v40, %v7391_v42  ;;  %v8343_v51 = vld [vmem:[%s9384_s21 + $0x88c] sm:$0xf] }
 0x2da   : > { %5661 = vmatpush.bf16.msrb.mxu0 %v6562_v57  ;;  %v7119_v52 = vld [vmem:[%s9384_s21 + $0x898] sm:$0xf0]  ;;  %v8439_v56 = vld [vmem:[%s9384_s21 + $0xb8c] sm:$0xf] }
 0x2db   : > { %v7247_v53 = vld [vmem:[%s9384_s21 + $0x998] sm:$0xf0]  ;;  %v8371_v63 = vld [vmem:[%s9384_s21 + $0x96c] sm:$0xf] }
 0x2dc   : > { %5674 = vmatpush.bf16.msrb.mxu1 %v6690_v61  ;;  %5687 = vmatpush.bf16.msrb.mxu2 %v6818_v62  ;;  %v7375_v55 = vld [vmem:[%s9384_s21 + $0xa98] sm:$0xf0]  ;;  %v8339_v62 = vld [vmem:[%s9384_s21 + $0x86c] sm:$0xf] }
 0x2dd   : > { %5700 = vmatpush.bf16.msrb.mxu3 %v6946_v4  ;;  %v7503_v57 = vld [vmem:[%s9384_s21 + $0xb98] sm:$0xf0]  ;;  %v7378_v61 = vor.u32 %v8407_v54, %v7375_v55  ;;  %v8403_v5 = vld [vmem:[%s9384_s21 + $0xa6c] sm:$0xf] }
 0x2de   : > { %5662 = vmatpush.bf16.msrb.mxu0 %v6546_v11  ;;  %v5456_v58 = vpop.f32.mrf.mxu0  ;;  %v7103_v20 = vld [vmem:[%s9384_s21 + $0x878] sm:$0xf0]  ;;  %v7506_v4 = vor.u32 %v8439_v56, %v7503_v57  ;;  %v8435_v8 = vld [vmem:[%s9384_s21 + $0xb6c] sm:$0xf] }
 0x2df   : > { %v5457_v3 = vadd.f32 %v5456_v58, %v10340_v37  ;;  %v7231_v22 = vld [vmem:[%s9384_s21 + $0x978] sm:$0xf0]  ;;  %v7106_v10 = vor.u32 %v8339_v62, %v7103_v20  ;;  %v8335_v12 = vld [vmem:[%s9384_s21 + $0x84c] sm:$0xf] }
 0x2e0   : > { %5675 = vmatpush.bf16.msrb.mxu1 %v6674_v15  ;;  %5688 = vmatpush.bf16.msrb.mxu2 %v6802_v16  ;;  %v5469_v21 = vpop.f32.mrf.mxu1  ;;  %v7359_v6 = vld [vmem:[%s9384_s21 + $0xa78] sm:$0xf0]  ;;  %v7234_v37 = vor.u32 %v8371_v63, %v7231_v22  ;;  %v8367_v14 = vld [vmem:[%s9384_s21 + $0x94c] sm:$0xf] }
 0x2e1   : > { %5701 = vmatpush.bf16.msrb.mxu3 %v6930_v18  ;;  %5663 = vmatmul.bf16.vlgmr.msrb.gmra.mxu0 %v9532_v0  ;;  %v8375_v0 = vld [vmem:[%s9384_s21 + $0x98c] sm:$0xf]  ;;  %v7487_v26 = vld [vmem:[%s9384_s21 + $0xb78] sm:$0xf0]  ;;  %v5470_v9 = vadd.f32 %v5469_v21, %v5457_v3  ;;  %v7362_v11 = vor.u32 %v8403_v5, %v7359_v6 }
 0x2e2   : > { %5707 = vmatpush.bf16.msra.mxu0 %v7170_v23  ;;  %v7250_v59 = vor.u32 %v8375_v0, %v7247_v53  ;;  %v7087_v13 = vld [vmem:[%s9384_s21 + $0x858] sm:$0xf0]  ;;  %v7490_v16 = vor.u32 %v8435_v8, %v7487_v26  ;;  %v8399_v17 = vld [vmem:[%s9384_s21 + $0xa4c] sm:$0xf] }
 0x2e3   : > { %5689 = vmatmul.bf16.vlgmr.msrb.gmra.mxu2 %v9527_v60  ;;  %5676 = vmatmul.bf16.vlgmr.msrb.gmra.mxu1 %v9536_v2  ;;  %v7266_v60 = vor.u32 %v8379_v35, %v7263_v38  ;;  %v7122_v2 = vor.u32 %v8343_v51, %v7119_v52  ;;  %v7215_v49 = vld [vmem:[%s9384_s21 + $0x958] sm:$0xf0]  ;;  %v7090_v27 = vor.u32 %v8335_v12, %v7087_v13  ;;  %v8331_v28 = vld [vmem:[%s9384_s21 + $0x82c] sm:$0xf] }
 0x2e4   : > { %5720 = vmatpush.bf16.msra.mxu1 %v7298_v24  ;;  %5733 = vmatpush.bf16.msra.mxu2 %v7426_v25  ;;  %v7343_v18 = vld [vmem:[%s9384_s21 + $0xa58] sm:$0xf0]  ;;  %v8431_v25 = vld [vmem:[%s9384_s21 + $0xb4c] sm:$0xf]  ;;  %v7218_v45 = vor.u32 %v8367_v14, %v7215_v49 }
 0x2e5   : > { %5746 = vmatpush.bf16.msra.mxu3 %v7554_v46  ;;  %v7471_v39 = vld [vmem:[%s9384_s21 + $0xb58] sm:$0xf0]  ;;  %v7346_v48 = vor.u32 %v8399_v17, %v7343_v18  ;;  %v8363_v30 = vld [vmem:[%s9384_s21 + $0x92c] sm:$0xf] }
 0x2e6   : > { %5702 = vmatmul.bf16.vlgmr.msrb.gmra.mxu3 %v9534_v1  ;;  %5708 = vmatpush.bf16.msra.mxu0 %v7154_v19  ;;  %v7522_v1 = vor.u32 %v8443_v43, %v7519_v44  ;;  %v5482_v15 = vpop.f32.mrf.mxu2  ;;  %v5458_v46 = vpop.f32.mrf.mxu0  ;;  %v7071_v29 = vld [vmem:[%s9384_s21 + $0x838] sm:$0xf0]  ;;  %v8395_v33 = vld [vmem:[%s9384_s21 + $0xa2c] sm:$0xf] }
 0x2e7   : > { %v5483_v23 = vadd.f32 %v5482_v15, %v5470_v9  ;;  %v7327_v34 = vld [vmem:[%s9384_s21 + $0xa38] sm:$0xf0]  ;;  %v8427_v35 = vld [vmem:[%s9384_s21 + $0xb2c] sm:$0xf]  ;;  %v7074_v38 = vor.u32 %v8331_v28, %v7071_v29  ;;  %v8673_v29 = vld [vmem:[#allocation1 + $0x1b] sm:$0xff] }
 0x2e8   : > { %5721 = vmatpush.bf16.msra.mxu1 %v7282_v31  ;;  %5734 = vmatpush.bf16.msra.mxu2 %v7410_v32  ;;  %v5471_v19 = vpop.f32.mrf.mxu1  ;;  %v7474_v31 = vor.u32 %v8431_v25, %v7471_v39  ;;  %v7199_v32 = vld [vmem:[%s9384_s21 + $0x938] sm:$0xf0]  ;;  %v8327_v40 = vld [vmem:[%s9384_s21 + $0x80c] sm:$0xf]  ;;  %v7330_v44 = vor.u32 %v8395_v33, %v7327_v34 }
 0x2e9   : > { %5747 = vmatpush.bf16.msra.mxu3 %v7538_v36  ;;  %v5495_v24 = vpop.f32.mrf.mxu3  ;;  %v7455_v36 = vld [vmem:[%s9384_s21 + $0xb38] sm:$0xf0]  ;;  %v7202_v43 = vor.u32 %v8363_v30, %v7199_v32  ;;  %v8483_v55 = vld [vmem:[%s9384_s21 + $0xcec] sm:$0xf] }
 0x2ea   : > { %5709 = vmatpush.bf16.msra.mxu0 %v7138_v47  ;;  %v10411_v41 = vadd.f32 %v5495_v24, %v5483_v23  ;;  %v7055_v42 = vld [vmem:[%s9384_s21 + $0x818] sm:$0xf0]  ;;  %v8359_v47 = vld [vmem:[%s9384_s21 + $0x90c] sm:$0xf]  ;;  %v7458_v52 = vor.u32 %v8427_v35, %v7455_v36 }
 0x2eb   : > { %v7311_v0 = vld [vmem:[%s9384_s21 + $0xa18] sm:$0xf0]  ;;  %v8515_v57 = vld [vmem:[%s9384_s21 + $0xdec] sm:$0xf] }
 0x2ec   : > { %5722 = vmatpush.bf16.msra.mxu1 %v7266_v60  ;;  %5735 = vmatpush.bf16.msra.mxu2 %v7394_v50  ;;  %v7183_v60 = vld [vmem:[%s9384_s21 + $0x918] sm:$0xf0]  ;;  %v8391_v50 = vld [vmem:[%s9384_s21 + $0xa0c] sm:$0xf] }
 0x2ed   : > { %5748 = vmatpush.bf16.msra.mxu3 %v7522_v1  ;;  %v8423_v1 = vld [vmem:[%s9384_s21 + $0xb0c] sm:$0xf]  ;;  %v7439_v53 = vld [vmem:[%s9384_s21 + $0xb18] sm:$0xf0]  ;;  %v7186_v62 = vor.u32 %v8359_v47, %v7183_v60  ;;  %v7314_v20 = vor.u32 %v8391_v50, %v7311_v0 }
 0x2ee   : > { %5710 = vmatpush.bf16.msra.mxu0 %v7122_v2  ;;  %v5484_v51 = vpop.f32.mrf.mxu2  ;;  %v7679_v56 = vld [vmem:[%s9384_s21 + $0xcf8] sm:$0xf0]  ;;  %v7058_v2 = vor.u32 %v8327_v40, %v7055_v42  ;;  %v8579_v63 = vld [vmem:[%s9384_s21 + $0xfec] sm:$0xf]  ;;  %v7442_v21 = vor.u32 %v8423_v1, %v7439_v53 }
 0x2ef   : > { %v7807_v58 = vld [vmem:[%s9384_s21 + $0xdf8] sm:$0xf0]  ;;  %v8479_v6 = vld [vmem:[%s9384_s21 + $0xccc] sm:$0xf] }
 0x2f0   : > { %5723 = vmatpush.bf16.msra.mxu1 %v7250_v59  ;;  %5736 = vmatpush.bf16.msra.mxu2 %v7378_v61  ;;  %v8547_v59 = vld [vmem:[%s9384_s21 + $0xeec] sm:$0xf]  ;;  %v7935_v61 = vld [vmem:[%s9384_s21 + $0xef8] sm:$0xf0]  ;;  %v7810_v22 = vor.u32 %v8515_v57, %v7807_v58 }
 0x2f1   : > { %5749 = vmatpush.bf16.msra.mxu3 %v7506_v4  ;;  %v5497_v54 = vpop.f32.mrf.mxu3  ;;  %v8063_v3 = vld [vmem:[%s9384_s21 + $0xff8] sm:$0xf0]  ;;  %v7682_v4 = vor.u32 %v8483_v55, %v7679_v56  ;;  %v7938_v5 = vor.u32 %v8547_v59, %v7935_v61  ;;  %v8511_v26 = vld [vmem:[%s9384_s21 + $0xdcc] sm:$0xf] }
 0x2f2   : > { %5711 = vmatpush.bf16.msra.mxu0 %v7106_v10  ;;  %v7663_v8 = vld [vmem:[%s9384_s21 + $0xcd8] sm:$0xf0]  ;;  %v8066_v9 = vor.u32 %v8579_v63, %v8063_v3  ;;  %v8575_v12 = vld [vmem:[%s9384_s21 + $0xfcc] sm:$0xf] }
 0x2f3   : > { %v7791_v10 = vld [vmem:[%s9384_s21 + $0xdd8] sm:$0xf0]  ;;  %v7666_v14 = vor.u32 %v8479_v6, %v7663_v8  ;;  %v8475_v49 = vld [vmem:[%s9384_s21 + $0xcac] sm:$0xf] }
 0x2f4   : > { %5724 = vmatpush.bf16.msra.mxu1 %v7234_v37  ;;  %5737 = vmatpush.bf16.msra.mxu2 %v7362_v11  ;;  %v8543_v37 = vld [vmem:[%s9384_s21 + $0xecc] sm:$0xf]  ;;  %v7919_v11 = vld [vmem:[%s9384_s21 + $0xed8] sm:$0xf0]  ;;  %v7794_v15 = vor.u32 %v8511_v26, %v7791_v10 }
 0x2f5   : > { %5750 = vmatpush.bf16.msra.mxu3 %v7490_v16  ;;  %v8047_v13 = vld [vmem:[%s9384_s21 + $0xfd8] sm:$0xf0]  ;;  %v7922_v16 = vor.u32 %v8543_v37, %v7919_v11  ;;  %v8507_v18 = vld [vmem:[%s9384_s21 + $0xdac] sm:$0xf] }
 0x2f6   : > { %5712 = vmatpush.bf16.msra.mxu0 %v7090_v27  ;;  %v7647_v17 = vld [vmem:[%s9384_s21 + $0xcb8] sm:$0xf0]  ;;  %v8050_v24 = vor.u32 %v8575_v12, %v8047_v13  ;;  %v8539_v39 = vld [vmem:[%s9384_s21 + $0xeac] sm:$0xf] }
 0x2f7   : > { %v8670_v23 = vld [vmem:[#allocation1] sm:$0xff]  ;;  %v8671_v46 = vld [vmem:[#allocation1 + $0x12] sm:$0xff]  ;;  %v7650_v30 = vor.u32 %v8475_v49, %v7647_v17 }
 0x2f8   : > { %5725 = vmatpush.bf16.msra.mxu1 %v7218_v45  ;;  %5738 = vmatpush.bf16.msra.mxu2 %v7346_v48  ;;  %v7775_v25 = vld [vmem:[%s9384_s21 + $0xdb8] sm:$0xf0]  ;;  %v8672_v45 = vld [vmem:[#allocation1 + $0x9] sm:$0xff]  ;;  %v8571_v48 = vld [vmem:[%s9384_s21 + $0xfac] sm:$0xf] }
 0x2f9   : > { %5751 = vmatpush.bf16.msra.mxu3 %v7474_v31  ;;  %v7903_v27 = vld [vmem:[%s9384_s21 + $0xeb8] sm:$0xf0]  ;;  %v7778_v19 = vor.u32 %v8507_v18, %v7775_v25  ;;  %v8471_v32 = vld [vmem:[%s9384_s21 + $0xc8c] sm:$0xf] }
 0x2fa   : > { %5713 = vmatpush.bf16.msra.mxu0 %v7074_v38  ;;  %v8031_v28 = vld [vmem:[%s9384_s21 + $0xfb8] sm:$0xf0]  ;;  %v7906_v31 = vor.u32 %v8539_v39, %v7903_v27  ;;  %v8503_v34 = vld [vmem:[%s9384_s21 + $0xd8c] sm:$0xf] }
 0x2fb   : > { %v7631_v33 = vld [vmem:[%s9384_s21 + $0xc98] sm:$0xf0]  ;;  %v8034_v35 = vor.u32 %v8571_v48, %v8031_v28  ;;  %v8535_v38 = vld [vmem:[%s9384_s21 + $0xe8c] sm:$0xf] }
 0x2fc   : > { %5726 = vmatpush.bf16.msra.mxu1 %v7202_v43  ;;  %5739 = vmatpush.bf16.msra.mxu2 %v7330_v44  ;;  %v7759_v36 = vld [vmem:[%s9384_s21 + $0xd98] sm:$0xf0]  ;;  %v8567_v43 = vld [vmem:[%s9384_s21 + $0xf8c] sm:$0xf]  ;;  %v7634_v60 = vor.u32 %v8471_v32, %v7631_v33 }
 0x2fd   : > { %5752 = vmatpush.bf16.msra.mxu3 %v7458_v52  ;;  %v7887_v40 = vld [vmem:[%s9384_s21 + $0xe98] sm:$0xf0]  ;;  %v7762_v51 = vor.u32 %v8503_v34, %v7759_v36  ;;  %v8467_v0 = vld [vmem:[%s9384_s21 + $0xc6c] sm:$0xf] }
 0x2fe   : > { %5714 = vmatpush.bf16.msra.mxu0 %v7058_v2  ;;  %v5508_v42 = vpop.f32.mrf.mxu0  ;;  %v8015_v44 = vld [vmem:[%s9384_s21 + $0xf98] sm:$0xf0]  ;;  %v7890_v52 = vor.u32 %v8535_v38, %v7887_v40  ;;  %v8499_v53 = vld [vmem:[%s9384_s21 + $0xd6c] sm:$0xf] }
 0x2ff   : > { %v5509_v47 = vadd.f32 %v5508_v42, %v10411_v41  ;;  %v7615_v1 = vld [vmem:[%s9384_s21 + $0xc78] sm:$0xf0]  ;;  %v8018_v54 = vor.u32 %v8567_v43, %v8015_v44  ;;  %v8531_v57 = vld [vmem:[%s9384_s21 + $0xe6c] sm:$0xf] }
 0x300   : > { %5727 = vmatpush.bf16.msra.mxu1 %v7186_v62  ;;  %5740 = vmatpush.bf16.msra.mxu2 %v7314_v20  ;;  %v5521_v50 = vpop.f32.mrf.mxu1  ;;  %v7743_v56 = vld [vmem:[%s9384_s21 + $0xd78] sm:$0xf0]  ;;  %v8563_v2 = vld [vmem:[%s9384_s21 + $0xf6c] sm:$0xf]  ;;  %v7618_v59 = vor.u32 %v8467_v0, %v7615_v1 }
 0x301   : > { %5753 = vmatpush.bf16.msra.mxu3 %v7442_v21  ;;  %5715 = vmatmul.bf16.vlgmr.msra.gmra.mxu0 %v8670_v23  ;;  %v5522_v55 = vadd.f32 %v5521_v50, %v5509_v47  ;;  %v7871_v41 = vld [vmem:[%s9384_s21 + $0xe78] sm:$0xf0]  ;;  %v7746_v61 = vor.u32 %v8499_v53, %v7743_v56  ;;  %v8463_v20 = vld [vmem:[%s9384_s21 + $0xc4c] sm:$0xf] }
 0x302   : > { %5759 = vmatpush.bf16.msrb.mxu0 %v7682_v4  ;;  %v7999_v58 = vld [vmem:[%s9384_s21 + $0xf78] sm:$0xf0]  ;;  %v7874_v62 = vor.u32 %v8531_v57, %v7871_v41  ;;  %v8495_v3 = vld [vmem:[%s9384_s21 + $0xd4c] sm:$0xf] }
 0x303   : > { %5741 = vmatmul.bf16.vlgmr.msra.gmra.mxu2 %v8671_v46  ;;  %5728 = vmatmul.bf16.vlgmr.msra.gmra.mxu1 %v8672_v45  ;;  %v7599_v63 = vld [vmem:[%s9384_s21 + $0xc58] sm:$0xf0]  ;;  %v8002_v21 = vor.u32 %v8563_v2, %v7999_v58  ;;  %v8491_v17 = vld [vmem:[%s9384_s21 + $0xd2c] sm:$0xf] }
 0x304   : > { %5772 = vmatpush.bf16.msrb.mxu1 %v7810_v22  ;;  %5785 = vmatpush.bf16.msrb.mxu2 %v7938_v5  ;;  %v7727_v22 = vld [vmem:[%s9384_s21 + $0xd58] sm:$0xf0]  ;;  %v8527_v5 = vld [vmem:[%s9384_s21 + $0xe4c] sm:$0xf]  ;;  %v7602_v11 = vor.u32 %v8463_v20, %v7599_v63 }
 0x305   : > { %5798 = vmatpush.bf16.msrb.mxu3 %v8066_v9  ;;  %v7855_v6 = vld [vmem:[%s9384_s21 + $0xe58] sm:$0xf0]  ;;  %v8559_v9 = vld [vmem:[%s9384_s21 + $0xf4c] sm:$0xf] }
 0x306   : > { %5754 = vmatmul.bf16.vlgmr.msra.gmra.mxu3 %v8673_v29  ;;  %5760 = vmatpush.bf16.msrb.mxu0 %v7666_v14  ;;  %v5534_v4 = vpop.f32.mrf.mxu2  ;;  %v7983_v10 = vld [vmem:[%s9384_s21 + $0xf58] sm:$0xf0]  ;;  %v5510_v37 = vpop.f32.mrf.mxu0  ;;  %v7730_v14 = vor.u32 %v8495_v3, %v7727_v22  ;;  %v8555_v39 = vld [vmem:[%s9384_s21 + $0xf2c] sm:$0xf] }
 0x307   : > { %v5535_v8 = vadd.f32 %v5534_v4, %v5522_v55  ;;  %v7583_v49 = vld [vmem:[%s9384_s21 + $0xc38] sm:$0xf0]  ;;  %v7986_v18 = vor.u32 %v8559_v9, %v7983_v10  ;;  %v8455_v28 = vld [vmem:[%s9384_s21 + $0xc0c] sm:$0xf] }
 0x308   : > { %5773 = vmatpush.bf16.msrb.mxu1 %v7794_v15  ;;  %5786 = vmatpush.bf16.msrb.mxu2 %v7922_v16  ;;  %v5523_v12 = vpop.f32.mrf.mxu1  ;;  %v7858_v15 = vor.u32 %v8527_v5, %v7855_v6  ;;  %v8459_v16 = vld [vmem:[%s9384_s21 + $0xc2c] sm:$0xf]  ;;  %v7711_v23 = vld [vmem:[%s9384_s21 + $0xd38] sm:$0xf0] }
 0x309   : > { %5799 = vmatpush.bf16.msrb.mxu3 %v8050_v24  ;;  %v5547_v26 = vpop.f32.mrf.mxu3  ;;  %v8523_v24 = vld [vmem:[%s9384_s21 + $0xe2c] sm:$0xf]  ;;  %v7839_v25 = vld [vmem:[%s9384_s21 + $0xe38] sm:$0xf0]  ;;  %v7586_v46 = vor.u32 %v8459_v16, %v7583_v49  ;;  %v7714_v45 = vor.u32 %v8491_v17, %v7711_v23 }
 0x30a   : > { %5761 = vmatpush.bf16.msrb.mxu0 %v7650_v30  ;;  %v5548_v13 = vadd.f32 %v5547_v26, %v5535_v8  ;;  %v7967_v27 = vld [vmem:[%s9384_s21 + $0xf38] sm:$0xf0]  ;;  %v7842_v48 = vor.u32 %v8523_v24, %v7839_v25  ;;  %v8487_v30 = vld [vmem:[%s9384_s21 + $0xd0c] sm:$0xf] }
 0x30b   : > { %v7567_v29 = vld [vmem:[%s9384_s21 + $0xc18] sm:$0xf0]  ;;  %v8519_v32 = vld [vmem:[%s9384_s21 + $0xe0c] sm:$0xf] }
 0x30c   : > { %5774 = vmatpush.bf16.msrb.mxu1 %v7778_v19  ;;  %5787 = vmatpush.bf16.msrb.mxu2 %v7906_v31  ;;  %v7970_v19 = vor.u32 %v8555_v39, %v7967_v27  ;;  %v7695_v31 = vld [vmem:[%s9384_s21 + $0xd18] sm:$0xf0]  ;;  %v7570_v40 = vor.u32 %v8455_v28, %v7567_v29  ;;  %v8676_v50 = vld [vmem:[#allocation1 + $0x36] sm:$0xff] }
 0x30d   : > { %5800 = vmatpush.bf16.msrb.mxu3 %v8034_v35  ;;  %v7823_v33 = vld [vmem:[%s9384_s21 + $0xe18] sm:$0xf0]  ;;  %v8551_v35 = vld [vmem:[%s9384_s21 + $0xf0c] sm:$0xf]  ;;  %v7698_v42 = vor.u32 %v8487_v30, %v7695_v31  ;;  %v5831_v30 = vld [vmem:[%s1851_s29] sm:$0xf] }
 0x30e   : > { %5762 = vmatpush.bf16.msrb.mxu0 %v7634_v60  ;;  %v5536_v34 = vpop.f32.mrf.mxu2  ;;  %v7951_v36 = vld [vmem:[%s9384_s21 + $0xf18] sm:$0xf0]  ;;  %v7826_v43 = vor.u32 %v8519_v32, %v7823_v33  ;;  %v8675_v60 = vld [vmem:[#allocation1 + $0x2d] sm:$0xff]  ;;  %v5845_v32 = vld [vmem:[%s1856_s6] sm:$0xf] }
 0x30f   : > { %v7954_v44 = vor.u32 %v8551_v35, %v7951_v36  ;;  %v8674_v47 = vld [vmem:[#allocation1 + $0x24] sm:$0xff]  ;;  %v5834_v35 = vperm.slane %v5831_v30, 1  ;;  %v5835_v36 = vperm.slane %v5831_v30, 2 }
 0x310   : > { %5775 = vmatpush.bf16.msrb.mxu1 %v7762_v51  ;;  %5788 = vmatpush.bf16.msrb.mxu2 %v7890_v52  ;;  %v8677_v51 = vld [vmem:[#allocation1 + $0x3f] sm:$0xff] }
 0x311   : > { %5801 = vmatpush.bf16.msrb.mxu3 %v8018_v54  ;;  %v5549_v38 = vpop.f32.mrf.mxu3 }
 0x312   : > { %5763 = vmatpush.bf16.msrb.mxu0 %v7618_v59  ;;  %v5836_v38 = vperm.slane %v5831_v30, 3 }
 0x314   : > { %5776 = vmatpush.bf16.msrb.mxu1 %v7746_v61  ;;  %5789 = vmatpush.bf16.msrb.mxu2 %v7874_v62 }
 0x315   : > { %5802 = vmatpush.bf16.msrb.mxu3 %v8002_v21 }
 0x316   : > { %5764 = vmatpush.bf16.msrb.mxu0 %v7602_v11 }
 0x318   : > { %5777 = vmatpush.bf16.msrb.mxu1 %v7730_v14  ;;  %5790 = vmatpush.bf16.msrb.mxu2 %v7858_v15 }
 0x319   : > { %5803 = vmatpush.bf16.msrb.mxu3 %v7986_v18 }
 0x31a   : > { %5765 = vmatpush.bf16.msrb.mxu0 %v7586_v46 }
 0x31c   : > { %5778 = vmatpush.bf16.msrb.mxu1 %v7714_v45  ;;  %5791 = vmatpush.bf16.msrb.mxu2 %v7842_v48 }
 0x31d   : > { %5804 = vmatpush.bf16.msrb.mxu3 %v7970_v19 }
 0x31e   : > { %5766 = vmatpush.bf16.msrb.mxu0 %v7570_v40  ;;  %v5560_v52 = vpop.f32.mrf.mxu0  ;;  %v5848_v40 = vperm.slane %v5845_v32, 1 }
 0x31f   : > { %v5561_v0 = vadd.f32 %v5560_v52, %v5548_v13  ;;  %v5847_v52 = vperm.slane %v5845_v32, 0 }
 0x320   : > { %5779 = vmatpush.bf16.msrb.mxu1 %v7698_v42  ;;  %5792 = vmatpush.bf16.msrb.mxu2 %v7826_v43  ;;  %v5573_v1 = vpop.f32.mrf.mxu1  ;;  %v5849_v42 = vperm.slane %v5845_v32, 2  ;;  %v5850_v43 = vperm.slane %v5845_v32, 3 }
 0x321   : > { %5805 = vmatpush.bf16.msrb.mxu3 %v7954_v44  ;;  %5767 = vmatmul.bf16.vlgmr.msrb.gmra.mxu0 %v8674_v47  ;;  %v5574_v53 = vadd.f32 %v5573_v1, %v5561_v0  ;;  %v5833_v44 = vperm.slane %v5831_v30, 0  ;;  %v5851_v1 = vrot.slane %v5848_v40, 6 }
 0x323   : > { %5780 = vmatmul.bf16.vlgmr.msrb.gmra.mxu1 %v8675_v60  ;;  %5793 = vmatmul.bf16.vlgmr.msrb.gmra.mxu2 %v8676_v50  ;;  %v5837_v60 = vrot.slane %v5834_v35, 6  ;;  %v5838_v50 = vrot.slane %v5835_v36, 4 }
 0x324   : > { %5806 = vmatmul.bf16.vlgmr.msrb.gmra.mxu3 %v8677_v51  ;;  %v5839_v51 = vrot.slane %v5836_v38, 2 }
 0x326   : > { %v5586_v54 = vpop.f32.mrf.mxu2  ;;  %v5562_v57 = vpop.f32.mrf.mxu0 }
 0x327   : > { %v5587_v55 = vadd.f32 %v5586_v54, %v5574_v53 }
 0x328   : > { %v5575_v41 = vpop.f32.mrf.mxu1 }
 0x329   : > { %v5599_v56 = vpop.f32.mrf.mxu3 }
 0x32a   : > { %v10494_v2 = vadd.f32 %v5599_v56, %v5587_v55  ;;  %v5852_v55 = vrot.slane %v5849_v42, 4  ;;  %v5853_v56 = vrot.slane %v5850_v43, 2 }
 0x32e   : > { %v5588_v58 = vpop.f32.mrf.mxu2 }
 0x331   : > { %v5601_v59 = vpop.f32.mrf.mxu3 }
 0x332   : > { %v5840_v59 = vsel %vm5818_vm0, %v5833_v44, %v5837_v60 }
 0x33e   : > { %v5612_v61 = vpop.f32.mrf.mxu0 }
 0x340   : > { %v5625_v62 = vpop.f32.mrf.mxu1 }
 0x341   : > { %v5626_v20 = vadd.f32 %v5625_v62, %v5612_v61  ;;  %v5841_v61 = vsel %vm5820_vm1, %v5838_v50, %v5839_v51  ;;  %v5854_v62 = vsel %vm5818_vm0, %v5847_v52, %v5851_v1 }
 0x346   : > { %v5638_v63 = vpop.f32.mrf.mxu2  ;;  %v5614_v22 = vpop.f32.mrf.mxu0 }
 0x347   : > { %v5639_v3 = vadd.f32 %v5638_v63, %v5626_v20  ;;  %v5816_v20 = vrot.slane %v10494_v2, 4 }
 0x348   : > { %v5627_v5 = vpop.f32.mrf.mxu1 }
 0x349   : > { %v5651_v21 = vpop.f32.mrf.mxu3 }
 0x34a   : > { %v5652_v4 = vadd.f32 %v5651_v21, %v5639_v3  ;;  %v5855_v3 = vsel %vm5820_vm1, %v5852_v55, %v5853_v56  ;;  %v5842_v21 = vsel %vm5822_vm2, %v5840_v59, %v5841_v61 }
 0x34b   : > { %v5856_v5 = vsel %vm5822_vm2, %v5854_v62, %v5855_v3 }
 0x34e   : > { %v5640_v6 = vpop.f32.mrf.mxu2 }
 0x351   : > { %v5653_v8 = vpop.f32.mrf.mxu3 }
 0x35e   : > { %v5664_v26 = vpop.f32.mrf.mxu0 }
 0x35f   : > { %v5665_v49 = vadd.f32 %v5664_v26, %v5652_v4 }
 0x360   : > { %v5677_v9 = vpop.f32.mrf.mxu1 }
 0x361   : > { %v5678_v24 = vadd.f32 %v5677_v9, %v5665_v49 }
 0x366   : > { %v5690_v10 = vpop.f32.mrf.mxu2  ;;  %v5666_v11 = vpop.f32.mrf.mxu0 }
 0x367   : > { %v5691_v39 = vadd.f32 %v5690_v10, %v5678_v24 }
 0x368   : > { %v5679_v12 = vpop.f32.mrf.mxu1 }
 0x369   : > { %v5703_v37 = vpop.f32.mrf.mxu3 }
 0x36a   : > { %v5704_v45 = vadd.f32 %v5703_v37, %v5691_v39 }
 0x36e   : > { %v5692_v13 = vpop.f32.mrf.mxu2 }
 0x371   : > { %v5705_v14 = vpop.f32.mrf.mxu3 }
 0x37e   : > { %v5716_v15 = vpop.f32.mrf.mxu0 }
 0x37f   : > { %v5717_v48 = vadd.f32 %v5716_v15, %v5704_v45 }
 0x380   : > { %v5729_v16 = vpop.f32.mrf.mxu1 }
 0x381   : > { %v5730_v28 = vadd.f32 %v5729_v16, %v5717_v48 }
 0x386   : > { %v5742_v17 = vpop.f32.mrf.mxu2  ;;  %v5718_v23 = vpop.f32.mrf.mxu0 }
 0x387   : > { %v5743_v29 = vadd.f32 %v5742_v17, %v5730_v28 }
 0x388   : > { %v5731_v25 = vpop.f32.mrf.mxu1 }
 0x389   : > { %v5755_v18 = vpop.f32.mrf.mxu3 }
 0x38a   : > { %v5756_v19 = vadd.f32 %v5755_v18, %v5743_v29 }
 0x38e   : > { %v5744_v27 = vpop.f32.mrf.mxu2 }
 0x391   : > { %v5757_v46 = vpop.f32.mrf.mxu3 }
 0x39e   : > { %v5768_v31 = vpop.f32.mrf.mxu0 }
 0x39f   : > { %v5769_v34 = vadd.f32 %v5768_v31, %v5756_v19 }
 0x3a0   : > { %v5781_v33 = vpop.f32.mrf.mxu1 }
 0x3a1   : > { %v5782_v47 = vadd.f32 %v5781_v33, %v5769_v34 }
 0x3a6   : > { %v5794_v0 = vpop.f32.mrf.mxu2  ;;  %v5770_v57 = vpop.f32.mrf.mxu0 }
 0x3a7   : > { %v5795_v53 = vadd.f32 %v5794_v0, %v5782_v47  ;;  %v5807_v54 = vpop.f32.mrf.mxu3 }
 0x3a8   : > { %v5783_v41 = vpop.f32.mrf.mxu1 }
 0x3a9   : > { %v5808_v58 = vadd.f32 %v5807_v54, %v5795_v53 }
 0x3ab   : > { %v5817_v63 = vrot.slane %v5808_v58, 2 }
 0x3ad   : > { %v5821_v4 = vsel %vm5820_vm1, %v5816_v20, %v5817_v63 }
 0x3ae   : > { %v5823_v22 = vsel %vm5822_vm2, %v10280_v7, %v5821_v4  ;;  %v5796_v6 = vpop.f32.mrf.mxu2 }
 0x3af   : > { %v5844_v8 = vmul.f32 %v5842_v21, %v5823_v22  ;;  %v5809_v26 = vpop.f32.mrf.mxu3 }
 0x3b1   : > { %v5858_v9 = vadd.f32 %v5856_v5, %v5844_v8 }
 0x3b3   : > { %v5859_v10 = vmax.f32 %v5858_v9, 0.0 }
 0x3b5   : > { %5861 = vst [vmem:[#allocation1] ss:$4 sm:$0xff] %v5859_v10 }
 0x3bc   : > { %v5862_v37 = vld.sshfl [vmem:[#allocation1] sm:$0xff pattern:$0x73625140]  ;;  %v5863_v11 = vld.sshfl [vmem:[#allocation1 + $0x8] sm:$0xff pattern:$0x73625140] }
 0x3bd   : > { %v5864_v12 = vld.sshfl [vmem:[#allocation1 + $0x10] sm:$0xff pattern:$0x73625140]  ;;  %v5865_v2 = vld.sshfl [vmem:[#allocation1 + $0x18] sm:$0xff pattern:$0x73625140]  ;;  %v5870_v13 = vpack.c.bf16 %v5863_v11, %v5862_v37 }
 0x3be   : > { %v5871_v14 = vpack.c.bf16 %v5865_v2, %v5864_v12 }
 0x3bf   : > { %v5874_v15 = vrot.slane %v5870_v13, 3 }
 0x3c0   : > { %v5875_v16 = vrot.slane %v5871_v14, 6  ;;  %v5876_v49 = vrot.slane %v5871_v14, 1 }
 0x3c1   : > { %v5880_v7 = vsel %vm5877_vm3, %v5870_v13, %v5874_v15 }
 0x3c2   : > { %v5884_v17 = vsel %vm5881_vm4, %v5875_v16, %v5876_v49 }
 0x3c3   : > { %v5885_v18 = vsel %vm5818_vm0, %v5880_v7, %v5884_v17 }
 0x3c4   : > { %5887 = vst [vmem:[%s1861_s8] sm:$0xf] %v5885_v18 }
 0x3c5 PF: > { %s14_s19 = sadd.s32 1, %s8732_s19   ;;  %s10544_s15 = smov %s8720_s16 }
 0x3c6   : > { %p11_p12 = scmp.ge.s32.totalorder %s14_s19, 4   ;;  %s10545_s16 = smov %s8810_s23 }
 0x3c7   : > { %s10546_s17 = smov %s8728_s18  ;;  %s10547_s18 = smov %s10549_s20 }
 0x3c8   :  { %13 = sbr.rel (!%p11_p12) target bundleno = 3 (0x3), region = 138 }

</bundles_post_ra>
